<compile_context>
chip_gen: v6e
topology: v6e:2x2x1
jax: 0.10.0
libtpu: 0.0.40
codegen_flags: <defaults>
</compile_context>

<pallas_src>
import jax
import jax.numpy as jnp
from jax.experimental import pallas as pl
from jax.experimental.pallas import tpu as pltpu


# ----------------------------------------------------------------------------
# Fused forward kernel: one grid step == one dialogue (batch element).
# ----------------------------------------------------------------------------
def _make_forward_kernel(N, EMB, D, L, n_hidden, C):
    inv_n = 1.0 / float(N)
    f32 = jnp.float32

    def kernel(feat_ref, bias_ref, smT_ref, t_ref,
               fc1w_ref, fc1b_ref,
               wq_ref, bq_ref, wm_ref, bm_ref, wat_ref,
               pcwh_ref, pcwf_ref, pcb_ref,
               lstw_ref, lstb_ref,
               mhw_ref, mhb_ref, mow_ref, mob_ref,
               out_ref, *h_scratch):
        feat = feat_ref[0]                                        # (N, EMB)

        # ---- fc1 + ReLU:  H0 = relu(features @ W1 + b1) ----
        H0 = jnp.maximum(
            jnp.dot(feat, fc1w_ref[...], preferred_element_type=f32) + fc1b_ref[...],
            0.0)

        bias_all = bias_ref[0]                                    # (N, N) [j, i] adj+causal bias
        sm_all = smT_ref[0]                                       # (N, N) [j, i] = s_mask[i, j]

        H_levels = [H0]
        for l in range(L):
            Wq = wq_ref[l]                                        # (D, 6D+1)
            bq = bq_ref[l]                                        # (1, 6D+1)
            Wm = wm_ref[l]                                        # (D, 6D)
            bm = bm_ref[l]                                        # (1, 6D)
            Wat = wat_ref[l]                                      # (D, 2D+1)
            H_in = H_levels[l]                                    # (N, D) previous level
            hcur = h_scratch[l]                                   # VMEM (N, D): evolving H1

            # rows >= i must be exactly zero (kills stale/NaN VMEM content)
            hcur[...] = jnp.zeros((N, D), f32)

            for i in range(N):                                    # fully unrolled recurrence
                q = H_in[i:i + 1, :]                              # (1, D)
                # all q-side projections in ONE MXU push:
                # [grus_c x-path gates | grus_p h-path gates | attention Q score]
                gq = jnp.dot(q, Wq, preferred_element_type=f32) + bq      # (1, 6D+1)

                if i == 0:
                    # no predecessors: M = 0, so the M-side gates are just the biases
                    M = jnp.zeros((1, D), f32)
                    gm = bm
                else:
                    H1 = hcur[...]                                # (N, D), rows >= i are 0
                    # stacked value/key transform: [H1@Wr0 | H1@Wr1 | H1@wk] in one push
                    S = jnp.dot(H1, Wat, preferred_element_type=f32)       # (N, 2D+1)
                    V0 = S[:, 0:D]
                    V1 = S[:, D:2 * D]
                    kscore = S[:, 2 * D:2 * D + 1]                # (N, 1)
                    qscore = gq[:, 6 * D:6 * D + 1]               # (1, 1) incl. attn bias
                    # adjacency mask (-1e30) + causal mask (-1e35) precomputed outside
                    score = kscore + qscore + bias_all[:, i:i + 1]          # (N, 1)
                    mmax = jnp.max(score, axis=0, keepdims=True)
                    e = jnp.exp(score - mmax)
                    attn = e / jnp.sum(e, axis=0, keepdims=True)  # (N, 1) softmax over j
                    sm_i = sm_all[:, i:i + 1]                     # (N, 1)
                    V = V0 * sm_i + V1 * (1.0 - sm_i)             # relation-specific values
                    M = jnp.sum(attn * V, axis=0, keepdims=True)  # (1, D) context
                    gm = jnp.dot(M, Wm, preferred_element_type=f32) + bm    # (1, 6D)

                # grus_c (x=q, h=M) and grus_p (x=M, h=q) from the fused gate slices
                r_c = jax.nn.sigmoid(gq[:, 0:D] + gm[:, 0:D])
                z_c = jax.nn.sigmoid(gq[:, D:2 * D] + gm[:, D:2 * D])
                n_c = jnp.tanh(gq[:, 2 * D:3 * D] + r_c * gm[:, 2 * D:3 * D])
                h_c = (1.0 - z_c) * n_c + z_c * M
                r_p = jax.nn.sigmoid(gm[:, 3 * D:4 * D] + gq[:, 3 * D:4 * D])
                z_p = jax.nn.sigmoid(gm[:, 4 * D:5 * D] + gq[:, 4 * D:5 * D])
                n_p = jnp.tanh(gm[:, 5 * D:6 * D] + r_p * gq[:, 5 * D:6 * D])
                h_p = (1.0 - z_p) * n_p + z_p * q
                hcur[i:i + 1, :] = h_c + h_p                      # H1 row i = C + P

            H_levels.append(hcur[...])                            # final H of this layer

        # ---- pc on the (virtual) concat [H0, H1, ..., HL, features] ----
        acc = jnp.dot(feat, pcwf_ref[...], preferred_element_type=f32) + pcb_ref[...]
        for k in range(L + 1):
            acc = acc + jnp.dot(H_levels[k], pcwh_ref[k], preferred_element_type=f32)
        Hp = acc                                                  # (N, D)

        # ---- speaker-stream LSTMs (A: t==0, B: t==1) + mean pool over N ----
        tcol = t_ref[0]                                           # (N, 1), 1 -> stream B
        WA = lstw_ref[0]
        bA = lstb_ref[0]                                          # (2D, 4D), (1, 4D)
        WB = lstw_ref[1]
        bB = lstb_ref[1]

        def lstm_step(x, h, c, W, b):
            g = jnp.dot(jnp.concatenate([x, h], axis=1), W,
                        preferred_element_type=f32) + b           # (1, 4D): one MXU push
            ig = jax.nn.sigmoid(g[:, 0:D])
            fg = jax.nn.sigmoid(g[:, D:2 * D])
            gg = jnp.tanh(g[:, 2 * D:3 * D])
            og = jax.nn.sigmoid(g[:, 3 * D:4 * D])
            c2 = fg * c + ig * gg
            h2 = og * jnp.tanh(c2)
            return h2, c2

        zero = jnp.zeros((1, D), f32)
        hA, cA, accA = zero, zero, zero
        hB, cB, accB = zero, zero, zero
        for ts in range(N):                                       # fully unrolled
            row = Hp[ts:ts + 1, :]
            tm = tcol[ts:ts + 1, :]                               # (1, 1)
            xB = row * tm
            xA = row - xB
            hA, cA = lstm_step(xA, hA, cA, WA, bA)
            accA = accA + hA
            hB, cB = lstm_step(xB, hB, cB, WB, bB)
            accB = accB + hB

        pooled = jnp.concatenate([accA * inv_n, accB * inv_n], axis=0)    # (2, D)

        # ---- out_mlp head (Dropout(p=0.0) is the identity) ----
        x = pooled
        for k in range(n_hidden):
            x = jnp.maximum(
                jnp.dot(x, mhw_ref[k], preferred_element_type=f32) + mhb_ref[k], 0.0)
        logits = jnp.dot(x, mow_ref[...], preferred_element_type=f32) + mob_ref[...]
        out_ref[0] = logits                                       # (2, num_class)

    return kernel


# ----------------------------------------------------------------------------
# Forward wrapper: precompute attention bias / masks, launch the fused kernel.
# ----------------------------------------------------------------------------
def dagerc_fushion_forward(p, features, adj, s_mask, s_mask_onehot, lengths, t):
    # s_mask_onehot is never used by the reference forward; lengths only feeds
    # attentive_node_features which is the identity for nodal_att_type=None.
    del s_mask_onehot, lengths
    B, N, EMB = features.shape
    D = p['fc1_w'].shape[1]
    L = p['wq_cat'].shape[0]
    n_hidden = p['mlp_hw'].shape[0]
    C = p['mlp_ow'].shape[1]

    # Attention bias, laid out [b, j, i]:  -(1 - adj[i, j]) * 1e30  (mask_logic)
    # plus -1e35 for j >= i (only nodes produced so far participate).
    adjT = jnp.swapaxes(adj.astype(jnp.float32), 1, 2)           # [b, j, i] = adj[b, i, j]
    jj = jnp.arange(N)[:, None]
    ii = jnp.arange(N)[None, :]
    causal = jnp.where(jj >= ii, -1e35, 0.0).astype(jnp.float32)
    attn_bias = (-(1.0 - adjT) * 1e30 + causal[None, :, :]).astype(jnp.float32)
    smT = jnp.swapaxes(s_mask.astype(jnp.float32), 1, 2)         # [b, j, i] = s_mask[b, i, j]
    tmask = t.astype(jnp.float32).reshape(B, N, 1)

    kern = _make_forward_kernel(N, EMB, D, L, n_hidden, C)
    bspec = lambda s: pl.BlockSpec(s, lambda b: (b, 0, 0))
    w2 = lambda s: pl.BlockSpec(s, lambda b: (0, 0))
    w3 = lambda s: pl.BlockSpec(s, lambda b: (0, 0, 0))
    in_specs = [
        bspec((1, N, EMB)), bspec((1, N, N)), bspec((1, N, N)), bspec((1, N, 1)),
        w2(p['fc1_w'].shape), w2(p['fc1_b'].shape),
        w3(p['wq_cat'].shape), w3(p['bq_cat'].shape),
        w3(p['wm_cat'].shape), w3(p['bm_cat'].shape),
        w3(p['wattn'].shape),
        w3(p['pc_wh'].shape), w2(p['pc_wf'].shape), w2(p['pc_b'].shape),
        w3(p['lstm_w'].shape), w3(p['lstm_b'].shape),
        w3(p['mlp_hw'].shape), w3(p['mlp_hb'].shape),
        w2(p['mlp_ow'].shape), w2(p['mlp_ob'].shape),
    ]
    return pl.pallas_call(
        kern,
        out_shape=jax.ShapeDtypeStruct((B, 2, C), jnp.float32),
        grid=(B,),
        in_specs=in_specs,
        out_specs=pl.BlockSpec((1, 2, C), lambda b: (b, 0, 0)),
        scratch_shapes=[pltpu.VMEM((N, D), jnp.float32) for _ in range(L)],
        compiler_params=pltpu.CompilerParams(dimension_semantics=("parallel",)),
    )(features.astype(jnp.float32), attn_bias, smT, tmask,
      p['fc1_w'], p['fc1_b'],
      p['wq_cat'], p['bq_cat'], p['wm_cat'], p['bm_cat'], p['wattn'],
      p['pc_wh'], p['pc_wf'], p['pc_b'],
      p['lstm_w'], p['lstm_b'],
      p['mlp_hw'], p['mlp_hb'], p['mlp_ow'], p['mlp_ob'])


# ----------------------------------------------------------------------------
# Deterministic synthetic parameters (PyTorch-default-style uniform), pre-fused
# into the layouts the kernel consumes (pure repacking of per-gate weights).
# ----------------------------------------------------------------------------
def _u(key, shape, fan_in):
    bound = 1.0 / (fan_in ** 0.5)
    return jax.random.uniform(key, shape, jnp.float32, minval=-bound, maxval=bound)


def init_params(key, emb, D, gnn_layers, mlp_hidden_layers, num_class):
    keys = iter(jax.random.split(key, 512))
    p = {}
    p['fc1_w'] = _u(next(keys), (emb, D), emb)
    p['fc1_b'] = _u(next(keys), (1, D), emb)

    wq_cat, bq_cat, wm_cat, bm_cat, wattn = [], [], [], [], []
    for _ in range(gnn_layers):
        # GAT_dialoggcn_v1: nn.Linear(2D, 1) split into Q/K columns + bias; Wr0/Wr1 no bias
        wq = _u(next(keys), (D, 1), 2 * D)
        wk = _u(next(keys), (D, 1), 2 * D)
        ab = _u(next(keys), (1, 1), 2 * D)
        wr0 = _u(next(keys), (D, D), D)
        wr1 = _u(next(keys), (D, D), D)
        # nn.GRUCell grus_c / grus_p, per-gate [r, z, n], stored pre-transposed (in, out)
        c_wih = _u(next(keys), (3, D, D), D)
        c_whh = _u(next(keys), (3, D, D), D)
        c_bih = _u(next(keys), (3, 1, D), D)
        c_bhh = _u(next(keys), (3, 1, D), D)
        p_wih = _u(next(keys), (3, D, D), D)
        p_whh = _u(next(keys), (3, D, D), D)
        p_bih = _u(next(keys), (3, 1, D), D)
        p_bhh = _u(next(keys), (3, 1, D), D)
        # everything multiplied by q = H_in[i]  (+ attention Q-score column)
        wq_cat.append(jnp.concatenate(
            [c_wih[0], c_wih[1], c_wih[2], p_whh[0], p_whh[1], p_whh[2], wq], axis=1))
        bq_cat.append(jnp.concatenate(
            [c_bih[0], c_bih[1], c_bih[2], p_bhh[0], p_bhh[1], p_bhh[2], ab], axis=1))
        # everything multiplied by the attention context M
        wm_cat.append(jnp.concatenate(
            [c_whh[0], c_whh[1], c_whh[2], p_wih[0], p_wih[1], p_wih[2]], axis=1))
        bm_cat.append(jnp.concatenate(
            [c_bhh[0], c_bhh[1], c_bhh[2], p_bih[0], p_bih[1], p_bih[2]], axis=1))
        # stacked value/key transform [Wr0 | Wr1 | wk]
        wattn.append(jnp.concatenate([wr0, wr1, wk], axis=1))
    p['wq_cat'] = jnp.stack(wq_cat)     # (L, D, 6D+1)
    p['bq_cat'] = jnp.stack(bq_cat)     # (L, 1, 6D+1)
    p['wm_cat'] = jnp.stack(wm_cat)     # (L, D, 6D)
    p['bm_cat'] = jnp.stack(bm_cat)     # (L, 1, 6D)
    p['wattn'] = jnp.stack(wattn)       # (L, D, 2D+1)

    # pc: Linear(D*(L+1)+emb, D), pre-split along the concat axis (avoids in-kernel concat)
    in_dim = D * (gnn_layers + 1) + emb
    p['pc_wh'] = _u(next(keys), (gnn_layers + 1, D, D), in_dim)
    p['pc_wf'] = _u(next(keys), (emb, D), in_dim)
    p['pc_b'] = _u(next(keys), (1, D), in_dim)

    # lstmA / lstmB: single-layer nn.LSTM, gates [i, f, g, o], fused [x; h] weights
    lstm_w, lstm_b = [], []
    for _ in range(2):
        wih = _u(next(keys), (4, D, D), D)
        whh = _u(next(keys), (4, D, D), D)
        bih = _u(next(keys), (4, 1, D), D)
        bhh = _u(next(keys), (4, 1, D), D)
        wx = jnp.concatenate([wih[0], wih[1], wih[2], wih[3]], axis=1)   # (D, 4D)
        wh = jnp.concatenate([whh[0], whh[1], whh[2], whh[3]], axis=1)   # (D, 4D)
        lstm_w.append(jnp.concatenate([wx, wh], axis=0))                 # (2D, 4D)
        lstm_b.append(jnp.concatenate(
            [bih[0] + bhh[0], bih[1] + bhh[1], bih[2] + bhh[2], bih[3] + bhh[3]], axis=1))
    p['lstm_w'] = jnp.stack(lstm_w)     # (2, 2D, 4D)
    p['lstm_b'] = jnp.stack(lstm_b)     # (2, 1, 4D)

    # out_mlp: mlp_layers x (Linear(D,D)+ReLU), Dropout(0)=id, Linear(D, num_class)
    p['mlp_hw'] = _u(next(keys), (mlp_hidden_layers, D, D), D)
    p['mlp_hb'] = _u(next(keys), (mlp_hidden_layers, 1, D), D)
    p['mlp_ow'] = _u(next(keys), (D, num_class), D)
    p['mlp_ob'] = _u(next(keys), (1, num_class), D)
    return p


# ----------------------------------------------------------------------------
if __name__ == "__main__":
    B, N, EMB, D = 2, 8, 32, 32
    GNN_LAYERS, MLP_LAYERS, NUM_CLASS = 2, 2, 6

    root = jax.random.PRNGKey(0)
    k_feat, k_adj, k_sm, k_t, k_par = jax.random.split(root, 5)

    features = jax.random.normal(k_feat, (B, N, EMB), jnp.float32)
    tril = jnp.tril(jnp.ones((N, N), jnp.float32), k=-1)         # only adj[:, i, :i] is read
    adj = (jax.random.uniform(k_adj, (B, N, N)) < 0.7).astype(jnp.float32) * tril
    s_mask = (jax.random.uniform(k_sm, (B, N, N)) < 0.5).astype(jnp.float32)
    s_mask_onehot = jnp.stack([1.0 - s_mask, s_mask], axis=-1)   # unused by forward
    lengths = jnp.full((B,), N, jnp.int32)                       # unused (nodal_att_type=None)
    t = (jax.random.uniform(k_t, (B, N)) < 0.5).astype(jnp.float32)  # '1' -> speaker-B stream

    params = init_params(k_par, EMB, D, GNN_LAYERS, MLP_LAYERS, NUM_CLASS)

    fwd = jax.jit(dagerc_fushion_forward)
    logits = fwd(params, features, adj, s_mask, s_mask_onehot, lengths, t)
    logits = jax.block_until_ready(logits)
    assert logits.shape == (B, 2, NUM_CLASS), logits.shape
    assert bool(jnp.all(jnp.isfinite(logits)))
    print("KERNEL_OK")
</pallas_src>

<mosaic_0001>
module attributes {stable_mosaic.version = 11 : i64} {
  func.func @kernel(%arg0: i32, %arg1: memref<1x8x32xf32, #tpu.memory_space<vmem>>, %arg2: memref<1x8x8xf32, #tpu.memory_space<vmem>>, %arg3: memref<1x8x8xf32, #tpu.memory_space<vmem>>, %arg4: memref<1x8x1xf32, #tpu.memory_space<vmem>>, %arg5: memref<32x32xf32, #tpu.memory_space<vmem>>, %arg6: memref<1x32xf32, #tpu.memory_space<vmem>>, %arg7: memref<2x32x193xf32, #tpu.memory_space<vmem>>, %arg8: memref<2x1x193xf32, #tpu.memory_space<vmem>>, %arg9: memref<2x32x192xf32, #tpu.memory_space<vmem>>, %arg10: memref<2x1x192xf32, #tpu.memory_space<vmem>>, %arg11: memref<2x32x65xf32, #tpu.memory_space<vmem>>, %arg12: memref<3x32x32xf32, #tpu.memory_space<vmem>>, %arg13: memref<32x32xf32, #tpu.memory_space<vmem>>, %arg14: memref<1x32xf32, #tpu.memory_space<vmem>>, %arg15: memref<2x64x128xf32, #tpu.memory_space<vmem>>, %arg16: memref<2x1x128xf32, #tpu.memory_space<vmem>>, %arg17: memref<2x32x32xf32, #tpu.memory_space<vmem>>, %arg18: memref<2x1x32xf32, #tpu.memory_space<vmem>>, %arg19: memref<32x6xf32, #tpu.memory_space<vmem>>, %arg20: memref<1x6xf32, #tpu.memory_space<vmem>>, %arg21: memref<1x2x6xf32, #tpu.memory_space<vmem>>, %arg22: memref<8x32xf32, #tpu.memory_space<vmem>>, %arg23: memref<8x32xf32, #tpu.memory_space<vmem>>) attributes {dimension_semantics = [#tpu.dimension_semantics<parallel>], iteration_bounds = array<i64: 2>, scalar_prefetch = 0 : i64, scratch_operands = 2 : i64, tpu.core_type = #tpu.core_type<tc>, window_params = [{transform_indices = @transform_0, window_bounds = array<i64: 1, 8, 32>}, {transform_indices = @transform_1, window_bounds = array<i64: 1, 8, 8>}, {transform_indices = @transform_2, window_bounds = array<i64: 1, 8, 8>}, {transform_indices = @transform_3, window_bounds = array<i64: 1, 8, 1>}, {pipeline_mode = #tpu.pipeline_mode<synchronous>, transform_indices = @transform_4, window_bounds = array<i64: 32, 32>}, {pipeline_mode = #tpu.pipeline_mode<synchronous>, transform_indices = @transform_5, window_bounds = array<i64: 1, 32>}, {pipeline_mode = #tpu.pipeline_mode<synchronous>, transform_indices = @transform_6, window_bounds = array<i64: 2, 32, 193>}, {pipeline_mode = #tpu.pipeline_mode<synchronous>, transform_indices = @transform_7, window_bounds = array<i64: 2, 1, 193>}, {pipeline_mode = #tpu.pipeline_mode<synchronous>, transform_indices = @transform_8, window_bounds = array<i64: 2, 32, 192>}, {pipeline_mode = #tpu.pipeline_mode<synchronous>, transform_indices = @transform_9, window_bounds = array<i64: 2, 1, 192>}, {pipeline_mode = #tpu.pipeline_mode<synchronous>, transform_indices = @transform_10, window_bounds = array<i64: 2, 32, 65>}, {pipeline_mode = #tpu.pipeline_mode<synchronous>, transform_indices = @transform_11, window_bounds = array<i64: 3, 32, 32>}, {pipeline_mode = #tpu.pipeline_mode<synchronous>, transform_indices = @transform_12, window_bounds = array<i64: 32, 32>}, {pipeline_mode = #tpu.pipeline_mode<synchronous>, transform_indices = @transform_13, window_bounds = array<i64: 1, 32>}, {pipeline_mode = #tpu.pipeline_mode<synchronous>, transform_indices = @transform_14, window_bounds = array<i64: 2, 64, 128>}, {pipeline_mode = #tpu.pipeline_mode<synchronous>, transform_indices = @transform_15, window_bounds = array<i64: 2, 1, 128>}, {pipeline_mode = #tpu.pipeline_mode<synchronous>, transform_indices = @transform_16, window_bounds = array<i64: 2, 32, 32>}, {pipeline_mode = #tpu.pipeline_mode<synchronous>, transform_indices = @transform_17, window_bounds = array<i64: 2, 1, 32>}, {pipeline_mode = #tpu.pipeline_mode<synchronous>, transform_indices = @transform_18, window_bounds = array<i64: 32, 6>}, {pipeline_mode = #tpu.pipeline_mode<synchronous>, transform_indices = @transform_19, window_bounds = array<i64: 1, 6>}, {transform_indices = @transform_20, window_bounds = array<i64: 1, 2, 6>}]} {
    %c0 = arith.constant 0 : index
    %c0_0 = arith.constant 0 : index
    %c0_1 = arith.constant 0 : index
    %0 = vector.load %arg1[%c0, %c0_0, %c0_1] : memref<1x8x32xf32, #tpu.memory_space<vmem>>, vector<1x8x32xf32>
    %1 = vector.shape_cast %0 : vector<1x8x32xf32> to vector<8x32xf32>
    %c0_2 = arith.constant 0 : index
    %c0_3 = arith.constant 0 : index
    %2 = vector.load %arg5[%c0_2, %c0_3] : memref<32x32xf32, #tpu.memory_space<vmem>>, vector<32x32xf32>
    %cst = arith.constant dense<0.000000e+00> : vector<8x32xf32>
    %3 = tpu.matmul %1, %2, %cst {dimension_numbers = #tpu.dot_dimension_numbers<[1], [0], [0], [1], [0, 0, 1, 1], [], []>} : vector<8x32xf32>, vector<32x32xf32>, vector<8x32xf32> -> vector<8x32xf32>
    %c0_4 = arith.constant 0 : index
    %c0_5 = arith.constant 0 : index
    %4 = vector.load %arg6[%c0_4, %c0_5] : memref<1x32xf32, #tpu.memory_space<vmem>>, vector<1x32xf32>
    %5 = vector.broadcast %4 : vector<1x32xf32> to vector<8x32xf32>
    %6 = arith.addf %3, %5 : vector<8x32xf32>
    %cst_6 = arith.constant 0.000000e+00 : f32
    %7 = vector.broadcast %cst_6 : f32 to vector<8x32xf32>
    %8 = arith.maximumf %6, %7 : vector<8x32xf32>
    %c0_7 = arith.constant 0 : index
    %c0_8 = arith.constant 0 : index
    %c0_9 = arith.constant 0 : index
    %9 = vector.load %arg2[%c0_7, %c0_8, %c0_9] : memref<1x8x8xf32, #tpu.memory_space<vmem>>, vector<1x8x8xf32>
    %10 = vector.shape_cast %9 : vector<1x8x8xf32> to vector<8x8xf32>
    %c0_10 = arith.constant 0 : index
    %c0_11 = arith.constant 0 : index
    %c0_12 = arith.constant 0 : index
    %11 = vector.load %arg3[%c0_10, %c0_11, %c0_12] : memref<1x8x8xf32, #tpu.memory_space<vmem>>, vector<1x8x8xf32>
    %12 = vector.shape_cast %11 : vector<1x8x8xf32> to vector<8x8xf32>
    %c0_13 = arith.constant 0 : index
    %c0_14 = arith.constant 0 : index
    %c0_15 = arith.constant 0 : index
    %13 = vector.load %arg7[%c0_13, %c0_14, %c0_15] : memref<2x32x193xf32, #tpu.memory_space<vmem>>, vector<1x32x193xf32>
    %14 = vector.shape_cast %13 : vector<1x32x193xf32> to vector<32x193xf32>
    %c0_16 = arith.constant 0 : index
    %c0_17 = arith.constant 0 : index
    %c0_18 = arith.constant 0 : index
    %15 = vector.load %arg8[%c0_16, %c0_17, %c0_18] : memref<2x1x193xf32, #tpu.memory_space<vmem>>, vector<1x1x193xf32>
    %16 = vector.shape_cast %15 : vector<1x1x193xf32> to vector<1x193xf32>
    %c0_19 = arith.constant 0 : index
    %c0_20 = arith.constant 0 : index
    %c0_21 = arith.constant 0 : index
    %17 = vector.load %arg9[%c0_19, %c0_20, %c0_21] : memref<2x32x192xf32, #tpu.memory_space<vmem>>, vector<1x32x192xf32>
    %18 = vector.shape_cast %17 : vector<1x32x192xf32> to vector<32x192xf32>
    %c0_22 = arith.constant 0 : index
    %c0_23 = arith.constant 0 : index
    %c0_24 = arith.constant 0 : index
    %19 = vector.load %arg10[%c0_22, %c0_23, %c0_24] : memref<2x1x192xf32, #tpu.memory_space<vmem>>, vector<1x1x192xf32>
    %20 = vector.shape_cast %19 : vector<1x1x192xf32> to vector<1x192xf32>
    %c0_25 = arith.constant 0 : index
    %c0_26 = arith.constant 0 : index
    %c0_27 = arith.constant 0 : index
    %21 = vector.load %arg11[%c0_25, %c0_26, %c0_27] : memref<2x32x65xf32, #tpu.memory_space<vmem>>, vector<1x32x65xf32>
    %22 = vector.shape_cast %21 : vector<1x32x65xf32> to vector<32x65xf32>
    %cst_28 = arith.constant 0.000000e+00 : f32
    %23 = vector.broadcast %cst_28 : f32 to vector<8x32xf32>
    %c0_29 = arith.constant 0 : index
    %c0_30 = arith.constant 0 : index
    %24 = vector.load %arg22[%c0_29, %c0_30] : memref<8x32xf32, #tpu.memory_space<vmem>>, vector<8x32xf32>
    tpu.vector_store %arg22[%c0_29, %c0_30], %23 {strides = array<i32>} : memref<8x32xf32, #tpu.memory_space<vmem>>, vector<8x32xf32>,
    %25 = vector.extract_strided_slice %8 {offsets = [0, 0], sizes = [1, 32], strides = [1, 1]} : vector<8x32xf32> to vector<1x32xf32>
    %cst_31 = arith.constant dense<0.000000e+00> : vector<1x193xf32>
    %26 = tpu.matmul %25, %14, %cst_31 {dimension_numbers = #tpu.dot_dimension_numbers<[1], [0], [0], [1], [0, 0, 1, 1], [], []>} : vector<1x32xf32>, vector<32x193xf32>, vector<1x193xf32> -> vector<1x193xf32>
    %27 = arith.addf %26, %16 : vector<1x193xf32>
    %cst_32 = arith.constant 0.000000e+00 : f32
    %28 = vector.broadcast %cst_32 : f32 to vector<1x32xf32>
    %29 = vector.extract_strided_slice %27 {offsets = [0, 0], sizes = [1, 32], strides = [1, 1]} : vector<1x193xf32> to vector<1x32xf32>
    %30 = vector.extract_strided_slice %20 {offsets = [0, 0], sizes = [1, 32], strides = [1, 1]} : vector<1x192xf32> to vector<1x32xf32>
    %31 = arith.addf %29, %30 : vector<1x32xf32>
    %32 = arith.negf %31 : vector<1x32xf32>
    %33 = math.exp %32 : vector<1x32xf32>
    %cst_33 = arith.constant 1.000000e+00 : f32
    %34 = vector.broadcast %cst_33 : f32 to vector<1x32xf32>
    %35 = arith.addf %34, %33 : vector<1x32xf32>
    %36 = arith.divf %34, %35 : vector<1x32xf32>
    %37 = vector.extract_strided_slice %27 {offsets = [0, 32], sizes = [1, 32], strides = [1, 1]} : vector<1x193xf32> to vector<1x32xf32>
    %38 = vector.extract_strided_slice %20 {offsets = [0, 32], sizes = [1, 32], strides = [1, 1]} : vector<1x192xf32> to vector<1x32xf32>
    %39 = arith.addf %37, %38 : vector<1x32xf32>
    %40 = arith.negf %39 : vector<1x32xf32>
    %41 = math.exp %40 : vector<1x32xf32>
    %cst_34 = arith.constant 1.000000e+00 : f32
    %42 = vector.broadcast %cst_34 : f32 to vector<1x32xf32>
    %43 = arith.addf %42, %41 : vector<1x32xf32>
    %44 = arith.divf %42, %43 : vector<1x32xf32>
    %45 = vector.extract_strided_slice %27 {offsets = [0, 64], sizes = [1, 32], strides = [1, 1]} : vector<1x193xf32> to vector<1x32xf32>
    %46 = vector.extract_strided_slice %20 {offsets = [0, 64], sizes = [1, 32], strides = [1, 1]} : vector<1x192xf32> to vector<1x32xf32>
    %47 = arith.mulf %36, %46 : vector<1x32xf32>
    %48 = arith.addf %45, %47 : vector<1x32xf32>
    %49 = math.tanh %48 : vector<1x32xf32>
    %cst_35 = arith.constant 1.000000e+00 : f32
    %50 = vector.broadcast %cst_35 : f32 to vector<1x32xf32>
    %51 = arith.subf %50, %44 : vector<1x32xf32>
    %52 = arith.mulf %51, %49 : vector<1x32xf32>
    %53 = arith.mulf %44, %28 : vector<1x32xf32>
    %54 = arith.addf %52, %53 : vector<1x32xf32>
    %55 = vector.extract_strided_slice %20 {offsets = [0, 96], sizes = [1, 32], strides = [1, 1]} : vector<1x192xf32> to vector<1x32xf32>
    %56 = vector.extract_strided_slice %27 {offsets = [0, 96], sizes = [1, 32], strides = [1, 1]} : vector<1x193xf32> to vector<1x32xf32>
    %57 = arith.addf %55, %56 : vector<1x32xf32>
    %58 = arith.negf %57 : vector<1x32xf32>
    %59 = math.exp %58 : vector<1x32xf32>
    %cst_36 = arith.constant 1.000000e+00 : f32
    %60 = vector.broadcast %cst_36 : f32 to vector<1x32xf32>
    %61 = arith.addf %60, %59 : vector<1x32xf32>
    %62 = arith.divf %60, %61 : vector<1x32xf32>
    %63 = vector.extract_strided_slice %20 {offsets = [0, 128], sizes = [1, 32], strides = [1, 1]} : vector<1x192xf32> to vector<1x32xf32>
    %64 = vector.extract_strided_slice %27 {offsets = [0, 128], sizes = [1, 32], strides = [1, 1]} : vector<1x193xf32> to vector<1x32xf32>
    %65 = arith.addf %63, %64 : vector<1x32xf32>
    %66 = arith.negf %65 : vector<1x32xf32>
    %67 = math.exp %66 : vector<1x32xf32>
    %cst_37 = arith.constant 1.000000e+00 : f32
    %68 = vector.broadcast %cst_37 : f32 to vector<1x32xf32>
    %69 = arith.addf %68, %67 : vector<1x32xf32>
    %70 = arith.divf %68, %69 : vector<1x32xf32>
    %71 = vector.extract_strided_slice %20 {offsets = [0, 160], sizes = [1, 32], strides = [1, 1]} : vector<1x192xf32> to vector<1x32xf32>
    %72 = vector.extract_strided_slice %27 {offsets = [0, 160], sizes = [1, 32], strides = [1, 1]} : vector<1x193xf32> to vector<1x32xf32>
    %73 = arith.mulf %62, %72 : vector<1x32xf32>
    %74 = arith.addf %71, %73 : vector<1x32xf32>
    %75 = math.tanh %74 : vector<1x32xf32>
    %cst_38 = arith.constant 1.000000e+00 : f32
    %76 = vector.broadcast %cst_38 : f32 to vector<1x32xf32>
    %77 = arith.subf %76, %70 : vector<1x32xf32>
    %78 = arith.mulf %77, %75 : vector<1x32xf32>
    %79 = arith.mulf %70, %25 : vector<1x32xf32>
    %80 = arith.addf %78, %79 : vector<1x32xf32>
    %81 = arith.addf %54, %80 : vector<1x32xf32>
    %c0_39 = arith.constant 0 : index
    %c0_40 = arith.constant 0 : index
    %82 = vector.load %arg22[%c0_39, %c0_40] : memref<8x32xf32, #tpu.memory_space<vmem>>, vector<1x32xf32>
    tpu.vector_store %arg22[%c0_39, %c0_40], %81 {strides = array<i32>} : memref<8x32xf32, #tpu.memory_space<vmem>>, vector<1x32xf32>,
    %83 = vector.extract_strided_slice %8 {offsets = [1, 0], sizes = [1, 32], strides = [1, 1]} : vector<8x32xf32> to vector<1x32xf32>
    %cst_41 = arith.constant dense<0.000000e+00> : vector<1x193xf32>
    %84 = tpu.matmul %83, %14, %cst_41 {dimension_numbers = #tpu.dot_dimension_numbers<[1], [0], [0], [1], [0, 0, 1, 1], [], []>} : vector<1x32xf32>, vector<32x193xf32>, vector<1x193xf32> -> vector<1x193xf32>
    %85 = arith.addf %84, %16 : vector<1x193xf32>
    %c0_42 = arith.constant 0 : index
    %c0_43 = arith.constant 0 : index
    %86 = vector.load %arg22[%c0_42, %c0_43] : memref<8x32xf32, #tpu.memory_space<vmem>>, vector<8x32xf32>
    %cst_44 = arith.constant dense<0.000000e+00> : vector<8x65xf32>
    %87 = tpu.matmul %86, %22, %cst_44 {dimension_numbers = #tpu.dot_dimension_numbers<[1], [0], [0], [1], [0, 0, 1, 1], [], []>} : vector<8x32xf32>, vector<32x65xf32>, vector<8x65xf32> -> vector<8x65xf32>
    %88 = vector.extract_strided_slice %87 {offsets = [0, 0], sizes = [8, 32], strides = [1, 1]} : vector<8x65xf32> to vector<8x32xf32>
    %89 = vector.extract_strided_slice %87 {offsets = [0, 32], sizes = [8, 32], strides = [1, 1]} : vector<8x65xf32> to vector<8x32xf32>
    %90 = vector.extract_strided_slice %87 {offsets = [0, 64], sizes = [8, 1], strides = [1, 1]} : vector<8x65xf32> to vector<8x1xf32>
    %91 = vector.extract_strided_slice %85 {offsets = [0, 192], sizes = [1, 1], strides = [1, 1]} : vector<1x193xf32> to vector<1x1xf32>
    %92 = vector.broadcast %91 : vector<1x1xf32> to vector<8x1xf32>
    %93 = arith.addf %90, %92 : vector<8x1xf32>
    %94 = vector.extract_strided_slice %10 {offsets = [0, 1], sizes = [8, 1], strides = [1, 1]} : vector<8x8xf32> to vector<8x1xf32>
    %95 = arith.addf %93, %94 : vector<8x1xf32>
    %cst_45 = arith.constant dense<0xFF800000> : vector<1xf32>
    %96 = vector.multi_reduction <maximumf>, %95, %cst_45 [0] : vector<8x1xf32> to vector<1xf32>
    %97 = vector.shape_cast %96 : vector<1xf32> to vector<1x1xf32>
    %98 = vector.broadcast %97 : vector<1x1xf32> to vector<8x1xf32>
    %99 = arith.subf %95, %98 : vector<8x1xf32>
    %100 = math.exp %99 : vector<8x1xf32>
    %cst_46 = arith.constant dense<0.000000e+00> : vector<1xf32>
    %101 = vector.multi_reduction <add>, %100, %cst_46 [0] : vector<8x1xf32> to vector<1xf32>
    %102 = vector.shape_cast %101 : vector<1xf32> to vector<1x1xf32>
    %103 = vector.broadcast %102 : vector<1x1xf32> to vector<8x1xf32>
    %104 = arith.divf %100, %103 : vector<8x1xf32>
    %105 = vector.extract_strided_slice %12 {offsets = [0, 1], sizes = [8, 1], strides = [1, 1]} : vector<8x8xf32> to vector<8x1xf32>
    %106 = vector.broadcast %105 : vector<8x1xf32> to vector<8x32xf32>
    %107 = arith.mulf %88, %106 : vector<8x32xf32>
    %cst_47 = arith.constant 1.000000e+00 : f32
    %108 = vector.broadcast %cst_47 : f32 to vector<8x1xf32>
    %109 = arith.subf %108, %105 : vector<8x1xf32>
    %110 = vector.broadcast %109 : vector<8x1xf32> to vector<8x32xf32>
    %111 = arith.mulf %89, %110 : vector<8x32xf32>
    %112 = arith.addf %107, %111 : vector<8x32xf32>
    %113 = vector.broadcast %104 : vector<8x1xf32> to vector<8x32xf32>
    %114 = arith.mulf %113, %112 : vector<8x32xf32>
    %cst_48 = arith.constant dense<0.000000e+00> : vector<32xf32>
    %115 = vector.multi_reduction <add>, %114, %cst_48 [0] : vector<8x32xf32> to vector<32xf32>
    %116 = vector.shape_cast %115 : vector<32xf32> to vector<1x32xf32>
    %cst_49 = arith.constant dense<0.000000e+00> : vector<1x192xf32>
    %117 = tpu.matmul %116, %18, %cst_49 {dimension_numbers = #tpu.dot_dimension_numbers<[1], [0], [0], [1], [0, 0, 1, 1], [], []>} : vector<1x32xf32>, vector<32x192xf32>, vector<1x192xf32> -> vector<1x192xf32>
    %118 = arith.addf %117, %20 : vector<1x192xf32>
    %119 = vector.extract_strided_slice %85 {offsets = [0, 0], sizes = [1, 32], strides = [1, 1]} : vector<1x193xf32> to vector<1x32xf32>
    %120 = vector.extract_strided_slice %118 {offsets = [0, 0], sizes = [1, 32], strides = [1, 1]} : vector<1x192xf32> to vector<1x32xf32>
    %121 = arith.addf %119, %120 : vector<1x32xf32>
    %122 = arith.negf %121 : vector<1x32xf32>
    %123 = math.exp %122 : vector<1x32xf32>
    %cst_50 = arith.constant 1.000000e+00 : f32
    %124 = vector.broadcast %cst_50 : f32 to vector<1x32xf32>
    %125 = arith.addf %124, %123 : vector<1x32xf32>
    %126 = arith.divf %124, %125 : vector<1x32xf32>
    %127 = vector.extract_strided_slice %85 {offsets = [0, 32], sizes = [1, 32], strides = [1, 1]} : vector<1x193xf32> to vector<1x32xf32>
    %128 = vector.extract_strided_slice %118 {offsets = [0, 32], sizes = [1, 32], strides = [1, 1]} : vector<1x192xf32> to vector<1x32xf32>
    %129 = arith.addf %127, %128 : vector<1x32xf32>
    %130 = arith.negf %129 : vector<1x32xf32>
    %131 = math.exp %130 : vector<1x32xf32>
    %cst_51 = arith.constant 1.000000e+00 : f32
    %132 = vector.broadcast %cst_51 : f32 to vector<1x32xf32>
    %133 = arith.addf %132, %131 : vector<1x32xf32>
    %134 = arith.divf %132, %133 : vector<1x32xf32>
    %135 = vector.extract_strided_slice %85 {offsets = [0, 64], sizes = [1, 32], strides = [1, 1]} : vector<1x193xf32> to vector<1x32xf32>
    %136 = vector.extract_strided_slice %118 {offsets = [0, 64], sizes = [1, 32], strides = [1, 1]} : vector<1x192xf32> to vector<1x32xf32>
    %137 = arith.mulf %126, %136 : vector<1x32xf32>
    %138 = arith.addf %135, %137 : vector<1x32xf32>
    %139 = math.tanh %138 : vector<1x32xf32>
    %cst_52 = arith.constant 1.000000e+00 : f32
    %140 = vector.broadcast %cst_52 : f32 to vector<1x32xf32>
    %141 = arith.subf %140, %134 : vector<1x32xf32>
    %142 = arith.mulf %141, %139 : vector<1x32xf32>
    %143 = arith.mulf %134, %116 : vector<1x32xf32>
    %144 = arith.addf %142, %143 : vector<1x32xf32>
    %145 = vector.extract_strided_slice %118 {offsets = [0, 96], sizes = [1, 32], strides = [1, 1]} : vector<1x192xf32> to vector<1x32xf32>
    %146 = vector.extract_strided_slice %85 {offsets = [0, 96], sizes = [1, 32], strides = [1, 1]} : vector<1x193xf32> to vector<1x32xf32>
    %147 = arith.addf %145, %146 : vector<1x32xf32>
    %148 = arith.negf %147 : vector<1x32xf32>
    %149 = math.exp %148 : vector<1x32xf32>
    %cst_53 = arith.constant 1.000000e+00 : f32
    %150 = vector.broadcast %cst_53 : f32 to vector<1x32xf32>
    %151 = arith.addf %150, %149 : vector<1x32xf32>
    %152 = arith.divf %150, %151 : vector<1x32xf32>
    %153 = vector.extract_strided_slice %118 {offsets = [0, 128], sizes = [1, 32], strides = [1, 1]} : vector<1x192xf32> to vector<1x32xf32>
    %154 = vector.extract_strided_slice %85 {offsets = [0, 128], sizes = [1, 32], strides = [1, 1]} : vector<1x193xf32> to vector<1x32xf32>
    %155 = arith.addf %153, %154 : vector<1x32xf32>
    %156 = arith.negf %155 : vector<1x32xf32>
    %157 = math.exp %156 : vector<1x32xf32>
    %cst_54 = arith.constant 1.000000e+00 : f32
    %158 = vector.broadcast %cst_54 : f32 to vector<1x32xf32>
    %159 = arith.addf %158, %157 : vector<1x32xf32>
    %160 = arith.divf %158, %159 : vector<1x32xf32>
    %161 = vector.extract_strided_slice %118 {offsets = [0, 160], sizes = [1, 32], strides = [1, 1]} : vector<1x192xf32> to vector<1x32xf32>
    %162 = vector.extract_strided_slice %85 {offsets = [0, 160], sizes = [1, 32], strides = [1, 1]} : vector<1x193xf32> to vector<1x32xf32>
    %163 = arith.mulf %152, %162 : vector<1x32xf32>
    %164 = arith.addf %161, %163 : vector<1x32xf32>
    %165 = math.tanh %164 : vector<1x32xf32>
    %cst_55 = arith.constant 1.000000e+00 : f32
    %166 = vector.broadcast %cst_55 : f32 to vector<1x32xf32>
    %167 = arith.subf %166, %160 : vector<1x32xf32>
    %168 = arith.mulf %167, %165 : vector<1x32xf32>
    %169 = arith.mulf %160, %83 : vector<1x32xf32>
    %170 = arith.addf %168, %169 : vector<1x32xf32>
    %171 = arith.addf %144, %170 : vector<1x32xf32>
    %c1 = arith.constant 1 : index
    %c0_56 = arith.constant 0 : index
    %172 = vector.load %arg22[%c1, %c0_56] : memref<8x32xf32, #tpu.memory_space<vmem>>, vector<1x32xf32>
    tpu.vector_store %arg22[%c1, %c0_56], %171 {strides = array<i32>} : memref<8x32xf32, #tpu.memory_space<vmem>>, vector<1x32xf32>,
    %173 = vector.extract_strided_slice %8 {offsets = [2, 0], sizes = [1, 32], strides = [1, 1]} : vector<8x32xf32> to vector<1x32xf32>
    %cst_57 = arith.constant dense<0.000000e+00> : vector<1x193xf32>
    %174 = tpu.matmul %173, %14, %cst_57 {dimension_numbers = #tpu.dot_dimension_numbers<[1], [0], [0], [1], [0, 0, 1, 1], [], []>} : vector<1x32xf32>, vector<32x193xf32>, vector<1x193xf32> -> vector<1x193xf32>
    %175 = arith.addf %174, %16 : vector<1x193xf32>
    %c0_58 = arith.constant 0 : index
    %c0_59 = arith.constant 0 : index
    %176 = vector.load %arg22[%c0_58, %c0_59] : memref<8x32xf32, #tpu.memory_space<vmem>>, vector<8x32xf32>
    %cst_60 = arith.constant dense<0.000000e+00> : vector<8x65xf32>
    %177 = tpu.matmul %176, %22, %cst_60 {dimension_numbers = #tpu.dot_dimension_numbers<[1], [0], [0], [1], [0, 0, 1, 1], [], []>} : vector<8x32xf32>, vector<32x65xf32>, vector<8x65xf32> -> vector<8x65xf32>
    %178 = vector.extract_strided_slice %177 {offsets = [0, 0], sizes = [8, 32], strides = [1, 1]} : vector<8x65xf32> to vector<8x32xf32>
    %179 = vector.extract_strided_slice %177 {offsets = [0, 32], sizes = [8, 32], strides = [1, 1]} : vector<8x65xf32> to vector<8x32xf32>
    %180 = vector.extract_strided_slice %177 {offsets = [0, 64], sizes = [8, 1], strides = [1, 1]} : vector<8x65xf32> to vector<8x1xf32>
    %181 = vector.extract_strided_slice %175 {offsets = [0, 192], sizes = [1, 1], strides = [1, 1]} : vector<1x193xf32> to vector<1x1xf32>
    %182 = vector.broadcast %181 : vector<1x1xf32> to vector<8x1xf32>
    %183 = arith.addf %180, %182 : vector<8x1xf32>
    %184 = vector.extract_strided_slice %10 {offsets = [0, 2], sizes = [8, 1], strides = [1, 1]} : vector<8x8xf32> to vector<8x1xf32>
    %185 = arith.addf %183, %184 : vector<8x1xf32>
    %cst_61 = arith.constant dense<0xFF800000> : vector<1xf32>
    %186 = vector.multi_reduction <maximumf>, %185, %cst_61 [0] : vector<8x1xf32> to vector<1xf32>
    %187 = vector.shape_cast %186 : vector<1xf32> to vector<1x1xf32>
    %188 = vector.broadcast %187 : vector<1x1xf32> to vector<8x1xf32>
    %189 = arith.subf %185, %188 : vector<8x1xf32>
    %190 = math.exp %189 : vector<8x1xf32>
    %cst_62 = arith.constant dense<0.000000e+00> : vector<1xf32>
    %191 = vector.multi_reduction <add>, %190, %cst_62 [0] : vector<8x1xf32> to vector<1xf32>
    %192 = vector.shape_cast %191 : vector<1xf32> to vector<1x1xf32>
    %193 = vector.broadcast %192 : vector<1x1xf32> to vector<8x1xf32>
    %194 = arith.divf %190, %193 : vector<8x1xf32>
    %195 = vector.extract_strided_slice %12 {offsets = [0, 2], sizes = [8, 1], strides = [1, 1]} : vector<8x8xf32> to vector<8x1xf32>
    %196 = vector.broadcast %195 : vector<8x1xf32> to vector<8x32xf32>
    %197 = arith.mulf %178, %196 : vector<8x32xf32>
    %cst_63 = arith.constant 1.000000e+00 : f32
    %198 = vector.broadcast %cst_63 : f32 to vector<8x1xf32>
    %199 = arith.subf %198, %195 : vector<8x1xf32>
    %200 = vector.broadcast %199 : vector<8x1xf32> to vector<8x32xf32>
    %201 = arith.mulf %179, %200 : vector<8x32xf32>
    %202 = arith.addf %197, %201 : vector<8x32xf32>
    %203 = vector.broadcast %194 : vector<8x1xf32> to vector<8x32xf32>
    %204 = arith.mulf %203, %202 : vector<8x32xf32>
    %cst_64 = arith.constant dense<0.000000e+00> : vector<32xf32>
    %205 = vector.multi_reduction <add>, %204, %cst_64 [0] : vector<8x32xf32> to vector<32xf32>
    %206 = vector.shape_cast %205 : vector<32xf32> to vector<1x32xf32>
    %cst_65 = arith.constant dense<0.000000e+00> : vector<1x192xf32>
    %207 = tpu.matmul %206, %18, %cst_65 {dimension_numbers = #tpu.dot_dimension_numbers<[1], [0], [0], [1], [0, 0, 1, 1], [], []>} : vector<1x32xf32>, vector<32x192xf32>, vector<1x192xf32> -> vector<1x192xf32>
    %208 = arith.addf %207, %20 : vector<1x192xf32>
    %209 = vector.extract_strided_slice %175 {offsets = [0, 0], sizes = [1, 32], strides = [1, 1]} : vector<1x193xf32> to vector<1x32xf32>
    %210 = vector.extract_strided_slice %208 {offsets = [0, 0], sizes = [1, 32], strides = [1, 1]} : vector<1x192xf32> to vector<1x32xf32>
    %211 = arith.addf %209, %210 : vector<1x32xf32>
    %212 = arith.negf %211 : vector<1x32xf32>
    %213 = math.exp %212 : vector<1x32xf32>
    %cst_66 = arith.constant 1.000000e+00 : f32
    %214 = vector.broadcast %cst_66 : f32 to vector<1x32xf32>
    %215 = arith.addf %214, %213 : vector<1x32xf32>
    %216 = arith.divf %214, %215 : vector<1x32xf32>
    %217 = vector.extract_strided_slice %175 {offsets = [0, 32], sizes = [1, 32], strides = [1, 1]} : vector<1x193xf32> to vector<1x32xf32>
    %218 = vector.extract_strided_slice %208 {offsets = [0, 32], sizes = [1, 32], strides = [1, 1]} : vector<1x192xf32> to vector<1x32xf32>
    %219 = arith.addf %217, %218 : vector<1x32xf32>
    %220 = arith.negf %219 : vector<1x32xf32>
    %221 = math.exp %220 : vector<1x32xf32>
    %cst_67 = arith.constant 1.000000e+00 : f32
    %222 = vector.broadcast %cst_67 : f32 to vector<1x32xf32>
    %223 = arith.addf %222, %221 : vector<1x32xf32>
    %224 = arith.divf %222, %223 : vector<1x32xf32>
    %225 = vector.extract_strided_slice %175 {offsets = [0, 64], sizes = [1, 32], strides = [1, 1]} : vector<1x193xf32> to vector<1x32xf32>
    %226 = vector.extract_strided_slice %208 {offsets = [0, 64], sizes = [1, 32], strides = [1, 1]} : vector<1x192xf32> to vector<1x32xf32>
    %227 = arith.mulf %216, %226 : vector<1x32xf32>
    %228 = arith.addf %225, %227 : vector<1x32xf32>
    %229 = math.tanh %228 : vector<1x32xf32>
    %cst_68 = arith.constant 1.000000e+00 : f32
    %230 = vector.broadcast %cst_68 : f32 to vector<1x32xf32>
    %231 = arith.subf %230, %224 : vector<1x32xf32>
    %232 = arith.mulf %231, %229 : vector<1x32xf32>
    %233 = arith.mulf %224, %206 : vector<1x32xf32>
    %234 = arith.addf %232, %233 : vector<1x32xf32>
    %235 = vector.extract_strided_slice %208 {offsets = [0, 96], sizes = [1, 32], strides = [1, 1]} : vector<1x192xf32> to vector<1x32xf32>
    %236 = vector.extract_strided_slice %175 {offsets = [0, 96], sizes = [1, 32], strides = [1, 1]} : vector<1x193xf32> to vector<1x32xf32>
    %237 = arith.addf %235, %236 : vector<1x32xf32>
    %238 = arith.negf %237 : vector<1x32xf32>
    %239 = math.exp %238 : vector<1x32xf32>
    %cst_69 = arith.constant 1.000000e+00 : f32
    %240 = vector.broadcast %cst_69 : f32 to vector<1x32xf32>
    %241 = arith.addf %240, %239 : vector<1x32xf32>
    %242 = arith.divf %240, %241 : vector<1x32xf32>
    %243 = vector.extract_strided_slice %208 {offsets = [0, 128], sizes = [1, 32], strides = [1, 1]} : vector<1x192xf32> to vector<1x32xf32>
    %244 = vector.extract_strided_slice %175 {offsets = [0, 128], sizes = [1, 32], strides = [1, 1]} : vector<1x193xf32> to vector<1x32xf32>
    %245 = arith.addf %243, %244 : vector<1x32xf32>
    %246 = arith.negf %245 : vector<1x32xf32>
    %247 = math.exp %246 : vector<1x32xf32>
    %cst_70 = arith.constant 1.000000e+00 : f32
    %248 = vector.broadcast %cst_70 : f32 to vector<1x32xf32>
    %249 = arith.addf %248, %247 : vector<1x32xf32>
    %250 = arith.divf %248, %249 : vector<1x32xf32>
    %251 = vector.extract_strided_slice %208 {offsets = [0, 160], sizes = [1, 32], strides = [1, 1]} : vector<1x192xf32> to vector<1x32xf32>
    %252 = vector.extract_strided_slice %175 {offsets = [0, 160], sizes = [1, 32], strides = [1, 1]} : vector<1x193xf32> to vector<1x32xf32>
    %253 = arith.mulf %242, %252 : vector<1x32xf32>
    %254 = arith.addf %251, %253 : vector<1x32xf32>
    %255 = math.tanh %254 : vector<1x32xf32>
    %cst_71 = arith.constant 1.000000e+00 : f32
    %256 = vector.broadcast %cst_71 : f32 to vector<1x32xf32>
    %257 = arith.subf %256, %250 : vector<1x32xf32>
    %258 = arith.mulf %257, %255 : vector<1x32xf32>
    %259 = arith.mulf %250, %173 : vector<1x32xf32>
    %260 = arith.addf %258, %259 : vector<1x32xf32>
    %261 = arith.addf %234, %260 : vector<1x32xf32>
    %c2 = arith.constant 2 : index
    %c0_72 = arith.constant 0 : index
    %262 = vector.load %arg22[%c2, %c0_72] : memref<8x32xf32, #tpu.memory_space<vmem>>, vector<1x32xf32>
    tpu.vector_store %arg22[%c2, %c0_72], %261 {strides = array<i32>} : memref<8x32xf32, #tpu.memory_space<vmem>>, vector<1x32xf32>,
    %263 = vector.extract_strided_slice %8 {offsets = [3, 0], sizes = [1, 32], strides = [1, 1]} : vector<8x32xf32> to vector<1x32xf32>
    %cst_73 = arith.constant dense<0.000000e+00> : vector<1x193xf32>
    %264 = tpu.matmul %263, %14, %cst_73 {dimension_numbers = #tpu.dot_dimension_numbers<[1], [0], [0], [1], [0, 0, 1, 1], [], []>} : vector<1x32xf32>, vector<32x193xf32>, vector<1x193xf32> -> vector<1x193xf32>
    %265 = arith.addf %264, %16 : vector<1x193xf32>
    %c0_74 = arith.constant 0 : index
    %c0_75 = arith.constant 0 : index
    %266 = vector.load %arg22[%c0_74, %c0_75] : memref<8x32xf32, #tpu.memory_space<vmem>>, vector<8x32xf32>
    %cst_76 = arith.constant dense<0.000000e+00> : vector<8x65xf32>
    %267 = tpu.matmul %266, %22, %cst_76 {dimension_numbers = #tpu.dot_dimension_numbers<[1], [0], [0], [1], [0, 0, 1, 1], [], []>} : vector<8x32xf32>, vector<32x65xf32>, vector<8x65xf32> -> vector<8x65xf32>
    %268 = vector.extract_strided_slice %267 {offsets = [0, 0], sizes = [8, 32], strides = [1, 1]} : vector<8x65xf32> to vector<8x32xf32>
    %269 = vector.extract_strided_slice %267 {offsets = [0, 32], sizes = [8, 32], strides = [1, 1]} : vector<8x65xf32> to vector<8x32xf32>
    %270 = vector.extract_strided_slice %267 {offsets = [0, 64], sizes = [8, 1], strides = [1, 1]} : vector<8x65xf32> to vector<8x1xf32>
    %271 = vector.extract_strided_slice %265 {offsets = [0, 192], sizes = [1, 1], strides = [1, 1]} : vector<1x193xf32> to vector<1x1xf32>
    %272 = vector.broadcast %271 : vector<1x1xf32> to vector<8x1xf32>
    %273 = arith.addf %270, %272 : vector<8x1xf32>
    %274 = vector.extract_strided_slice %10 {offsets = [0, 3], sizes = [8, 1], strides = [1, 1]} : vector<8x8xf32> to vector<8x1xf32>
    %275 = arith.addf %273, %274 : vector<8x1xf32>
    %cst_77 = arith.constant dense<0xFF800000> : vector<1xf32>
    %276 = vector.multi_reduction <maximumf>, %275, %cst_77 [0] : vector<8x1xf32> to vector<1xf32>
    %277 = vector.shape_cast %276 : vector<1xf32> to vector<1x1xf32>
    %278 = vector.broadcast %277 : vector<1x1xf32> to vector<8x1xf32>
    %279 = arith.subf %275, %278 : vector<8x1xf32>
    %280 = math.exp %279 : vector<8x1xf32>
    %cst_78 = arith.constant dense<0.000000e+00> : vector<1xf32>
    %281 = vector.multi_reduction <add>, %280, %cst_78 [0] : vector<8x1xf32> to vector<1xf32>
    %282 = vector.shape_cast %281 : vector<1xf32> to vector<1x1xf32>
    %283 = vector.broadcast %282 : vector<1x1xf32> to vector<8x1xf32>
    %284 = arith.divf %280, %283 : vector<8x1xf32>
    %285 = vector.extract_strided_slice %12 {offsets = [0, 3], sizes = [8, 1], strides = [1, 1]} : vector<8x8xf32> to vector<8x1xf32>
    %286 = vector.broadcast %285 : vector<8x1xf32> to vector<8x32xf32>
    %287 = arith.mulf %268, %286 : vector<8x32xf32>
    %cst_79 = arith.constant 1.000000e+00 : f32
    %288 = vector.broadcast %cst_79 : f32 to vector<8x1xf32>
    %289 = arith.subf %288, %285 : vector<8x1xf32>
    %290 = vector.broadcast %289 : vector<8x1xf32> to vector<8x32xf32>
    %291 = arith.mulf %269, %290 : vector<8x32xf32>
    %292 = arith.addf %287, %291 : vector<8x32xf32>
    %293 = vector.broadcast %284 : vector<8x1xf32> to vector<8x32xf32>
    %294 = arith.mulf %293, %292 : vector<8x32xf32>
    %cst_80 = arith.constant dense<0.000000e+00> : vector<32xf32>
    %295 = vector.multi_reduction <add>, %294, %cst_80 [0] : vector<8x32xf32> to vector<32xf32>
    %296 = vector.shape_cast %295 : vector<32xf32> to vector<1x32xf32>
    %cst_81 = arith.constant dense<0.000000e+00> : vector<1x192xf32>
    %297 = tpu.matmul %296, %18, %cst_81 {dimension_numbers = #tpu.dot_dimension_numbers<[1], [0], [0], [1], [0, 0, 1, 1], [], []>} : vector<1x32xf32>, vector<32x192xf32>, vector<1x192xf32> -> vector<1x192xf32>
    %298 = arith.addf %297, %20 : vector<1x192xf32>
    %299 = vector.extract_strided_slice %265 {offsets = [0, 0], sizes = [1, 32], strides = [1, 1]} : vector<1x193xf32> to vector<1x32xf32>
    %300 = vector.extract_strided_slice %298 {offsets = [0, 0], sizes = [1, 32], strides = [1, 1]} : vector<1x192xf32> to vector<1x32xf32>
    %301 = arith.addf %299, %300 : vector<1x32xf32>
    %302 = arith.negf %301 : vector<1x32xf32>
    %303 = math.exp %302 : vector<1x32xf32>
    %cst_82 = arith.constant 1.000000e+00 : f32
    %304 = vector.broadcast %cst_82 : f32 to vector<1x32xf32>
    %305 = arith.addf %304, %303 : vector<1x32xf32>
    %306 = arith.divf %304, %305 : vector<1x32xf32>
    %307 = vector.extract_strided_slice %265 {offsets = [0, 32], sizes = [1, 32], strides = [1, 1]} : vector<1x193xf32> to vector<1x32xf32>
    %308 = vector.extract_strided_slice %298 {offsets = [0, 32], sizes = [1, 32], strides = [1, 1]} : vector<1x192xf32> to vector<1x32xf32>
    %309 = arith.addf %307, %308 : vector<1x32xf32>
    %310 = arith.negf %309 : vector<1x32xf32>
    %311 = math.exp %310 : vector<1x32xf32>
    %cst_83 = arith.constant 1.000000e+00 : f32
    %312 = vector.broadcast %cst_83 : f32 to vector<1x32xf32>
    %313 = arith.addf %312, %311 : vector<1x32xf32>
    %314 = arith.divf %312, %313 : vector<1x32xf32>
    %315 = vector.extract_strided_slice %265 {offsets = [0, 64], sizes = [1, 32], strides = [1, 1]} : vector<1x193xf32> to vector<1x32xf32>
    %316 = vector.extract_strided_slice %298 {offsets = [0, 64], sizes = [1, 32], strides = [1, 1]} : vector<1x192xf32> to vector<1x32xf32>
    %317 = arith.mulf %306, %316 : vector<1x32xf32>
    %318 = arith.addf %315, %317 : vector<1x32xf32>
    %319 = math.tanh %318 : vector<1x32xf32>
    %cst_84 = arith.constant 1.000000e+00 : f32
    %320 = vector.broadcast %cst_84 : f32 to vector<1x32xf32>
    %321 = arith.subf %320, %314 : vector<1x32xf32>
    %322 = arith.mulf %321, %319 : vector<1x32xf32>
    %323 = arith.mulf %314, %296 : vector<1x32xf32>
    %324 = arith.addf %322, %323 : vector<1x32xf32>
    %325 = vector.extract_strided_slice %298 {offsets = [0, 96], sizes = [1, 32], strides = [1, 1]} : vector<1x192xf32> to vector<1x32xf32>
    %326 = vector.extract_strided_slice %265 {offsets = [0, 96], sizes = [1, 32], strides = [1, 1]} : vector<1x193xf32> to vector<1x32xf32>
    %327 = arith.addf %325, %326 : vector<1x32xf32>
    %328 = arith.negf %327 : vector<1x32xf32>
    %329 = math.exp %328 : vector<1x32xf32>
    %cst_85 = arith.constant 1.000000e+00 : f32
    %330 = vector.broadcast %cst_85 : f32 to vector<1x32xf32>
    %331 = arith.addf %330, %329 : vector<1x32xf32>
    %332 = arith.divf %330, %331 : vector<1x32xf32>
    %333 = vector.extract_strided_slice %298 {offsets = [0, 128], sizes = [1, 32], strides = [1, 1]} : vector<1x192xf32> to vector<1x32xf32>
    %334 = vector.extract_strided_slice %265 {offsets = [0, 128], sizes = [1, 32], strides = [1, 1]} : vector<1x193xf32> to vector<1x32xf32>
    %335 = arith.addf %333, %334 : vector<1x32xf32>
    %336 = arith.negf %335 : vector<1x32xf32>
    %337 = math.exp %336 : vector<1x32xf32>
    %cst_86 = arith.constant 1.000000e+00 : f32
    %338 = vector.broadcast %cst_86 : f32 to vector<1x32xf32>
    %339 = arith.addf %338, %337 : vector<1x32xf32>
    %340 = arith.divf %338, %339 : vector<1x32xf32>
    %341 = vector.extract_strided_slice %298 {offsets = [0, 160], sizes = [1, 32], strides = [1, 1]} : vector<1x192xf32> to vector<1x32xf32>
    %342 = vector.extract_strided_slice %265 {offsets = [0, 160], sizes = [1, 32], strides = [1, 1]} : vector<1x193xf32> to vector<1x32xf32>
    %343 = arith.mulf %332, %342 : vector<1x32xf32>
    %344 = arith.addf %341, %343 : vector<1x32xf32>
    %345 = math.tanh %344 : vector<1x32xf32>
    %cst_87 = arith.constant 1.000000e+00 : f32
    %346 = vector.broadcast %cst_87 : f32 to vector<1x32xf32>
    %347 = arith.subf %346, %340 : vector<1x32xf32>
    %348 = arith.mulf %347, %345 : vector<1x32xf32>
    %349 = arith.mulf %340, %263 : vector<1x32xf32>
    %350 = arith.addf %348, %349 : vector<1x32xf32>
    %351 = arith.addf %324, %350 : vector<1x32xf32>
    %c3 = arith.constant 3 : index
    %c0_88 = arith.constant 0 : index
    %352 = vector.load %arg22[%c3, %c0_88] : memref<8x32xf32, #tpu.memory_space<vmem>>, vector<1x32xf32>
    tpu.vector_store %arg22[%c3, %c0_88], %351 {strides = array<i32>} : memref<8x32xf32, #tpu.memory_space<vmem>>, vector<1x32xf32>,
    %353 = vector.extract_strided_slice %8 {offsets = [4, 0], sizes = [1, 32], strides = [1, 1]} : vector<8x32xf32> to vector<1x32xf32>
    %cst_89 = arith.constant dense<0.000000e+00> : vector<1x193xf32>
    %354 = tpu.matmul %353, %14, %cst_89 {dimension_numbers = #tpu.dot_dimension_numbers<[1], [0], [0], [1], [0, 0, 1, 1], [], []>} : vector<1x32xf32>, vector<32x193xf32>, vector<1x193xf32> -> vector<1x193xf32>
    %355 = arith.addf %354, %16 : vector<1x193xf32>
    %c0_90 = arith.constant 0 : index
    %c0_91 = arith.constant 0 : index
    %356 = vector.load %arg22[%c0_90, %c0_91] : memref<8x32xf32, #tpu.memory_space<vmem>>, vector<8x32xf32>
    %cst_92 = arith.constant dense<0.000000e+00> : vector<8x65xf32>
    %357 = tpu.matmul %356, %22, %cst_92 {dimension_numbers = #tpu.dot_dimension_numbers<[1], [0], [0], [1], [0, 0, 1, 1], [], []>} : vector<8x32xf32>, vector<32x65xf32>, vector<8x65xf32> -> vector<8x65xf32>
    %358 = vector.extract_strided_slice %357 {offsets = [0, 0], sizes = [8, 32], strides = [1, 1]} : vector<8x65xf32> to vector<8x32xf32>
    %359 = vector.extract_strided_slice %357 {offsets = [0, 32], sizes = [8, 32], strides = [1, 1]} : vector<8x65xf32> to vector<8x32xf32>
    %360 = vector.extract_strided_slice %357 {offsets = [0, 64], sizes = [8, 1], strides = [1, 1]} : vector<8x65xf32> to vector<8x1xf32>
    %361 = vector.extract_strided_slice %355 {offsets = [0, 192], sizes = [1, 1], strides = [1, 1]} : vector<1x193xf32> to vector<1x1xf32>
    %362 = vector.broadcast %361 : vector<1x1xf32> to vector<8x1xf32>
    %363 = arith.addf %360, %362 : vector<8x1xf32>
    %364 = vector.extract_strided_slice %10 {offsets = [0, 4], sizes = [8, 1], strides = [1, 1]} : vector<8x8xf32> to vector<8x1xf32>
    %365 = arith.addf %363, %364 : vector<8x1xf32>
    %cst_93 = arith.constant dense<0xFF800000> : vector<1xf32>
    %366 = vector.multi_reduction <maximumf>, %365, %cst_93 [0] : vector<8x1xf32> to vector<1xf32>
    %367 = vector.shape_cast %366 : vector<1xf32> to vector<1x1xf32>
    %368 = vector.broadcast %367 : vector<1x1xf32> to vector<8x1xf32>
    %369 = arith.subf %365, %368 : vector<8x1xf32>
    %370 = math.exp %369 : vector<8x1xf32>
    %cst_94 = arith.constant dense<0.000000e+00> : vector<1xf32>
    %371 = vector.multi_reduction <add>, %370, %cst_94 [0] : vector<8x1xf32> to vector<1xf32>
    %372 = vector.shape_cast %371 : vector<1xf32> to vector<1x1xf32>
    %373 = vector.broadcast %372 : vector<1x1xf32> to vector<8x1xf32>
    %374 = arith.divf %370, %373 : vector<8x1xf32>
    %375 = vector.extract_strided_slice %12 {offsets = [0, 4], sizes = [8, 1], strides = [1, 1]} : vector<8x8xf32> to vector<8x1xf32>
    %376 = vector.broadcast %375 : vector<8x1xf32> to vector<8x32xf32>
    %377 = arith.mulf %358, %376 : vector<8x32xf32>
    %cst_95 = arith.constant 1.000000e+00 : f32
    %378 = vector.broadcast %cst_95 : f32 to vector<8x1xf32>
    %379 = arith.subf %378, %375 : vector<8x1xf32>
    %380 = vector.broadcast %379 : vector<8x1xf32> to vector<8x32xf32>
    %381 = arith.mulf %359, %380 : vector<8x32xf32>
    %382 = arith.addf %377, %381 : vector<8x32xf32>
    %383 = vector.broadcast %374 : vector<8x1xf32> to vector<8x32xf32>
    %384 = arith.mulf %383, %382 : vector<8x32xf32>
    %cst_96 = arith.constant dense<0.000000e+00> : vector<32xf32>
    %385 = vector.multi_reduction <add>, %384, %cst_96 [0] : vector<8x32xf32> to vector<32xf32>
    %386 = vector.shape_cast %385 : vector<32xf32> to vector<1x32xf32>
    %cst_97 = arith.constant dense<0.000000e+00> : vector<1x192xf32>
    %387 = tpu.matmul %386, %18, %cst_97 {dimension_numbers = #tpu.dot_dimension_numbers<[1], [0], [0], [1], [0, 0, 1, 1], [], []>} : vector<1x32xf32>, vector<32x192xf32>, vector<1x192xf32> -> vector<1x192xf32>
    %388 = arith.addf %387, %20 : vector<1x192xf32>
    %389 = vector.extract_strided_slice %355 {offsets = [0, 0], sizes = [1, 32], strides = [1, 1]} : vector<1x193xf32> to vector<1x32xf32>
    %390 = vector.extract_strided_slice %388 {offsets = [0, 0], sizes = [1, 32], strides = [1, 1]} : vector<1x192xf32> to vector<1x32xf32>
    %391 = arith.addf %389, %390 : vector<1x32xf32>
    %392 = arith.negf %391 : vector<1x32xf32>
    %393 = math.exp %392 : vector<1x32xf32>
    %cst_98 = arith.constant 1.000000e+00 : f32
    %394 = vector.broadcast %cst_98 : f32 to vector<1x32xf32>
    %395 = arith.addf %394, %393 : vector<1x32xf32>
    %396 = arith.divf %394, %395 : vector<1x32xf32>
    %397 = vector.extract_strided_slice %355 {offsets = [0, 32], sizes = [1, 32], strides = [1, 1]} : vector<1x193xf32> to vector<1x32xf32>
    %398 = vector.extract_strided_slice %388 {offsets = [0, 32], sizes = [1, 32], strides = [1, 1]} : vector<1x192xf32> to vector<1x32xf32>
    %399 = arith.addf %397, %398 : vector<1x32xf32>
    %400 = arith.negf %399 : vector<1x32xf32>
    %401 = math.exp %400 : vector<1x32xf32>
    %cst_99 = arith.constant 1.000000e+00 : f32
    %402 = vector.broadcast %cst_99 : f32 to vector<1x32xf32>
    %403 = arith.addf %402, %401 : vector<1x32xf32>
    %404 = arith.divf %402, %403 : vector<1x32xf32>
    %405 = vector.extract_strided_slice %355 {offsets = [0, 64], sizes = [1, 32], strides = [1, 1]} : vector<1x193xf32> to vector<1x32xf32>
    %406 = vector.extract_strided_slice %388 {offsets = [0, 64], sizes = [1, 32], strides = [1, 1]} : vector<1x192xf32> to vector<1x32xf32>
    %407 = arith.mulf %396, %406 : vector<1x32xf32>
    %408 = arith.addf %405, %407 : vector<1x32xf32>
    %409 = math.tanh %408 : vector<1x32xf32>
    %cst_100 = arith.constant 1.000000e+00 : f32
    %410 = vector.broadcast %cst_100 : f32 to vector<1x32xf32>
    %411 = arith.subf %410, %404 : vector<1x32xf32>
    %412 = arith.mulf %411, %409 : vector<1x32xf32>
    %413 = arith.mulf %404, %386 : vector<1x32xf32>
    %414 = arith.addf %412, %413 : vector<1x32xf32>
    %415 = vector.extract_strided_slice %388 {offsets = [0, 96], sizes = [1, 32], strides = [1, 1]} : vector<1x192xf32> to vector<1x32xf32>
    %416 = vector.extract_strided_slice %355 {offsets = [0, 96], sizes = [1, 32], strides = [1, 1]} : vector<1x193xf32> to vector<1x32xf32>
    %417 = arith.addf %415, %416 : vector<1x32xf32>
    %418 = arith.negf %417 : vector<1x32xf32>
    %419 = math.exp %418 : vector<1x32xf32>
    %cst_101 = arith.constant 1.000000e+00 : f32
    %420 = vector.broadcast %cst_101 : f32 to vector<1x32xf32>
    %421 = arith.addf %420, %419 : vector<1x32xf32>
    %422 = arith.divf %420, %421 : vector<1x32xf32>
    %423 = vector.extract_strided_slice %388 {offsets = [0, 128], sizes = [1, 32], strides = [1, 1]} : vector<1x192xf32> to vector<1x32xf32>
    %424 = vector.extract_strided_slice %355 {offsets = [0, 128], sizes = [1, 32], strides = [1, 1]} : vector<1x193xf32> to vector<1x32xf32>
    %425 = arith.addf %423, %424 : vector<1x32xf32>
    %426 = arith.negf %425 : vector<1x32xf32>
    %427 = math.exp %426 : vector<1x32xf32>
    %cst_102 = arith.constant 1.000000e+00 : f32
    %428 = vector.broadcast %cst_102 : f32 to vector<1x32xf32>
    %429 = arith.addf %428, %427 : vector<1x32xf32>
    %430 = arith.divf %428, %429 : vector<1x32xf32>
    %431 = vector.extract_strided_slice %388 {offsets = [0, 160], sizes = [1, 32], strides = [1, 1]} : vector<1x192xf32> to vector<1x32xf32>
    %432 = vector.extract_strided_slice %355 {offsets = [0, 160], sizes = [1, 32], strides = [1, 1]} : vector<1x193xf32> to vector<1x32xf32>
    %433 = arith.mulf %422, %432 : vector<1x32xf32>
    %434 = arith.addf %431, %433 : vector<1x32xf32>
    %435 = math.tanh %434 : vector<1x32xf32>
    %cst_103 = arith.constant 1.000000e+00 : f32
    %436 = vector.broadcast %cst_103 : f32 to vector<1x32xf32>
    %437 = arith.subf %436, %430 : vector<1x32xf32>
    %438 = arith.mulf %437, %435 : vector<1x32xf32>
    %439 = arith.mulf %430, %353 : vector<1x32xf32>
    %440 = arith.addf %438, %439 : vector<1x32xf32>
    %441 = arith.addf %414, %440 : vector<1x32xf32>
    %c4 = arith.constant 4 : index
    %c0_104 = arith.constant 0 : index
    %442 = vector.load %arg22[%c4, %c0_104] : memref<8x32xf32, #tpu.memory_space<vmem>>, vector<1x32xf32>
    tpu.vector_store %arg22[%c4, %c0_104], %441 {strides = array<i32>} : memref<8x32xf32, #tpu.memory_space<vmem>>, vector<1x32xf32>,
    %443 = vector.extract_strided_slice %8 {offsets = [5, 0], sizes = [1, 32], strides = [1, 1]} : vector<8x32xf32> to vector<1x32xf32>
    %cst_105 = arith.constant dense<0.000000e+00> : vector<1x193xf32>
    %444 = tpu.matmul %443, %14, %cst_105 {dimension_numbers = #tpu.dot_dimension_numbers<[1], [0], [0], [1], [0, 0, 1, 1], [], []>} : vector<1x32xf32>, vector<32x193xf32>, vector<1x193xf32> -> vector<1x193xf32>
    %445 = arith.addf %444, %16 : vector<1x193xf32>
    %c0_106 = arith.constant 0 : index
    %c0_107 = arith.constant 0 : index
    %446 = vector.load %arg22[%c0_106, %c0_107] : memref<8x32xf32, #tpu.memory_space<vmem>>, vector<8x32xf32>
    %cst_108 = arith.constant dense<0.000000e+00> : vector<8x65xf32>
    %447 = tpu.matmul %446, %22, %cst_108 {dimension_numbers = #tpu.dot_dimension_numbers<[1], [0], [0], [1], [0, 0, 1, 1], [], []>} : vector<8x32xf32>, vector<32x65xf32>, vector<8x65xf32> -> vector<8x65xf32>
    %448 = vector.extract_strided_slice %447 {offsets = [0, 0], sizes = [8, 32], strides = [1, 1]} : vector<8x65xf32> to vector<8x32xf32>
    %449 = vector.extract_strided_slice %447 {offsets = [0, 32], sizes = [8, 32], strides = [1, 1]} : vector<8x65xf32> to vector<8x32xf32>
    %450 = vector.extract_strided_slice %447 {offsets = [0, 64], sizes = [8, 1], strides = [1, 1]} : vector<8x65xf32> to vector<8x1xf32>
    %451 = vector.extract_strided_slice %445 {offsets = [0, 192], sizes = [1, 1], strides = [1, 1]} : vector<1x193xf32> to vector<1x1xf32>
    %452 = vector.broadcast %451 : vector<1x1xf32> to vector<8x1xf32>
    %453 = arith.addf %450, %452 : vector<8x1xf32>
    %454 = vector.extract_strided_slice %10 {offsets = [0, 5], sizes = [8, 1], strides = [1, 1]} : vector<8x8xf32> to vector<8x1xf32>
    %455 = arith.addf %453, %454 : vector<8x1xf32>
    %cst_109 = arith.constant dense<0xFF800000> : vector<1xf32>
    %456 = vector.multi_reduction <maximumf>, %455, %cst_109 [0] : vector<8x1xf32> to vector<1xf32>
    %457 = vector.shape_cast %456 : vector<1xf32> to vector<1x1xf32>
    %458 = vector.broadcast %457 : vector<1x1xf32> to vector<8x1xf32>
    %459 = arith.subf %455, %458 : vector<8x1xf32>
    %460 = math.exp %459 : vector<8x1xf32>
    %cst_110 = arith.constant dense<0.000000e+00> : vector<1xf32>
    %461 = vector.multi_reduction <add>, %460, %cst_110 [0] : vector<8x1xf32> to vector<1xf32>
    %462 = vector.shape_cast %461 : vector<1xf32> to vector<1x1xf32>
    %463 = vector.broadcast %462 : vector<1x1xf32> to vector<8x1xf32>
    %464 = arith.divf %460, %463 : vector<8x1xf32>
    %465 = vector.extract_strided_slice %12 {offsets = [0, 5], sizes = [8, 1], strides = [1, 1]} : vector<8x8xf32> to vector<8x1xf32>
    %466 = vector.broadcast %465 : vector<8x1xf32> to vector<8x32xf32>
    %467 = arith.mulf %448, %466 : vector<8x32xf32>
    %cst_111 = arith.constant 1.000000e+00 : f32
    %468 = vector.broadcast %cst_111 : f32 to vector<8x1xf32>
    %469 = arith.subf %468, %465 : vector<8x1xf32>
    %470 = vector.broadcast %469 : vector<8x1xf32> to vector<8x32xf32>
    %471 = arith.mulf %449, %470 : vector<8x32xf32>
    %472 = arith.addf %467, %471 : vector<8x32xf32>
    %473 = vector.broadcast %464 : vector<8x1xf32> to vector<8x32xf32>
    %474 = arith.mulf %473, %472 : vector<8x32xf32>
    %cst_112 = arith.constant dense<0.000000e+00> : vector<32xf32>
    %475 = vector.multi_reduction <add>, %474, %cst_112 [0] : vector<8x32xf32> to vector<32xf32>
    %476 = vector.shape_cast %475 : vector<32xf32> to vector<1x32xf32>
    %cst_113 = arith.constant dense<0.000000e+00> : vector<1x192xf32>
    %477 = tpu.matmul %476, %18, %cst_113 {dimension_numbers = #tpu.dot_dimension_numbers<[1], [0], [0], [1], [0, 0, 1, 1], [], []>} : vector<1x32xf32>, vector<32x192xf32>, vector<1x192xf32> -> vector<1x192xf32>
    %478 = arith.addf %477, %20 : vector<1x192xf32>
    %479 = vector.extract_strided_slice %445 {offsets = [0, 0], sizes = [1, 32], strides = [1, 1]} : vector<1x193xf32> to vector<1x32xf32>
    %480 = vector.extract_strided_slice %478 {offsets = [0, 0], sizes = [1, 32], strides = [1, 1]} : vector<1x192xf32> to vector<1x32xf32>
    %481 = arith.addf %479, %480 : vector<1x32xf32>
    %482 = arith.negf %481 : vector<1x32xf32>
    %483 = math.exp %482 : vector<1x32xf32>
    %cst_114 = arith.constant 1.000000e+00 : f32
    %484 = vector.broadcast %cst_114 : f32 to vector<1x32xf32>
    %485 = arith.addf %484, %483 : vector<1x32xf32>
    %486 = arith.divf %484, %485 : vector<1x32xf32>
    %487 = vector.extract_strided_slice %445 {offsets = [0, 32], sizes = [1, 32], strides = [1, 1]} : vector<1x193xf32> to vector<1x32xf32>
    %488 = vector.extract_strided_slice %478 {offsets = [0, 32], sizes = [1, 32], strides = [1, 1]} : vector<1x192xf32> to vector<1x32xf32>
    %489 = arith.addf %487, %488 : vector<1x32xf32>
    %490 = arith.negf %489 : vector<1x32xf32>
    %491 = math.exp %490 : vector<1x32xf32>
    %cst_115 = arith.constant 1.000000e+00 : f32
    %492 = vector.broadcast %cst_115 : f32 to vector<1x32xf32>
    %493 = arith.addf %492, %491 : vector<1x32xf32>
    %494 = arith.divf %492, %493 : vector<1x32xf32>
    %495 = vector.extract_strided_slice %445 {offsets = [0, 64], sizes = [1, 32], strides = [1, 1]} : vector<1x193xf32> to vector<1x32xf32>
    %496 = vector.extract_strided_slice %478 {offsets = [0, 64], sizes = [1, 32], strides = [1, 1]} : vector<1x192xf32> to vector<1x32xf32>
    %497 = arith.mulf %486, %496 : vector<1x32xf32>
    %498 = arith.addf %495, %497 : vector<1x32xf32>
    %499 = math.tanh %498 : vector<1x32xf32>
    %cst_116 = arith.constant 1.000000e+00 : f32
    %500 = vector.broadcast %cst_116 : f32 to vector<1x32xf32>
    %501 = arith.subf %500, %494 : vector<1x32xf32>
    %502 = arith.mulf %501, %499 : vector<1x32xf32>
    %503 = arith.mulf %494, %476 : vector<1x32xf32>
    %504 = arith.addf %502, %503 : vector<1x32xf32>
    %505 = vector.extract_strided_slice %478 {offsets = [0, 96], sizes = [1, 32], strides = [1, 1]} : vector<1x192xf32> to vector<1x32xf32>
    %506 = vector.extract_strided_slice %445 {offsets = [0, 96], sizes = [1, 32], strides = [1, 1]} : vector<1x193xf32> to vector<1x32xf32>
    %507 = arith.addf %505, %506 : vector<1x32xf32>
    %508 = arith.negf %507 : vector<1x32xf32>
    %509 = math.exp %508 : vector<1x32xf32>
    %cst_117 = arith.constant 1.000000e+00 : f32
    %510 = vector.broadcast %cst_117 : f32 to vector<1x32xf32>
    %511 = arith.addf %510, %509 : vector<1x32xf32>
    %512 = arith.divf %510, %511 : vector<1x32xf32>
    %513 = vector.extract_strided_slice %478 {offsets = [0, 128], sizes = [1, 32], strides = [1, 1]} : vector<1x192xf32> to vector<1x32xf32>
    %514 = vector.extract_strided_slice %445 {offsets = [0, 128], sizes = [1, 32], strides = [1, 1]} : vector<1x193xf32> to vector<1x32xf32>
    %515 = arith.addf %513, %514 : vector<1x32xf32>
    %516 = arith.negf %515 : vector<1x32xf32>
    %517 = math.exp %516 : vector<1x32xf32>
    %cst_118 = arith.constant 1.000000e+00 : f32
    %518 = vector.broadcast %cst_118 : f32 to vector<1x32xf32>
    %519 = arith.addf %518, %517 : vector<1x32xf32>
    %520 = arith.divf %518, %519 : vector<1x32xf32>
    %521 = vector.extract_strided_slice %478 {offsets = [0, 160], sizes = [1, 32], strides = [1, 1]} : vector<1x192xf32> to vector<1x32xf32>
    %522 = vector.extract_strided_slice %445 {offsets = [0, 160], sizes = [1, 32], strides = [1, 1]} : vector<1x193xf32> to vector<1x32xf32>
    %523 = arith.mulf %512, %522 : vector<1x32xf32>
    %524 = arith.addf %521, %523 : vector<1x32xf32>
    %525 = math.tanh %524 : vector<1x32xf32>
    %cst_119 = arith.constant 1.000000e+00 : f32
    %526 = vector.broadcast %cst_119 : f32 to vector<1x32xf32>
    %527 = arith.subf %526, %520 : vector<1x32xf32>
    %528 = arith.mulf %527, %525 : vector<1x32xf32>
    %529 = arith.mulf %520, %443 : vector<1x32xf32>
    %530 = arith.addf %528, %529 : vector<1x32xf32>
    %531 = arith.addf %504, %530 : vector<1x32xf32>
    %c5 = arith.constant 5 : index
    %c0_120 = arith.constant 0 : index
    %532 = vector.load %arg22[%c5, %c0_120] : memref<8x32xf32, #tpu.memory_space<vmem>>, vector<1x32xf32>
    tpu.vector_store %arg22[%c5, %c0_120], %531 {strides = array<i32>} : memref<8x32xf32, #tpu.memory_space<vmem>>, vector<1x32xf32>,
    %533 = vector.extract_strided_slice %8 {offsets = [6, 0], sizes = [1, 32], strides = [1, 1]} : vector<8x32xf32> to vector<1x32xf32>
    %cst_121 = arith.constant dense<0.000000e+00> : vector<1x193xf32>
    %534 = tpu.matmul %533, %14, %cst_121 {dimension_numbers = #tpu.dot_dimension_numbers<[1], [0], [0], [1], [0, 0, 1, 1], [], []>} : vector<1x32xf32>, vector<32x193xf32>, vector<1x193xf32> -> vector<1x193xf32>
    %535 = arith.addf %534, %16 : vector<1x193xf32>
    %c0_122 = arith.constant 0 : index
    %c0_123 = arith.constant 0 : index
    %536 = vector.load %arg22[%c0_122, %c0_123] : memref<8x32xf32, #tpu.memory_space<vmem>>, vector<8x32xf32>
    %cst_124 = arith.constant dense<0.000000e+00> : vector<8x65xf32>
    %537 = tpu.matmul %536, %22, %cst_124 {dimension_numbers = #tpu.dot_dimension_numbers<[1], [0], [0], [1], [0, 0, 1, 1], [], []>} : vector<8x32xf32>, vector<32x65xf32>, vector<8x65xf32> -> vector<8x65xf32>
    %538 = vector.extract_strided_slice %537 {offsets = [0, 0], sizes = [8, 32], strides = [1, 1]} : vector<8x65xf32> to vector<8x32xf32>
    %539 = vector.extract_strided_slice %537 {offsets = [0, 32], sizes = [8, 32], strides = [1, 1]} : vector<8x65xf32> to vector<8x32xf32>
    %540 = vector.extract_strided_slice %537 {offsets = [0, 64], sizes = [8, 1], strides = [1, 1]} : vector<8x65xf32> to vector<8x1xf32>
    %541 = vector.extract_strided_slice %535 {offsets = [0, 192], sizes = [1, 1], strides = [1, 1]} : vector<1x193xf32> to vector<1x1xf32>
    %542 = vector.broadcast %541 : vector<1x1xf32> to vector<8x1xf32>
    %543 = arith.addf %540, %542 : vector<8x1xf32>
    %544 = vector.extract_strided_slice %10 {offsets = [0, 6], sizes = [8, 1], strides = [1, 1]} : vector<8x8xf32> to vector<8x1xf32>
    %545 = arith.addf %543, %544 : vector<8x1xf32>
    %cst_125 = arith.constant dense<0xFF800000> : vector<1xf32>
    %546 = vector.multi_reduction <maximumf>, %545, %cst_125 [0] : vector<8x1xf32> to vector<1xf32>
    %547 = vector.shape_cast %546 : vector<1xf32> to vector<1x1xf32>
    %548 = vector.broadcast %547 : vector<1x1xf32> to vector<8x1xf32>
    %549 = arith.subf %545, %548 : vector<8x1xf32>
    %550 = math.exp %549 : vector<8x1xf32>
    %cst_126 = arith.constant dense<0.000000e+00> : vector<1xf32>
    %551 = vector.multi_reduction <add>, %550, %cst_126 [0] : vector<8x1xf32> to vector<1xf32>
    %552 = vector.shape_cast %551 : vector<1xf32> to vector<1x1xf32>
    %553 = vector.broadcast %552 : vector<1x1xf32> to vector<8x1xf32>
    %554 = arith.divf %550, %553 : vector<8x1xf32>
    %555 = vector.extract_strided_slice %12 {offsets = [0, 6], sizes = [8, 1], strides = [1, 1]} : vector<8x8xf32> to vector<8x1xf32>
    %556 = vector.broadcast %555 : vector<8x1xf32> to vector<8x32xf32>
    %557 = arith.mulf %538, %556 : vector<8x32xf32>
    %cst_127 = arith.constant 1.000000e+00 : f32
    %558 = vector.broadcast %cst_127 : f32 to vector<8x1xf32>
    %559 = arith.subf %558, %555 : vector<8x1xf32>
    %560 = vector.broadcast %559 : vector<8x1xf32> to vector<8x32xf32>
    %561 = arith.mulf %539, %560 : vector<8x32xf32>
    %562 = arith.addf %557, %561 : vector<8x32xf32>
    %563 = vector.broadcast %554 : vector<8x1xf32> to vector<8x32xf32>
    %564 = arith.mulf %563, %562 : vector<8x32xf32>
    %cst_128 = arith.constant dense<0.000000e+00> : vector<32xf32>
    %565 = vector.multi_reduction <add>, %564, %cst_128 [0] : vector<8x32xf32> to vector<32xf32>
    %566 = vector.shape_cast %565 : vector<32xf32> to vector<1x32xf32>
    %cst_129 = arith.constant dense<0.000000e+00> : vector<1x192xf32>
    %567 = tpu.matmul %566, %18, %cst_129 {dimension_numbers = #tpu.dot_dimension_numbers<[1], [0], [0], [1], [0, 0, 1, 1], [], []>} : vector<1x32xf32>, vector<32x192xf32>, vector<1x192xf32> -> vector<1x192xf32>
    %568 = arith.addf %567, %20 : vector<1x192xf32>
    %569 = vector.extract_strided_slice %535 {offsets = [0, 0], sizes = [1, 32], strides = [1, 1]} : vector<1x193xf32> to vector<1x32xf32>
    %570 = vector.extract_strided_slice %568 {offsets = [0, 0], sizes = [1, 32], strides = [1, 1]} : vector<1x192xf32> to vector<1x32xf32>
    %571 = arith.addf %569, %570 : vector<1x32xf32>
    %572 = arith.negf %571 : vector<1x32xf32>
    %573 = math.exp %572 : vector<1x32xf32>
    %cst_130 = arith.constant 1.000000e+00 : f32
    %574 = vector.broadcast %cst_130 : f32 to vector<1x32xf32>
    %575 = arith.addf %574, %573 : vector<1x32xf32>
    %576 = arith.divf %574, %575 : vector<1x32xf32>
    %577 = vector.extract_strided_slice %535 {offsets = [0, 32], sizes = [1, 32], strides = [1, 1]} : vector<1x193xf32> to vector<1x32xf32>
    %578 = vector.extract_strided_slice %568 {offsets = [0, 32], sizes = [1, 32], strides = [1, 1]} : vector<1x192xf32> to vector<1x32xf32>
    %579 = arith.addf %577, %578 : vector<1x32xf32>
    %580 = arith.negf %579 : vector<1x32xf32>
    %581 = math.exp %580 : vector<1x32xf32>
    %cst_131 = arith.constant 1.000000e+00 : f32
    %582 = vector.broadcast %cst_131 : f32 to vector<1x32xf32>
    %583 = arith.addf %582, %581 : vector<1x32xf32>
    %584 = arith.divf %582, %583 : vector<1x32xf32>
    %585 = vector.extract_strided_slice %535 {offsets = [0, 64], sizes = [1, 32], strides = [1, 1]} : vector<1x193xf32> to vector<1x32xf32>
    %586 = vector.extract_strided_slice %568 {offsets = [0, 64], sizes = [1, 32], strides = [1, 1]} : vector<1x192xf32> to vector<1x32xf32>
    %587 = arith.mulf %576, %586 : vector<1x32xf32>
    %588 = arith.addf %585, %587 : vector<1x32xf32>
    %589 = math.tanh %588 : vector<1x32xf32>
    %cst_132 = arith.constant 1.000000e+00 : f32
    %590 = vector.broadcast %cst_132 : f32 to vector<1x32xf32>
    %591 = arith.subf %590, %584 : vector<1x32xf32>
    %592 = arith.mulf %591, %589 : vector<1x32xf32>
    %593 = arith.mulf %584, %566 : vector<1x32xf32>
    %594 = arith.addf %592, %593 : vector<1x32xf32>
    %595 = vector.extract_strided_slice %568 {offsets = [0, 96], sizes = [1, 32], strides = [1, 1]} : vector<1x192xf32> to vector<1x32xf32>
    %596 = vector.extract_strided_slice %535 {offsets = [0, 96], sizes = [1, 32], strides = [1, 1]} : vector<1x193xf32> to vector<1x32xf32>
    %597 = arith.addf %595, %596 : vector<1x32xf32>
    %598 = arith.negf %597 : vector<1x32xf32>
    %599 = math.exp %598 : vector<1x32xf32>
    %cst_133 = arith.constant 1.000000e+00 : f32
    %600 = vector.broadcast %cst_133 : f32 to vector<1x32xf32>
    %601 = arith.addf %600, %599 : vector<1x32xf32>
    %602 = arith.divf %600, %601 : vector<1x32xf32>
    %603 = vector.extract_strided_slice %568 {offsets = [0, 128], sizes = [1, 32], strides = [1, 1]} : vector<1x192xf32> to vector<1x32xf32>
    %604 = vector.extract_strided_slice %535 {offsets = [0, 128], sizes = [1, 32], strides = [1, 1]} : vector<1x193xf32> to vector<1x32xf32>
    %605 = arith.addf %603, %604 : vector<1x32xf32>
    %606 = arith.negf %605 : vector<1x32xf32>
    %607 = math.exp %606 : vector<1x32xf32>
    %cst_134 = arith.constant 1.000000e+00 : f32
    %608 = vector.broadcast %cst_134 : f32 to vector<1x32xf32>
    %609 = arith.addf %608, %607 : vector<1x32xf32>
    %610 = arith.divf %608, %609 : vector<1x32xf32>
    %611 = vector.extract_strided_slice %568 {offsets = [0, 160], sizes = [1, 32], strides = [1, 1]} : vector<1x192xf32> to vector<1x32xf32>
    %612 = vector.extract_strided_slice %535 {offsets = [0, 160], sizes = [1, 32], strides = [1, 1]} : vector<1x193xf32> to vector<1x32xf32>
    %613 = arith.mulf %602, %612 : vector<1x32xf32>
    %614 = arith.addf %611, %613 : vector<1x32xf32>
    %615 = math.tanh %614 : vector<1x32xf32>
    %cst_135 = arith.constant 1.000000e+00 : f32
    %616 = vector.broadcast %cst_135 : f32 to vector<1x32xf32>
    %617 = arith.subf %616, %610 : vector<1x32xf32>
    %618 = arith.mulf %617, %615 : vector<1x32xf32>
    %619 = arith.mulf %610, %533 : vector<1x32xf32>
    %620 = arith.addf %618, %619 : vector<1x32xf32>
    %621 = arith.addf %594, %620 : vector<1x32xf32>
    %c6 = arith.constant 6 : index
    %c0_136 = arith.constant 0 : index
    %622 = vector.load %arg22[%c6, %c0_136] : memref<8x32xf32, #tpu.memory_space<vmem>>, vector<1x32xf32>
    tpu.vector_store %arg22[%c6, %c0_136], %621 {strides = array<i32>} : memref<8x32xf32, #tpu.memory_space<vmem>>, vector<1x32xf32>,
    %623 = vector.extract_strided_slice %8 {offsets = [7, 0], sizes = [1, 32], strides = [1, 1]} : vector<8x32xf32> to vector<1x32xf32>
    %cst_137 = arith.constant dense<0.000000e+00> : vector<1x193xf32>
    %624 = tpu.matmul %623, %14, %cst_137 {dimension_numbers = #tpu.dot_dimension_numbers<[1], [0], [0], [1], [0, 0, 1, 1], [], []>} : vector<1x32xf32>, vector<32x193xf32>, vector<1x193xf32> -> vector<1x193xf32>
    %625 = arith.addf %624, %16 : vector<1x193xf32>
    %c0_138 = arith.constant 0 : index
    %c0_139 = arith.constant 0 : index
    %626 = vector.load %arg22[%c0_138, %c0_139] : memref<8x32xf32, #tpu.memory_space<vmem>>, vector<8x32xf32>
    %cst_140 = arith.constant dense<0.000000e+00> : vector<8x65xf32>
    %627 = tpu.matmul %626, %22, %cst_140 {dimension_numbers = #tpu.dot_dimension_numbers<[1], [0], [0], [1], [0, 0, 1, 1], [], []>} : vector<8x32xf32>, vector<32x65xf32>, vector<8x65xf32> -> vector<8x65xf32>
    %628 = vector.extract_strided_slice %627 {offsets = [0, 0], sizes = [8, 32], strides = [1, 1]} : vector<8x65xf32> to vector<8x32xf32>
    %629 = vector.extract_strided_slice %627 {offsets = [0, 32], sizes = [8, 32], strides = [1, 1]} : vector<8x65xf32> to vector<8x32xf32>
    %630 = vector.extract_strided_slice %627 {offsets = [0, 64], sizes = [8, 1], strides = [1, 1]} : vector<8x65xf32> to vector<8x1xf32>
    %631 = vector.extract_strided_slice %625 {offsets = [0, 192], sizes = [1, 1], strides = [1, 1]} : vector<1x193xf32> to vector<1x1xf32>
    %632 = vector.broadcast %631 : vector<1x1xf32> to vector<8x1xf32>
    %633 = arith.addf %630, %632 : vector<8x1xf32>
    %634 = vector.extract_strided_slice %10 {offsets = [0, 7], sizes = [8, 1], strides = [1, 1]} : vector<8x8xf32> to vector<8x1xf32>
    %635 = arith.addf %633, %634 : vector<8x1xf32>
    %cst_141 = arith.constant dense<0xFF800000> : vector<1xf32>
    %636 = vector.multi_reduction <maximumf>, %635, %cst_141 [0] : vector<8x1xf32> to vector<1xf32>
    %637 = vector.shape_cast %636 : vector<1xf32> to vector<1x1xf32>
    %638 = vector.broadcast %637 : vector<1x1xf32> to vector<8x1xf32>
    %639 = arith.subf %635, %638 : vector<8x1xf32>
    %640 = math.exp %639 : vector<8x1xf32>
    %cst_142 = arith.constant dense<0.000000e+00> : vector<1xf32>
    %641 = vector.multi_reduction <add>, %640, %cst_142 [0] : vector<8x1xf32> to vector<1xf32>
    %642 = vector.shape_cast %641 : vector<1xf32> to vector<1x1xf32>
    %643 = vector.broadcast %642 : vector<1x1xf32> to vector<8x1xf32>
    %644 = arith.divf %640, %643 : vector<8x1xf32>
    %645 = vector.extract_strided_slice %12 {offsets = [0, 7], sizes = [8, 1], strides = [1, 1]} : vector<8x8xf32> to vector<8x1xf32>
    %646 = vector.broadcast %645 : vector<8x1xf32> to vector<8x32xf32>
    %647 = arith.mulf %628, %646 : vector<8x32xf32>
    %cst_143 = arith.constant 1.000000e+00 : f32
    %648 = vector.broadcast %cst_143 : f32 to vector<8x1xf32>
    %649 = arith.subf %648, %645 : vector<8x1xf32>
    %650 = vector.broadcast %649 : vector<8x1xf32> to vector<8x32xf32>
    %651 = arith.mulf %629, %650 : vector<8x32xf32>
    %652 = arith.addf %647, %651 : vector<8x32xf32>
    %653 = vector.broadcast %644 : vector<8x1xf32> to vector<8x32xf32>
    %654 = arith.mulf %653, %652 : vector<8x32xf32>
    %cst_144 = arith.constant dense<0.000000e+00> : vector<32xf32>
    %655 = vector.multi_reduction <add>, %654, %cst_144 [0] : vector<8x32xf32> to vector<32xf32>
    %656 = vector.shape_cast %655 : vector<32xf32> to vector<1x32xf32>
    %cst_145 = arith.constant dense<0.000000e+00> : vector<1x192xf32>
    %657 = tpu.matmul %656, %18, %cst_145 {dimension_numbers = #tpu.dot_dimension_numbers<[1], [0], [0], [1], [0, 0, 1, 1], [], []>} : vector<1x32xf32>, vector<32x192xf32>, vector<1x192xf32> -> vector<1x192xf32>
    %658 = arith.addf %657, %20 : vector<1x192xf32>
    %659 = vector.extract_strided_slice %625 {offsets = [0, 0], sizes = [1, 32], strides = [1, 1]} : vector<1x193xf32> to vector<1x32xf32>
    %660 = vector.extract_strided_slice %658 {offsets = [0, 0], sizes = [1, 32], strides = [1, 1]} : vector<1x192xf32> to vector<1x32xf32>
    %661 = arith.addf %659, %660 : vector<1x32xf32>
    %662 = arith.negf %661 : vector<1x32xf32>
    %663 = math.exp %662 : vector<1x32xf32>
    %cst_146 = arith.constant 1.000000e+00 : f32
    %664 = vector.broadcast %cst_146 : f32 to vector<1x32xf32>
    %665 = arith.addf %664, %663 : vector<1x32xf32>
    %666 = arith.divf %664, %665 : vector<1x32xf32>
    %667 = vector.extract_strided_slice %625 {offsets = [0, 32], sizes = [1, 32], strides = [1, 1]} : vector<1x193xf32> to vector<1x32xf32>
    %668 = vector.extract_strided_slice %658 {offsets = [0, 32], sizes = [1, 32], strides = [1, 1]} : vector<1x192xf32> to vector<1x32xf32>
    %669 = arith.addf %667, %668 : vector<1x32xf32>
    %670 = arith.negf %669 : vector<1x32xf32>
    %671 = math.exp %670 : vector<1x32xf32>
    %cst_147 = arith.constant 1.000000e+00 : f32
    %672 = vector.broadcast %cst_147 : f32 to vector<1x32xf32>
    %673 = arith.addf %672, %671 : vector<1x32xf32>
    %674 = arith.divf %672, %673 : vector<1x32xf32>
    %675 = vector.extract_strided_slice %625 {offsets = [0, 64], sizes = [1, 32], strides = [1, 1]} : vector<1x193xf32> to vector<1x32xf32>
    %676 = vector.extract_strided_slice %658 {offsets = [0, 64], sizes = [1, 32], strides = [1, 1]} : vector<1x192xf32> to vector<1x32xf32>
    %677 = arith.mulf %666, %676 : vector<1x32xf32>
    %678 = arith.addf %675, %677 : vector<1x32xf32>
    %679 = math.tanh %678 : vector<1x32xf32>
    %cst_148 = arith.constant 1.000000e+00 : f32
    %680 = vector.broadcast %cst_148 : f32 to vector<1x32xf32>
    %681 = arith.subf %680, %674 : vector<1x32xf32>
    %682 = arith.mulf %681, %679 : vector<1x32xf32>
    %683 = arith.mulf %674, %656 : vector<1x32xf32>
    %684 = arith.addf %682, %683 : vector<1x32xf32>
    %685 = vector.extract_strided_slice %658 {offsets = [0, 96], sizes = [1, 32], strides = [1, 1]} : vector<1x192xf32> to vector<1x32xf32>
    %686 = vector.extract_strided_slice %625 {offsets = [0, 96], sizes = [1, 32], strides = [1, 1]} : vector<1x193xf32> to vector<1x32xf32>
    %687 = arith.addf %685, %686 : vector<1x32xf32>
    %688 = arith.negf %687 : vector<1x32xf32>
    %689 = math.exp %688 : vector<1x32xf32>
    %cst_149 = arith.constant 1.000000e+00 : f32
    %690 = vector.broadcast %cst_149 : f32 to vector<1x32xf32>
    %691 = arith.addf %690, %689 : vector<1x32xf32>
    %692 = arith.divf %690, %691 : vector<1x32xf32>
    %693 = vector.extract_strided_slice %658 {offsets = [0, 128], sizes = [1, 32], strides = [1, 1]} : vector<1x192xf32> to vector<1x32xf32>
    %694 = vector.extract_strided_slice %625 {offsets = [0, 128], sizes = [1, 32], strides = [1, 1]} : vector<1x193xf32> to vector<1x32xf32>
    %695 = arith.addf %693, %694 : vector<1x32xf32>
    %696 = arith.negf %695 : vector<1x32xf32>
    %697 = math.exp %696 : vector<1x32xf32>
    %cst_150 = arith.constant 1.000000e+00 : f32
    %698 = vector.broadcast %cst_150 : f32 to vector<1x32xf32>
    %699 = arith.addf %698, %697 : vector<1x32xf32>
    %700 = arith.divf %698, %699 : vector<1x32xf32>
    %701 = vector.extract_strided_slice %658 {offsets = [0, 160], sizes = [1, 32], strides = [1, 1]} : vector<1x192xf32> to vector<1x32xf32>
    %702 = vector.extract_strided_slice %625 {offsets = [0, 160], sizes = [1, 32], strides = [1, 1]} : vector<1x193xf32> to vector<1x32xf32>
    %703 = arith.mulf %692, %702 : vector<1x32xf32>
    %704 = arith.addf %701, %703 : vector<1x32xf32>
    %705 = math.tanh %704 : vector<1x32xf32>
    %cst_151 = arith.constant 1.000000e+00 : f32
    %706 = vector.broadcast %cst_151 : f32 to vector<1x32xf32>
    %707 = arith.subf %706, %700 : vector<1x32xf32>
    %708 = arith.mulf %707, %705 : vector<1x32xf32>
    %709 = arith.mulf %700, %623 : vector<1x32xf32>
    %710 = arith.addf %708, %709 : vector<1x32xf32>
    %711 = arith.addf %684, %710 : vector<1x32xf32>
    %c7 = arith.constant 7 : index
    %c0_152 = arith.constant 0 : index
    %712 = vector.load %arg22[%c7, %c0_152] : memref<8x32xf32, #tpu.memory_space<vmem>>, vector<1x32xf32>
    tpu.vector_store %arg22[%c7, %c0_152], %711 {strides = array<i32>} : memref<8x32xf32, #tpu.memory_space<vmem>>, vector<1x32xf32>,
    %c0_153 = arith.constant 0 : index
    %c0_154 = arith.constant 0 : index
    %713 = vector.load %arg22[%c0_153, %c0_154] : memref<8x32xf32, #tpu.memory_space<vmem>>, vector<8x32xf32>
    %c1_155 = arith.constant 1 : index
    %c0_156 = arith.constant 0 : index
    %c0_157 = arith.constant 0 : index
    %714 = vector.load %arg7[%c1_155, %c0_156, %c0_157] : memref<2x32x193xf32, #tpu.memory_space<vmem>>, vector<1x32x193xf32>
    %715 = vector.shape_cast %714 : vector<1x32x193xf32> to vector<32x193xf32>
    %c1_158 = arith.constant 1 : index
    %c0_159 = arith.constant 0 : index
    %c0_160 = arith.constant 0 : index
    %716 = vector.load %arg8[%c1_158, %c0_159, %c0_160] : memref<2x1x193xf32, #tpu.memory_space<vmem>>, vector<1x1x193xf32>
    %717 = vector.shape_cast %716 : vector<1x1x193xf32> to vector<1x193xf32>
    %c1_161 = arith.constant 1 : index
    %c0_162 = arith.constant 0 : index
    %c0_163 = arith.constant 0 : index
    %718 = vector.load %arg9[%c1_161, %c0_162, %c0_163] : memref<2x32x192xf32, #tpu.memory_space<vmem>>, vector<1x32x192xf32>
    %719 = vector.shape_cast %718 : vector<1x32x192xf32> to vector<32x192xf32>
    %c1_164 = arith.constant 1 : index
    %c0_165 = arith.constant 0 : index
    %c0_166 = arith.constant 0 : index
    %720 = vector.load %arg10[%c1_164, %c0_165, %c0_166] : memref<2x1x192xf32, #tpu.memory_space<vmem>>, vector<1x1x192xf32>
    %721 = vector.shape_cast %720 : vector<1x1x192xf32> to vector<1x192xf32>
    %c1_167 = arith.constant 1 : index
    %c0_168 = arith.constant 0 : index
    %c0_169 = arith.constant 0 : index
    %722 = vector.load %arg11[%c1_167, %c0_168, %c0_169] : memref<2x32x65xf32, #tpu.memory_space<vmem>>, vector<1x32x65xf32>
    %723 = vector.shape_cast %722 : vector<1x32x65xf32> to vector<32x65xf32>
    %cst_170 = arith.constant 0.000000e+00 : f32
    %724 = vector.broadcast %cst_170 : f32 to vector<8x32xf32>
    %c0_171 = arith.constant 0 : index
    %c0_172 = arith.constant 0 : index
    %725 = vector.load %arg23[%c0_171, %c0_172] : memref<8x32xf32, #tpu.memory_space<vmem>>, vector<8x32xf32>
    tpu.vector_store %arg23[%c0_171, %c0_172], %724 {strides = array<i32>} : memref<8x32xf32, #tpu.memory_space<vmem>>, vector<8x32xf32>,
    %726 = vector.extract_strided_slice %713 {offsets = [0, 0], sizes = [1, 32], strides = [1, 1]} : vector<8x32xf32> to vector<1x32xf32>
    %cst_173 = arith.constant dense<0.000000e+00> : vector<1x193xf32>
    %727 = tpu.matmul %726, %715, %cst_173 {dimension_numbers = #tpu.dot_dimension_numbers<[1], [0], [0], [1], [0, 0, 1, 1], [], []>} : vector<1x32xf32>, vector<32x193xf32>, vector<1x193xf32> -> vector<1x193xf32>
    %728 = arith.addf %727, %717 : vector<1x193xf32>
    %cst_174 = arith.constant 0.000000e+00 : f32
    %729 = vector.broadcast %cst_174 : f32 to vector<1x32xf32>
    %730 = vector.extract_strided_slice %728 {offsets = [0, 0], sizes = [1, 32], strides = [1, 1]} : vector<1x193xf32> to vector<1x32xf32>
    %731 = vector.extract_strided_slice %721 {offsets = [0, 0], sizes = [1, 32], strides = [1, 1]} : vector<1x192xf32> to vector<1x32xf32>
    %732 = arith.addf %730, %731 : vector<1x32xf32>
    %733 = arith.negf %732 : vector<1x32xf32>
    %734 = math.exp %733 : vector<1x32xf32>
    %cst_175 = arith.constant 1.000000e+00 : f32
    %735 = vector.broadcast %cst_175 : f32 to vector<1x32xf32>
    %736 = arith.addf %735, %734 : vector<1x32xf32>
    %737 = arith.divf %735, %736 : vector<1x32xf32>
    %738 = vector.extract_strided_slice %728 {offsets = [0, 32], sizes = [1, 32], strides = [1, 1]} : vector<1x193xf32> to vector<1x32xf32>
    %739 = vector.extract_strided_slice %721 {offsets = [0, 32], sizes = [1, 32], strides = [1, 1]} : vector<1x192xf32> to vector<1x32xf32>
    %740 = arith.addf %738, %739 : vector<1x32xf32>
    %741 = arith.negf %740 : vector<1x32xf32>
    %742 = math.exp %741 : vector<1x32xf32>
    %cst_176 = arith.constant 1.000000e+00 : f32
    %743 = vector.broadcast %cst_176 : f32 to vector<1x32xf32>
    %744 = arith.addf %743, %742 : vector<1x32xf32>
    %745 = arith.divf %743, %744 : vector<1x32xf32>
    %746 = vector.extract_strided_slice %728 {offsets = [0, 64], sizes = [1, 32], strides = [1, 1]} : vector<1x193xf32> to vector<1x32xf32>
    %747 = vector.extract_strided_slice %721 {offsets = [0, 64], sizes = [1, 32], strides = [1, 1]} : vector<1x192xf32> to vector<1x32xf32>
    %748 = arith.mulf %737, %747 : vector<1x32xf32>
    %749 = arith.addf %746, %748 : vector<1x32xf32>
    %750 = math.tanh %749 : vector<1x32xf32>
    %cst_177 = arith.constant 1.000000e+00 : f32
    %751 = vector.broadcast %cst_177 : f32 to vector<1x32xf32>
    %752 = arith.subf %751, %745 : vector<1x32xf32>
    %753 = arith.mulf %752, %750 : vector<1x32xf32>
    %754 = arith.mulf %745, %729 : vector<1x32xf32>
    %755 = arith.addf %753, %754 : vector<1x32xf32>
    %756 = vector.extract_strided_slice %721 {offsets = [0, 96], sizes = [1, 32], strides = [1, 1]} : vector<1x192xf32> to vector<1x32xf32>
    %757 = vector.extract_strided_slice %728 {offsets = [0, 96], sizes = [1, 32], strides = [1, 1]} : vector<1x193xf32> to vector<1x32xf32>
    %758 = arith.addf %756, %757 : vector<1x32xf32>
    %759 = arith.negf %758 : vector<1x32xf32>
    %760 = math.exp %759 : vector<1x32xf32>
    %cst_178 = arith.constant 1.000000e+00 : f32
    %761 = vector.broadcast %cst_178 : f32 to vector<1x32xf32>
    %762 = arith.addf %761, %760 : vector<1x32xf32>
    %763 = arith.divf %761, %762 : vector<1x32xf32>
    %764 = vector.extract_strided_slice %721 {offsets = [0, 128], sizes = [1, 32], strides = [1, 1]} : vector<1x192xf32> to vector<1x32xf32>
    %765 = vector.extract_strided_slice %728 {offsets = [0, 128], sizes = [1, 32], strides = [1, 1]} : vector<1x193xf32> to vector<1x32xf32>
    %766 = arith.addf %764, %765 : vector<1x32xf32>
    %767 = arith.negf %766 : vector<1x32xf32>
    %768 = math.exp %767 : vector<1x32xf32>
    %cst_179 = arith.constant 1.000000e+00 : f32
    %769 = vector.broadcast %cst_179 : f32 to vector<1x32xf32>
    %770 = arith.addf %769, %768 : vector<1x32xf32>
    %771 = arith.divf %769, %770 : vector<1x32xf32>
    %772 = vector.extract_strided_slice %721 {offsets = [0, 160], sizes = [1, 32], strides = [1, 1]} : vector<1x192xf32> to vector<1x32xf32>
    %773 = vector.extract_strided_slice %728 {offsets = [0, 160], sizes = [1, 32], strides = [1, 1]} : vector<1x193xf32> to vector<1x32xf32>
    %774 = arith.mulf %763, %773 : vector<1x32xf32>
    %775 = arith.addf %772, %774 : vector<1x32xf32>
    %776 = math.tanh %775 : vector<1x32xf32>
    %cst_180 = arith.constant 1.000000e+00 : f32
    %777 = vector.broadcast %cst_180 : f32 to vector<1x32xf32>
    %778 = arith.subf %777, %771 : vector<1x32xf32>
    %779 = arith.mulf %778, %776 : vector<1x32xf32>
    %780 = arith.mulf %771, %726 : vector<1x32xf32>
    %781 = arith.addf %779, %780 : vector<1x32xf32>
    %782 = arith.addf %755, %781 : vector<1x32xf32>
    %c0_181 = arith.constant 0 : index
    %c0_182 = arith.constant 0 : index
    %783 = vector.load %arg23[%c0_181, %c0_182] : memref<8x32xf32, #tpu.memory_space<vmem>>, vector<1x32xf32>
    tpu.vector_store %arg23[%c0_181, %c0_182], %782 {strides = array<i32>} : memref<8x32xf32, #tpu.memory_space<vmem>>, vector<1x32xf32>,
    %784 = vector.extract_strided_slice %713 {offsets = [1, 0], sizes = [1, 32], strides = [1, 1]} : vector<8x32xf32> to vector<1x32xf32>
    %cst_183 = arith.constant dense<0.000000e+00> : vector<1x193xf32>
    %785 = tpu.matmul %784, %715, %cst_183 {dimension_numbers = #tpu.dot_dimension_numbers<[1], [0], [0], [1], [0, 0, 1, 1], [], []>} : vector<1x32xf32>, vector<32x193xf32>, vector<1x193xf32> -> vector<1x193xf32>
    %786 = arith.addf %785, %717 : vector<1x193xf32>
    %c0_184 = arith.constant 0 : index
    %c0_185 = arith.constant 0 : index
    %787 = vector.load %arg23[%c0_184, %c0_185] : memref<8x32xf32, #tpu.memory_space<vmem>>, vector<8x32xf32>
    %cst_186 = arith.constant dense<0.000000e+00> : vector<8x65xf32>
    %788 = tpu.matmul %787, %723, %cst_186 {dimension_numbers = #tpu.dot_dimension_numbers<[1], [0], [0], [1], [0, 0, 1, 1], [], []>} : vector<8x32xf32>, vector<32x65xf32>, vector<8x65xf32> -> vector<8x65xf32>
    %789 = vector.extract_strided_slice %788 {offsets = [0, 0], sizes = [8, 32], strides = [1, 1]} : vector<8x65xf32> to vector<8x32xf32>
    %790 = vector.extract_strided_slice %788 {offsets = [0, 32], sizes = [8, 32], strides = [1, 1]} : vector<8x65xf32> to vector<8x32xf32>
    %791 = vector.extract_strided_slice %788 {offsets = [0, 64], sizes = [8, 1], strides = [1, 1]} : vector<8x65xf32> to vector<8x1xf32>
    %792 = vector.extract_strided_slice %786 {offsets = [0, 192], sizes = [1, 1], strides = [1, 1]} : vector<1x193xf32> to vector<1x1xf32>
    %793 = vector.broadcast %792 : vector<1x1xf32> to vector<8x1xf32>
    %794 = arith.addf %791, %793 : vector<8x1xf32>
    %795 = vector.extract_strided_slice %10 {offsets = [0, 1], sizes = [8, 1], strides = [1, 1]} : vector<8x8xf32> to vector<8x1xf32>
    %796 = arith.addf %794, %795 : vector<8x1xf32>
    %cst_187 = arith.constant dense<0xFF800000> : vector<1xf32>
    %797 = vector.multi_reduction <maximumf>, %796, %cst_187 [0] : vector<8x1xf32> to vector<1xf32>
    %798 = vector.shape_cast %797 : vector<1xf32> to vector<1x1xf32>
    %799 = vector.broadcast %798 : vector<1x1xf32> to vector<8x1xf32>
    %800 = arith.subf %796, %799 : vector<8x1xf32>
    %801 = math.exp %800 : vector<8x1xf32>
    %cst_188 = arith.constant dense<0.000000e+00> : vector<1xf32>
    %802 = vector.multi_reduction <add>, %801, %cst_188 [0] : vector<8x1xf32> to vector<1xf32>
    %803 = vector.shape_cast %802 : vector<1xf32> to vector<1x1xf32>
    %804 = vector.broadcast %803 : vector<1x1xf32> to vector<8x1xf32>
    %805 = arith.divf %801, %804 : vector<8x1xf32>
    %806 = vector.extract_strided_slice %12 {offsets = [0, 1], sizes = [8, 1], strides = [1, 1]} : vector<8x8xf32> to vector<8x1xf32>
    %807 = vector.broadcast %806 : vector<8x1xf32> to vector<8x32xf32>
    %808 = arith.mulf %789, %807 : vector<8x32xf32>
    %cst_189 = arith.constant 1.000000e+00 : f32
    %809 = vector.broadcast %cst_189 : f32 to vector<8x1xf32>
    %810 = arith.subf %809, %806 : vector<8x1xf32>
    %811 = vector.broadcast %810 : vector<8x1xf32> to vector<8x32xf32>
    %812 = arith.mulf %790, %811 : vector<8x32xf32>
    %813 = arith.addf %808, %812 : vector<8x32xf32>
    %814 = vector.broadcast %805 : vector<8x1xf32> to vector<8x32xf32>
    %815 = arith.mulf %814, %813 : vector<8x32xf32>
    %cst_190 = arith.constant dense<0.000000e+00> : vector<32xf32>
    %816 = vector.multi_reduction <add>, %815, %cst_190 [0] : vector<8x32xf32> to vector<32xf32>
    %817 = vector.shape_cast %816 : vector<32xf32> to vector<1x32xf32>
    %cst_191 = arith.constant dense<0.000000e+00> : vector<1x192xf32>
    %818 = tpu.matmul %817, %719, %cst_191 {dimension_numbers = #tpu.dot_dimension_numbers<[1], [0], [0], [1], [0, 0, 1, 1], [], []>} : vector<1x32xf32>, vector<32x192xf32>, vector<1x192xf32> -> vector<1x192xf32>
    %819 = arith.addf %818, %721 : vector<1x192xf32>
    %820 = vector.extract_strided_slice %786 {offsets = [0, 0], sizes = [1, 32], strides = [1, 1]} : vector<1x193xf32> to vector<1x32xf32>
    %821 = vector.extract_strided_slice %819 {offsets = [0, 0], sizes = [1, 32], strides = [1, 1]} : vector<1x192xf32> to vector<1x32xf32>
    %822 = arith.addf %820, %821 : vector<1x32xf32>
    %823 = arith.negf %822 : vector<1x32xf32>
    %824 = math.exp %823 : vector<1x32xf32>
    %cst_192 = arith.constant 1.000000e+00 : f32
    %825 = vector.broadcast %cst_192 : f32 to vector<1x32xf32>
    %826 = arith.addf %825, %824 : vector<1x32xf32>
    %827 = arith.divf %825, %826 : vector<1x32xf32>
    %828 = vector.extract_strided_slice %786 {offsets = [0, 32], sizes = [1, 32], strides = [1, 1]} : vector<1x193xf32> to vector<1x32xf32>
    %829 = vector.extract_strided_slice %819 {offsets = [0, 32], sizes = [1, 32], strides = [1, 1]} : vector<1x192xf32> to vector<1x32xf32>
    %830 = arith.addf %828, %829 : vector<1x32xf32>
    %831 = arith.negf %830 : vector<1x32xf32>
    %832 = math.exp %831 : vector<1x32xf32>
    %cst_193 = arith.constant 1.000000e+00 : f32
    %833 = vector.broadcast %cst_193 : f32 to vector<1x32xf32>
    %834 = arith.addf %833, %832 : vector<1x32xf32>
    %835 = arith.divf %833, %834 : vector<1x32xf32>
    %836 = vector.extract_strided_slice %786 {offsets = [0, 64], sizes = [1, 32], strides = [1, 1]} : vector<1x193xf32> to vector<1x32xf32>
    %837 = vector.extract_strided_slice %819 {offsets = [0, 64], sizes = [1, 32], strides = [1, 1]} : vector<1x192xf32> to vector<1x32xf32>
    %838 = arith.mulf %827, %837 : vector<1x32xf32>
    %839 = arith.addf %836, %838 : vector<1x32xf32>
    %840 = math.tanh %839 : vector<1x32xf32>
    %cst_194 = arith.constant 1.000000e+00 : f32
    %841 = vector.broadcast %cst_194 : f32 to vector<1x32xf32>
    %842 = arith.subf %841, %835 : vector<1x32xf32>
    %843 = arith.mulf %842, %840 : vector<1x32xf32>
    %844 = arith.mulf %835, %817 : vector<1x32xf32>
    %845 = arith.addf %843, %844 : vector<1x32xf32>
    %846 = vector.extract_strided_slice %819 {offsets = [0, 96], sizes = [1, 32], strides = [1, 1]} : vector<1x192xf32> to vector<1x32xf32>
    %847 = vector.extract_strided_slice %786 {offsets = [0, 96], sizes = [1, 32], strides = [1, 1]} : vector<1x193xf32> to vector<1x32xf32>
    %848 = arith.addf %846, %847 : vector<1x32xf32>
    %849 = arith.negf %848 : vector<1x32xf32>
    %850 = math.exp %849 : vector<1x32xf32>
    %cst_195 = arith.constant 1.000000e+00 : f32
    %851 = vector.broadcast %cst_195 : f32 to vector<1x32xf32>
    %852 = arith.addf %851, %850 : vector<1x32xf32>
    %853 = arith.divf %851, %852 : vector<1x32xf32>
    %854 = vector.extract_strided_slice %819 {offsets = [0, 128], sizes = [1, 32], strides = [1, 1]} : vector<1x192xf32> to vector<1x32xf32>
    %855 = vector.extract_strided_slice %786 {offsets = [0, 128], sizes = [1, 32], strides = [1, 1]} : vector<1x193xf32> to vector<1x32xf32>
    %856 = arith.addf %854, %855 : vector<1x32xf32>
    %857 = arith.negf %856 : vector<1x32xf32>
    %858 = math.exp %857 : vector<1x32xf32>
    %cst_196 = arith.constant 1.000000e+00 : f32
    %859 = vector.broadcast %cst_196 : f32 to vector<1x32xf32>
    %860 = arith.addf %859, %858 : vector<1x32xf32>
    %861 = arith.divf %859, %860 : vector<1x32xf32>
    %862 = vector.extract_strided_slice %819 {offsets = [0, 160], sizes = [1, 32], strides = [1, 1]} : vector<1x192xf32> to vector<1x32xf32>
    %863 = vector.extract_strided_slice %786 {offsets = [0, 160], sizes = [1, 32], strides = [1, 1]} : vector<1x193xf32> to vector<1x32xf32>
    %864 = arith.mulf %853, %863 : vector<1x32xf32>
    %865 = arith.addf %862, %864 : vector<1x32xf32>
    %866 = math.tanh %865 : vector<1x32xf32>
    %cst_197 = arith.constant 1.000000e+00 : f32
    %867 = vector.broadcast %cst_197 : f32 to vector<1x32xf32>
    %868 = arith.subf %867, %861 : vector<1x32xf32>
    %869 = arith.mulf %868, %866 : vector<1x32xf32>
    %870 = arith.mulf %861, %784 : vector<1x32xf32>
    %871 = arith.addf %869, %870 : vector<1x32xf32>
    %872 = arith.addf %845, %871 : vector<1x32xf32>
    %c1_198 = arith.constant 1 : index
    %c0_199 = arith.constant 0 : index
    %873 = vector.load %arg23[%c1_198, %c0_199] : memref<8x32xf32, #tpu.memory_space<vmem>>, vector<1x32xf32>
    tpu.vector_store %arg23[%c1_198, %c0_199], %872 {strides = array<i32>} : memref<8x32xf32, #tpu.memory_space<vmem>>, vector<1x32xf32>,
    %874 = vector.extract_strided_slice %713 {offsets = [2, 0], sizes = [1, 32], strides = [1, 1]} : vector<8x32xf32> to vector<1x32xf32>
    %cst_200 = arith.constant dense<0.000000e+00> : vector<1x193xf32>
    %875 = tpu.matmul %874, %715, %cst_200 {dimension_numbers = #tpu.dot_dimension_numbers<[1], [0], [0], [1], [0, 0, 1, 1], [], []>} : vector<1x32xf32>, vector<32x193xf32>, vector<1x193xf32> -> vector<1x193xf32>
    %876 = arith.addf %875, %717 : vector<1x193xf32>
    %c0_201 = arith.constant 0 : index
    %c0_202 = arith.constant 0 : index
    %877 = vector.load %arg23[%c0_201, %c0_202] : memref<8x32xf32, #tpu.memory_space<vmem>>, vector<8x32xf32>
    %cst_203 = arith.constant dense<0.000000e+00> : vector<8x65xf32>
    %878 = tpu.matmul %877, %723, %cst_203 {dimension_numbers = #tpu.dot_dimension_numbers<[1], [0], [0], [1], [0, 0, 1, 1], [], []>} : vector<8x32xf32>, vector<32x65xf32>, vector<8x65xf32> -> vector<8x65xf32>
    %879 = vector.extract_strided_slice %878 {offsets = [0, 0], sizes = [8, 32], strides = [1, 1]} : vector<8x65xf32> to vector<8x32xf32>
    %880 = vector.extract_strided_slice %878 {offsets = [0, 32], sizes = [8, 32], strides = [1, 1]} : vector<8x65xf32> to vector<8x32xf32>
    %881 = vector.extract_strided_slice %878 {offsets = [0, 64], sizes = [8, 1], strides = [1, 1]} : vector<8x65xf32> to vector<8x1xf32>
    %882 = vector.extract_strided_slice %876 {offsets = [0, 192], sizes = [1, 1], strides = [1, 1]} : vector<1x193xf32> to vector<1x1xf32>
    %883 = vector.broadcast %882 : vector<1x1xf32> to vector<8x1xf32>
    %884 = arith.addf %881, %883 : vector<8x1xf32>
    %885 = vector.extract_strided_slice %10 {offsets = [0, 2], sizes = [8, 1], strides = [1, 1]} : vector<8x8xf32> to vector<8x1xf32>
    %886 = arith.addf %884, %885 : vector<8x1xf32>
    %cst_204 = arith.constant dense<0xFF800000> : vector<1xf32>
    %887 = vector.multi_reduction <maximumf>, %886, %cst_204 [0] : vector<8x1xf32> to vector<1xf32>
    %888 = vector.shape_cast %887 : vector<1xf32> to vector<1x1xf32>
    %889 = vector.broadcast %888 : vector<1x1xf32> to vector<8x1xf32>
    %890 = arith.subf %886, %889 : vector<8x1xf32>
    %891 = math.exp %890 : vector<8x1xf32>
    %cst_205 = arith.constant dense<0.000000e+00> : vector<1xf32>
    %892 = vector.multi_reduction <add>, %891, %cst_205 [0] : vector<8x1xf32> to vector<1xf32>
    %893 = vector.shape_cast %892 : vector<1xf32> to vector<1x1xf32>
    %894 = vector.broadcast %893 : vector<1x1xf32> to vector<8x1xf32>
    %895 = arith.divf %891, %894 : vector<8x1xf32>
    %896 = vector.extract_strided_slice %12 {offsets = [0, 2], sizes = [8, 1], strides = [1, 1]} : vector<8x8xf32> to vector<8x1xf32>
    %897 = vector.broadcast %896 : vector<8x1xf32> to vector<8x32xf32>
    %898 = arith.mulf %879, %897 : vector<8x32xf32>
    %cst_206 = arith.constant 1.000000e+00 : f32
    %899 = vector.broadcast %cst_206 : f32 to vector<8x1xf32>
    %900 = arith.subf %899, %896 : vector<8x1xf32>
    %901 = vector.broadcast %900 : vector<8x1xf32> to vector<8x32xf32>
    %902 = arith.mulf %880, %901 : vector<8x32xf32>
    %903 = arith.addf %898, %902 : vector<8x32xf32>
    %904 = vector.broadcast %895 : vector<8x1xf32> to vector<8x32xf32>
    %905 = arith.mulf %904, %903 : vector<8x32xf32>
    %cst_207 = arith.constant dense<0.000000e+00> : vector<32xf32>
    %906 = vector.multi_reduction <add>, %905, %cst_207 [0] : vector<8x32xf32> to vector<32xf32>
    %907 = vector.shape_cast %906 : vector<32xf32> to vector<1x32xf32>
    %cst_208 = arith.constant dense<0.000000e+00> : vector<1x192xf32>
    %908 = tpu.matmul %907, %719, %cst_208 {dimension_numbers = #tpu.dot_dimension_numbers<[1], [0], [0], [1], [0, 0, 1, 1], [], []>} : vector<1x32xf32>, vector<32x192xf32>, vector<1x192xf32> -> vector<1x192xf32>
    %909 = arith.addf %908, %721 : vector<1x192xf32>
    %910 = vector.extract_strided_slice %876 {offsets = [0, 0], sizes = [1, 32], strides = [1, 1]} : vector<1x193xf32> to vector<1x32xf32>
    %911 = vector.extract_strided_slice %909 {offsets = [0, 0], sizes = [1, 32], strides = [1, 1]} : vector<1x192xf32> to vector<1x32xf32>
    %912 = arith.addf %910, %911 : vector<1x32xf32>
    %913 = arith.negf %912 : vector<1x32xf32>
    %914 = math.exp %913 : vector<1x32xf32>
    %cst_209 = arith.constant 1.000000e+00 : f32
    %915 = vector.broadcast %cst_209 : f32 to vector<1x32xf32>
    %916 = arith.addf %915, %914 : vector<1x32xf32>
    %917 = arith.divf %915, %916 : vector<1x32xf32>
    %918 = vector.extract_strided_slice %876 {offsets = [0, 32], sizes = [1, 32], strides = [1, 1]} : vector<1x193xf32> to vector<1x32xf32>
    %919 = vector.extract_strided_slice %909 {offsets = [0, 32], sizes = [1, 32], strides = [1, 1]} : vector<1x192xf32> to vector<1x32xf32>
    %920 = arith.addf %918, %919 : vector<1x32xf32>
    %921 = arith.negf %920 : vector<1x32xf32>
    %922 = math.exp %921 : vector<1x32xf32>
    %cst_210 = arith.constant 1.000000e+00 : f32
    %923 = vector.broadcast %cst_210 : f32 to vector<1x32xf32>
    %924 = arith.addf %923, %922 : vector<1x32xf32>
    %925 = arith.divf %923, %924 : vector<1x32xf32>
    %926 = vector.extract_strided_slice %876 {offsets = [0, 64], sizes = [1, 32], strides = [1, 1]} : vector<1x193xf32> to vector<1x32xf32>
    %927 = vector.extract_strided_slice %909 {offsets = [0, 64], sizes = [1, 32], strides = [1, 1]} : vector<1x192xf32> to vector<1x32xf32>
    %928 = arith.mulf %917, %927 : vector<1x32xf32>
    %929 = arith.addf %926, %928 : vector<1x32xf32>
    %930 = math.tanh %929 : vector<1x32xf32>
    %cst_211 = arith.constant 1.000000e+00 : f32
    %931 = vector.broadcast %cst_211 : f32 to vector<1x32xf32>
    %932 = arith.subf %931, %925 : vector<1x32xf32>
    %933 = arith.mulf %932, %930 : vector<1x32xf32>
    %934 = arith.mulf %925, %907 : vector<1x32xf32>
    %935 = arith.addf %933, %934 : vector<1x32xf32>
    %936 = vector.extract_strided_slice %909 {offsets = [0, 96], sizes = [1, 32], strides = [1, 1]} : vector<1x192xf32> to vector<1x32xf32>
    %937 = vector.extract_strided_slice %876 {offsets = [0, 96], sizes = [1, 32], strides = [1, 1]} : vector<1x193xf32> to vector<1x32xf32>
    %938 = arith.addf %936, %937 : vector<1x32xf32>
    %939 = arith.negf %938 : vector<1x32xf32>
    %940 = math.exp %939 : vector<1x32xf32>
    %cst_212 = arith.constant 1.000000e+00 : f32
    %941 = vector.broadcast %cst_212 : f32 to vector<1x32xf32>
    %942 = arith.addf %941, %940 : vector<1x32xf32>
    %943 = arith.divf %941, %942 : vector<1x32xf32>
    %944 = vector.extract_strided_slice %909 {offsets = [0, 128], sizes = [1, 32], strides = [1, 1]} : vector<1x192xf32> to vector<1x32xf32>
    %945 = vector.extract_strided_slice %876 {offsets = [0, 128], sizes = [1, 32], strides = [1, 1]} : vector<1x193xf32> to vector<1x32xf32>
    %946 = arith.addf %944, %945 : vector<1x32xf32>
    %947 = arith.negf %946 : vector<1x32xf32>
    %948 = math.exp %947 : vector<1x32xf32>
    %cst_213 = arith.constant 1.000000e+00 : f32
    %949 = vector.broadcast %cst_213 : f32 to vector<1x32xf32>
    %950 = arith.addf %949, %948 : vector<1x32xf32>
    %951 = arith.divf %949, %950 : vector<1x32xf32>
    %952 = vector.extract_strided_slice %909 {offsets = [0, 160], sizes = [1, 32], strides = [1, 1]} : vector<1x192xf32> to vector<1x32xf32>
    %953 = vector.extract_strided_slice %876 {offsets = [0, 160], sizes = [1, 32], strides = [1, 1]} : vector<1x193xf32> to vector<1x32xf32>
    %954 = arith.mulf %943, %953 : vector<1x32xf32>
    %955 = arith.addf %952, %954 : vector<1x32xf32>
    %956 = math.tanh %955 : vector<1x32xf32>
    %cst_214 = arith.constant 1.000000e+00 : f32
    %957 = vector.broadcast %cst_214 : f32 to vector<1x32xf32>
    %958 = arith.subf %957, %951 : vector<1x32xf32>
    %959 = arith.mulf %958, %956 : vector<1x32xf32>
    %960 = arith.mulf %951, %874 : vector<1x32xf32>
    %961 = arith.addf %959, %960 : vector<1x32xf32>
    %962 = arith.addf %935, %961 : vector<1x32xf32>
    %c2_215 = arith.constant 2 : index
    %c0_216 = arith.constant 0 : index
    %963 = vector.load %arg23[%c2_215, %c0_216] : memref<8x32xf32, #tpu.memory_space<vmem>>, vector<1x32xf32>
    tpu.vector_store %arg23[%c2_215, %c0_216], %962 {strides = array<i32>} : memref<8x32xf32, #tpu.memory_space<vmem>>, vector<1x32xf32>,
    %964 = vector.extract_strided_slice %713 {offsets = [3, 0], sizes = [1, 32], strides = [1, 1]} : vector<8x32xf32> to vector<1x32xf32>
    %cst_217 = arith.constant dense<0.000000e+00> : vector<1x193xf32>
    %965 = tpu.matmul %964, %715, %cst_217 {dimension_numbers = #tpu.dot_dimension_numbers<[1], [0], [0], [1], [0, 0, 1, 1], [], []>} : vector<1x32xf32>, vector<32x193xf32>, vector<1x193xf32> -> vector<1x193xf32>
    %966 = arith.addf %965, %717 : vector<1x193xf32>
    %c0_218 = arith.constant 0 : index
    %c0_219 = arith.constant 0 : index
    %967 = vector.load %arg23[%c0_218, %c0_219] : memref<8x32xf32, #tpu.memory_space<vmem>>, vector<8x32xf32>
    %cst_220 = arith.constant dense<0.000000e+00> : vector<8x65xf32>
    %968 = tpu.matmul %967, %723, %cst_220 {dimension_numbers = #tpu.dot_dimension_numbers<[1], [0], [0], [1], [0, 0, 1, 1], [], []>} : vector<8x32xf32>, vector<32x65xf32>, vector<8x65xf32> -> vector<8x65xf32>
    %969 = vector.extract_strided_slice %968 {offsets = [0, 0], sizes = [8, 32], strides = [1, 1]} : vector<8x65xf32> to vector<8x32xf32>
    %970 = vector.extract_strided_slice %968 {offsets = [0, 32], sizes = [8, 32], strides = [1, 1]} : vector<8x65xf32> to vector<8x32xf32>
    %971 = vector.extract_strided_slice %968 {offsets = [0, 64], sizes = [8, 1], strides = [1, 1]} : vector<8x65xf32> to vector<8x1xf32>
    %972 = vector.extract_strided_slice %966 {offsets = [0, 192], sizes = [1, 1], strides = [1, 1]} : vector<1x193xf32> to vector<1x1xf32>
    %973 = vector.broadcast %972 : vector<1x1xf32> to vector<8x1xf32>
    %974 = arith.addf %971, %973 : vector<8x1xf32>
    %975 = vector.extract_strided_slice %10 {offsets = [0, 3], sizes = [8, 1], strides = [1, 1]} : vector<8x8xf32> to vector<8x1xf32>
    %976 = arith.addf %974, %975 : vector<8x1xf32>
    %cst_221 = arith.constant dense<0xFF800000> : vector<1xf32>
    %977 = vector.multi_reduction <maximumf>, %976, %cst_221 [0] : vector<8x1xf32> to vector<1xf32>
    %978 = vector.shape_cast %977 : vector<1xf32> to vector<1x1xf32>
    %979 = vector.broadcast %978 : vector<1x1xf32> to vector<8x1xf32>
    %980 = arith.subf %976, %979 : vector<8x1xf32>
    %981 = math.exp %980 : vector<8x1xf32>
    %cst_222 = arith.constant dense<0.000000e+00> : vector<1xf32>
    %982 = vector.multi_reduction <add>, %981, %cst_222 [0] : vector<8x1xf32> to vector<1xf32>
    %983 = vector.shape_cast %982 : vector<1xf32> to vector<1x1xf32>
    %984 = vector.broadcast %983 : vector<1x1xf32> to vector<8x1xf32>
    %985 = arith.divf %981, %984 : vector<8x1xf32>
    %986 = vector.extract_strided_slice %12 {offsets = [0, 3], sizes = [8, 1], strides = [1, 1]} : vector<8x8xf32> to vector<8x1xf32>
    %987 = vector.broadcast %986 : vector<8x1xf32> to vector<8x32xf32>
    %988 = arith.mulf %969, %987 : vector<8x32xf32>
    %cst_223 = arith.constant 1.000000e+00 : f32
    %989 = vector.broadcast %cst_223 : f32 to vector<8x1xf32>
    %990 = arith.subf %989, %986 : vector<8x1xf32>
    %991 = vector.broadcast %990 : vector<8x1xf32> to vector<8x32xf32>
    %992 = arith.mulf %970, %991 : vector<8x32xf32>
    %993 = arith.addf %988, %992 : vector<8x32xf32>
    %994 = vector.broadcast %985 : vector<8x1xf32> to vector<8x32xf32>
    %995 = arith.mulf %994, %993 : vector<8x32xf32>
    %cst_224 = arith.constant dense<0.000000e+00> : vector<32xf32>
    %996 = vector.multi_reduction <add>, %995, %cst_224 [0] : vector<8x32xf32> to vector<32xf32>
    %997 = vector.shape_cast %996 : vector<32xf32> to vector<1x32xf32>
    %cst_225 = arith.constant dense<0.000000e+00> : vector<1x192xf32>
    %998 = tpu.matmul %997, %719, %cst_225 {dimension_numbers = #tpu.dot_dimension_numbers<[1], [0], [0], [1], [0, 0, 1, 1], [], []>} : vector<1x32xf32>, vector<32x192xf32>, vector<1x192xf32> -> vector<1x192xf32>
    %999 = arith.addf %998, %721 : vector<1x192xf32>
    %1000 = vector.extract_strided_slice %966 {offsets = [0, 0], sizes = [1, 32], strides = [1, 1]} : vector<1x193xf32> to vector<1x32xf32>
    %1001 = vector.extract_strided_slice %999 {offsets = [0, 0], sizes = [1, 32], strides = [1, 1]} : vector<1x192xf32> to vector<1x32xf32>
    %1002 = arith.addf %1000, %1001 : vector<1x32xf32>
    %1003 = arith.negf %1002 : vector<1x32xf32>
    %1004 = math.exp %1003 : vector<1x32xf32>
    %cst_226 = arith.constant 1.000000e+00 : f32
    %1005 = vector.broadcast %cst_226 : f32 to vector<1x32xf32>
    %1006 = arith.addf %1005, %1004 : vector<1x32xf32>
    %1007 = arith.divf %1005, %1006 : vector<1x32xf32>
    %1008 = vector.extract_strided_slice %966 {offsets = [0, 32], sizes = [1, 32], strides = [1, 1]} : vector<1x193xf32> to vector<1x32xf32>
    %1009 = vector.extract_strided_slice %999 {offsets = [0, 32], sizes = [1, 32], strides = [1, 1]} : vector<1x192xf32> to vector<1x32xf32>
    %1010 = arith.addf %1008, %1009 : vector<1x32xf32>
    %1011 = arith.negf %1010 : vector<1x32xf32>
    %1012 = math.exp %1011 : vector<1x32xf32>
    %cst_227 = arith.constant 1.000000e+00 : f32
    %1013 = vector.broadcast %cst_227 : f32 to vector<1x32xf32>
    %1014 = arith.addf %1013, %1012 : vector<1x32xf32>
    %1015 = arith.divf %1013, %1014 : vector<1x32xf32>
    %1016 = vector.extract_strided_slice %966 {offsets = [0, 64], sizes = [1, 32], strides = [1, 1]} : vector<1x193xf32> to vector<1x32xf32>
    %1017 = vector.extract_strided_slice %999 {offsets = [0, 64], sizes = [1, 32], strides = [1, 1]} : vector<1x192xf32> to vector<1x32xf32>
    %1018 = arith.mulf %1007, %1017 : vector<1x32xf32>
    %1019 = arith.addf %1016, %1018 : vector<1x32xf32>
    %1020 = math.tanh %1019 : vector<1x32xf32>
    %cst_228 = arith.constant 1.000000e+00 : f32
    %1021 = vector.broadcast %cst_228 : f32 to vector<1x32xf32>
    %1022 = arith.subf %1021, %1015 : vector<1x32xf32>
    %1023 = arith.mulf %1022, %1020 : vector<1x32xf32>
    %1024 = arith.mulf %1015, %997 : vector<1x32xf32>
    %1025 = arith.addf %1023, %1024 : vector<1x32xf32>
    %1026 = vector.extract_strided_slice %999 {offsets = [0, 96], sizes = [1, 32], strides = [1, 1]} : vector<1x192xf32> to vector<1x32xf32>
    %1027 = vector.extract_strided_slice %966 {offsets = [0, 96], sizes = [1, 32], strides = [1, 1]} : vector<1x193xf32> to vector<1x32xf32>
    %1028 = arith.addf %1026, %1027 : vector<1x32xf32>
    %1029 = arith.negf %1028 : vector<1x32xf32>
    %1030 = math.exp %1029 : vector<1x32xf32>
    %cst_229 = arith.constant 1.000000e+00 : f32
    %1031 = vector.broadcast %cst_229 : f32 to vector<1x32xf32>
    %1032 = arith.addf %1031, %1030 : vector<1x32xf32>
    %1033 = arith.divf %1031, %1032 : vector<1x32xf32>
    %1034 = vector.extract_strided_slice %999 {offsets = [0, 128], sizes = [1, 32], strides = [1, 1]} : vector<1x192xf32> to vector<1x32xf32>
    %1035 = vector.extract_strided_slice %966 {offsets = [0, 128], sizes = [1, 32], strides = [1, 1]} : vector<1x193xf32> to vector<1x32xf32>
    %1036 = arith.addf %1034, %1035 : vector<1x32xf32>
    %1037 = arith.negf %1036 : vector<1x32xf32>
    %1038 = math.exp %1037 : vector<1x32xf32>
    %cst_230 = arith.constant 1.000000e+00 : f32
    %1039 = vector.broadcast %cst_230 : f32 to vector<1x32xf32>
    %1040 = arith.addf %1039, %1038 : vector<1x32xf32>
    %1041 = arith.divf %1039, %1040 : vector<1x32xf32>
    %1042 = vector.extract_strided_slice %999 {offsets = [0, 160], sizes = [1, 32], strides = [1, 1]} : vector<1x192xf32> to vector<1x32xf32>
    %1043 = vector.extract_strided_slice %966 {offsets = [0, 160], sizes = [1, 32], strides = [1, 1]} : vector<1x193xf32> to vector<1x32xf32>
    %1044 = arith.mulf %1033, %1043 : vector<1x32xf32>
    %1045 = arith.addf %1042, %1044 : vector<1x32xf32>
    %1046 = math.tanh %1045 : vector<1x32xf32>
    %cst_231 = arith.constant 1.000000e+00 : f32
    %1047 = vector.broadcast %cst_231 : f32 to vector<1x32xf32>
    %1048 = arith.subf %1047, %1041 : vector<1x32xf32>
    %1049 = arith.mulf %1048, %1046 : vector<1x32xf32>
    %1050 = arith.mulf %1041, %964 : vector<1x32xf32>
    %1051 = arith.addf %1049, %1050 : vector<1x32xf32>
    %1052 = arith.addf %1025, %1051 : vector<1x32xf32>
    %c3_232 = arith.constant 3 : index
    %c0_233 = arith.constant 0 : index
    %1053 = vector.load %arg23[%c3_232, %c0_233] : memref<8x32xf32, #tpu.memory_space<vmem>>, vector<1x32xf32>
    tpu.vector_store %arg23[%c3_232, %c0_233], %1052 {strides = array<i32>} : memref<8x32xf32, #tpu.memory_space<vmem>>, vector<1x32xf32>,
    %1054 = vector.extract_strided_slice %713 {offsets = [4, 0], sizes = [1, 32], strides = [1, 1]} : vector<8x32xf32> to vector<1x32xf32>
    %cst_234 = arith.constant dense<0.000000e+00> : vector<1x193xf32>
    %1055 = tpu.matmul %1054, %715, %cst_234 {dimension_numbers = #tpu.dot_dimension_numbers<[1], [0], [0], [1], [0, 0, 1, 1], [], []>} : vector<1x32xf32>, vector<32x193xf32>, vector<1x193xf32> -> vector<1x193xf32>
    %1056 = arith.addf %1055, %717 : vector<1x193xf32>
    %c0_235 = arith.constant 0 : index
    %c0_236 = arith.constant 0 : index
    %1057 = vector.load %arg23[%c0_235, %c0_236] : memref<8x32xf32, #tpu.memory_space<vmem>>, vector<8x32xf32>
    %cst_237 = arith.constant dense<0.000000e+00> : vector<8x65xf32>
    %1058 = tpu.matmul %1057, %723, %cst_237 {dimension_numbers = #tpu.dot_dimension_numbers<[1], [0], [0], [1], [0, 0, 1, 1], [], []>} : vector<8x32xf32>, vector<32x65xf32>, vector<8x65xf32> -> vector<8x65xf32>
    %1059 = vector.extract_strided_slice %1058 {offsets = [0, 0], sizes = [8, 32], strides = [1, 1]} : vector<8x65xf32> to vector<8x32xf32>
    %1060 = vector.extract_strided_slice %1058 {offsets = [0, 32], sizes = [8, 32], strides = [1, 1]} : vector<8x65xf32> to vector<8x32xf32>
    %1061 = vector.extract_strided_slice %1058 {offsets = [0, 64], sizes = [8, 1], strides = [1, 1]} : vector<8x65xf32> to vector<8x1xf32>
    %1062 = vector.extract_strided_slice %1056 {offsets = [0, 192], sizes = [1, 1], strides = [1, 1]} : vector<1x193xf32> to vector<1x1xf32>
    %1063 = vector.broadcast %1062 : vector<1x1xf32> to vector<8x1xf32>
    %1064 = arith.addf %1061, %1063 : vector<8x1xf32>
    %1065 = vector.extract_strided_slice %10 {offsets = [0, 4], sizes = [8, 1], strides = [1, 1]} : vector<8x8xf32> to vector<8x1xf32>
    %1066 = arith.addf %1064, %1065 : vector<8x1xf32>
    %cst_238 = arith.constant dense<0xFF800000> : vector<1xf32>
    %1067 = vector.multi_reduction <maximumf>, %1066, %cst_238 [0] : vector<8x1xf32> to vector<1xf32>
    %1068 = vector.shape_cast %1067 : vector<1xf32> to vector<1x1xf32>
    %1069 = vector.broadcast %1068 : vector<1x1xf32> to vector<8x1xf32>
    %1070 = arith.subf %1066, %1069 : vector<8x1xf32>
    %1071 = math.exp %1070 : vector<8x1xf32>
    %cst_239 = arith.constant dense<0.000000e+00> : vector<1xf32>
    %1072 = vector.multi_reduction <add>, %1071, %cst_239 [0] : vector<8x1xf32> to vector<1xf32>
    %1073 = vector.shape_cast %1072 : vector<1xf32> to vector<1x1xf32>
    %1074 = vector.broadcast %1073 : vector<1x1xf32> to vector<8x1xf32>
    %1075 = arith.divf %1071, %1074 : vector<8x1xf32>
    %1076 = vector.extract_strided_slice %12 {offsets = [0, 4], sizes = [8, 1], strides = [1, 1]} : vector<8x8xf32> to vector<8x1xf32>
    %1077 = vector.broadcast %1076 : vector<8x1xf32> to vector<8x32xf32>
    %1078 = arith.mulf %1059, %1077 : vector<8x32xf32>
    %cst_240 = arith.constant 1.000000e+00 : f32
    %1079 = vector.broadcast %cst_240 : f32 to vector<8x1xf32>
    %1080 = arith.subf %1079, %1076 : vector<8x1xf32>
    %1081 = vector.broadcast %1080 : vector<8x1xf32> to vector<8x32xf32>
    %1082 = arith.mulf %1060, %1081 : vector<8x32xf32>
    %1083 = arith.addf %1078, %1082 : vector<8x32xf32>
    %1084 = vector.broadcast %1075 : vector<8x1xf32> to vector<8x32xf32>
    %1085 = arith.mulf %1084, %1083 : vector<8x32xf32>
    %cst_241 = arith.constant dense<0.000000e+00> : vector<32xf32>
    %1086 = vector.multi_reduction <add>, %1085, %cst_241 [0] : vector<8x32xf32> to vector<32xf32>
    %1087 = vector.shape_cast %1086 : vector<32xf32> to vector<1x32xf32>
    %cst_242 = arith.constant dense<0.000000e+00> : vector<1x192xf32>
    %1088 = tpu.matmul %1087, %719, %cst_242 {dimension_numbers = #tpu.dot_dimension_numbers<[1], [0], [0], [1], [0, 0, 1, 1], [], []>} : vector<1x32xf32>, vector<32x192xf32>, vector<1x192xf32> -> vector<1x192xf32>
    %1089 = arith.addf %1088, %721 : vector<1x192xf32>
    %1090 = vector.extract_strided_slice %1056 {offsets = [0, 0], sizes = [1, 32], strides = [1, 1]} : vector<1x193xf32> to vector<1x32xf32>
    %1091 = vector.extract_strided_slice %1089 {offsets = [0, 0], sizes = [1, 32], strides = [1, 1]} : vector<1x192xf32> to vector<1x32xf32>
    %1092 = arith.addf %1090, %1091 : vector<1x32xf32>
    %1093 = arith.negf %1092 : vector<1x32xf32>
    %1094 = math.exp %1093 : vector<1x32xf32>
    %cst_243 = arith.constant 1.000000e+00 : f32
    %1095 = vector.broadcast %cst_243 : f32 to vector<1x32xf32>
    %1096 = arith.addf %1095, %1094 : vector<1x32xf32>
    %1097 = arith.divf %1095, %1096 : vector<1x32xf32>
    %1098 = vector.extract_strided_slice %1056 {offsets = [0, 32], sizes = [1, 32], strides = [1, 1]} : vector<1x193xf32> to vector<1x32xf32>
    %1099 = vector.extract_strided_slice %1089 {offsets = [0, 32], sizes = [1, 32], strides = [1, 1]} : vector<1x192xf32> to vector<1x32xf32>
    %1100 = arith.addf %1098, %1099 : vector<1x32xf32>
    %1101 = arith.negf %1100 : vector<1x32xf32>
    %1102 = math.exp %1101 : vector<1x32xf32>
    %cst_244 = arith.constant 1.000000e+00 : f32
    %1103 = vector.broadcast %cst_244 : f32 to vector<1x32xf32>
    %1104 = arith.addf %1103, %1102 : vector<1x32xf32>
    %1105 = arith.divf %1103, %1104 : vector<1x32xf32>
    %1106 = vector.extract_strided_slice %1056 {offsets = [0, 64], sizes = [1, 32], strides = [1, 1]} : vector<1x193xf32> to vector<1x32xf32>
    %1107 = vector.extract_strided_slice %1089 {offsets = [0, 64], sizes = [1, 32], strides = [1, 1]} : vector<1x192xf32> to vector<1x32xf32>
    %1108 = arith.mulf %1097, %1107 : vector<1x32xf32>
    %1109 = arith.addf %1106, %1108 : vector<1x32xf32>
    %1110 = math.tanh %1109 : vector<1x32xf32>
    %cst_245 = arith.constant 1.000000e+00 : f32
    %1111 = vector.broadcast %cst_245 : f32 to vector<1x32xf32>
    %1112 = arith.subf %1111, %1105 : vector<1x32xf32>
    %1113 = arith.mulf %1112, %1110 : vector<1x32xf32>
    %1114 = arith.mulf %1105, %1087 : vector<1x32xf32>
    %1115 = arith.addf %1113, %1114 : vector<1x32xf32>
    %1116 = vector.extract_strided_slice %1089 {offsets = [0, 96], sizes = [1, 32], strides = [1, 1]} : vector<1x192xf32> to vector<1x32xf32>
    %1117 = vector.extract_strided_slice %1056 {offsets = [0, 96], sizes = [1, 32], strides = [1, 1]} : vector<1x193xf32> to vector<1x32xf32>
    %1118 = arith.addf %1116, %1117 : vector<1x32xf32>
    %1119 = arith.negf %1118 : vector<1x32xf32>
    %1120 = math.exp %1119 : vector<1x32xf32>
    %cst_246 = arith.constant 1.000000e+00 : f32
    %1121 = vector.broadcast %cst_246 : f32 to vector<1x32xf32>
    %1122 = arith.addf %1121, %1120 : vector<1x32xf32>
    %1123 = arith.divf %1121, %1122 : vector<1x32xf32>
    %1124 = vector.extract_strided_slice %1089 {offsets = [0, 128], sizes = [1, 32], strides = [1, 1]} : vector<1x192xf32> to vector<1x32xf32>
    %1125 = vector.extract_strided_slice %1056 {offsets = [0, 128], sizes = [1, 32], strides = [1, 1]} : vector<1x193xf32> to vector<1x32xf32>
    %1126 = arith.addf %1124, %1125 : vector<1x32xf32>
    %1127 = arith.negf %1126 : vector<1x32xf32>
    %1128 = math.exp %1127 : vector<1x32xf32>
    %cst_247 = arith.constant 1.000000e+00 : f32
    %1129 = vector.broadcast %cst_247 : f32 to vector<1x32xf32>
    %1130 = arith.addf %1129, %1128 : vector<1x32xf32>
    %1131 = arith.divf %1129, %1130 : vector<1x32xf32>
    %1132 = vector.extract_strided_slice %1089 {offsets = [0, 160], sizes = [1, 32], strides = [1, 1]} : vector<1x192xf32> to vector<1x32xf32>
    %1133 = vector.extract_strided_slice %1056 {offsets = [0, 160], sizes = [1, 32], strides = [1, 1]} : vector<1x193xf32> to vector<1x32xf32>
    %1134 = arith.mulf %1123, %1133 : vector<1x32xf32>
    %1135 = arith.addf %1132, %1134 : vector<1x32xf32>
    %1136 = math.tanh %1135 : vector<1x32xf32>
    %cst_248 = arith.constant 1.000000e+00 : f32
    %1137 = vector.broadcast %cst_248 : f32 to vector<1x32xf32>
    %1138 = arith.subf %1137, %1131 : vector<1x32xf32>
    %1139 = arith.mulf %1138, %1136 : vector<1x32xf32>
    %1140 = arith.mulf %1131, %1054 : vector<1x32xf32>
    %1141 = arith.addf %1139, %1140 : vector<1x32xf32>
    %1142 = arith.addf %1115, %1141 : vector<1x32xf32>
    %c4_249 = arith.constant 4 : index
    %c0_250 = arith.constant 0 : index
    %1143 = vector.load %arg23[%c4_249, %c0_250] : memref<8x32xf32, #tpu.memory_space<vmem>>, vector<1x32xf32>
    tpu.vector_store %arg23[%c4_249, %c0_250], %1142 {strides = array<i32>} : memref<8x32xf32, #tpu.memory_space<vmem>>, vector<1x32xf32>,
    %1144 = vector.extract_strided_slice %713 {offsets = [5, 0], sizes = [1, 32], strides = [1, 1]} : vector<8x32xf32> to vector<1x32xf32>
    %cst_251 = arith.constant dense<0.000000e+00> : vector<1x193xf32>
    %1145 = tpu.matmul %1144, %715, %cst_251 {dimension_numbers = #tpu.dot_dimension_numbers<[1], [0], [0], [1], [0, 0, 1, 1], [], []>} : vector<1x32xf32>, vector<32x193xf32>, vector<1x193xf32> -> vector<1x193xf32>
    %1146 = arith.addf %1145, %717 : vector<1x193xf32>
    %c0_252 = arith.constant 0 : index
    %c0_253 = arith.constant 0 : index
    %1147 = vector.load %arg23[%c0_252, %c0_253] : memref<8x32xf32, #tpu.memory_space<vmem>>, vector<8x32xf32>
    %cst_254 = arith.constant dense<0.000000e+00> : vector<8x65xf32>
    %1148 = tpu.matmul %1147, %723, %cst_254 {dimension_numbers = #tpu.dot_dimension_numbers<[1], [0], [0], [1], [0, 0, 1, 1], [], []>} : vector<8x32xf32>, vector<32x65xf32>, vector<8x65xf32> -> vector<8x65xf32>
    %1149 = vector.extract_strided_slice %1148 {offsets = [0, 0], sizes = [8, 32], strides = [1, 1]} : vector<8x65xf32> to vector<8x32xf32>
    %1150 = vector.extract_strided_slice %1148 {offsets = [0, 32], sizes = [8, 32], strides = [1, 1]} : vector<8x65xf32> to vector<8x32xf32>
    %1151 = vector.extract_strided_slice %1148 {offsets = [0, 64], sizes = [8, 1], strides = [1, 1]} : vector<8x65xf32> to vector<8x1xf32>
    %1152 = vector.extract_strided_slice %1146 {offsets = [0, 192], sizes = [1, 1], strides = [1, 1]} : vector<1x193xf32> to vector<1x1xf32>
    %1153 = vector.broadcast %1152 : vector<1x1xf32> to vector<8x1xf32>
    %1154 = arith.addf %1151, %1153 : vector<8x1xf32>
    %1155 = vector.extract_strided_slice %10 {offsets = [0, 5], sizes = [8, 1], strides = [1, 1]} : vector<8x8xf32> to vector<8x1xf32>
    %1156 = arith.addf %1154, %1155 : vector<8x1xf32>
    %cst_255 = arith.constant dense<0xFF800000> : vector<1xf32>
    %1157 = vector.multi_reduction <maximumf>, %1156, %cst_255 [0] : vector<8x1xf32> to vector<1xf32>
    %1158 = vector.shape_cast %1157 : vector<1xf32> to vector<1x1xf32>
    %1159 = vector.broadcast %1158 : vector<1x1xf32> to vector<8x1xf32>
    %1160 = arith.subf %1156, %1159 : vector<8x1xf32>
    %1161 = math.exp %1160 : vector<8x1xf32>
    %cst_256 = arith.constant dense<0.000000e+00> : vector<1xf32>
    %1162 = vector.multi_reduction <add>, %1161, %cst_256 [0] : vector<8x1xf32> to vector<1xf32>
    %1163 = vector.shape_cast %1162 : vector<1xf32> to vector<1x1xf32>
    %1164 = vector.broadcast %1163 : vector<1x1xf32> to vector<8x1xf32>
    %1165 = arith.divf %1161, %1164 : vector<8x1xf32>
    %1166 = vector.extract_strided_slice %12 {offsets = [0, 5], sizes = [8, 1], strides = [1, 1]} : vector<8x8xf32> to vector<8x1xf32>
    %1167 = vector.broadcast %1166 : vector<8x1xf32> to vector<8x32xf32>
    %1168 = arith.mulf %1149, %1167 : vector<8x32xf32>
    %cst_257 = arith.constant 1.000000e+00 : f32
    %1169 = vector.broadcast %cst_257 : f32 to vector<8x1xf32>
    %1170 = arith.subf %1169, %1166 : vector<8x1xf32>
    %1171 = vector.broadcast %1170 : vector<8x1xf32> to vector<8x32xf32>
    %1172 = arith.mulf %1150, %1171 : vector<8x32xf32>
    %1173 = arith.addf %1168, %1172 : vector<8x32xf32>
    %1174 = vector.broadcast %1165 : vector<8x1xf32> to vector<8x32xf32>
    %1175 = arith.mulf %1174, %1173 : vector<8x32xf32>
    %cst_258 = arith.constant dense<0.000000e+00> : vector<32xf32>
    %1176 = vector.multi_reduction <add>, %1175, %cst_258 [0] : vector<8x32xf32> to vector<32xf32>
    %1177 = vector.shape_cast %1176 : vector<32xf32> to vector<1x32xf32>
    %cst_259 = arith.constant dense<0.000000e+00> : vector<1x192xf32>
    %1178 = tpu.matmul %1177, %719, %cst_259 {dimension_numbers = #tpu.dot_dimension_numbers<[1], [0], [0], [1], [0, 0, 1, 1], [], []>} : vector<1x32xf32>, vector<32x192xf32>, vector<1x192xf32> -> vector<1x192xf32>
    %1179 = arith.addf %1178, %721 : vector<1x192xf32>
    %1180 = vector.extract_strided_slice %1146 {offsets = [0, 0], sizes = [1, 32], strides = [1, 1]} : vector<1x193xf32> to vector<1x32xf32>
    %1181 = vector.extract_strided_slice %1179 {offsets = [0, 0], sizes = [1, 32], strides = [1, 1]} : vector<1x192xf32> to vector<1x32xf32>
    %1182 = arith.addf %1180, %1181 : vector<1x32xf32>
    %1183 = arith.negf %1182 : vector<1x32xf32>
    %1184 = math.exp %1183 : vector<1x32xf32>
    %cst_260 = arith.constant 1.000000e+00 : f32
    %1185 = vector.broadcast %cst_260 : f32 to vector<1x32xf32>
    %1186 = arith.addf %1185, %1184 : vector<1x32xf32>
    %1187 = arith.divf %1185, %1186 : vector<1x32xf32>
    %1188 = vector.extract_strided_slice %1146 {offsets = [0, 32], sizes = [1, 32], strides = [1, 1]} : vector<1x193xf32> to vector<1x32xf32>
    %1189 = vector.extract_strided_slice %1179 {offsets = [0, 32], sizes = [1, 32], strides = [1, 1]} : vector<1x192xf32> to vector<1x32xf32>
    %1190 = arith.addf %1188, %1189 : vector<1x32xf32>
    %1191 = arith.negf %1190 : vector<1x32xf32>
    %1192 = math.exp %1191 : vector<1x32xf32>
    %cst_261 = arith.constant 1.000000e+00 : f32
    %1193 = vector.broadcast %cst_261 : f32 to vector<1x32xf32>
    %1194 = arith.addf %1193, %1192 : vector<1x32xf32>
    %1195 = arith.divf %1193, %1194 : vector<1x32xf32>
    %1196 = vector.extract_strided_slice %1146 {offsets = [0, 64], sizes = [1, 32], strides = [1, 1]} : vector<1x193xf32> to vector<1x32xf32>
    %1197 = vector.extract_strided_slice %1179 {offsets = [0, 64], sizes = [1, 32], strides = [1, 1]} : vector<1x192xf32> to vector<1x32xf32>
    %1198 = arith.mulf %1187, %1197 : vector<1x32xf32>
    %1199 = arith.addf %1196, %1198 : vector<1x32xf32>
    %1200 = math.tanh %1199 : vector<1x32xf32>
    %cst_262 = arith.constant 1.000000e+00 : f32
    %1201 = vector.broadcast %cst_262 : f32 to vector<1x32xf32>
    %1202 = arith.subf %1201, %1195 : vector<1x32xf32>
    %1203 = arith.mulf %1202, %1200 : vector<1x32xf32>
    %1204 = arith.mulf %1195, %1177 : vector<1x32xf32>
    %1205 = arith.addf %1203, %1204 : vector<1x32xf32>
    %1206 = vector.extract_strided_slice %1179 {offsets = [0, 96], sizes = [1, 32], strides = [1, 1]} : vector<1x192xf32> to vector<1x32xf32>
    %1207 = vector.extract_strided_slice %1146 {offsets = [0, 96], sizes = [1, 32], strides = [1, 1]} : vector<1x193xf32> to vector<1x32xf32>
    %1208 = arith.addf %1206, %1207 : vector<1x32xf32>
    %1209 = arith.negf %1208 : vector<1x32xf32>
    %1210 = math.exp %1209 : vector<1x32xf32>
    %cst_263 = arith.constant 1.000000e+00 : f32
    %1211 = vector.broadcast %cst_263 : f32 to vector<1x32xf32>
    %1212 = arith.addf %1211, %1210 : vector<1x32xf32>
    %1213 = arith.divf %1211, %1212 : vector<1x32xf32>
    %1214 = vector.extract_strided_slice %1179 {offsets = [0, 128], sizes = [1, 32], strides = [1, 1]} : vector<1x192xf32> to vector<1x32xf32>
    %1215 = vector.extract_strided_slice %1146 {offsets = [0, 128], sizes = [1, 32], strides = [1, 1]} : vector<1x193xf32> to vector<1x32xf32>
    %1216 = arith.addf %1214, %1215 : vector<1x32xf32>
    %1217 = arith.negf %1216 : vector<1x32xf32>
    %1218 = math.exp %1217 : vector<1x32xf32>
    %cst_264 = arith.constant 1.000000e+00 : f32
    %1219 = vector.broadcast %cst_264 : f32 to vector<1x32xf32>
    %1220 = arith.addf %1219, %1218 : vector<1x32xf32>
    %1221 = arith.divf %1219, %1220 : vector<1x32xf32>
    %1222 = vector.extract_strided_slice %1179 {offsets = [0, 160], sizes = [1, 32], strides = [1, 1]} : vector<1x192xf32> to vector<1x32xf32>
    %1223 = vector.extract_strided_slice %1146 {offsets = [0, 160], sizes = [1, 32], strides = [1, 1]} : vector<1x193xf32> to vector<1x32xf32>
    %1224 = arith.mulf %1213, %1223 : vector<1x32xf32>
    %1225 = arith.addf %1222, %1224 : vector<1x32xf32>
    %1226 = math.tanh %1225 : vector<1x32xf32>
    %cst_265 = arith.constant 1.000000e+00 : f32
    %1227 = vector.broadcast %cst_265 : f32 to vector<1x32xf32>
    %1228 = arith.subf %1227, %1221 : vector<1x32xf32>
    %1229 = arith.mulf %1228, %1226 : vector<1x32xf32>
    %1230 = arith.mulf %1221, %1144 : vector<1x32xf32>
    %1231 = arith.addf %1229, %1230 : vector<1x32xf32>
    %1232 = arith.addf %1205, %1231 : vector<1x32xf32>
    %c5_266 = arith.constant 5 : index
    %c0_267 = arith.constant 0 : index
    %1233 = vector.load %arg23[%c5_266, %c0_267] : memref<8x32xf32, #tpu.memory_space<vmem>>, vector<1x32xf32>
    tpu.vector_store %arg23[%c5_266, %c0_267], %1232 {strides = array<i32>} : memref<8x32xf32, #tpu.memory_space<vmem>>, vector<1x32xf32>,
    %1234 = vector.extract_strided_slice %713 {offsets = [6, 0], sizes = [1, 32], strides = [1, 1]} : vector<8x32xf32> to vector<1x32xf32>
    %cst_268 = arith.constant dense<0.000000e+00> : vector<1x193xf32>
    %1235 = tpu.matmul %1234, %715, %cst_268 {dimension_numbers = #tpu.dot_dimension_numbers<[1], [0], [0], [1], [0, 0, 1, 1], [], []>} : vector<1x32xf32>, vector<32x193xf32>, vector<1x193xf32> -> vector<1x193xf32>
    %1236 = arith.addf %1235, %717 : vector<1x193xf32>
    %c0_269 = arith.constant 0 : index
    %c0_270 = arith.constant 0 : index
    %1237 = vector.load %arg23[%c0_269, %c0_270] : memref<8x32xf32, #tpu.memory_space<vmem>>, vector<8x32xf32>
    %cst_271 = arith.constant dense<0.000000e+00> : vector<8x65xf32>
    %1238 = tpu.matmul %1237, %723, %cst_271 {dimension_numbers = #tpu.dot_dimension_numbers<[1], [0], [0], [1], [0, 0, 1, 1], [], []>} : vector<8x32xf32>, vector<32x65xf32>, vector<8x65xf32> -> vector<8x65xf32>
    %1239 = vector.extract_strided_slice %1238 {offsets = [0, 0], sizes = [8, 32], strides = [1, 1]} : vector<8x65xf32> to vector<8x32xf32>
    %1240 = vector.extract_strided_slice %1238 {offsets = [0, 32], sizes = [8, 32], strides = [1, 1]} : vector<8x65xf32> to vector<8x32xf32>
    %1241 = vector.extract_strided_slice %1238 {offsets = [0, 64], sizes = [8, 1], strides = [1, 1]} : vector<8x65xf32> to vector<8x1xf32>
    %1242 = vector.extract_strided_slice %1236 {offsets = [0, 192], sizes = [1, 1], strides = [1, 1]} : vector<1x193xf32> to vector<1x1xf32>
    %1243 = vector.broadcast %1242 : vector<1x1xf32> to vector<8x1xf32>
    %1244 = arith.addf %1241, %1243 : vector<8x1xf32>
    %1245 = vector.extract_strided_slice %10 {offsets = [0, 6], sizes = [8, 1], strides = [1, 1]} : vector<8x8xf32> to vector<8x1xf32>
    %1246 = arith.addf %1244, %1245 : vector<8x1xf32>
    %cst_272 = arith.constant dense<0xFF800000> : vector<1xf32>
    %1247 = vector.multi_reduction <maximumf>, %1246, %cst_272 [0] : vector<8x1xf32> to vector<1xf32>
    %1248 = vector.shape_cast %1247 : vector<1xf32> to vector<1x1xf32>
    %1249 = vector.broadcast %1248 : vector<1x1xf32> to vector<8x1xf32>
    %1250 = arith.subf %1246, %1249 : vector<8x1xf32>
    %1251 = math.exp %1250 : vector<8x1xf32>
    %cst_273 = arith.constant dense<0.000000e+00> : vector<1xf32>
    %1252 = vector.multi_reduction <add>, %1251, %cst_273 [0] : vector<8x1xf32> to vector<1xf32>
    %1253 = vector.shape_cast %1252 : vector<1xf32> to vector<1x1xf32>
    %1254 = vector.broadcast %1253 : vector<1x1xf32> to vector<8x1xf32>
    %1255 = arith.divf %1251, %1254 : vector<8x1xf32>
    %1256 = vector.extract_strided_slice %12 {offsets = [0, 6], sizes = [8, 1], strides = [1, 1]} : vector<8x8xf32> to vector<8x1xf32>
    %1257 = vector.broadcast %1256 : vector<8x1xf32> to vector<8x32xf32>
    %1258 = arith.mulf %1239, %1257 : vector<8x32xf32>
    %cst_274 = arith.constant 1.000000e+00 : f32
    %1259 = vector.broadcast %cst_274 : f32 to vector<8x1xf32>
    %1260 = arith.subf %1259, %1256 : vector<8x1xf32>
    %1261 = vector.broadcast %1260 : vector<8x1xf32> to vector<8x32xf32>
    %1262 = arith.mulf %1240, %1261 : vector<8x32xf32>
    %1263 = arith.addf %1258, %1262 : vector<8x32xf32>
    %1264 = vector.broadcast %1255 : vector<8x1xf32> to vector<8x32xf32>
    %1265 = arith.mulf %1264, %1263 : vector<8x32xf32>
    %cst_275 = arith.constant dense<0.000000e+00> : vector<32xf32>
    %1266 = vector.multi_reduction <add>, %1265, %cst_275 [0] : vector<8x32xf32> to vector<32xf32>
    %1267 = vector.shape_cast %1266 : vector<32xf32> to vector<1x32xf32>
    %cst_276 = arith.constant dense<0.000000e+00> : vector<1x192xf32>
    %1268 = tpu.matmul %1267, %719, %cst_276 {dimension_numbers = #tpu.dot_dimension_numbers<[1], [0], [0], [1], [0, 0, 1, 1], [], []>} : vector<1x32xf32>, vector<32x192xf32>, vector<1x192xf32> -> vector<1x192xf32>
    %1269 = arith.addf %1268, %721 : vector<1x192xf32>
    %1270 = vector.extract_strided_slice %1236 {offsets = [0, 0], sizes = [1, 32], strides = [1, 1]} : vector<1x193xf32> to vector<1x32xf32>
    %1271 = vector.extract_strided_slice %1269 {offsets = [0, 0], sizes = [1, 32], strides = [1, 1]} : vector<1x192xf32> to vector<1x32xf32>
    %1272 = arith.addf %1270, %1271 : vector<1x32xf32>
    %1273 = arith.negf %1272 : vector<1x32xf32>
    %1274 = math.exp %1273 : vector<1x32xf32>
    %cst_277 = arith.constant 1.000000e+00 : f32
    %1275 = vector.broadcast %cst_277 : f32 to vector<1x32xf32>
    %1276 = arith.addf %1275, %1274 : vector<1x32xf32>
    %1277 = arith.divf %1275, %1276 : vector<1x32xf32>
    %1278 = vector.extract_strided_slice %1236 {offsets = [0, 32], sizes = [1, 32], strides = [1, 1]} : vector<1x193xf32> to vector<1x32xf32>
    %1279 = vector.extract_strided_slice %1269 {offsets = [0, 32], sizes = [1, 32], strides = [1, 1]} : vector<1x192xf32> to vector<1x32xf32>
    %1280 = arith.addf %1278, %1279 : vector<1x32xf32>
    %1281 = arith.negf %1280 : vector<1x32xf32>
    %1282 = math.exp %1281 : vector<1x32xf32>
    %cst_278 = arith.constant 1.000000e+00 : f32
    %1283 = vector.broadcast %cst_278 : f32 to vector<1x32xf32>
    %1284 = arith.addf %1283, %1282 : vector<1x32xf32>
    %1285 = arith.divf %1283, %1284 : vector<1x32xf32>
    %1286 = vector.extract_strided_slice %1236 {offsets = [0, 64], sizes = [1, 32], strides = [1, 1]} : vector<1x193xf32> to vector<1x32xf32>
    %1287 = vector.extract_strided_slice %1269 {offsets = [0, 64], sizes = [1, 32], strides = [1, 1]} : vector<1x192xf32> to vector<1x32xf32>
    %1288 = arith.mulf %1277, %1287 : vector<1x32xf32>
    %1289 = arith.addf %1286, %1288 : vector<1x32xf32>
    %1290 = math.tanh %1289 : vector<1x32xf32>
    %cst_279 = arith.constant 1.000000e+00 : f32
    %1291 = vector.broadcast %cst_279 : f32 to vector<1x32xf32>
    %1292 = arith.subf %1291, %1285 : vector<1x32xf32>
    %1293 = arith.mulf %1292, %1290 : vector<1x32xf32>
    %1294 = arith.mulf %1285, %1267 : vector<1x32xf32>
    %1295 = arith.addf %1293, %1294 : vector<1x32xf32>
    %1296 = vector.extract_strided_slice %1269 {offsets = [0, 96], sizes = [1, 32], strides = [1, 1]} : vector<1x192xf32> to vector<1x32xf32>
    %1297 = vector.extract_strided_slice %1236 {offsets = [0, 96], sizes = [1, 32], strides = [1, 1]} : vector<1x193xf32> to vector<1x32xf32>
    %1298 = arith.addf %1296, %1297 : vector<1x32xf32>
    %1299 = arith.negf %1298 : vector<1x32xf32>
    %1300 = math.exp %1299 : vector<1x32xf32>
    %cst_280 = arith.constant 1.000000e+00 : f32
    %1301 = vector.broadcast %cst_280 : f32 to vector<1x32xf32>
    %1302 = arith.addf %1301, %1300 : vector<1x32xf32>
    %1303 = arith.divf %1301, %1302 : vector<1x32xf32>
    %1304 = vector.extract_strided_slice %1269 {offsets = [0, 128], sizes = [1, 32], strides = [1, 1]} : vector<1x192xf32> to vector<1x32xf32>
    %1305 = vector.extract_strided_slice %1236 {offsets = [0, 128], sizes = [1, 32], strides = [1, 1]} : vector<1x193xf32> to vector<1x32xf32>
    %1306 = arith.addf %1304, %1305 : vector<1x32xf32>
    %1307 = arith.negf %1306 : vector<1x32xf32>
    %1308 = math.exp %1307 : vector<1x32xf32>
    %cst_281 = arith.constant 1.000000e+00 : f32
    %1309 = vector.broadcast %cst_281 : f32 to vector<1x32xf32>
    %1310 = arith.addf %1309, %1308 : vector<1x32xf32>
    %1311 = arith.divf %1309, %1310 : vector<1x32xf32>
    %1312 = vector.extract_strided_slice %1269 {offsets = [0, 160], sizes = [1, 32], strides = [1, 1]} : vector<1x192xf32> to vector<1x32xf32>
    %1313 = vector.extract_strided_slice %1236 {offsets = [0, 160], sizes = [1, 32], strides = [1, 1]} : vector<1x193xf32> to vector<1x32xf32>
    %1314 = arith.mulf %1303, %1313 : vector<1x32xf32>
    %1315 = arith.addf %1312, %1314 : vector<1x32xf32>
    %1316 = math.tanh %1315 : vector<1x32xf32>
    %cst_282 = arith.constant 1.000000e+00 : f32
    %1317 = vector.broadcast %cst_282 : f32 to vector<1x32xf32>
    %1318 = arith.subf %1317, %1311 : vector<1x32xf32>
    %1319 = arith.mulf %1318, %1316 : vector<1x32xf32>
    %1320 = arith.mulf %1311, %1234 : vector<1x32xf32>
    %1321 = arith.addf %1319, %1320 : vector<1x32xf32>
    %1322 = arith.addf %1295, %1321 : vector<1x32xf32>
    %c6_283 = arith.constant 6 : index
    %c0_284 = arith.constant 0 : index
    %1323 = vector.load %arg23[%c6_283, %c0_284] : memref<8x32xf32, #tpu.memory_space<vmem>>, vector<1x32xf32>
    tpu.vector_store %arg23[%c6_283, %c0_284], %1322 {strides = array<i32>} : memref<8x32xf32, #tpu.memory_space<vmem>>, vector<1x32xf32>,
    %1324 = vector.extract_strided_slice %713 {offsets = [7, 0], sizes = [1, 32], strides = [1, 1]} : vector<8x32xf32> to vector<1x32xf32>
    %cst_285 = arith.constant dense<0.000000e+00> : vector<1x193xf32>
    %1325 = tpu.matmul %1324, %715, %cst_285 {dimension_numbers = #tpu.dot_dimension_numbers<[1], [0], [0], [1], [0, 0, 1, 1], [], []>} : vector<1x32xf32>, vector<32x193xf32>, vector<1x193xf32> -> vector<1x193xf32>
    %1326 = arith.addf %1325, %717 : vector<1x193xf32>
    %c0_286 = arith.constant 0 : index
    %c0_287 = arith.constant 0 : index
    %1327 = vector.load %arg23[%c0_286, %c0_287] : memref<8x32xf32, #tpu.memory_space<vmem>>, vector<8x32xf32>
    %cst_288 = arith.constant dense<0.000000e+00> : vector<8x65xf32>
    %1328 = tpu.matmul %1327, %723, %cst_288 {dimension_numbers = #tpu.dot_dimension_numbers<[1], [0], [0], [1], [0, 0, 1, 1], [], []>} : vector<8x32xf32>, vector<32x65xf32>, vector<8x65xf32> -> vector<8x65xf32>
    %1329 = vector.extract_strided_slice %1328 {offsets = [0, 0], sizes = [8, 32], strides = [1, 1]} : vector<8x65xf32> to vector<8x32xf32>
    %1330 = vector.extract_strided_slice %1328 {offsets = [0, 32], sizes = [8, 32], strides = [1, 1]} : vector<8x65xf32> to vector<8x32xf32>
    %1331 = vector.extract_strided_slice %1328 {offsets = [0, 64], sizes = [8, 1], strides = [1, 1]} : vector<8x65xf32> to vector<8x1xf32>
    %1332 = vector.extract_strided_slice %1326 {offsets = [0, 192], sizes = [1, 1], strides = [1, 1]} : vector<1x193xf32> to vector<1x1xf32>
    %1333 = vector.broadcast %1332 : vector<1x1xf32> to vector<8x1xf32>
    %1334 = arith.addf %1331, %1333 : vector<8x1xf32>
    %1335 = vector.extract_strided_slice %10 {offsets = [0, 7], sizes = [8, 1], strides = [1, 1]} : vector<8x8xf32> to vector<8x1xf32>
    %1336 = arith.addf %1334, %1335 : vector<8x1xf32>
    %cst_289 = arith.constant dense<0xFF800000> : vector<1xf32>
    %1337 = vector.multi_reduction <maximumf>, %1336, %cst_289 [0] : vector<8x1xf32> to vector<1xf32>
    %1338 = vector.shape_cast %1337 : vector<1xf32> to vector<1x1xf32>
    %1339 = vector.broadcast %1338 : vector<1x1xf32> to vector<8x1xf32>
    %1340 = arith.subf %1336, %1339 : vector<8x1xf32>
    %1341 = math.exp %1340 : vector<8x1xf32>
    %cst_290 = arith.constant dense<0.000000e+00> : vector<1xf32>
    %1342 = vector.multi_reduction <add>, %1341, %cst_290 [0] : vector<8x1xf32> to vector<1xf32>
    %1343 = vector.shape_cast %1342 : vector<1xf32> to vector<1x1xf32>
    %1344 = vector.broadcast %1343 : vector<1x1xf32> to vector<8x1xf32>
    %1345 = arith.divf %1341, %1344 : vector<8x1xf32>
    %1346 = vector.extract_strided_slice %12 {offsets = [0, 7], sizes = [8, 1], strides = [1, 1]} : vector<8x8xf32> to vector<8x1xf32>
    %1347 = vector.broadcast %1346 : vector<8x1xf32> to vector<8x32xf32>
    %1348 = arith.mulf %1329, %1347 : vector<8x32xf32>
    %cst_291 = arith.constant 1.000000e+00 : f32
    %1349 = vector.broadcast %cst_291 : f32 to vector<8x1xf32>
    %1350 = arith.subf %1349, %1346 : vector<8x1xf32>
    %1351 = vector.broadcast %1350 : vector<8x1xf32> to vector<8x32xf32>
    %1352 = arith.mulf %1330, %1351 : vector<8x32xf32>
    %1353 = arith.addf %1348, %1352 : vector<8x32xf32>
    %1354 = vector.broadcast %1345 : vector<8x1xf32> to vector<8x32xf32>
    %1355 = arith.mulf %1354, %1353 : vector<8x32xf32>
    %cst_292 = arith.constant dense<0.000000e+00> : vector<32xf32>
    %1356 = vector.multi_reduction <add>, %1355, %cst_292 [0] : vector<8x32xf32> to vector<32xf32>
    %1357 = vector.shape_cast %1356 : vector<32xf32> to vector<1x32xf32>
    %cst_293 = arith.constant dense<0.000000e+00> : vector<1x192xf32>
    %1358 = tpu.matmul %1357, %719, %cst_293 {dimension_numbers = #tpu.dot_dimension_numbers<[1], [0], [0], [1], [0, 0, 1, 1], [], []>} : vector<1x32xf32>, vector<32x192xf32>, vector<1x192xf32> -> vector<1x192xf32>
    %1359 = arith.addf %1358, %721 : vector<1x192xf32>
    %1360 = vector.extract_strided_slice %1326 {offsets = [0, 0], sizes = [1, 32], strides = [1, 1]} : vector<1x193xf32> to vector<1x32xf32>
    %1361 = vector.extract_strided_slice %1359 {offsets = [0, 0], sizes = [1, 32], strides = [1, 1]} : vector<1x192xf32> to vector<1x32xf32>
    %1362 = arith.addf %1360, %1361 : vector<1x32xf32>
    %1363 = arith.negf %1362 : vector<1x32xf32>
    %1364 = math.exp %1363 : vector<1x32xf32>
    %cst_294 = arith.constant 1.000000e+00 : f32
    %1365 = vector.broadcast %cst_294 : f32 to vector<1x32xf32>
    %1366 = arith.addf %1365, %1364 : vector<1x32xf32>
    %1367 = arith.divf %1365, %1366 : vector<1x32xf32>
    %1368 = vector.extract_strided_slice %1326 {offsets = [0, 32], sizes = [1, 32], strides = [1, 1]} : vector<1x193xf32> to vector<1x32xf32>
    %1369 = vector.extract_strided_slice %1359 {offsets = [0, 32], sizes = [1, 32], strides = [1, 1]} : vector<1x192xf32> to vector<1x32xf32>
    %1370 = arith.addf %1368, %1369 : vector<1x32xf32>
    %1371 = arith.negf %1370 : vector<1x32xf32>
    %1372 = math.exp %1371 : vector<1x32xf32>
    %cst_295 = arith.constant 1.000000e+00 : f32
    %1373 = vector.broadcast %cst_295 : f32 to vector<1x32xf32>
    %1374 = arith.addf %1373, %1372 : vector<1x32xf32>
    %1375 = arith.divf %1373, %1374 : vector<1x32xf32>
    %1376 = vector.extract_strided_slice %1326 {offsets = [0, 64], sizes = [1, 32], strides = [1, 1]} : vector<1x193xf32> to vector<1x32xf32>
    %1377 = vector.extract_strided_slice %1359 {offsets = [0, 64], sizes = [1, 32], strides = [1, 1]} : vector<1x192xf32> to vector<1x32xf32>
    %1378 = arith.mulf %1367, %1377 : vector<1x32xf32>
    %1379 = arith.addf %1376, %1378 : vector<1x32xf32>
    %1380 = math.tanh %1379 : vector<1x32xf32>
    %cst_296 = arith.constant 1.000000e+00 : f32
    %1381 = vector.broadcast %cst_296 : f32 to vector<1x32xf32>
    %1382 = arith.subf %1381, %1375 : vector<1x32xf32>
    %1383 = arith.mulf %1382, %1380 : vector<1x32xf32>
    %1384 = arith.mulf %1375, %1357 : vector<1x32xf32>
    %1385 = arith.addf %1383, %1384 : vector<1x32xf32>
    %1386 = vector.extract_strided_slice %1359 {offsets = [0, 96], sizes = [1, 32], strides = [1, 1]} : vector<1x192xf32> to vector<1x32xf32>
    %1387 = vector.extract_strided_slice %1326 {offsets = [0, 96], sizes = [1, 32], strides = [1, 1]} : vector<1x193xf32> to vector<1x32xf32>
    %1388 = arith.addf %1386, %1387 : vector<1x32xf32>
    %1389 = arith.negf %1388 : vector<1x32xf32>
    %1390 = math.exp %1389 : vector<1x32xf32>
    %cst_297 = arith.constant 1.000000e+00 : f32
    %1391 = vector.broadcast %cst_297 : f32 to vector<1x32xf32>
    %1392 = arith.addf %1391, %1390 : vector<1x32xf32>
    %1393 = arith.divf %1391, %1392 : vector<1x32xf32>
    %1394 = vector.extract_strided_slice %1359 {offsets = [0, 128], sizes = [1, 32], strides = [1, 1]} : vector<1x192xf32> to vector<1x32xf32>
    %1395 = vector.extract_strided_slice %1326 {offsets = [0, 128], sizes = [1, 32], strides = [1, 1]} : vector<1x193xf32> to vector<1x32xf32>
    %1396 = arith.addf %1394, %1395 : vector<1x32xf32>
    %1397 = arith.negf %1396 : vector<1x32xf32>
    %1398 = math.exp %1397 : vector<1x32xf32>
    %cst_298 = arith.constant 1.000000e+00 : f32
    %1399 = vector.broadcast %cst_298 : f32 to vector<1x32xf32>
    %1400 = arith.addf %1399, %1398 : vector<1x32xf32>
    %1401 = arith.divf %1399, %1400 : vector<1x32xf32>
    %1402 = vector.extract_strided_slice %1359 {offsets = [0, 160], sizes = [1, 32], strides = [1, 1]} : vector<1x192xf32> to vector<1x32xf32>
    %1403 = vector.extract_strided_slice %1326 {offsets = [0, 160], sizes = [1, 32], strides = [1, 1]} : vector<1x193xf32> to vector<1x32xf32>
    %1404 = arith.mulf %1393, %1403 : vector<1x32xf32>
    %1405 = arith.addf %1402, %1404 : vector<1x32xf32>
    %1406 = math.tanh %1405 : vector<1x32xf32>
    %cst_299 = arith.constant 1.000000e+00 : f32
    %1407 = vector.broadcast %cst_299 : f32 to vector<1x32xf32>
    %1408 = arith.subf %1407, %1401 : vector<1x32xf32>
    %1409 = arith.mulf %1408, %1406 : vector<1x32xf32>
    %1410 = arith.mulf %1401, %1324 : vector<1x32xf32>
    %1411 = arith.addf %1409, %1410 : vector<1x32xf32>
    %1412 = arith.addf %1385, %1411 : vector<1x32xf32>
    %c7_300 = arith.constant 7 : index
    %c0_301 = arith.constant 0 : index
    %1413 = vector.load %arg23[%c7_300, %c0_301] : memref<8x32xf32, #tpu.memory_space<vmem>>, vector<1x32xf32>
    tpu.vector_store %arg23[%c7_300, %c0_301], %1412 {strides = array<i32>} : memref<8x32xf32, #tpu.memory_space<vmem>>, vector<1x32xf32>,
    %c0_302 = arith.constant 0 : index
    %c0_303 = arith.constant 0 : index
    %1414 = vector.load %arg23[%c0_302, %c0_303] : memref<8x32xf32, #tpu.memory_space<vmem>>, vector<8x32xf32>
    %c0_304 = arith.constant 0 : index
    %c0_305 = arith.constant 0 : index
    %1415 = vector.load %arg13[%c0_304, %c0_305] : memref<32x32xf32, #tpu.memory_space<vmem>>, vector<32x32xf32>
    %cst_306 = arith.constant dense<0.000000e+00> : vector<8x32xf32>
    %1416 = tpu.matmul %1, %1415, %cst_306 {dimension_numbers = #tpu.dot_dimension_numbers<[1], [0], [0], [1], [0, 0, 1, 1], [], []>} : vector<8x32xf32>, vector<32x32xf32>, vector<8x32xf32> -> vector<8x32xf32>
    %c0_307 = arith.constant 0 : index
    %c0_308 = arith.constant 0 : index
    %1417 = vector.load %arg14[%c0_307, %c0_308] : memref<1x32xf32, #tpu.memory_space<vmem>>, vector<1x32xf32>
    %1418 = vector.broadcast %1417 : vector<1x32xf32> to vector<8x32xf32>
    %1419 = arith.addf %1416, %1418 : vector<8x32xf32>
    %c0_309 = arith.constant 0 : index
    %c0_310 = arith.constant 0 : index
    %c0_311 = arith.constant 0 : index
    %1420 = vector.load %arg12[%c0_309, %c0_310, %c0_311] : memref<3x32x32xf32, #tpu.memory_space<vmem>>, vector<1x32x32xf32>
    %1421 = vector.shape_cast %1420 : vector<1x32x32xf32> to vector<32x32xf32>
    %cst_312 = arith.constant dense<0.000000e+00> : vector<8x32xf32>
    %1422 = tpu.matmul %8, %1421, %cst_312 {dimension_numbers = #tpu.dot_dimension_numbers<[1], [0], [0], [1], [0, 0, 1, 1], [], []>} : vector<8x32xf32>, vector<32x32xf32>, vector<8x32xf32> -> vector<8x32xf32>
    %1423 = arith.addf %1419, %1422 : vector<8x32xf32>
    %c1_313 = arith.constant 1 : index
    %c0_314 = arith.constant 0 : index
    %c0_315 = arith.constant 0 : index
    %1424 = vector.load %arg12[%c1_313, %c0_314, %c0_315] : memref<3x32x32xf32, #tpu.memory_space<vmem>>, vector<1x32x32xf32>
    %1425 = vector.shape_cast %1424 : vector<1x32x32xf32> to vector<32x32xf32>
    %cst_316 = arith.constant dense<0.000000e+00> : vector<8x32xf32>
    %1426 = tpu.matmul %713, %1425, %cst_316 {dimension_numbers = #tpu.dot_dimension_numbers<[1], [0], [0], [1], [0, 0, 1, 1], [], []>} : vector<8x32xf32>, vector<32x32xf32>, vector<8x32xf32> -> vector<8x32xf32>
    %1427 = arith.addf %1423, %1426 : vector<8x32xf32>
    %c2_317 = arith.constant 2 : index
    %c0_318 = arith.constant 0 : index
    %c0_319 = arith.constant 0 : index
    %1428 = vector.load %arg12[%c2_317, %c0_318, %c0_319] : memref<3x32x32xf32, #tpu.memory_space<vmem>>, vector<1x32x32xf32>
    %1429 = vector.shape_cast %1428 : vector<1x32x32xf32> to vector<32x32xf32>
    %cst_320 = arith.constant dense<0.000000e+00> : vector<8x32xf32>
    %1430 = tpu.matmul %1414, %1429, %cst_320 {dimension_numbers = #tpu.dot_dimension_numbers<[1], [0], [0], [1], [0, 0, 1, 1], [], []>} : vector<8x32xf32>, vector<32x32xf32>, vector<8x32xf32> -> vector<8x32xf32>
    %1431 = arith.addf %1427, %1430 : vector<8x32xf32>
    %c0_321 = arith.constant 0 : index
    %c0_322 = arith.constant 0 : index
    %c0_323 = arith.constant 0 : index
    %1432 = vector.load %arg4[%c0_321, %c0_322, %c0_323] : memref<1x8x1xf32, #tpu.memory_space<vmem>>, vector<1x8x1xf32>
    %1433 = vector.shape_cast %1432 : vector<1x8x1xf32> to vector<8x1xf32>
    %c0_324 = arith.constant 0 : index
    %c0_325 = arith.constant 0 : index
    %c0_326 = arith.constant 0 : index
    %1434 = vector.load %arg15[%c0_324, %c0_325, %c0_326] : memref<2x64x128xf32, #tpu.memory_space<vmem>>, vector<1x64x128xf32>
    %1435 = vector.shape_cast %1434 : vector<1x64x128xf32> to vector<64x128xf32>
    %c0_327 = arith.constant 0 : index
    %c0_328 = arith.constant 0 : index
    %c0_329 = arith.constant 0 : index
    %1436 = vector.load %arg16[%c0_327, %c0_328, %c0_329] : memref<2x1x128xf32, #tpu.memory_space<vmem>>, vector<1x1x128xf32>
    %1437 = vector.shape_cast %1436 : vector<1x1x128xf32> to vector<1x128xf32>
    %c1_330 = arith.constant 1 : index
    %c0_331 = arith.constant 0 : index
    %c0_332 = arith.constant 0 : index
    %1438 = vector.load %arg15[%c1_330, %c0_331, %c0_332] : memref<2x64x128xf32, #tpu.memory_space<vmem>>, vector<1x64x128xf32>
    %1439 = vector.shape_cast %1438 : vector<1x64x128xf32> to vector<64x128xf32>
    %c1_333 = arith.constant 1 : index
    %c0_334 = arith.constant 0 : index
    %c0_335 = arith.constant 0 : index
    %1440 = vector.load %arg16[%c1_333, %c0_334, %c0_335] : memref<2x1x128xf32, #tpu.memory_space<vmem>>, vector<1x1x128xf32>
    %1441 = vector.shape_cast %1440 : vector<1x1x128xf32> to vector<1x128xf32>
    %cst_336 = arith.constant 0.000000e+00 : f32
    %1442 = vector.broadcast %cst_336 : f32 to vector<1x32xf32>
    %1443 = vector.extract_strided_slice %1431 {offsets = [0, 0], sizes = [1, 32], strides = [1, 1]} : vector<8x32xf32> to vector<1x32xf32>
    %1444 = vector.extract_strided_slice %1433 {offsets = [0, 0], sizes = [1, 1], strides = [1, 1]} : vector<8x1xf32> to vector<1x1xf32>
    %1445 = vector.broadcast %1444 : vector<1x1xf32> to vector<1x32xf32>
    %1446 = arith.mulf %1443, %1445 : vector<1x32xf32>
    %1447 = arith.subf %1443, %1446 : vector<1x32xf32>
    %1448 = tpu.concatenate %1447, %1442 in 1 : vector<1x32xf32>, vector<1x32xf32> -> vector<1x64xf32>
    %cst_337 = arith.constant dense<0.000000e+00> : vector<1x128xf32>
    %1449 = tpu.matmul %1448, %1435, %cst_337 {dimension_numbers = #tpu.dot_dimension_numbers<[1], [0], [0], [1], [0, 0, 1, 1], [], []>} : vector<1x64xf32>, vector<64x128xf32>, vector<1x128xf32> -> vector<1x128xf32>
    %1450 = arith.addf %1449, %1437 : vector<1x128xf32>
    %1451 = vector.extract_strided_slice %1450 {offsets = [0, 0], sizes = [1, 32], strides = [1, 1]} : vector<1x128xf32> to vector<1x32xf32>
    %1452 = arith.negf %1451 : vector<1x32xf32>
    %1453 = math.exp %1452 : vector<1x32xf32>
    %cst_338 = arith.constant 1.000000e+00 : f32
    %1454 = vector.broadcast %cst_338 : f32 to vector<1x32xf32>
    %1455 = arith.addf %1454, %1453 : vector<1x32xf32>
    %1456 = arith.divf %1454, %1455 : vector<1x32xf32>
    %1457 = vector.extract_strided_slice %1450 {offsets = [0, 32], sizes = [1, 32], strides = [1, 1]} : vector<1x128xf32> to vector<1x32xf32>
    %1458 = arith.negf %1457 : vector<1x32xf32>
    %1459 = math.exp %1458 : vector<1x32xf32>
    %cst_339 = arith.constant 1.000000e+00 : f32
    %1460 = vector.broadcast %cst_339 : f32 to vector<1x32xf32>
    %1461 = arith.addf %1460, %1459 : vector<1x32xf32>
    %1462 = arith.divf %1460, %1461 : vector<1x32xf32>
    %1463 = vector.extract_strided_slice %1450 {offsets = [0, 64], sizes = [1, 32], strides = [1, 1]} : vector<1x128xf32> to vector<1x32xf32>
    %1464 = math.tanh %1463 : vector<1x32xf32>
    %1465 = vector.extract_strided_slice %1450 {offsets = [0, 96], sizes = [1, 32], strides = [1, 1]} : vector<1x128xf32> to vector<1x32xf32>
    %1466 = arith.negf %1465 : vector<1x32xf32>
    %1467 = math.exp %1466 : vector<1x32xf32>
    %cst_340 = arith.constant 1.000000e+00 : f32
    %1468 = vector.broadcast %cst_340 : f32 to vector<1x32xf32>
    %1469 = arith.addf %1468, %1467 : vector<1x32xf32>
    %1470 = arith.divf %1468, %1469 : vector<1x32xf32>
    %1471 = arith.mulf %1462, %1442 : vector<1x32xf32>
    %1472 = arith.mulf %1456, %1464 : vector<1x32xf32>
    %1473 = arith.addf %1471, %1472 : vector<1x32xf32>
    %1474 = math.tanh %1473 : vector<1x32xf32>
    %1475 = arith.mulf %1470, %1474 : vector<1x32xf32>
    %1476 = arith.addf %1442, %1475 : vector<1x32xf32>
    %1477 = tpu.concatenate %1446, %1442 in 1 : vector<1x32xf32>, vector<1x32xf32> -> vector<1x64xf32>
    %cst_341 = arith.constant dense<0.000000e+00> : vector<1x128xf32>
    %1478 = tpu.matmul %1477, %1439, %cst_341 {dimension_numbers = #tpu.dot_dimension_numbers<[1], [0], [0], [1], [0, 0, 1, 1], [], []>} : vector<1x64xf32>, vector<64x128xf32>, vector<1x128xf32> -> vector<1x128xf32>
    %1479 = arith.addf %1478, %1441 : vector<1x128xf32>
    %1480 = vector.extract_strided_slice %1479 {offsets = [0, 0], sizes = [1, 32], strides = [1, 1]} : vector<1x128xf32> to vector<1x32xf32>
    %1481 = arith.negf %1480 : vector<1x32xf32>
    %1482 = math.exp %1481 : vector<1x32xf32>
    %cst_342 = arith.constant 1.000000e+00 : f32
    %1483 = vector.broadcast %cst_342 : f32 to vector<1x32xf32>
    %1484 = arith.addf %1483, %1482 : vector<1x32xf32>
    %1485 = arith.divf %1483, %1484 : vector<1x32xf32>
    %1486 = vector.extract_strided_slice %1479 {offsets = [0, 32], sizes = [1, 32], strides = [1, 1]} : vector<1x128xf32> to vector<1x32xf32>
    %1487 = arith.negf %1486 : vector<1x32xf32>
    %1488 = math.exp %1487 : vector<1x32xf32>
    %cst_343 = arith.constant 1.000000e+00 : f32
    %1489 = vector.broadcast %cst_343 : f32 to vector<1x32xf32>
    %1490 = arith.addf %1489, %1488 : vector<1x32xf32>
    %1491 = arith.divf %1489, %1490 : vector<1x32xf32>
    %1492 = vector.extract_strided_slice %1479 {offsets = [0, 64], sizes = [1, 32], strides = [1, 1]} : vector<1x128xf32> to vector<1x32xf32>
    %1493 = math.tanh %1492 : vector<1x32xf32>
    %1494 = vector.extract_strided_slice %1479 {offsets = [0, 96], sizes = [1, 32], strides = [1, 1]} : vector<1x128xf32> to vector<1x32xf32>
    %1495 = arith.negf %1494 : vector<1x32xf32>
    %1496 = math.exp %1495 : vector<1x32xf32>
    %cst_344 = arith.constant 1.000000e+00 : f32
    %1497 = vector.broadcast %cst_344 : f32 to vector<1x32xf32>
    %1498 = arith.addf %1497, %1496 : vector<1x32xf32>
    %1499 = arith.divf %1497, %1498 : vector<1x32xf32>
    %1500 = arith.mulf %1491, %1442 : vector<1x32xf32>
    %1501 = arith.mulf %1485, %1493 : vector<1x32xf32>
    %1502 = arith.addf %1500, %1501 : vector<1x32xf32>
    %1503 = math.tanh %1502 : vector<1x32xf32>
    %1504 = arith.mulf %1499, %1503 : vector<1x32xf32>
    %1505 = arith.addf %1442, %1504 : vector<1x32xf32>
    %1506 = vector.extract_strided_slice %1431 {offsets = [1, 0], sizes = [1, 32], strides = [1, 1]} : vector<8x32xf32> to vector<1x32xf32>
    %1507 = vector.extract_strided_slice %1433 {offsets = [1, 0], sizes = [1, 1], strides = [1, 1]} : vector<8x1xf32> to vector<1x1xf32>
    %1508 = vector.broadcast %1507 : vector<1x1xf32> to vector<1x32xf32>
    %1509 = arith.mulf %1506, %1508 : vector<1x32xf32>
    %1510 = arith.subf %1506, %1509 : vector<1x32xf32>
    %1511 = tpu.concatenate %1510, %1475 in 1 : vector<1x32xf32>, vector<1x32xf32> -> vector<1x64xf32>
    %cst_345 = arith.constant dense<0.000000e+00> : vector<1x128xf32>
    %1512 = tpu.matmul %1511, %1435, %cst_345 {dimension_numbers = #tpu.dot_dimension_numbers<[1], [0], [0], [1], [0, 0, 1, 1], [], []>} : vector<1x64xf32>, vector<64x128xf32>, vector<1x128xf32> -> vector<1x128xf32>
    %1513 = arith.addf %1512, %1437 : vector<1x128xf32>
    %1514 = vector.extract_strided_slice %1513 {offsets = [0, 0], sizes = [1, 32], strides = [1, 1]} : vector<1x128xf32> to vector<1x32xf32>
    %1515 = arith.negf %1514 : vector<1x32xf32>
    %1516 = math.exp %1515 : vector<1x32xf32>
    %cst_346 = arith.constant 1.000000e+00 : f32
    %1517 = vector.broadcast %cst_346 : f32 to vector<1x32xf32>
    %1518 = arith.addf %1517, %1516 : vector<1x32xf32>
    %1519 = arith.divf %1517, %1518 : vector<1x32xf32>
    %1520 = vector.extract_strided_slice %1513 {offsets = [0, 32], sizes = [1, 32], strides = [1, 1]} : vector<1x128xf32> to vector<1x32xf32>
    %1521 = arith.negf %1520 : vector<1x32xf32>
    %1522 = math.exp %1521 : vector<1x32xf32>
    %cst_347 = arith.constant 1.000000e+00 : f32
    %1523 = vector.broadcast %cst_347 : f32 to vector<1x32xf32>
    %1524 = arith.addf %1523, %1522 : vector<1x32xf32>
    %1525 = arith.divf %1523, %1524 : vector<1x32xf32>
    %1526 = vector.extract_strided_slice %1513 {offsets = [0, 64], sizes = [1, 32], strides = [1, 1]} : vector<1x128xf32> to vector<1x32xf32>
    %1527 = math.tanh %1526 : vector<1x32xf32>
    %1528 = vector.extract_strided_slice %1513 {offsets = [0, 96], sizes = [1, 32], strides = [1, 1]} : vector<1x128xf32> to vector<1x32xf32>
    %1529 = arith.negf %1528 : vector<1x32xf32>
    %1530 = math.exp %1529 : vector<1x32xf32>
    %cst_348 = arith.constant 1.000000e+00 : f32
    %1531 = vector.broadcast %cst_348 : f32 to vector<1x32xf32>
    %1532 = arith.addf %1531, %1530 : vector<1x32xf32>
    %1533 = arith.divf %1531, %1532 : vector<1x32xf32>
    %1534 = arith.mulf %1525, %1473 : vector<1x32xf32>
    %1535 = arith.mulf %1519, %1527 : vector<1x32xf32>
    %1536 = arith.addf %1534, %1535 : vector<1x32xf32>
    %1537 = math.tanh %1536 : vector<1x32xf32>
    %1538 = arith.mulf %1533, %1537 : vector<1x32xf32>
    %1539 = arith.addf %1476, %1538 : vector<1x32xf32>
    %1540 = tpu.concatenate %1509, %1504 in 1 : vector<1x32xf32>, vector<1x32xf32> -> vector<1x64xf32>
    %cst_349 = arith.constant dense<0.000000e+00> : vector<1x128xf32>
    %1541 = tpu.matmul %1540, %1439, %cst_349 {dimension_numbers = #tpu.dot_dimension_numbers<[1], [0], [0], [1], [0, 0, 1, 1], [], []>} : vector<1x64xf32>, vector<64x128xf32>, vector<1x128xf32> -> vector<1x128xf32>
    %1542 = arith.addf %1541, %1441 : vector<1x128xf32>
    %1543 = vector.extract_strided_slice %1542 {offsets = [0, 0], sizes = [1, 32], strides = [1, 1]} : vector<1x128xf32> to vector<1x32xf32>
    %1544 = arith.negf %1543 : vector<1x32xf32>
    %1545 = math.exp %1544 : vector<1x32xf32>
    %cst_350 = arith.constant 1.000000e+00 : f32
    %1546 = vector.broadcast %cst_350 : f32 to vector<1x32xf32>
    %1547 = arith.addf %1546, %1545 : vector<1x32xf32>
    %1548 = arith.divf %1546, %1547 : vector<1x32xf32>
    %1549 = vector.extract_strided_slice %1542 {offsets = [0, 32], sizes = [1, 32], strides = [1, 1]} : vector<1x128xf32> to vector<1x32xf32>
    %1550 = arith.negf %1549 : vector<1x32xf32>
    %1551 = math.exp %1550 : vector<1x32xf32>
    %cst_351 = arith.constant 1.000000e+00 : f32
    %1552 = vector.broadcast %cst_351 : f32 to vector<1x32xf32>
    %1553 = arith.addf %1552, %1551 : vector<1x32xf32>
    %1554 = arith.divf %1552, %1553 : vector<1x32xf32>
    %1555 = vector.extract_strided_slice %1542 {offsets = [0, 64], sizes = [1, 32], strides = [1, 1]} : vector<1x128xf32> to vector<1x32xf32>
    %1556 = math.tanh %1555 : vector<1x32xf32>
    %1557 = vector.extract_strided_slice %1542 {offsets = [0, 96], sizes = [1, 32], strides = [1, 1]} : vector<1x128xf32> to vector<1x32xf32>
    %1558 = arith.negf %1557 : vector<1x32xf32>
    %1559 = math.exp %1558 : vector<1x32xf32>
    %cst_352 = arith.constant 1.000000e+00 : f32
    %1560 = vector.broadcast %cst_352 : f32 to vector<1x32xf32>
    %1561 = arith.addf %1560, %1559 : vector<1x32xf32>
    %1562 = arith.divf %1560, %1561 : vector<1x32xf32>
    %1563 = arith.mulf %1554, %1502 : vector<1x32xf32>
    %1564 = arith.mulf %1548, %1556 : vector<1x32xf32>
    %1565 = arith.addf %1563, %1564 : vector<1x32xf32>
    %1566 = math.tanh %1565 : vector<1x32xf32>
    %1567 = arith.mulf %1562, %1566 : vector<1x32xf32>
    %1568 = arith.addf %1505, %1567 : vector<1x32xf32>
    %1569 = vector.extract_strided_slice %1431 {offsets = [2, 0], sizes = [1, 32], strides = [1, 1]} : vector<8x32xf32> to vector<1x32xf32>
    %1570 = vector.extract_strided_slice %1433 {offsets = [2, 0], sizes = [1, 1], strides = [1, 1]} : vector<8x1xf32> to vector<1x1xf32>
    %1571 = vector.broadcast %1570 : vector<1x1xf32> to vector<1x32xf32>
    %1572 = arith.mulf %1569, %1571 : vector<1x32xf32>
    %1573 = arith.subf %1569, %1572 : vector<1x32xf32>
    %1574 = tpu.concatenate %1573, %1538 in 1 : vector<1x32xf32>, vector<1x32xf32> -> vector<1x64xf32>
    %cst_353 = arith.constant dense<0.000000e+00> : vector<1x128xf32>
    %1575 = tpu.matmul %1574, %1435, %cst_353 {dimension_numbers = #tpu.dot_dimension_numbers<[1], [0], [0], [1], [0, 0, 1, 1], [], []>} : vector<1x64xf32>, vector<64x128xf32>, vector<1x128xf32> -> vector<1x128xf32>
    %1576 = arith.addf %1575, %1437 : vector<1x128xf32>
    %1577 = vector.extract_strided_slice %1576 {offsets = [0, 0], sizes = [1, 32], strides = [1, 1]} : vector<1x128xf32> to vector<1x32xf32>
    %1578 = arith.negf %1577 : vector<1x32xf32>
    %1579 = math.exp %1578 : vector<1x32xf32>
    %cst_354 = arith.constant 1.000000e+00 : f32
    %1580 = vector.broadcast %cst_354 : f32 to vector<1x32xf32>
    %1581 = arith.addf %1580, %1579 : vector<1x32xf32>
    %1582 = arith.divf %1580, %1581 : vector<1x32xf32>
    %1583 = vector.extract_strided_slice %1576 {offsets = [0, 32], sizes = [1, 32], strides = [1, 1]} : vector<1x128xf32> to vector<1x32xf32>
    %1584 = arith.negf %1583 : vector<1x32xf32>
    %1585 = math.exp %1584 : vector<1x32xf32>
    %cst_355 = arith.constant 1.000000e+00 : f32
    %1586 = vector.broadcast %cst_355 : f32 to vector<1x32xf32>
    %1587 = arith.addf %1586, %1585 : vector<1x32xf32>
    %1588 = arith.divf %1586, %1587 : vector<1x32xf32>
    %1589 = vector.extract_strided_slice %1576 {offsets = [0, 64], sizes = [1, 32], strides = [1, 1]} : vector<1x128xf32> to vector<1x32xf32>
    %1590 = math.tanh %1589 : vector<1x32xf32>
    %1591 = vector.extract_strided_slice %1576 {offsets = [0, 96], sizes = [1, 32], strides = [1, 1]} : vector<1x128xf32> to vector<1x32xf32>
    %1592 = arith.negf %1591 : vector<1x32xf32>
    %1593 = math.exp %1592 : vector<1x32xf32>
    %cst_356 = arith.constant 1.000000e+00 : f32
    %1594 = vector.broadcast %cst_356 : f32 to vector<1x32xf32>
    %1595 = arith.addf %1594, %1593 : vector<1x32xf32>
    %1596 = arith.divf %1594, %1595 : vector<1x32xf32>
    %1597 = arith.mulf %1588, %1536 : vector<1x32xf32>
    %1598 = arith.mulf %1582, %1590 : vector<1x32xf32>
    %1599 = arith.addf %1597, %1598 : vector<1x32xf32>
    %1600 = math.tanh %1599 : vector<1x32xf32>
    %1601 = arith.mulf %1596, %1600 : vector<1x32xf32>
    %1602 = arith.addf %1539, %1601 : vector<1x32xf32>
    %1603 = tpu.concatenate %1572, %1567 in 1 : vector<1x32xf32>, vector<1x32xf32> -> vector<1x64xf32>
    %cst_357 = arith.constant dense<0.000000e+00> : vector<1x128xf32>
    %1604 = tpu.matmul %1603, %1439, %cst_357 {dimension_numbers = #tpu.dot_dimension_numbers<[1], [0], [0], [1], [0, 0, 1, 1], [], []>} : vector<1x64xf32>, vector<64x128xf32>, vector<1x128xf32> -> vector<1x128xf32>
    %1605 = arith.addf %1604, %1441 : vector<1x128xf32>
    %1606 = vector.extract_strided_slice %1605 {offsets = [0, 0], sizes = [1, 32], strides = [1, 1]} : vector<1x128xf32> to vector<1x32xf32>
    %1607 = arith.negf %1606 : vector<1x32xf32>
    %1608 = math.exp %1607 : vector<1x32xf32>
    %cst_358 = arith.constant 1.000000e+00 : f32
    %1609 = vector.broadcast %cst_358 : f32 to vector<1x32xf32>
    %1610 = arith.addf %1609, %1608 : vector<1x32xf32>
    %1611 = arith.divf %1609, %1610 : vector<1x32xf32>
    %1612 = vector.extract_strided_slice %1605 {offsets = [0, 32], sizes = [1, 32], strides = [1, 1]} : vector<1x128xf32> to vector<1x32xf32>
    %1613 = arith.negf %1612 : vector<1x32xf32>
    %1614 = math.exp %1613 : vector<1x32xf32>
    %cst_359 = arith.constant 1.000000e+00 : f32
    %1615 = vector.broadcast %cst_359 : f32 to vector<1x32xf32>
    %1616 = arith.addf %1615, %1614 : vector<1x32xf32>
    %1617 = arith.divf %1615, %1616 : vector<1x32xf32>
    %1618 = vector.extract_strided_slice %1605 {offsets = [0, 64], sizes = [1, 32], strides = [1, 1]} : vector<1x128xf32> to vector<1x32xf32>
    %1619 = math.tanh %1618 : vector<1x32xf32>
    %1620 = vector.extract_strided_slice %1605 {offsets = [0, 96], sizes = [1, 32], strides = [1, 1]} : vector<1x128xf32> to vector<1x32xf32>
    %1621 = arith.negf %1620 : vector<1x32xf32>
    %1622 = math.exp %1621 : vector<1x32xf32>
    %cst_360 = arith.constant 1.000000e+00 : f32
    %1623 = vector.broadcast %cst_360 : f32 to vector<1x32xf32>
    %1624 = arith.addf %1623, %1622 : vector<1x32xf32>
    %1625 = arith.divf %1623, %1624 : vector<1x32xf32>
    %1626 = arith.mulf %1617, %1565 : vector<1x32xf32>
    %1627 = arith.mulf %1611, %1619 : vector<1x32xf32>
    %1628 = arith.addf %1626, %1627 : vector<1x32xf32>
    %1629 = math.tanh %1628 : vector<1x32xf32>
    %1630 = arith.mulf %1625, %1629 : vector<1x32xf32>
    %1631 = arith.addf %1568, %1630 : vector<1x32xf32>
    %1632 = vector.extract_strided_slice %1431 {offsets = [3, 0], sizes = [1, 32], strides = [1, 1]} : vector<8x32xf32> to vector<1x32xf32>
    %1633 = vector.extract_strided_slice %1433 {offsets = [3, 0], sizes = [1, 1], strides = [1, 1]} : vector<8x1xf32> to vector<1x1xf32>
    %1634 = vector.broadcast %1633 : vector<1x1xf32> to vector<1x32xf32>
    %1635 = arith.mulf %1632, %1634 : vector<1x32xf32>
    %1636 = arith.subf %1632, %1635 : vector<1x32xf32>
    %1637 = tpu.concatenate %1636, %1601 in 1 : vector<1x32xf32>, vector<1x32xf32> -> vector<1x64xf32>
    %cst_361 = arith.constant dense<0.000000e+00> : vector<1x128xf32>
    %1638 = tpu.matmul %1637, %1435, %cst_361 {dimension_numbers = #tpu.dot_dimension_numbers<[1], [0], [0], [1], [0, 0, 1, 1], [], []>} : vector<1x64xf32>, vector<64x128xf32>, vector<1x128xf32> -> vector<1x128xf32>
    %1639 = arith.addf %1638, %1437 : vector<1x128xf32>
    %1640 = vector.extract_strided_slice %1639 {offsets = [0, 0], sizes = [1, 32], strides = [1, 1]} : vector<1x128xf32> to vector<1x32xf32>
    %1641 = arith.negf %1640 : vector<1x32xf32>
    %1642 = math.exp %1641 : vector<1x32xf32>
    %cst_362 = arith.constant 1.000000e+00 : f32
    %1643 = vector.broadcast %cst_362 : f32 to vector<1x32xf32>
    %1644 = arith.addf %1643, %1642 : vector<1x32xf32>
    %1645 = arith.divf %1643, %1644 : vector<1x32xf32>
    %1646 = vector.extract_strided_slice %1639 {offsets = [0, 32], sizes = [1, 32], strides = [1, 1]} : vector<1x128xf32> to vector<1x32xf32>
    %1647 = arith.negf %1646 : vector<1x32xf32>
    %1648 = math.exp %1647 : vector<1x32xf32>
    %cst_363 = arith.constant 1.000000e+00 : f32
    %1649 = vector.broadcast %cst_363 : f32 to vector<1x32xf32>
    %1650 = arith.addf %1649, %1648 : vector<1x32xf32>
    %1651 = arith.divf %1649, %1650 : vector<1x32xf32>
    %1652 = vector.extract_strided_slice %1639 {offsets = [0, 64], sizes = [1, 32], strides = [1, 1]} : vector<1x128xf32> to vector<1x32xf32>
    %1653 = math.tanh %1652 : vector<1x32xf32>
    %1654 = vector.extract_strided_slice %1639 {offsets = [0, 96], sizes = [1, 32], strides = [1, 1]} : vector<1x128xf32> to vector<1x32xf32>
    %1655 = arith.negf %1654 : vector<1x32xf32>
    %1656 = math.exp %1655 : vector<1x32xf32>
    %cst_364 = arith.constant 1.000000e+00 : f32
    %1657 = vector.broadcast %cst_364 : f32 to vector<1x32xf32>
    %1658 = arith.addf %1657, %1656 : vector<1x32xf32>
    %1659 = arith.divf %1657, %1658 : vector<1x32xf32>
    %1660 = arith.mulf %1651, %1599 : vector<1x32xf32>
    %1661 = arith.mulf %1645, %1653 : vector<1x32xf32>
    %1662 = arith.addf %1660, %1661 : vector<1x32xf32>
    %1663 = math.tanh %1662 : vector<1x32xf32>
    %1664 = arith.mulf %1659, %1663 : vector<1x32xf32>
    %1665 = arith.addf %1602, %1664 : vector<1x32xf32>
    %1666 = tpu.concatenate %1635, %1630 in 1 : vector<1x32xf32>, vector<1x32xf32> -> vector<1x64xf32>
    %cst_365 = arith.constant dense<0.000000e+00> : vector<1x128xf32>
    %1667 = tpu.matmul %1666, %1439, %cst_365 {dimension_numbers = #tpu.dot_dimension_numbers<[1], [0], [0], [1], [0, 0, 1, 1], [], []>} : vector<1x64xf32>, vector<64x128xf32>, vector<1x128xf32> -> vector<1x128xf32>
    %1668 = arith.addf %1667, %1441 : vector<1x128xf32>
    %1669 = vector.extract_strided_slice %1668 {offsets = [0, 0], sizes = [1, 32], strides = [1, 1]} : vector<1x128xf32> to vector<1x32xf32>
    %1670 = arith.negf %1669 : vector<1x32xf32>
    %1671 = math.exp %1670 : vector<1x32xf32>
    %cst_366 = arith.constant 1.000000e+00 : f32
    %1672 = vector.broadcast %cst_366 : f32 to vector<1x32xf32>
    %1673 = arith.addf %1672, %1671 : vector<1x32xf32>
    %1674 = arith.divf %1672, %1673 : vector<1x32xf32>
    %1675 = vector.extract_strided_slice %1668 {offsets = [0, 32], sizes = [1, 32], strides = [1, 1]} : vector<1x128xf32> to vector<1x32xf32>
    %1676 = arith.negf %1675 : vector<1x32xf32>
    %1677 = math.exp %1676 : vector<1x32xf32>
    %cst_367 = arith.constant 1.000000e+00 : f32
    %1678 = vector.broadcast %cst_367 : f32 to vector<1x32xf32>
    %1679 = arith.addf %1678, %1677 : vector<1x32xf32>
    %1680 = arith.divf %1678, %1679 : vector<1x32xf32>
    %1681 = vector.extract_strided_slice %1668 {offsets = [0, 64], sizes = [1, 32], strides = [1, 1]} : vector<1x128xf32> to vector<1x32xf32>
    %1682 = math.tanh %1681 : vector<1x32xf32>
    %1683 = vector.extract_strided_slice %1668 {offsets = [0, 96], sizes = [1, 32], strides = [1, 1]} : vector<1x128xf32> to vector<1x32xf32>
    %1684 = arith.negf %1683 : vector<1x32xf32>
    %1685 = math.exp %1684 : vector<1x32xf32>
    %cst_368 = arith.constant 1.000000e+00 : f32
    %1686 = vector.broadcast %cst_368 : f32 to vector<1x32xf32>
    %1687 = arith.addf %1686, %1685 : vector<1x32xf32>
    %1688 = arith.divf %1686, %1687 : vector<1x32xf32>
    %1689 = arith.mulf %1680, %1628 : vector<1x32xf32>
    %1690 = arith.mulf %1674, %1682 : vector<1x32xf32>
    %1691 = arith.addf %1689, %1690 : vector<1x32xf32>
    %1692 = math.tanh %1691 : vector<1x32xf32>
    %1693 = arith.mulf %1688, %1692 : vector<1x32xf32>
    %1694 = arith.addf %1631, %1693 : vector<1x32xf32>
    %1695 = vector.extract_strided_slice %1431 {offsets = [4, 0], sizes = [1, 32], strides = [1, 1]} : vector<8x32xf32> to vector<1x32xf32>
    %1696 = vector.extract_strided_slice %1433 {offsets = [4, 0], sizes = [1, 1], strides = [1, 1]} : vector<8x1xf32> to vector<1x1xf32>
    %1697 = vector.broadcast %1696 : vector<1x1xf32> to vector<1x32xf32>
    %1698 = arith.mulf %1695, %1697 : vector<1x32xf32>
    %1699 = arith.subf %1695, %1698 : vector<1x32xf32>
    %1700 = tpu.concatenate %1699, %1664 in 1 : vector<1x32xf32>, vector<1x32xf32> -> vector<1x64xf32>
    %cst_369 = arith.constant dense<0.000000e+00> : vector<1x128xf32>
    %1701 = tpu.matmul %1700, %1435, %cst_369 {dimension_numbers = #tpu.dot_dimension_numbers<[1], [0], [0], [1], [0, 0, 1, 1], [], []>} : vector<1x64xf32>, vector<64x128xf32>, vector<1x128xf32> -> vector<1x128xf32>
    %1702 = arith.addf %1701, %1437 : vector<1x128xf32>
    %1703 = vector.extract_strided_slice %1702 {offsets = [0, 0], sizes = [1, 32], strides = [1, 1]} : vector<1x128xf32> to vector<1x32xf32>
    %1704 = arith.negf %1703 : vector<1x32xf32>
    %1705 = math.exp %1704 : vector<1x32xf32>
    %cst_370 = arith.constant 1.000000e+00 : f32
    %1706 = vector.broadcast %cst_370 : f32 to vector<1x32xf32>
    %1707 = arith.addf %1706, %1705 : vector<1x32xf32>
    %1708 = arith.divf %1706, %1707 : vector<1x32xf32>
    %1709 = vector.extract_strided_slice %1702 {offsets = [0, 32], sizes = [1, 32], strides = [1, 1]} : vector<1x128xf32> to vector<1x32xf32>
    %1710 = arith.negf %1709 : vector<1x32xf32>
    %1711 = math.exp %1710 : vector<1x32xf32>
    %cst_371 = arith.constant 1.000000e+00 : f32
    %1712 = vector.broadcast %cst_371 : f32 to vector<1x32xf32>
    %1713 = arith.addf %1712, %1711 : vector<1x32xf32>
    %1714 = arith.divf %1712, %1713 : vector<1x32xf32>
    %1715 = vector.extract_strided_slice %1702 {offsets = [0, 64], sizes = [1, 32], strides = [1, 1]} : vector<1x128xf32> to vector<1x32xf32>
    %1716 = math.tanh %1715 : vector<1x32xf32>
    %1717 = vector.extract_strided_slice %1702 {offsets = [0, 96], sizes = [1, 32], strides = [1, 1]} : vector<1x128xf32> to vector<1x32xf32>
    %1718 = arith.negf %1717 : vector<1x32xf32>
    %1719 = math.exp %1718 : vector<1x32xf32>
    %cst_372 = arith.constant 1.000000e+00 : f32
    %1720 = vector.broadcast %cst_372 : f32 to vector<1x32xf32>
    %1721 = arith.addf %1720, %1719 : vector<1x32xf32>
    %1722 = arith.divf %1720, %1721 : vector<1x32xf32>
    %1723 = arith.mulf %1714, %1662 : vector<1x32xf32>
    %1724 = arith.mulf %1708, %1716 : vector<1x32xf32>
    %1725 = arith.addf %1723, %1724 : vector<1x32xf32>
    %1726 = math.tanh %1725 : vector<1x32xf32>
    %1727 = arith.mulf %1722, %1726 : vector<1x32xf32>
    %1728 = arith.addf %1665, %1727 : vector<1x32xf32>
    %1729 = tpu.concatenate %1698, %1693 in 1 : vector<1x32xf32>, vector<1x32xf32> -> vector<1x64xf32>
    %cst_373 = arith.constant dense<0.000000e+00> : vector<1x128xf32>
    %1730 = tpu.matmul %1729, %1439, %cst_373 {dimension_numbers = #tpu.dot_dimension_numbers<[1], [0], [0], [1], [0, 0, 1, 1], [], []>} : vector<1x64xf32>, vector<64x128xf32>, vector<1x128xf32> -> vector<1x128xf32>
    %1731 = arith.addf %1730, %1441 : vector<1x128xf32>
    %1732 = vector.extract_strided_slice %1731 {offsets = [0, 0], sizes = [1, 32], strides = [1, 1]} : vector<1x128xf32> to vector<1x32xf32>
    %1733 = arith.negf %1732 : vector<1x32xf32>
    %1734 = math.exp %1733 : vector<1x32xf32>
    %cst_374 = arith.constant 1.000000e+00 : f32
    %1735 = vector.broadcast %cst_374 : f32 to vector<1x32xf32>
    %1736 = arith.addf %1735, %1734 : vector<1x32xf32>
    %1737 = arith.divf %1735, %1736 : vector<1x32xf32>
    %1738 = vector.extract_strided_slice %1731 {offsets = [0, 32], sizes = [1, 32], strides = [1, 1]} : vector<1x128xf32> to vector<1x32xf32>
    %1739 = arith.negf %1738 : vector<1x32xf32>
    %1740 = math.exp %1739 : vector<1x32xf32>
    %cst_375 = arith.constant 1.000000e+00 : f32
    %1741 = vector.broadcast %cst_375 : f32 to vector<1x32xf32>
    %1742 = arith.addf %1741, %1740 : vector<1x32xf32>
    %1743 = arith.divf %1741, %1742 : vector<1x32xf32>
    %1744 = vector.extract_strided_slice %1731 {offsets = [0, 64], sizes = [1, 32], strides = [1, 1]} : vector<1x128xf32> to vector<1x32xf32>
    %1745 = math.tanh %1744 : vector<1x32xf32>
    %1746 = vector.extract_strided_slice %1731 {offsets = [0, 96], sizes = [1, 32], strides = [1, 1]} : vector<1x128xf32> to vector<1x32xf32>
    %1747 = arith.negf %1746 : vector<1x32xf32>
    %1748 = math.exp %1747 : vector<1x32xf32>
    %cst_376 = arith.constant 1.000000e+00 : f32
    %1749 = vector.broadcast %cst_376 : f32 to vector<1x32xf32>
    %1750 = arith.addf %1749, %1748 : vector<1x32xf32>
    %1751 = arith.divf %1749, %1750 : vector<1x32xf32>
    %1752 = arith.mulf %1743, %1691 : vector<1x32xf32>
    %1753 = arith.mulf %1737, %1745 : vector<1x32xf32>
    %1754 = arith.addf %1752, %1753 : vector<1x32xf32>
    %1755 = math.tanh %1754 : vector<1x32xf32>
    %1756 = arith.mulf %1751, %1755 : vector<1x32xf32>
    %1757 = arith.addf %1694, %1756 : vector<1x32xf32>
    %1758 = vector.extract_strided_slice %1431 {offsets = [5, 0], sizes = [1, 32], strides = [1, 1]} : vector<8x32xf32> to vector<1x32xf32>
    %1759 = vector.extract_strided_slice %1433 {offsets = [5, 0], sizes = [1, 1], strides = [1, 1]} : vector<8x1xf32> to vector<1x1xf32>
    %1760 = vector.broadcast %1759 : vector<1x1xf32> to vector<1x32xf32>
    %1761 = arith.mulf %1758, %1760 : vector<1x32xf32>
    %1762 = arith.subf %1758, %1761 : vector<1x32xf32>
    %1763 = tpu.concatenate %1762, %1727 in 1 : vector<1x32xf32>, vector<1x32xf32> -> vector<1x64xf32>
    %cst_377 = arith.constant dense<0.000000e+00> : vector<1x128xf32>
    %1764 = tpu.matmul %1763, %1435, %cst_377 {dimension_numbers = #tpu.dot_dimension_numbers<[1], [0], [0], [1], [0, 0, 1, 1], [], []>} : vector<1x64xf32>, vector<64x128xf32>, vector<1x128xf32> -> vector<1x128xf32>
    %1765 = arith.addf %1764, %1437 : vector<1x128xf32>
    %1766 = vector.extract_strided_slice %1765 {offsets = [0, 0], sizes = [1, 32], strides = [1, 1]} : vector<1x128xf32> to vector<1x32xf32>
    %1767 = arith.negf %1766 : vector<1x32xf32>
    %1768 = math.exp %1767 : vector<1x32xf32>
    %cst_378 = arith.constant 1.000000e+00 : f32
    %1769 = vector.broadcast %cst_378 : f32 to vector<1x32xf32>
    %1770 = arith.addf %1769, %1768 : vector<1x32xf32>
    %1771 = arith.divf %1769, %1770 : vector<1x32xf32>
    %1772 = vector.extract_strided_slice %1765 {offsets = [0, 32], sizes = [1, 32], strides = [1, 1]} : vector<1x128xf32> to vector<1x32xf32>
    %1773 = arith.negf %1772 : vector<1x32xf32>
    %1774 = math.exp %1773 : vector<1x32xf32>
    %cst_379 = arith.constant 1.000000e+00 : f32
    %1775 = vector.broadcast %cst_379 : f32 to vector<1x32xf32>
    %1776 = arith.addf %1775, %1774 : vector<1x32xf32>
    %1777 = arith.divf %1775, %1776 : vector<1x32xf32>
    %1778 = vector.extract_strided_slice %1765 {offsets = [0, 64], sizes = [1, 32], strides = [1, 1]} : vector<1x128xf32> to vector<1x32xf32>
    %1779 = math.tanh %1778 : vector<1x32xf32>
    %1780 = vector.extract_strided_slice %1765 {offsets = [0, 96], sizes = [1, 32], strides = [1, 1]} : vector<1x128xf32> to vector<1x32xf32>
    %1781 = arith.negf %1780 : vector<1x32xf32>
    %1782 = math.exp %1781 : vector<1x32xf32>
    %cst_380 = arith.constant 1.000000e+00 : f32
    %1783 = vector.broadcast %cst_380 : f32 to vector<1x32xf32>
    %1784 = arith.addf %1783, %1782 : vector<1x32xf32>
    %1785 = arith.divf %1783, %1784 : vector<1x32xf32>
    %1786 = arith.mulf %1777, %1725 : vector<1x32xf32>
    %1787 = arith.mulf %1771, %1779 : vector<1x32xf32>
    %1788 = arith.addf %1786, %1787 : vector<1x32xf32>
    %1789 = math.tanh %1788 : vector<1x32xf32>
    %1790 = arith.mulf %1785, %1789 : vector<1x32xf32>
    %1791 = arith.addf %1728, %1790 : vector<1x32xf32>
    %1792 = tpu.concatenate %1761, %1756 in 1 : vector<1x32xf32>, vector<1x32xf32> -> vector<1x64xf32>
    %cst_381 = arith.constant dense<0.000000e+00> : vector<1x128xf32>
    %1793 = tpu.matmul %1792, %1439, %cst_381 {dimension_numbers = #tpu.dot_dimension_numbers<[1], [0], [0], [1], [0, 0, 1, 1], [], []>} : vector<1x64xf32>, vector<64x128xf32>, vector<1x128xf32> -> vector<1x128xf32>
    %1794 = arith.addf %1793, %1441 : vector<1x128xf32>
    %1795 = vector.extract_strided_slice %1794 {offsets = [0, 0], sizes = [1, 32], strides = [1, 1]} : vector<1x128xf32> to vector<1x32xf32>
    %1796 = arith.negf %1795 : vector<1x32xf32>
    %1797 = math.exp %1796 : vector<1x32xf32>
    %cst_382 = arith.constant 1.000000e+00 : f32
    %1798 = vector.broadcast %cst_382 : f32 to vector<1x32xf32>
    %1799 = arith.addf %1798, %1797 : vector<1x32xf32>
    %1800 = arith.divf %1798, %1799 : vector<1x32xf32>
    %1801 = vector.extract_strided_slice %1794 {offsets = [0, 32], sizes = [1, 32], strides = [1, 1]} : vector<1x128xf32> to vector<1x32xf32>
    %1802 = arith.negf %1801 : vector<1x32xf32>
    %1803 = math.exp %1802 : vector<1x32xf32>
    %cst_383 = arith.constant 1.000000e+00 : f32
    %1804 = vector.broadcast %cst_383 : f32 to vector<1x32xf32>
    %1805 = arith.addf %1804, %1803 : vector<1x32xf32>
    %1806 = arith.divf %1804, %1805 : vector<1x32xf32>
    %1807 = vector.extract_strided_slice %1794 {offsets = [0, 64], sizes = [1, 32], strides = [1, 1]} : vector<1x128xf32> to vector<1x32xf32>
    %1808 = math.tanh %1807 : vector<1x32xf32>
    %1809 = vector.extract_strided_slice %1794 {offsets = [0, 96], sizes = [1, 32], strides = [1, 1]} : vector<1x128xf32> to vector<1x32xf32>
    %1810 = arith.negf %1809 : vector<1x32xf32>
    %1811 = math.exp %1810 : vector<1x32xf32>
    %cst_384 = arith.constant 1.000000e+00 : f32
    %1812 = vector.broadcast %cst_384 : f32 to vector<1x32xf32>
    %1813 = arith.addf %1812, %1811 : vector<1x32xf32>
    %1814 = arith.divf %1812, %1813 : vector<1x32xf32>
    %1815 = arith.mulf %1806, %1754 : vector<1x32xf32>
    %1816 = arith.mulf %1800, %1808 : vector<1x32xf32>
    %1817 = arith.addf %1815, %1816 : vector<1x32xf32>
    %1818 = math.tanh %1817 : vector<1x32xf32>
    %1819 = arith.mulf %1814, %1818 : vector<1x32xf32>
    %1820 = arith.addf %1757, %1819 : vector<1x32xf32>
    %1821 = vector.extract_strided_slice %1431 {offsets = [6, 0], sizes = [1, 32], strides = [1, 1]} : vector<8x32xf32> to vector<1x32xf32>
    %1822 = vector.extract_strided_slice %1433 {offsets = [6, 0], sizes = [1, 1], strides = [1, 1]} : vector<8x1xf32> to vector<1x1xf32>
    %1823 = vector.broadcast %1822 : vector<1x1xf32> to vector<1x32xf32>
    %1824 = arith.mulf %1821, %1823 : vector<1x32xf32>
    %1825 = arith.subf %1821, %1824 : vector<1x32xf32>
    %1826 = tpu.concatenate %1825, %1790 in 1 : vector<1x32xf32>, vector<1x32xf32> -> vector<1x64xf32>
    %cst_385 = arith.constant dense<0.000000e+00> : vector<1x128xf32>
    %1827 = tpu.matmul %1826, %1435, %cst_385 {dimension_numbers = #tpu.dot_dimension_numbers<[1], [0], [0], [1], [0, 0, 1, 1], [], []>} : vector<1x64xf32>, vector<64x128xf32>, vector<1x128xf32> -> vector<1x128xf32>
    %1828 = arith.addf %1827, %1437 : vector<1x128xf32>
    %1829 = vector.extract_strided_slice %1828 {offsets = [0, 0], sizes = [1, 32], strides = [1, 1]} : vector<1x128xf32> to vector<1x32xf32>
    %1830 = arith.negf %1829 : vector<1x32xf32>
    %1831 = math.exp %1830 : vector<1x32xf32>
    %cst_386 = arith.constant 1.000000e+00 : f32
    %1832 = vector.broadcast %cst_386 : f32 to vector<1x32xf32>
    %1833 = arith.addf %1832, %1831 : vector<1x32xf32>
    %1834 = arith.divf %1832, %1833 : vector<1x32xf32>
    %1835 = vector.extract_strided_slice %1828 {offsets = [0, 32], sizes = [1, 32], strides = [1, 1]} : vector<1x128xf32> to vector<1x32xf32>
    %1836 = arith.negf %1835 : vector<1x32xf32>
    %1837 = math.exp %1836 : vector<1x32xf32>
    %cst_387 = arith.constant 1.000000e+00 : f32
    %1838 = vector.broadcast %cst_387 : f32 to vector<1x32xf32>
    %1839 = arith.addf %1838, %1837 : vector<1x32xf32>
    %1840 = arith.divf %1838, %1839 : vector<1x32xf32>
    %1841 = vector.extract_strided_slice %1828 {offsets = [0, 64], sizes = [1, 32], strides = [1, 1]} : vector<1x128xf32> to vector<1x32xf32>
    %1842 = math.tanh %1841 : vector<1x32xf32>
    %1843 = vector.extract_strided_slice %1828 {offsets = [0, 96], sizes = [1, 32], strides = [1, 1]} : vector<1x128xf32> to vector<1x32xf32>
    %1844 = arith.negf %1843 : vector<1x32xf32>
    %1845 = math.exp %1844 : vector<1x32xf32>
    %cst_388 = arith.constant 1.000000e+00 : f32
    %1846 = vector.broadcast %cst_388 : f32 to vector<1x32xf32>
    %1847 = arith.addf %1846, %1845 : vector<1x32xf32>
    %1848 = arith.divf %1846, %1847 : vector<1x32xf32>
    %1849 = arith.mulf %1840, %1788 : vector<1x32xf32>
    %1850 = arith.mulf %1834, %1842 : vector<1x32xf32>
    %1851 = arith.addf %1849, %1850 : vector<1x32xf32>
    %1852 = math.tanh %1851 : vector<1x32xf32>
    %1853 = arith.mulf %1848, %1852 : vector<1x32xf32>
    %1854 = arith.addf %1791, %1853 : vector<1x32xf32>
    %1855 = tpu.concatenate %1824, %1819 in 1 : vector<1x32xf32>, vector<1x32xf32> -> vector<1x64xf32>
    %cst_389 = arith.constant dense<0.000000e+00> : vector<1x128xf32>
    %1856 = tpu.matmul %1855, %1439, %cst_389 {dimension_numbers = #tpu.dot_dimension_numbers<[1], [0], [0], [1], [0, 0, 1, 1], [], []>} : vector<1x64xf32>, vector<64x128xf32>, vector<1x128xf32> -> vector<1x128xf32>
    %1857 = arith.addf %1856, %1441 : vector<1x128xf32>
    %1858 = vector.extract_strided_slice %1857 {offsets = [0, 0], sizes = [1, 32], strides = [1, 1]} : vector<1x128xf32> to vector<1x32xf32>
    %1859 = arith.negf %1858 : vector<1x32xf32>
    %1860 = math.exp %1859 : vector<1x32xf32>
    %cst_390 = arith.constant 1.000000e+00 : f32
    %1861 = vector.broadcast %cst_390 : f32 to vector<1x32xf32>
    %1862 = arith.addf %1861, %1860 : vector<1x32xf32>
    %1863 = arith.divf %1861, %1862 : vector<1x32xf32>
    %1864 = vector.extract_strided_slice %1857 {offsets = [0, 32], sizes = [1, 32], strides = [1, 1]} : vector<1x128xf32> to vector<1x32xf32>
    %1865 = arith.negf %1864 : vector<1x32xf32>
    %1866 = math.exp %1865 : vector<1x32xf32>
    %cst_391 = arith.constant 1.000000e+00 : f32
    %1867 = vector.broadcast %cst_391 : f32 to vector<1x32xf32>
    %1868 = arith.addf %1867, %1866 : vector<1x32xf32>
    %1869 = arith.divf %1867, %1868 : vector<1x32xf32>
    %1870 = vector.extract_strided_slice %1857 {offsets = [0, 64], sizes = [1, 32], strides = [1, 1]} : vector<1x128xf32> to vector<1x32xf32>
    %1871 = math.tanh %1870 : vector<1x32xf32>
    %1872 = vector.extract_strided_slice %1857 {offsets = [0, 96], sizes = [1, 32], strides = [1, 1]} : vector<1x128xf32> to vector<1x32xf32>
    %1873 = arith.negf %1872 : vector<1x32xf32>
    %1874 = math.exp %1873 : vector<1x32xf32>
    %cst_392 = arith.constant 1.000000e+00 : f32
    %1875 = vector.broadcast %cst_392 : f32 to vector<1x32xf32>
    %1876 = arith.addf %1875, %1874 : vector<1x32xf32>
    %1877 = arith.divf %1875, %1876 : vector<1x32xf32>
    %1878 = arith.mulf %1869, %1817 : vector<1x32xf32>
    %1879 = arith.mulf %1863, %1871 : vector<1x32xf32>
    %1880 = arith.addf %1878, %1879 : vector<1x32xf32>
    %1881 = math.tanh %1880 : vector<1x32xf32>
    %1882 = arith.mulf %1877, %1881 : vector<1x32xf32>
    %1883 = arith.addf %1820, %1882 : vector<1x32xf32>
    %1884 = vector.extract_strided_slice %1431 {offsets = [7, 0], sizes = [1, 32], strides = [1, 1]} : vector<8x32xf32> to vector<1x32xf32>
    %1885 = vector.extract_strided_slice %1433 {offsets = [7, 0], sizes = [1, 1], strides = [1, 1]} : vector<8x1xf32> to vector<1x1xf32>
    %1886 = vector.broadcast %1885 : vector<1x1xf32> to vector<1x32xf32>
    %1887 = arith.mulf %1884, %1886 : vector<1x32xf32>
    %1888 = arith.subf %1884, %1887 : vector<1x32xf32>
    %1889 = tpu.concatenate %1888, %1853 in 1 : vector<1x32xf32>, vector<1x32xf32> -> vector<1x64xf32>
    %cst_393 = arith.constant dense<0.000000e+00> : vector<1x128xf32>
    %1890 = tpu.matmul %1889, %1435, %cst_393 {dimension_numbers = #tpu.dot_dimension_numbers<[1], [0], [0], [1], [0, 0, 1, 1], [], []>} : vector<1x64xf32>, vector<64x128xf32>, vector<1x128xf32> -> vector<1x128xf32>
    %1891 = arith.addf %1890, %1437 : vector<1x128xf32>
    %1892 = vector.extract_strided_slice %1891 {offsets = [0, 0], sizes = [1, 32], strides = [1, 1]} : vector<1x128xf32> to vector<1x32xf32>
    %1893 = arith.negf %1892 : vector<1x32xf32>
    %1894 = math.exp %1893 : vector<1x32xf32>
    %cst_394 = arith.constant 1.000000e+00 : f32
    %1895 = vector.broadcast %cst_394 : f32 to vector<1x32xf32>
    %1896 = arith.addf %1895, %1894 : vector<1x32xf32>
    %1897 = arith.divf %1895, %1896 : vector<1x32xf32>
    %1898 = vector.extract_strided_slice %1891 {offsets = [0, 32], sizes = [1, 32], strides = [1, 1]} : vector<1x128xf32> to vector<1x32xf32>
    %1899 = arith.negf %1898 : vector<1x32xf32>
    %1900 = math.exp %1899 : vector<1x32xf32>
    %cst_395 = arith.constant 1.000000e+00 : f32
    %1901 = vector.broadcast %cst_395 : f32 to vector<1x32xf32>
    %1902 = arith.addf %1901, %1900 : vector<1x32xf32>
    %1903 = arith.divf %1901, %1902 : vector<1x32xf32>
    %1904 = vector.extract_strided_slice %1891 {offsets = [0, 64], sizes = [1, 32], strides = [1, 1]} : vector<1x128xf32> to vector<1x32xf32>
    %1905 = math.tanh %1904 : vector<1x32xf32>
    %1906 = vector.extract_strided_slice %1891 {offsets = [0, 96], sizes = [1, 32], strides = [1, 1]} : vector<1x128xf32> to vector<1x32xf32>
    %1907 = arith.negf %1906 : vector<1x32xf32>
    %1908 = math.exp %1907 : vector<1x32xf32>
    %cst_396 = arith.constant 1.000000e+00 : f32
    %1909 = vector.broadcast %cst_396 : f32 to vector<1x32xf32>
    %1910 = arith.addf %1909, %1908 : vector<1x32xf32>
    %1911 = arith.divf %1909, %1910 : vector<1x32xf32>
    %1912 = arith.mulf %1903, %1851 : vector<1x32xf32>
    %1913 = arith.mulf %1897, %1905 : vector<1x32xf32>
    %1914 = arith.addf %1912, %1913 : vector<1x32xf32>
    %1915 = math.tanh %1914 : vector<1x32xf32>
    %1916 = arith.mulf %1911, %1915 : vector<1x32xf32>
    %1917 = arith.addf %1854, %1916 : vector<1x32xf32>
    %1918 = tpu.concatenate %1887, %1882 in 1 : vector<1x32xf32>, vector<1x32xf32> -> vector<1x64xf32>
    %cst_397 = arith.constant dense<0.000000e+00> : vector<1x128xf32>
    %1919 = tpu.matmul %1918, %1439, %cst_397 {dimension_numbers = #tpu.dot_dimension_numbers<[1], [0], [0], [1], [0, 0, 1, 1], [], []>} : vector<1x64xf32>, vector<64x128xf32>, vector<1x128xf32> -> vector<1x128xf32>
    %1920 = arith.addf %1919, %1441 : vector<1x128xf32>
    %1921 = vector.extract_strided_slice %1920 {offsets = [0, 0], sizes = [1, 32], strides = [1, 1]} : vector<1x128xf32> to vector<1x32xf32>
    %1922 = arith.negf %1921 : vector<1x32xf32>
    %1923 = math.exp %1922 : vector<1x32xf32>
    %cst_398 = arith.constant 1.000000e+00 : f32
    %1924 = vector.broadcast %cst_398 : f32 to vector<1x32xf32>
    %1925 = arith.addf %1924, %1923 : vector<1x32xf32>
    %1926 = arith.divf %1924, %1925 : vector<1x32xf32>
    %1927 = vector.extract_strided_slice %1920 {offsets = [0, 32], sizes = [1, 32], strides = [1, 1]} : vector<1x128xf32> to vector<1x32xf32>
    %1928 = arith.negf %1927 : vector<1x32xf32>
    %1929 = math.exp %1928 : vector<1x32xf32>
    %cst_399 = arith.constant 1.000000e+00 : f32
    %1930 = vector.broadcast %cst_399 : f32 to vector<1x32xf32>
    %1931 = arith.addf %1930, %1929 : vector<1x32xf32>
    %1932 = arith.divf %1930, %1931 : vector<1x32xf32>
    %1933 = vector.extract_strided_slice %1920 {offsets = [0, 64], sizes = [1, 32], strides = [1, 1]} : vector<1x128xf32> to vector<1x32xf32>
    %1934 = math.tanh %1933 : vector<1x32xf32>
    %1935 = vector.extract_strided_slice %1920 {offsets = [0, 96], sizes = [1, 32], strides = [1, 1]} : vector<1x128xf32> to vector<1x32xf32>
    %1936 = arith.negf %1935 : vector<1x32xf32>
    %1937 = math.exp %1936 : vector<1x32xf32>
    %cst_400 = arith.constant 1.000000e+00 : f32
    %1938 = vector.broadcast %cst_400 : f32 to vector<1x32xf32>
    %1939 = arith.addf %1938, %1937 : vector<1x32xf32>
    %1940 = arith.divf %1938, %1939 : vector<1x32xf32>
    %1941 = arith.mulf %1932, %1880 : vector<1x32xf32>
    %1942 = arith.mulf %1926, %1934 : vector<1x32xf32>
    %1943 = arith.addf %1941, %1942 : vector<1x32xf32>
    %1944 = math.tanh %1943 : vector<1x32xf32>
    %1945 = arith.mulf %1940, %1944 : vector<1x32xf32>
    %1946 = arith.addf %1883, %1945 : vector<1x32xf32>
    %cst_401 = arith.constant 1.250000e-01 : f32
    %1947 = vector.broadcast %cst_401 : f32 to vector<1x32xf32>
    %1948 = arith.mulf %1917, %1947 : vector<1x32xf32>
    %cst_402 = arith.constant 1.250000e-01 : f32
    %1949 = vector.broadcast %cst_402 : f32 to vector<1x32xf32>
    %1950 = arith.mulf %1946, %1949 : vector<1x32xf32>
    %1951 = tpu.concatenate %1948, %1950 in 0 : vector<1x32xf32>, vector<1x32xf32> -> vector<2x32xf32>
    %c0_403 = arith.constant 0 : index
    %c0_404 = arith.constant 0 : index
    %c0_405 = arith.constant 0 : index
    %1952 = vector.load %arg17[%c0_403, %c0_404, %c0_405] : memref<2x32x32xf32, #tpu.memory_space<vmem>>, vector<1x32x32xf32>
    %1953 = vector.shape_cast %1952 : vector<1x32x32xf32> to vector<32x32xf32>
    %cst_406 = arith.constant dense<0.000000e+00> : vector<2x32xf32>
    %1954 = tpu.matmul %1951, %1953, %cst_406 {dimension_numbers = #tpu.dot_dimension_numbers<[1], [0], [0], [1], [0, 0, 1, 1], [], []>} : vector<2x32xf32>, vector<32x32xf32>, vector<2x32xf32> -> vector<2x32xf32>
    %c0_407 = arith.constant 0 : index
    %c0_408 = arith.constant 0 : index
    %c0_409 = arith.constant 0 : index
    %1955 = vector.load %arg18[%c0_407, %c0_408, %c0_409] : memref<2x1x32xf32, #tpu.memory_space<vmem>>, vector<1x1x32xf32>
    %1956 = vector.shape_cast %1955 : vector<1x1x32xf32> to vector<1x32xf32>
    %1957 = vector.broadcast %1956 : vector<1x32xf32> to vector<2x32xf32>
    %1958 = arith.addf %1954, %1957 : vector<2x32xf32>
    %cst_410 = arith.constant 0.000000e+00 : f32
    %1959 = vector.broadcast %cst_410 : f32 to vector<2x32xf32>
    %1960 = arith.maximumf %1958, %1959 : vector<2x32xf32>
    %c1_411 = arith.constant 1 : index
    %c0_412 = arith.constant 0 : index
    %c0_413 = arith.constant 0 : index
    %1961 = vector.load %arg17[%c1_411, %c0_412, %c0_413] : memref<2x32x32xf32, #tpu.memory_space<vmem>>, vector<1x32x32xf32>
    %1962 = vector.shape_cast %1961 : vector<1x32x32xf32> to vector<32x32xf32>
    %cst_414 = arith.constant dense<0.000000e+00> : vector<2x32xf32>
    %1963 = tpu.matmul %1960, %1962, %cst_414 {dimension_numbers = #tpu.dot_dimension_numbers<[1], [0], [0], [1], [0, 0, 1, 1], [], []>} : vector<2x32xf32>, vector<32x32xf32>, vector<2x32xf32> -> vector<2x32xf32>
    %c1_415 = arith.constant 1 : index
    %c0_416 = arith.constant 0 : index
    %c0_417 = arith.constant 0 : index
    %1964 = vector.load %arg18[%c1_415, %c0_416, %c0_417] : memref<2x1x32xf32, #tpu.memory_space<vmem>>, vector<1x1x32xf32>
    %1965 = vector.shape_cast %1964 : vector<1x1x32xf32> to vector<1x32xf32>
    %1966 = vector.broadcast %1965 : vector<1x32xf32> to vector<2x32xf32>
    %1967 = arith.addf %1963, %1966 : vector<2x32xf32>
    %cst_418 = arith.constant 0.000000e+00 : f32
    %1968 = vector.broadcast %cst_418 : f32 to vector<2x32xf32>
    %1969 = arith.maximumf %1967, %1968 : vector<2x32xf32>
    %c0_419 = arith.constant 0 : index
    %c0_420 = arith.constant 0 : index
    %1970 = vector.load %arg19[%c0_419, %c0_420] : memref<32x6xf32, #tpu.memory_space<vmem>>, vector<32x6xf32>
    %cst_421 = arith.constant dense<0.000000e+00> : vector<2x6xf32>
    %1971 = tpu.matmul %1969, %1970, %cst_421 {dimension_numbers = #tpu.dot_dimension_numbers<[1], [0], [0], [1], [0, 0, 1, 1], [], []>} : vector<2x32xf32>, vector<32x6xf32>, vector<2x6xf32> -> vector<2x6xf32>
    %c0_422 = arith.constant 0 : index
    %c0_423 = arith.constant 0 : index
    %1972 = vector.load %arg20[%c0_422, %c0_423] : memref<1x6xf32, #tpu.memory_space<vmem>>, vector<1x6xf32>
    %1973 = vector.broadcast %1972 : vector<1x6xf32> to vector<2x6xf32>
    %1974 = arith.addf %1971, %1973 : vector<2x6xf32>
    %c0_424 = arith.constant 0 : index
    %c0_425 = arith.constant 0 : index
    %c0_426 = arith.constant 0 : index
    %1975 = vector.load %arg21[%c0_424, %c0_425, %c0_426] : memref<1x2x6xf32, #tpu.memory_space<vmem>>, vector<1x2x6xf32>
    %1976 = vector.shape_cast %1975 : vector<1x2x6xf32> to vector<2x6xf32>
    %1977 = vector.shape_cast %1974 : vector<2x6xf32> to vector<1x2x6xf32>
    tpu.vector_store %arg21[%c0_424, %c0_425, %c0_426], %1977 {strides = array<i32>} : memref<1x2x6xf32, #tpu.memory_space<vmem>>, vector<1x2x6xf32>,
    return
  }
  func.func @transform_0(%arg0: i32) -> (i32, i32, i32) {
    %c0_i32 = arith.constant 0 : i32
    %c0_i32_0 = arith.constant 0 : i32
    %c0_i32_1 = arith.constant 0 : i32
    return %arg0, %c0_i32, %c0_i32_0 : i32, i32, i32
  }
  func.func @transform_1(%arg0: i32) -> (i32, i32, i32) {
    %c0_i32 = arith.constant 0 : i32
    %c0_i32_0 = arith.constant 0 : i32
    %c0_i32_1 = arith.constant 0 : i32
    return %arg0, %c0_i32, %c0_i32_0 : i32, i32, i32
  }
  func.func @transform_2(%arg0: i32) -> (i32, i32, i32) {
    %c0_i32 = arith.constant 0 : i32
    %c0_i32_0 = arith.constant 0 : i32
    %c0_i32_1 = arith.constant 0 : i32
    return %arg0, %c0_i32, %c0_i32_0 : i32, i32, i32
  }
  func.func @transform_3(%arg0: i32) -> (i32, i32, i32) {
    %c0_i32 = arith.constant 0 : i32
    %c0_i32_0 = arith.constant 0 : i32
    %c0_i32_1 = arith.constant 0 : i32
    return %arg0, %c0_i32, %c0_i32_0 : i32, i32, i32
  }
  func.func @transform_4(%arg0: i32) -> (i32, i32) {
    %c0_i32 = arith.constant 0 : i32
    %c0_i32_0 = arith.constant 0 : i32
    %c0_i32_1 = arith.constant 0 : i32
    return %c0_i32, %c0_i32_0 : i32, i32
  }
  func.func @transform_5(%arg0: i32) -> (i32, i32) {
    %c0_i32 = arith.constant 0 : i32
    %c0_i32_0 = arith.constant 0 : i32
    %c0_i32_1 = arith.constant 0 : i32
    return %c0_i32, %c0_i32_0 : i32, i32
  }
  func.func @transform_6(%arg0: i32) -> (i32, i32, i32) {
    %c0_i32 = arith.constant 0 : i32
    %c0_i32_0 = arith.constant 0 : i32
    %c0_i32_1 = arith.constant 0 : i32
    %c0_i32_2 = arith.constant 0 : i32
    return %c0_i32, %c0_i32_0, %c0_i32_1 : i32, i32, i32
  }
  func.func @transform_7(%arg0: i32) -> (i32, i32, i32) {
    %c0_i32 = arith.constant 0 : i32
    %c0_i32_0 = arith.constant 0 : i32
    %c0_i32_1 = arith.constant 0 : i32
    %c0_i32_2 = arith.constant 0 : i32
    return %c0_i32, %c0_i32_0, %c0_i32_1 : i32, i32, i32
  }
  func.func @transform_8(%arg0: i32) -> (i32, i32, i32) {
    %c0_i32 = arith.constant 0 : i32
    %c0_i32_0 = arith.constant 0 : i32
    %c0_i32_1 = arith.constant 0 : i32
    %c0_i32_2 = arith.constant 0 : i32
    return %c0_i32, %c0_i32_0, %c0_i32_1 : i32, i32, i32
  }
  func.func @transform_9(%arg0: i32) -> (i32, i32, i32) {
    %c0_i32 = arith.constant 0 : i32
    %c0_i32_0 = arith.constant 0 : i32
    %c0_i32_1 = arith.constant 0 : i32
    %c0_i32_2 = arith.constant 0 : i32
    return %c0_i32, %c0_i32_0, %c0_i32_1 : i32, i32, i32
  }
  func.func @transform_10(%arg0: i32) -> (i32, i32, i32) {
    %c0_i32 = arith.constant 0 : i32
    %c0_i32_0 = arith.constant 0 : i32
    %c0_i32_1 = arith.constant 0 : i32
    %c0_i32_2 = arith.constant 0 : i32
    return %c0_i32, %c0_i32_0, %c0_i32_1 : i32, i32, i32
  }
  func.func @transform_11(%arg0: i32) -> (i32, i32, i32) {
    %c0_i32 = arith.constant 0 : i32
    %c0_i32_0 = arith.constant 0 : i32
    %c0_i32_1 = arith.constant 0 : i32
    %c0_i32_2 = arith.constant 0 : i32
    return %c0_i32, %c0_i32_0, %c0_i32_1 : i32, i32, i32
  }
  func.func @transform_12(%arg0: i32) -> (i32, i32) {
    %c0_i32 = arith.constant 0 : i32
    %c0_i32_0 = arith.constant 0 : i32
    %c0_i32_1 = arith.constant 0 : i32
    return %c0_i32, %c0_i32_0 : i32, i32
  }
  func.func @transform_13(%arg0: i32) -> (i32, i32) {
    %c0_i32 = arith.constant 0 : i32
    %c0_i32_0 = arith.constant 0 : i32
    %c0_i32_1 = arith.constant 0 : i32
    return %c0_i32, %c0_i32_0 : i32, i32
  }
  func.func @transform_14(%arg0: i32) -> (i32, i32, i32) {
    %c0_i32 = arith.constant 0 : i32
    %c0_i32_0 = arith.constant 0 : i32
    %c0_i32_1 = arith.constant 0 : i32
    %c0_i32_2 = arith.constant 0 : i32
    return %c0_i32, %c0_i32_0, %c0_i32_1 : i32, i32, i32
  }
  func.func @transform_15(%arg0: i32) -> (i32, i32, i32) {
    %c0_i32 = arith.constant 0 : i32
    %c0_i32_0 = arith.constant 0 : i32
    %c0_i32_1 = arith.constant 0 : i32
    %c0_i32_2 = arith.constant 0 : i32
    return %c0_i32, %c0_i32_0, %c0_i32_1 : i32, i32, i32
  }
  func.func @transform_16(%arg0: i32) -> (i32, i32, i32) {
    %c0_i32 = arith.constant 0 : i32
    %c0_i32_0 = arith.constant 0 : i32
    %c0_i32_1 = arith.constant 0 : i32
    %c0_i32_2 = arith.constant 0 : i32
    return %c0_i32, %c0_i32_0, %c0_i32_1 : i32, i32, i32
  }
  func.func @transform_17(%arg0: i32) -> (i32, i32, i32) {
    %c0_i32 = arith.constant 0 : i32
    %c0_i32_0 = arith.constant 0 : i32
    %c0_i32_1 = arith.constant 0 : i32
    %c0_i32_2 = arith.constant 0 : i32
    return %c0_i32, %c0_i32_0, %c0_i32_1 : i32, i32, i32
  }
  func.func @transform_18(%arg0: i32) -> (i32, i32) {
    %c0_i32 = arith.constant 0 : i32
    %c0_i32_0 = arith.constant 0 : i32
    %c0_i32_1 = arith.constant 0 : i32
    return %c0_i32, %c0_i32_0 : i32, i32
  }
  func.func @transform_19(%arg0: i32) -> (i32, i32) {
    %c0_i32 = arith.constant 0 : i32
    %c0_i32_0 = arith.constant 0 : i32
    %c0_i32_1 = arith.constant 0 : i32
    return %c0_i32, %c0_i32_0 : i32, i32
  }
  func.func @transform_20(%arg0: i32) -> (i32, i32, i32) {
    %c0_i32 = arith.constant 0 : i32
    %c0_i32_0 = arith.constant 0 : i32
    %c0_i32_1 = arith.constant 0 : i32
    return %arg0, %c0_i32, %c0_i32_0 : i32, i32, i32
  }
}

</mosaic_0001>

<bundles_post_ra>
// kernel: dagerc_fushion_forward.1
= control target key start
LH: loop header
LB: loop body
LE: loop exit
PB: predicated region body
PF: predicated region fallthrough
CT: control target
= control target key end

     0   :  { %s13268_s0 = inlined_call_operand.hbm [shape: f32[2,8,32], index: 0, kind: input, shape index: {}]   ;;  %s13269_s1 = inlined_call_operand.vmem [shape: f32[2,8,8], index: 1, kind: input, shape index: {}]   ;;  %s13270_s2 = inlined_call_operand.vmem [shape: f32[2,8,8], index: 2, kind: input, shape index: {}]   ;;  %s13271_s3 = inlined_call_operand.vmem [shape: f32[2,8,1], index: 3, kind: input, shape index: {}]   ;;  %s13272_s4 = inlined_call_operand.hbm [shape: f32[32,32], index: 4, kind: input, shape index: {}]   ;;  %s13273_s5 = inlined_call_operand.hbm [shape: f32[1,32], index: 5, kind: input, shape index: {}]   ;;  %s13274_s6 = inlined_call_operand.vmem [shape: f32[2,32,193], index: 6, kind: input, shape index: {}]   ;;  %s13275_s7 = inlined_call_operand.hbm [shape: f32[2,1,193], index: 7, kind: input, shape index: {}]   ;;  %s13276_s8 = inlined_call_operand.hbm [shape: f32[2,32,192], index: 8, kind: input, shape index: {}]   ;;  %s13277_s9 = inlined_call_operand.hbm [shape: f32[2,1,192], index: 9, kind: input, shape index: {}]   ;;  %s13278_s10 = inlined_call_operand.vmem [shape: f32[2,32,65], index: 10, kind: input, shape index: {}]   ;;  %s13279_s11 = inlined_call_operand.hbm [shape: f32[3,32,32], index: 11, kind: input, shape index: {}]   ;;  %s13280_s12 = inlined_call_operand.hbm [shape: f32[32,32], index: 12, kind: input, shape index: {}]   ;;  %s13281_s13 = inlined_call_operand.hbm [shape: f32[1,32], index: 13, kind: input, shape index: {}]   ;;  %s13282_s14 = inlined_call_operand.hbm [shape: f32[2,64,128], index: 14, kind: input, shape index: {}]   ;;  %s13283_s15 = inlined_call_operand.hbm [shape: f32[2,1,128], index: 15, kind: input, shape index: {}]   ;;  %s13284_s16 = inlined_call_operand.hbm [shape: f32[2,32,32], index: 16, kind: input, shape index: {}]   ;;  %s13285_s17 = inlined_call_operand.hbm [shape: f32[2,1,32], index: 17, kind: input, shape index: {}]   ;;  %s13286_s18 = inlined_call_operand.vmem [shape: f32[32,6], index: 18, kind: input, shape index: {}]   ;;  %s13287_s19 = inlined_call_operand.hbm [shape: f32[1,6], index: 19, kind: input, shape index: {}]   ;;  %s13288_s20 = inlined_call_operand.hbm [shape: f32[2,2,6], index: 20, kind: output, shape index: {}]  }
   0x1   :  { %13315 = sst [smem:[#allocation40_spill]] %s13268_s0 }
   0x2   :  { %13316 = sst [smem:[#allocation41_spill]] %s13269_s1 }
   0x3   :  { %13317 = sst [smem:[#allocation42_spill]] %s13270_s2 }
   0x4   :  { %13318 = sst [smem:[#allocation43_spill]] %s13271_s3 }
   0x5   :  { %13319 = sst [smem:[#allocation44_spill]] %s13272_s4 }
   0x6   :  { %13320 = sst [smem:[#allocation45_spill]] %s13273_s5 }
   0x7   :  { %13321 = sst [smem:[#allocation46_spill]] %s13274_s6 }
   0x8   :  { %13322 = sst [smem:[#allocation47_spill]] %s13275_s7 }
   0x9   :  { %13323 = sst [smem:[#allocation48_spill]] %s13276_s8 }
   0xa   :  { %13324 = sst [smem:[#allocation49_spill]] %s13277_s9 }
   0xb   :  { %13325 = sst [smem:[#allocation50_spill]] %s13278_s10 }
   0xc   :  { %13326 = sst [smem:[#allocation51_spill]] %s13279_s11 }
   0xd   :  { %13327 = sst [smem:[#allocation52_spill]] %s13280_s12 }
   0xe   :  { %13328 = sst [smem:[#allocation53_spill]] %s13281_s13 }
   0xf   :  { %13329 = sst [smem:[#allocation54_spill]] %s13286_s18 }
  0x10   :  { %13330 = sst [smem:[#allocation55_spill]] %s13288_s20 }
  0x11   :  { %25 = vsyncpa [#allocation5], 0 }
  0x12   :  { %27 = vsyncpa [#allocation5 + $0x1], 0 }
  0x13   :  { %28 = vsyncpa [#allocation8], 0 }
  0x14   :  { %29 = vsyncpa [#allocation11], 0 }
  0x15   :  { %30 = vsyncpa [#allocation14], 0 }
  0x16   :  { %31 = vsyncpa [#allocation17], 0 }
  0x17   :  { %32 = vsyncpa [#allocation20], 0 }
  0x18   :  { %33 = vsyncpa [#allocation23], 0 }
  0x19   :  { %34 = vsyncpa [#allocation26], 0 }
  0x1a   :  { %35 = vsyncpa [#allocation6], 0 }
  0x1b   :  { %37 = vsyncpa [#allocation6 + $0x1], 0  ;;  %s10890_s1 = smov 0   ;;  %s10892_s22 = smov 0  }
  0x1c   :  { %s10894_s23 = smov 0   ;;  %s10896_s24 = smov 0  }
  0x1d LB: > { %s10741_s2 = smov [#allocation7]   ;;  %s10911_s3 = sadd.s32 4294967295, %s10739_s24   ;;  %s10739_s24 = sphi %s10896_s24, %s13392_s24   ;;  %s10735_s23 = sphi %s10894_s23, %s13391_s23   ;;  %s10731_s22 = sphi %s10892_s22, %s13390_s22   ;;  %s10727_s1 = sphi %s10890_s1, %s13389_s1  }
  0x1e   : > { %s526_s25 = sshll.u32 %s10741_s2, 4  ;;  %p8640_p0 = scmp.ge.s32.totalorder %s10739_s24, 1  ;;  %s527_s25 = int_to_ptr.vmem [resolvable:$true] %s526_s25 }
  0x1f   : > { %p13298_p1 = scmp.eq.s32.totalorder %s10911_s3, 0  ;;  %p514_p2 = scmp.lt.s32.totalorder %s10739_s24, 3 }
  0x20   : > { %s10742_s27 = smov [#allocation10]   ;;  %s10743_s29 = smov [#allocation13]  }
  0x21   : > { %p10916_p3 = pnand %p8640_p0, %p514_p2  ;;  %s553_s28 = sshll.u32 %s10742_s27, 4  ;;  %s10929_s28 = int_to_ptr.vmem [resolvable:$true] %s553_s28 }
  0x22   : > { %s10931_s30 = sshll.u32 %s10743_s29, 4  ;;  %s10292_s21 = scalar_lea.vmem %s527_s25, 512  ;;  %s580_s30 = int_to_ptr.vmem [resolvable:$true] %s10931_s30 }
  0x23   : > { %s13331_s26 = scalar_select %p10916_p3, 1, 0 }
  0x24   : > { %p9669_p5 = pneg %p10916_p3  ;;  %p10293_p8 = scmp.ne.s32.totalorder %s527_s25, %s10292_s21 }
  0x25   : > { %p10300_p11 = scmp.lt.s32.totalorder %s527_s25, %s527_s25  ;;  %p10301_p12 = scmp.lt.s32.totalorder %s10292_s21, %s10292_s21 }
  0x26   : > { %p10925_p6 = pnand %p9669_p5, %p13298_p1 }
  0x27   : > { %p10302_p13 = por %p10301_p12, %p10300_p11 }
  0x28   : > { %p10935_p7 = pneg %p10925_p6 }
  0x2a   : > { %p10295_p9 = pnand %p10293_p8, %p10935_p7 }
  0x2c   : > { %p10296_p10 = pneg %p10295_p9 }
  0x2e   : > { %p10303_p0 = pnand %p10302_p13, %p10296_p10 }
  0x30   : > { %10306 = shalt.err (!%p10303_p0)
}
  0x31   : > { %s13294_s2 = smov 128   ;;  %s13296_s27 = smov 8  }
  0x32   : > { %s13334_s18 = sld [smem:[#allocation44_spill]]  ;;  %s10318_s10 = scalar_lea.vmem %s10929_s28, 64 }
  0x33   : > { %p10319_p2 = scmp.ne.s32.totalorder %s10929_s28, %s10318_s10  ;;  %p10326_p9 = scmp.lt.s32.totalorder %s10929_s28, %s10929_s28 }
  0x34   : > { %p10327_p10 = scmp.lt.s32.totalorder %s10318_s10, %s10318_s10 }
  0x35   : > { %p10321_p5 = pnand %p10319_p2, %p10935_p7 }
  0x36   : > { %p10328_p11 = por %p10327_p10, %p10326_p9 }
  0x37   : > { %p10322_p8 = pneg %p10321_p5 }
  0x38   : > { %9672 = dma.hbm_to_vmem [thread:$0]  (!%p10925_p6), %s13334_s18, 512, %s527_s25, [#allocation8], %s13294_s2, %s13294_s2, %s13296_s27  }
  0x39   : > { %p10329_p12 = pnand %p10328_p11, %p10322_p8 }
  0x3b   : > { %10332 = shalt.err (!%p10329_p12)
}
  0x3c   : > { %s10746_s21 = smov 32   ;;  %s10747_s6 = smov 2  }
  0x3d   : > { %s13335_s7 = sld [smem:[#allocation47_spill]]  ;;  %s10344_s25 = scalar_lea.vmem %s580_s30, 64 }
  0x3e   : > { %p10345_p13 = scmp.ne.s32.totalorder %s580_s30, %s10344_s25  ;;  %p10352_p5 = scmp.lt.s32.totalorder %s580_s30, %s580_s30 }
  0x3f   : > { %p10353_p8 = scmp.lt.s32.totalorder %s10344_s25, %s10344_s25 }
  0x40   : > { %p10347_p0 = pnand %p10345_p13, %p10935_p7 }
  0x41   : > { %p10354_p9 = por %p10353_p8, %p10352_p5 }
  0x42   : > { %p10348_p2 = pneg %p10347_p0 }
  0x43   : > { %9678 = dma.hbm_to_vmem [thread:$0]  (!%p10925_p6), %s13335_s7, 64, %s10929_s28, [#allocation11], %s10746_s21, %s10746_s21, %s10747_s6  }
  0x44   : > { %p10355_p10 = pnand %p10354_p9, %p10348_p2 }
  0x46   : > { %10358 = shalt.err (!%p10355_p10)
}
  0x47   : > { %s13336_s9 = sld [smem:[#allocation49_spill]]  ;;  %s10748_s20 = smov [#allocation16]  }
  0x48   : > { %s608_s28 = sshll.u32 %s10748_s20, 4  ;;  %s10749_s18 = smov [#allocation19]   ;;  %s609_s28 = int_to_ptr.vmem [resolvable:$true] %s608_s28 }
  0x49   : > { %s632_s2 = sshll.u32 %s10749_s18, 4  ;;  %s10370_s27 = scalar_lea.vmem %s609_s28, 512  ;;  %s633_s2 = int_to_ptr.vmem [resolvable:$true] %s632_s2 }
  0x4a   : > { %p10371_p11 = scmp.ne.s32.totalorder %s609_s28, %s10370_s27  ;;  %p10378_p0 = scmp.lt.s32.totalorder %s609_s28, %s609_s28 }
  0x4b   : > { %p10379_p2 = scmp.lt.s32.totalorder %s10370_s27, %s10370_s27 }
  0x4c   : > { %p10373_p12 = pnand %p10371_p11, %p10935_p7 }
  0x4d   : > { %9684 = dma.hbm_to_vmem [thread:$0]  (!%p10925_p6), %s13336_s9, 64, %s580_s30, [#allocation14], %s10746_s21, %s10746_s21, %s10747_s6  }
  0x4e   : > { %p10374_p13 = pneg %p10373_p12  ;;  %p10380_p5 = por %p10379_p2, %p10378_p0 }
  0x50   : > { %p10381_p8 = pnand %p10380_p5, %p10374_p13 }
  0x52   : > { %10384 = shalt.err (!%p10381_p8)
}
  0x53   : > { %s13337_s25 = smov 8   ;;  %s13338_s10 = smov 128  }
  0x54   : > { %s13339_s12 = sld [smem:[#allocation52_spill]]  ;;  %s10396_s21 = scalar_lea.vmem %s633_s2, 2048 }
  0x55   : > { %p10397_p9 = scmp.ne.s32.totalorder %s633_s2, %s10396_s21  ;;  %p10404_p12 = scmp.lt.s32.totalorder %s633_s2, %s633_s2 }
  0x56   : > { %p10405_p0 = scmp.lt.s32.totalorder %s10396_s21, %s10396_s21 }
  0x57   : > { %p10399_p10 = pnand %p10397_p9, %p10935_p7 }
  0x58   : > { %p10406_p13 = por %p10405_p0, %p10404_p12 }
  0x59   : > { %p10400_p11 = pneg %p10399_p10 }
  0x5a   : > { %9690 = dma.hbm_to_vmem [thread:$0]  (!%p10925_p6), %s13339_s12, 512, %s609_s28, [#allocation17], %s13338_s10, %s13338_s10, %s13337_s25  }
  0x5b   : > { %p10407_p2 = pnand %p10406_p13, %p10400_p11 }
  0x5d   : > { %10410 = shalt.err (!%p10407_p2)
}
  0x5e   : > { %9696 = dma.hbm_to_vmem [thread:$0]  (!%p10925_p6), %s13282_s14, 2048, %s633_s2, [#allocation20], %s13338_s10, %s13338_s10, %s13337_s25  }
  0x5f   : > { %s10750_s20 = smov [#allocation22]   ;;  %s10751_s18 = smov [#allocation9]  }
  0x60   : > { %s658_s28 = sshll.u32 %s10750_s20, 4  ;;  %s540_s6 = sshll.u32 %s10751_s18, 4  ;;  %s659_s28 = int_to_ptr.vmem [resolvable:$true] %s658_s28  ;;  %s541_s6 = int_to_ptr.vmem [resolvable:$true] %s540_s6 }
  0x61   : > { %s10422_s30 = scalar_lea.vmem %s659_s28, 1024  ;;  %p10430_p10 = scmp.lt.s32.totalorder %s659_s28, %s659_s28 }
  0x62   : > { %p10423_p5 = scmp.ne.s32.totalorder %s659_s28, %s10422_s30  ;;  %p10431_p11 = scmp.lt.s32.totalorder %s10422_s30, %s10422_s30 }
  0x64   : > { %p10425_p8 = pnand %p10423_p5, %p10935_p7  ;;  %p10432_p12 = por %p10431_p11, %p10430_p10 }
  0x66   : > { %p10426_p9 = pneg %p10425_p8 }
  0x68   : > { %p10433_p0 = pnand %p10432_p12, %p10426_p9 }
  0x6a   : > { %10436 = shalt.err (!%p10433_p0)
}
  0x6b   : > { %9702 = dma.hbm_to_vmem [thread:$0]  (!%p10925_p6), %s13284_s16, 1024, %s659_s28, [#allocation23], %s13338_s10, %s13338_s10, %s13337_s25  }
  0x6c   : > { %s10448_s27 = scalar_lea.vmem %s541_s6, 16  ;;  %s10455_s29 = scalar_lea.vmem %s541_s6, 32 }
  0x6d   : > { %p10449_p13 = scmp.ne.s32.totalorder %s541_s6, %s10448_s27  ;;  %p10456_p8 = scmp.lt.s32.totalorder %s541_s6, %s541_s6 }
  0x6e   : > { %p10457_p9 = scmp.lt.s32.totalorder %s10455_s29, %s10448_s27 }
  0x6f   : > { %p10451_p2 = pnand %p10449_p13, %p10935_p7 }
  0x70   : > { %p10458_p10 = por %p10457_p9, %p10456_p8 }
  0x71   : > { %p10452_p5 = pneg %p10451_p2 }
  0x73   : > { %p10459_p11 = pnand %p10458_p10, %p10452_p5 }
  0x75   : > { %10462 = shalt.err (!%p10459_p11)
}
  0x76   : > { %s13340_s5 = sld [smem:[#allocation45_spill]]  ;;  %s10752_s28 = smov [#allocation12]  }
  0x77   : > { %s566_s30 = sshll.u32 %s10752_s28, 4  ;;  %s567_s30 = int_to_ptr.vmem [resolvable:$true] %s566_s30 }
  0x78   : > { %s10474_s2 = scalar_lea.vmem %s567_s30, 2048  ;;  %p10482_p2 = scmp.lt.s32.totalorder %s567_s30, %s567_s30 }
  0x79   : > { %p10475_p12 = scmp.ne.s32.totalorder %s567_s30, %s10474_s2  ;;  %p10483_p4 = scmp.lt.s32.totalorder %s10474_s2, %s10474_s2 }
  0x7b   : > { %p10477_p0 = pnand %p10475_p12, %p10935_p7  ;;  %p10484_p8 = por %p10483_p4, %p10482_p2 }
  0x7c   : > { %9675 = dma.hbm_to_vmem [thread:$0]  (!%p10925_p6), %s13340_s5, 16, %s541_s6, [#allocation8]  }
  0x7d   : > { %p10478_p13 = pneg %p10477_p0 }
  0x7f   : > { %p10485_p5 = pnand %p10484_p8, %p10478_p13 }
  0x81   : > { %10488 = shalt.err (!%p10485_p5)
}
  0x82   : > { %s10753_s21 = smov 256   ;;  %s10754_s27 = smov 16  }
  0x83   : > { %s13341_s8 = sld [smem:[#allocation48_spill]]  ;;  %s10755_s20 = smov [#allocation15]  }
  0x84   : > { %s595_s18 = sshll.u32 %s10755_s20, 4  ;;  %s10756_s28 = smov [#allocation18]   ;;  %s596_s18 = int_to_ptr.vmem [resolvable:$true] %s595_s18 }
  0x85   : > { %s622_s5 = sshll.u32 %s10756_s28, 4  ;;  %s10500_s2 = scalar_lea.vmem %s596_s18, 1536  ;;  %s623_s5 = int_to_ptr.vmem [resolvable:$true] %s622_s5 }
  0x86   : > { %p10501_p4 = scmp.ne.s32.totalorder %s596_s18, %s10500_s2  ;;  %p10508_p11 = scmp.lt.s32.totalorder %s596_s18, %s596_s18 }
  0x87   : > { %p10509_p12 = scmp.lt.s32.totalorder %s10500_s2, %s10500_s2 }
  0x88   : > { %p10503_p9 = pnand %p10501_p4, %p10935_p7 }
  0x89   : > { %9681 = dma.hbm_to_vmem [thread:$0]  (!%p10925_p6), %s13341_s8, 2048, %s567_s30, [#allocation11], %s10753_s21, %s10753_s21, %s10754_s27  }
  0x8a   : > { %p10504_p10 = pneg %p10503_p9  ;;  %p10510_p0 = por %p10509_p12, %p10508_p11 }
  0x8c   : > { %p10511_p13 = pnand %p10510_p0, %p10504_p10 }
  0x8e   : > { %10514 = shalt.err (!%p10511_p13)
}
  0x8f   : > { %s13342_s11 = sld [smem:[#allocation51_spill]]  ;;  %s10526_s6 = scalar_lea.vmem %s623_s5, 16 }
  0x90   : > { %p10527_p2 = scmp.ne.s32.totalorder %s623_s5, %s10526_s6  ;;  %s10533_s29 = scalar_lea.vmem %s623_s5, 32 }
  0x91   : > { %p10534_p4 = scmp.lt.s32.totalorder %s623_s5, %s623_s5  ;;  %p10535_p9 = scmp.lt.s32.totalorder %s10533_s29, %s10526_s6 }
  0x92   : > { %p10529_p8 = pnand %p10527_p2, %p10935_p7 }
  0x93   : > { %p10536_p10 = por %p10535_p9, %p10534_p4 }
  0x94   : > { %p10530_p5 = pneg %p10529_p8 }
  0x95   : > { %9687 = dma.hbm_to_vmem [thread:$0]  (!%p10925_p6), %s13342_s11, 1536, %s596_s18, [#allocation14], %s13338_s10, %s13338_s10, %s13337_s25  }
  0x96   : > { %p10537_p11 = pnand %p10536_p10, %p10530_p5 }
  0x98   : > { %10540 = shalt.err (!%p10537_p11)
}
  0x99   : > { %s13343_s13 = sld [smem:[#allocation53_spill]]  ;;  %s10757_s2 = smov [#allocation21]  }
  0x9a   : > { %s645_s25 = sshll.u32 %s10757_s2, 4  ;;  %s10758_s10 = smov [#allocation24]   ;;  %s646_s25 = int_to_ptr.vmem [resolvable:$true] %s645_s25 }
  0x9b   : > { %s671_s18 = sshll.u32 %s10758_s10, 4  ;;  %s10552_s30 = scalar_lea.vmem %s646_s25, 32  ;;  %s672_s18 = int_to_ptr.vmem [resolvable:$true] %s671_s18 }
  0x9c   : > { %p10553_p12 = scmp.ne.s32.totalorder %s646_s25, %s10552_s30  ;;  %p10560_p2 = scmp.lt.s32.totalorder %s646_s25, %s646_s25 }
  0x9d   : > { %p10561_p8 = scmp.lt.s32.totalorder %s10552_s30, %s10552_s30 }
  0x9e   : > { %p10555_p0 = pnand %p10553_p12, %p10935_p7 }
  0x9f   : > { %9693 = dma.hbm_to_vmem [thread:$0]  (!%p10925_p6), %s13343_s13, 16, %s623_s5, [#allocation17]  }
  0xa0   : > { %p10556_p13 = pneg %p10555_p0  ;;  %p10562_p5 = por %p10561_p8, %p10560_p2 }
  0xa2   : > { %p10563_p4 = pnand %p10562_p5, %p10556_p13 }
  0xa4   : > { %10566 = shalt.err (!%p10563_p4)
}
  0xa5   : > { %s10759_s21 = smov 1   ;;  %s10578_s29 = scalar_lea.vmem %s672_s18, 32 }
  0xa6   : > { %9699 = dma.hbm_to_vmem [thread:$0]  (!%p10925_p6), %s13283_s15, 32, %s646_s25, [#allocation20], %s10754_s27, %s10754_s27, %s10759_s21  }
  0xa7   : > { %p10579_p9 = scmp.ne.s32.totalorder %s672_s18, %s10578_s29  ;;  %p10586_p12 = scmp.lt.s32.totalorder %s672_s18, %s672_s18 }
  0xa8   : > { %p10587_p0 = scmp.lt.s32.totalorder %s10578_s29, %s10578_s29 }
  0xa9   : > { %p10581_p10 = pnand %p10579_p9, %p10935_p7 }
  0xaa   : > { %p10588_p13 = por %p10587_p0, %p10586_p12 }
  0xab   : > { %p10582_p11 = pneg %p10581_p10 }
  0xad   : > { %p10589_p2 = pnand %p10588_p13, %p10582_p11 }
  0xaf   : > { %10592 = shalt.err (!%p10589_p2)
}
  0xb0   : > { %9705 = dma.hbm_to_vmem [thread:$0]  (!%p10925_p6), %s13285_s17, 32, %s672_s18, [#allocation23], %s10754_s27, %s10754_s27, %s10759_s21  }
  0xb1   : > { %s10760_s2 = smov [#allocation25]  }
  0xb2   : > { %s688_s25 = sshll.u32 %s10760_s2, 4  ;;  %s689_s25 = int_to_ptr.vmem [resolvable:$true] %s688_s25 }
  0xb3   : > { %s10604_s10 = scalar_lea.vmem %s689_s25, 16  ;;  %s10611_s30 = scalar_lea.vmem %s689_s25, 32 }
  0xb4   : > { %p10605_p8 = scmp.ne.s32.totalorder %s689_s25, %s10604_s10  ;;  %p10612_p9 = scmp.lt.s32.totalorder %s689_s25, %s689_s25 }
  0xb5   : > { %p10613_p10 = scmp.lt.s32.totalorder %s10611_s30, %s10604_s10 }
  0xb6   : > { %p10607_p5 = pnand %p10605_p8, %p10935_p7 }
  0xb7   : > { %p10614_p11 = por %p10613_p10, %p10612_p9 }
  0xb8   : > { %p10608_p4 = pneg %p10607_p5 }
  0xba   : > { %p10615_p12 = pnand %p10614_p11, %p10608_p4 }
  0xbc   : > { %10618 = shalt.err (!%p10615_p12)
}
  0xbd   : > { %9708 = dma.hbm_to_vmem [thread:$0]  (!%p10925_p6), %s13287_s19, 16, %s689_s25, [#allocation26]  }
  0xbe   : > { %s8639_s0 = sadd.s32 4294967294, %s10739_s24   ;;  %s11058_s4 = sadd.s32 1, %s10739_s24  }
  0xbf   : > { %s47_s27 = ssub.s32 %s10739_s24, %s11058_s4  ;;  %s50_s18 = sadd.s32 1, %s10735_s23 }
  0xc0   : > { %p48_p7 = scmp.eq.s32.totalorder %s47_s27, 0  ;;  %p57_p0 = scmp.ne.s32.totalorder %s10735_s23, %s10731_s22 }
  0xc1   : > { %p58_p13 = scmp.eq.s32.totalorder %s10739_s24, 0  ;;  %p63_p2 = scmp.ne.s32.totalorder %s10731_s22, %s10727_s1 }
  0xc2   : > { %s11069_s21 = scalar_select %p48_p7, %s10735_s23, %s50_s18  }
  0xc3   : > { %p11071_p8 = por %p58_p13, %p57_p0  ;;  %p11077_p6 = por %p13298_p1, %p63_p2 }
  0xc4   : > { %p501_p5 = scmp.eq.s32.totalorder %s10911_s3, 1  ;;  %p507_p4 = scmp.eq.s32.totalorder %s8639_s0, 1 }
  0xc5   : > { %s13345_s20 = scalar_select %p11077_p6, 1, 0 }
  0xc6   : > { %p9730_p9 = scmp.lt.s32.totalorder %s10739_s24, 2  ;;  %s699_s28 = sand.u32 1, %s10735_s23  }
  0xc7   : > { %p11084_p10 = por %p501_p5, %p57_p0  ;;  %p11088_p11 = por %p507_p4, %p63_p2 }
  0xc8   : > { %s8655_s10 = sshll.u32 %s699_s28, 3  ;;  %s8656_s30 = sshll.u32 %s10739_s24, 7 }
  0xc9   : > { %s13346_s2 = scalar_select %p11084_p10, 1, 0 }
  0xca   : > { %s13347_s25 = scalar_select %p11088_p11, 1, 0 }
  0xcb   : > { %s13348_s27 = sld [smem:[#allocation40_spill]]  ;;  %s703_s0 = scalar_lea.vmem [#allocation4], %s8655_s10 }
  0xcc   : > { %s710_s7 = sshll.u32 %s703_s0, 4  ;;  %p11100_p12 = pnand %p9730_p9, %p11071_p8  ;;  %s711_s7 = int_to_ptr.vmem [resolvable:$true] %s710_s7 }
  0xcd   : > { %s700_s9 = scalar_lea.sflag [#allocation5], %s699_s28 }
  0xce   : > { %p10621_p0 = pneg %p11100_p12 }
  0xd1   : > { %s11096_s18 = scalar_lea.hbm %s13348_s27, %s8656_s30  ;;  %s10624_s6 = scalar_lea.hbm %s13348_s27, 256 }
  0xd2   : > { %s10619_s11 = scalar_lea.hbm %s11096_s18, 128  ;;  %p10625_p5 = scmp.lt.s32.totalorder %s11096_s18, %s13348_s27 }
  0xd3   : > { %p10620_p7 = scmp.ne.s32.totalorder %s11096_s18, %s10619_s11  ;;  %p10626_p8 = scmp.lt.s32.totalorder %s10624_s6, %s10619_s11 }
  0xd5   : > { %p10622_p13 = pnand %p10621_p0, %p10620_p7  ;;  %p10627_p4 = por %p10626_p8, %p10625_p5 }
  0xd7   : > { %p10623_p2 = pneg %p10622_p13 }
  0xd9   : > { %p10628_p9 = pnand %p10627_p4, %p10623_p2 }
  0xdb   : > { %10631 = shalt.err (!%p10628_p9)
}
  0xdc   : > { %s10632_s29 = scalar_lea.vmem %s711_s7, 128  ;;  %s10761_s28 = smov [#allocation4]  }
  0xdd   : > { %p10633_p1 = scmp.ne.s32.totalorder %s711_s7, %s10632_s29  ;;  %s10637_s12 = sshll.u32 %s10761_s28, 4  ;;  %s10638_s12 = int_to_ptr.vmem [resolvable:$false] %s10637_s12 }
  0xde   : > { %s10639_s13 = scalar_lea.vmem %s10638_s12, 256  ;;  %p10640_p7 = scmp.lt.s32.totalorder %s711_s7, %s10638_s12 }
  0xdf   : > { %p10635_p11 = pnand %p10633_p1, %p10621_p0  ;;  %p10641_p13 = scmp.lt.s32.totalorder %s10639_s13, %s10632_s29 }
  0xe1   : > { %p10636_p10 = pneg %p10635_p11  ;;  %p10642_p6 = por %p10641_p13, %p10640_p7 }
  0xe3   : > { %p10643_p3 = pnand %p10642_p6, %p10636_p10 }
  0xe5   : > { %10646 = shalt.err (!%p10643_p3)
}
  0xe6   : > { %9712 = dma.hbm_to_vmem [thread:$0]  (!%p11100_p12), %s11096_s18, 128, %s711_s7, %s700_s9  }
  0xe7   : > { %p13350_p2 = scmp.ne.s32.totalorder %s13331_s26, 0 }
  0xe9   : > { %740 = sbr.rel (%p13350_p2) target bundleno = 23878 (0x5d46), region = 100 }
  0xee   : > { %s11121_s11 = sand.u32 1, %s10731_s22   ;;  %p13351_p1 = scmp.ne.s32.totalorder %s13345_s20, 0 }
  0xef   : > { %s8658_s30 = sshll.u32 %s11121_s11, 3  ;;  %s743_s5 = scalar_lea.sflag [#allocation5], %s11121_s11 }
  0xf0   : > { %s11125_s12 = scalar_lea.vmem [#allocation4], %s8658_s30 }
  0xf1   : > { %10690 = dma.done.wait (%p13351_p1), %s743_s5, 128  }
  0xf2   : > { %10692 = vsyncadd (%p13351_p1), %s743_s5, 4294967168  ;;  %p13352_p3 = scmp.eq.s32.totalorder %s10911_s3, 0 }
  0xf4   : > { %10694 = dma.done.wait (%p13352_p3), [#allocation8], 528   ;;  %p13353_p6 = pmov %p13352_p3 }
  0xf5   : > { %p13354_p10 = pmov %p13352_p3 }
  0xf6   : > { %10696 = vsyncadd (%p13353_p6), [#allocation8], 4294966768 }
  0xf7   : > { %10698 = dma.done.wait (%p13354_p10), [#allocation11], 2112   ;;  %p13355_p11 = pmov %p13352_p3 }
  0xf8   : > { %p13356_p12 = pmov %p13352_p3 }
  0xf9   : > { %10700 = vsyncadd (%p13355_p11), [#allocation11], 4294965184 }
  0xfa   : > { %10702 = dma.done.wait (%p13356_p12), [#allocation14], 1600   ;;  %p13357_p0 = pmov %p13352_p3 }
  0xfc   : > { %10704 = vsyncadd (%p13357_p0), [#allocation14], 4294965696  ;;  %p13358_p5 = pmov %p13357_p0 }
  0xfd   : > { %p13359_p8 = pmov %p13357_p0 }
  0xfe   : > { %10706 = dma.done.wait (%p13358_p5), [#allocation17], 528  }
  0xff   : > { %10708 = vsyncadd (%p13359_p8), [#allocation17], 4294966768  ;;  %p13360_p4 = pmov %p13357_p0 }
 0x100   : > { %p13361_p9 = pmov %p13357_p0 }
 0x101   : > { %10710 = dma.done.wait (%p13360_p4), [#allocation20], 2080  }
 0x102   : > { %10712 = vsyncadd (%p13361_p9), [#allocation20], 4294965216  ;;  %p13362_p7 = pmov %p13357_p0 }
 0x103   : > { %p13363_p13 = pmov %p13357_p0 }
 0x104   : > { %10714 = dma.done.wait (%p13362_p7), [#allocation23], 1056  }
 0x105   : > { %10716 = vsyncadd (%p13363_p13), [#allocation23], 4294966240  ;;  %p13364_p2 = pmov %p13357_p0 }
 0x106   : > { %p13365_p1 = pmov %p13357_p0 }
 0x107   : > { %10718 = dma.done.wait (%p13364_p2), [#allocation26], 16  }
 0x108   : > { %10720 = vsyncadd (%p13365_p1), [#allocation26], 4294967280  ;;  %vm891_vm0 = vcmask 261120   ;;  %v13308_v0 = vmov 0.0   ;;  %vm10763_vm1 = vmmov 0   ;;  %v883_v1 = vld [vmem:[#allocation7 + $0x18] sm:$0xff]  ;;  %v992_v21 = vlaneseq }
 0x109   : > { %9067 = vmatprep.subr.mxu0 %v13308_v0  ;;  %9075 = vmatprep.mubr.msk.f32.mxu0 %vm10763_vm1, %v13308_v0  ;;  %990 = vst.msk [vmem:[#allocation2] sm:$0xff] %vm891_vm0, %v13308_v0  ;;  %3610 = vst.msk [vmem:[#allocation3] sm:$0xff] %vm891_vm0, %v13308_v0  ;;  %v882_v2 = vld [vmem:[#allocation7 + $0x10] sm:$0xff]  ;;  %s13366_s9 = sld [smem:[#allocation46_spill]]  ;;  %v881_v4 = vld [vmem:[#allocation7 + $0x8] sm:$0xff]  ;;  %s10764_s26 = smov 96  }
 0x10a   : > { %1069 = vmatprep.mubr.f32.mxu1 %v13308_v0  ;;  %9068 = vmatpush3.msra.mxu0 %v883_v1  ;;  %v880_v7 = vld [vmem:[#allocation7] sm:$0xff]  ;;  %v879_v8 = vld [vmem:[%s11125_s12] sm:$0xff]  ;;  %v993_v22 = vshrl.u32 %v992_v21, 7  ;;  %v10765_v23 = vmov 1966171168   ;;  %s10766_s20 = smov 64  }
 0x10b   : > { %9069 = vmatprep.subr.mxu0 %v13308_v0  ;;  %v8676_v14 = vld [vmem:[#allocation9] ss:$0 sm:$0xff]  ;;  %v11241_v20 = vld [vmem:[#allocation13] sm:$0x3]  ;;  %v1117_v24 = vunpack.c.l.s4 %v10765_v23  ;;  %v976_v27 = vld [vmem:[#allocation10] sm:$0x3] }
 0x10c   : > { %9070 = vmatpush3.msra.mxu0 %v882_v2  ;;  %1134 = vrot.lane.b32.xlu1 %v11241_v20, %s10764_s26  ;;  %v11245_v25 = vsub.s32 1, %v993_v22  ;;  %v11254_v34 = vsub.s32 0, %v993_v22  ;;  %s13302_s18 = smov 32   ;;  %v10768_v48 = vmov 1   ;;  %v1106_v49 = vrot.slane %v11241_v20, 1  ;;  %p867_p3 = scmp.lt.s32.totalorder %s10911_s3, 1 }
 0x10d   : > { %9071 = vmatprep.subr.mxu0 %v13308_v0  ;;  %v1118_v26 = vunpack.c.0.s8 %v1117_v24  ;;  %9820 = vset.pattern.permute.xlu0 %v10768_v48  ;;  %s13367_s28 = sld [smem:[#allocation41_spill]]  ;;  %vm1161_vm2 = vcmask 253952   ;;  %vm1321_vm3 = vcmask 531968   ;;  %s10771_s5 = smov 62   ;;  %vm6460_vm4 = vcmask 523264  }
 0x10e   : > { %9072 = vmatpush3.msra.mxu0 %v881_v4  ;;  %v11248_v28 = vrot.slane %v976_v27, %v11245_v25  ;;  %v11259_v36 = vrot.slane %v11241_v20, %v11254_v34  ;;  %v11265_v37 = vrot.slane %v976_v27, %v11254_v34  ;;  %9819 = vset.pattern.permute.xlu1 %v10768_v48  ;;  %s868_s6 = scalar_select %p867_p3, %s10911_s3, 1  ;;  %vm8133_vm5 = vcmask 1040384  }
 0x10f   : > { %v11170_v3 = vld [vmem:[%s13366_s9 + $0x38] sm:$0xff]  ;;  %v11177_v5 = vld [vmem:[%s13366_s9 + $0x30] sm:$0xff]  ;;  %v11182_v6 = vld [vmem:[%s13366_s9 + $0x28] sm:$0xff]  ;;  %9073 = vmatprep.subr.mxu0 %v13308_v0  ;;  %v11250_v30 = vsub.s32 %v1118_v26, %v993_v22  ;;  %s13368_s8 = sld [smem:[#allocation42_spill]]  ;;  %s10774_s7 = smov 61   ;;  %vm8393_vm6 = vcmask 41984  }
 0x110   : > { %1029 = vmatprep.subr.mxu1 %v11170_v3  ;;  %9074 = vmatpush3.msra.mxu0 %v880_v7  ;;  %v11197_v9 = vld [vmem:[%s13366_s9 + $0x20] sm:$0xff]  ;;  %v11203_v10 = vld [vmem:[%s13366_s9 + $0x18] sm:$0xff]  ;;  %v11210_v11 = vld [vmem:[%s13366_s9 + $0x10] sm:$0xff]  ;;  %s11279_s10 = sshll.u32 %s868_s6, 3  ;;  %s10769_s6 = smov 63  }
 0x111   : > { %1030 = vmatpush1.msra.mxu1 %v11177_v5  ;;  %9076 = vmatmul.mubr.msk.f32.vlgmr.msra.gmra.mxu0 %vm891_vm0, %v879_v8  ;;  %v11217_v12 = vld [vmem:[%s13366_s9 + $0x8] sm:$0xff]  ;;  %v11224_v13 = vld [vmem:[%s13366_s9] sm:$0xff]  ;;  %s10775_s0 = smov 60   ;;  %p13386_p10 = scmp.ne.s32.totalorder %s13346_s2, 0 }
 0x112   : > { %1031 = vmatprep.subr.mxu1 %v11182_v6  ;;  %1190 = vmatprep.subr.mxu0 %v11170_v3 }
 0x113   : > { %1191 = vmatpush1.msra.mxu0 %v11177_v5  ;;  %1230 = vmatprep.mubr.f32.mxu0 %v13308_v0  ;;  %s11287_s30 = scalar_lea.vmem %s13367_s28, %s11279_s10  ;;  %s13369_s28 = sld [smem:[#allocation50_spill]] }
 0x114   : > { %1192 = vmatprep.subr.mxu0 %v11182_v6  ;;  %1032 = vmatpush1.msra.mxu1 %v11197_v9  ;;  %v11291_v8 = vld [vmem:[%s11287_s30] sm:$0xff] }
 0x115   : > { %1193 = vmatpush1.msra.mxu0 %v11197_v9  ;;  %1033 = vmatprep.subr.mxu1 %v11203_v10  ;;  %s11297_s13 = scalar_lea.vmem %s13368_s8, %s11279_s10  ;;  %s8810_s8 = sshll.u32 %s10911_s3, 5 }
 0x116   : > { %1194 = vmatprep.subr.mxu0 %v11203_v10  ;;  %1034 = vmatpush1.msra.mxu1 %v11210_v11  ;;  %s10784_s3 = smov [#allocation27]  }
 0x117   : > { %1195 = vmatpush1.msra.mxu0 %v11210_v11  ;;  %1035 = vmatprep.subr.mxu1 %v11217_v12 }
 0x118   : > { %1196 = vmatprep.subr.mxu0 %v11217_v12  ;;  %1036 = vmatpush1.msra.mxu1 %v11224_v13 }
 0x119   : > { %1197 = vmatpush1.msra.mxu0 %v11224_v13  ;;  %9078 = vmatprep.subr.mxu1 %v13308_v0  ;;  %v11314_v21 = vld [vmem:[%s13369_s28 + $0x18] sm:$0xff]  ;;  %v11320_v22 = vld [vmem:[%s13369_s28 + $0x10] sm:$0xff]  ;;  %v11326_v23 = vld [vmem:[%s13369_s28 + $0x8] sm:$0xff] }
 0x11a   : > { %v11333_v24 = vld [vmem:[%s13369_s28] sm:$0xff] }
 0x17e   : > { %v1135_v53 = vpop.permute.xlu1 %1134 }
 0x17f   : > { %v1136_v55 = vrot.slane %v1135_v53, 1 }
 0x1d1   : > { %v961_v15 = vpop.f32.mrf.mxu0 }
 0x1d2   : > { %v962_v16 = vadd.f32 %v8676_v14, %v961_v15  ;;  %v11303_v15 = vld [vmem:[%s11297_s13] sm:$0xff] }
 0x1d3   : > { %v9077_v17 = vpop.f32.mrf.mxu0 }
 0x1d4   : > { %v11230_v18 = vmax.f32 %v962_v16, 0.0 }
 0x1d6   : > { %8678 = vmatmul.mubr.msk.f32.vlgmr.msra.gmra.mxu1 %vm891_vm0, %v11230_v18  ;;  %v1163_v19 = vrot.slane %v11230_v18, 1 }
 0x1d7   : > { %9086 = vmatprep.mubr.msk.f32.mxu1 %vm10763_vm1, %v13308_v0  ;;  %9079 = vmatpush3.msra.mxu1 %v11314_v21 }
 0x1d8   : > { %8681 = vmatmul.mubr.msk.f32.vlgmr.msra.gmra.mxu0 %vm891_vm0, %v1163_v19  ;;  %9080 = vmatprep.subr.mxu1 %v13308_v0 }
 0x1d9   : > { %1445 = vmatprep.mubr.f32.mxu0 %v13308_v0  ;;  %9081 = vmatpush3.msra.mxu1 %v11320_v22 }
 0x1da   : > { %9082 = vmatprep.subr.mxu1 %v13308_v0 }
 0x1db   : > { %9083 = vmatpush3.msra.mxu1 %v11326_v23 }
 0x1dc   : > { %9084 = vmatprep.subr.mxu1 %v13308_v0 }
 0x1dd   : > { %9085 = vmatpush3.msra.mxu1 %v11333_v24 }
 0x1de   : > { %1545 = vmatprep.subr.mxu1 %v11170_v3 }
 0x296   : > { %v1071_v29 = vpop.f32.mrf.mxu1 }
 0x297   : > { %v1072_v38 = vadd.f32 %v1071_v29, %v11265_v37 }
 0x298   : > { %v1073_v31 = vpop.f32.mrf.mxu1  ;;  %v11299_v14 = vpop.f32.mrf.mxu0 }
 0x299   : > { %v1074_v32 = vadd.f32 %v1073_v31, %v11248_v28  ;;  %v1076_v39 = vadd.f32 %v1072_v38, %v11241_v20 }
 0x29a   : > { %v1234_v16 = vpop.f32.mrf.mxu0 }
 0x29b   : > { %v1122_v33 = vrot.slane %v1074_v32, %v11250_v30  ;;  %v8679_v40 = vmul.f32 -1.442695, %v1076_v39  ;;  %v1108_v50 = vadd.f32 %v1106_v49, %v1074_v32  ;;  %v11307_v17 = vadd.f32 %v1234_v16, %v11248_v28 }
 0x29d   : > { %v1129_v35 = vrot.slane %v1122_v33, %v11250_v30  ;;  %9843 = vpow2.f32 %v8679_v40  ;;  %v8680_v51 = vmul.f32 -1.442695, %v1108_v50 }
 0x29f   : > { %1130 = vrot.lane.b32.xlu0 %v1129_v35, %s10766_s20 }
 0x2a3   : > { %1088 = vrot.lane.b32.xlu0 %v11259_v36, %s10766_s20 }
 0x2aa   : > { %v9844_v41 = vpop.eup %9843 }
 0x2ab   : > { %v1080_v42 = vadd.f32 1.0, %v9844_v41  ;;  %v1518_v41 = vrot.slane %v11230_v18, 2 }
 0x2ad   : > { %9845 = vrcp.f32 %v1080_v42  ;;  %v13305_v42 = vmov 64  }
 0x2ae   : > { %9847 = vpow2.f32 %v8680_v51 }
 0x2ba   : > { %v11269_v43 = vpop.eup %9845 }
 0x2bb   : > { %v9848_v52 = vpop.eup %9847  ;;  %v1098_v26 = vsub.f32 1.0, %v11269_v43  ;;  %v1104_v31 = vmul.f32 0.0, %v11269_v43 }
 0x2bc   : > { %v1112_v54 = vadd.f32 1.0, %v9848_v52 }
 0x2be   : > { %9849 = vrcp.f32 %v1112_v54 }
 0x2cb   : > { %v9850_v60 = vpop.eup %9849 }
 0x2cc   : > { %v1144_v61 = vsub.f32 1.0, %v9850_v60  ;;  %v1146_v1 = vmul.f32 %v9850_v60, %v11230_v18 }
 0x311   : > { %v1131_v44 = vpop.permute.xlu0 %1130 }
 0x312   : > { %v1133_v45 = vmul.f32 %v11269_v43, %v1131_v44 }
 0x314   : > { %1139 = vrot.lane.b32.xlu1 %v1133_v45, %s13302_s18 }
 0x315   : > { %v1089_v46 = vpop.permute.xlu0 %1088 }
 0x316   : > { %v1091_v47 = vmul.f32 %v11269_v43, %v1089_v46  ;;  %v1314_v43 = vrot.slane %v11307_v17, %v11254_v34 }
 0x318   : > { %1093 = vrot.lane.b32.xlu0 %v1091_v47, %s10766_s20 }
 0x386   : > { %v1140_v56 = vpop.permute.xlu1 %1139 }
 0x387   : > { %v1142_v57 = vadd.f32 %v1140_v56, %v1136_v55 }
 0x389   : > { %9851 = vtanh.f32 %v1142_v57 }
 0x38a   : > { %v1094_v58 = vpop.permute.xlu0 %1093 }
 0x38b   : > { %v1096_v59 = vadd.f32 %v1094_v58, %v1072_v38  ;;  %v11343_v38 = vsub.f32 1.0, %v11303_v15 }
 0x38d   : > { %9853 = vtanh.f32 %v1096_v59 }
 0x396   : > { %v9852_v62 = vpop.eup %9851 }
 0x397   : > { %v1145_v63 = vmul.f32 %v9852_v62, %v1144_v61 }
 0x399   : > { %v1147_v2 = vadd.f32 %v1146_v1, %v1145_v63 }
 0x39a   : > { %v9854_v4 = vpop.eup %9853 }
 0x39b   : > { %1100 = vrot.lane.b32.xlu1 %v9854_v4, %s10764_s26  ;;  %v1152_v7 = vrot.slane %v1147_v2, %v11254_v34 }
 0x39d   : > { %1153 = vrot.lane.b32.xlu0 %v1152_v7, %s13302_s18 }
 0x3a1   : > { %1317 = vrot.lane.b32.xlu0 %v11291_v8, %s10769_s6  ;;  %s13383_s6 = sld [smem:[#allocation43_spill]] }
 0x3a5   : > { %1343 = vperm.xlu0 %9820, %v11303_v15  }
 0x3a9   : > { %1489 = vrot.lane.b32.xlu0 %v11307_v17, %s10766_s20 }
 0x40d   : > { %v1101_v27 = vpop.permute.xlu1 %1100 }
 0x40e   : > { %v1103_v29 = vmul.f32 %v1101_v27, %v1098_v26  ;;  %v11373_v27 = vld [vmem:[#allocation12 + $0x38] sm:$0xff] }
 0x40f   : > { %v1154_v33 = vpop.permute.xlu0 %1153  ;;  %1405 = vmatprep.subr.mxu0 %v11373_v27 }
 0x410   : > { %v1105_v32 = vadd.f32 %v1104_v31, %v1103_v29  ;;  %v11376_v29 = vld [vmem:[#allocation12 + $0x30] sm:$0xff]  ;;  %v11380_v31 = vld [vmem:[#allocation12 + $0x28] sm:$0xff] }
 0x411   : > { %1406 = vmatpush1.msra.mxu0 %v11376_v29 }
 0x412   : > { %v1156_v35 = vadd.f32 %v1154_v33, %v1105_v32  ;;  %1407 = vmatprep.subr.mxu0 %v11380_v31  ;;  %v11384_v32 = vld [vmem:[#allocation12 + $0x20] sm:$0xff]  ;;  %v11388_v33 = vld [vmem:[#allocation12 + $0x18] sm:$0xff] }
 0x413   : > { %v11364_v46 = vpop.permute.xlu0 %1317  ;;  %1408 = vmatpush1.msra.mxu0 %v11384_v32 }
 0x414   : > { %1158 = vrot.lane.b32.xlu1 %v1156_v35, %s10764_s26  ;;  %1409 = vmatprep.subr.mxu0 %v11388_v33  ;;  %v11392_v35 = vld [vmem:[#allocation12 + $0x10] sm:$0xff] }
 0x415   : > { %1410 = vmatpush1.msra.mxu0 %v11392_v35 }
 0x418   : > { %1350 = vperm.xlu1 %9819, %v11343_v38  }
 0x41c   : > { %9821 = vset.pattern.permute.xlu1 %v13305_v42 }
 0x486   : > { %v1159_v39 = vpop.permute.xlu1 %1158 }
 0x487   : > { %1162 = vst.msk [vmem:[#allocation2] sm:$0x1] %vm1161_vm2, %v1159_v39  ;;  %v11396_v39 = vld [vmem:[#allocation12 + $0x8] sm:$0xff] }
 0x488   : > { %1411 = vmatprep.subr.mxu0 %v11396_v39 }
 0x48e   : > { %v1237_v40 = vld [vmem:[#allocation2] sm:$0xff] }
 0x48f   : > { %9087 = vmatmul.mubr.msk.f32.vlgmr.msra.gmra.mxu1 %vm891_vm0, %v1237_v40  ;;  %v11398_v40 = vld [vmem:[#allocation12] sm:$0xff] }
 0x490   : > { %1546 = vmatpush1.msra.mxu1 %v11177_v5  ;;  %1585 = vmatprep.mubr.f32.mxu1 %v13308_v0 }
 0x491   : > { %1547 = vmatprep.subr.mxu1 %v11182_v6  ;;  %1412 = vmatpush1.msra.mxu0 %v11398_v40 }
 0x492   : > { %1548 = vmatpush1.msra.mxu1 %v11197_v9  ;;  %9089 = vmatprep.subr.mxu0 %v13308_v0 }
 0x493   : > { %1549 = vmatprep.subr.mxu1 %v11203_v10  ;;  %v11369_v16 = vpop.permute.xlu1 %1350 }
 0x494   : > { %1550 = vmatpush1.msra.mxu1 %v11210_v11 }
 0x495   : > { %1551 = vmatprep.subr.mxu1 %v11217_v12 }
 0x496   : > { %1552 = vmatpush1.msra.mxu1 %v11224_v13 }
 0x497   : > { %8686 = vmatmul.mubr.msk.f32.vlgmr.msra.gmra.mxu1 %vm891_vm0, %v1518_v41  ;;  %1749 = vmatprep.subr.mxu1 %v11373_v27 }
 0x498   : > { %1789 = vmatprep.mubr.f32.mxu1 %v13308_v0  ;;  %1750 = vmatpush1.msra.mxu1 %v11376_v29 }
 0x499   : > { %1751 = vmatprep.subr.mxu1 %v11380_v31 }
 0x49a   : > { %1752 = vmatpush1.msra.mxu1 %v11384_v32 }
 0x49b   : > { %1753 = vmatprep.subr.mxu1 %v11388_v33 }
 0x49c   : > { %1754 = vmatpush1.msra.mxu1 %v11392_v35 }
 0x49d   : > { %1755 = vmatprep.subr.mxu1 %v11396_v39 }
 0x49e   : > { %1756 = vmatpush1.msra.mxu1 %v11398_v40 }
 0x49f   : > { %9100 = vmatprep.subr.mxu1 %v13308_v0 }
 0x54f   : > { %v1307_v44 = vpop.f32.mrf.mxu1 }
 0x550   : > { %v1315_v45 = vadd.f32 %v1314_v43, %v1307_v44  ;;  %v1353_v26 = vmul.f32 %v11369_v16, %v1307_v44 }
 0x551   : > { %v9088_v47 = vpop.f32.mrf.mxu1 }
 0x552   : > { %v1320_v48 = vadd.f32 %v11364_v46, %v1315_v45  ;;  %v11407_v45 = vpop.permute.xlu0 %1343 }
 0x553   : > { %v1346_v47 = vmul.f32 %v11407_v45, %v1307_v44 }
 0x554   : > { %v1322_v49 = vsel %vm1321_vm3, %v1320_v48, -inf }
 0x555   : > { %v1323_v50 = vrot.slane %v1322_v49, 4 }
 0x557   : > { %v1324_v51 = vmax.f32 %v1322_v49, %v1323_v50 }
 0x559   : > { %v1325_v52 = vrot.slane %v1324_v51, 2 }
 0x55b   : > { %v1326_v53 = vmax.f32 %v1324_v51, %v1325_v52 }
 0x55d   : > { %v1327_v54 = vrot.slane %v1326_v53, 1 }
 0x55f   : > { %v1328_v55 = vmax.f32 %v1326_v53, %v1327_v54 }
 0x561   : > { %v1329_v56 = vsub.f32 %v1320_v48, %v1328_v55 }
 0x563   : > { %v1330_v57 = vmul.f32 1.442695, %v1329_v56 }
 0x565   : > { %9855 = vpow2.f32 %v1330_v57 }
 0x572   : > { %v9856_v58 = vpop.eup %9855 }
 0x573   : > { %v1332_v59 = vsel %vm1321_vm3, %v9856_v58, 0.0 }
 0x574   : > { %v1333_v60 = vrot.slane %v1332_v59, 4 }
 0x576   : > { %v1334_v61 = vadd.f32 %v1333_v60, %v1332_v59 }
 0x578   : > { %v1335_v62 = vrot.slane %v1334_v61, 2 }
 0x57a   : > { %v1336_v63 = vadd.f32 %v1335_v62, %v1334_v61 }
 0x57c   : > { %v1337_v1 = vrot.slane %v1336_v63, 1 }
 0x57e   : > { %v1338_v2 = vadd.f32 %v1337_v1, %v1336_v63 }
 0x580   : > { %9857 = vrcp.f32 %v1338_v2  ;;  %v1490_v2 = vpop.permute.xlu0 %1489 }
 0x58d   : > { %v9858_v4 = vpop.eup %9857 }
 0x58e   : > { %v1340_v7 = vmul.f32 %v9858_v4, %v9856_v58  ;;  %v1233_v58 = vadd.f32 %v11299_v14, %v11265_v37  ;;  %v11430_v14 = vrot.slane %v11241_v20, %v11245_v25 }
 0x590   : > { %1361 = vperm.xlu1 %9821, %v1340_v7  }
 0x594   : > { %1355 = vrot.lane.b32.xlu1 %v1353_v26, %s10764_s26 }
 0x60b   : > { %v1362_v43 = vpop.permute.xlu1 %1361 }
 0x60f   : > { %v1356_v48 = vpop.permute.xlu1 %1355 }
 0x610   : > { %v1358_v49 = vadd.f32 %v1356_v48, %v1346_v47 }
 0x612   : > { %v1364_v50 = vmul.f32 %v1362_v43, %v1358_v49 }
 0x614   : > { %v1365_v51 = vsel %vm891_vm0, %v1364_v50, 0.0 }
 0x615   : > { %v1366_v52 = vrot.slane %v1365_v51, 4 }
 0x617   : > { %v1367_v53 = vadd.f32 %v1366_v52, %v1365_v51 }
 0x619   : > { %v1368_v54 = vrot.slane %v1367_v53, 2 }
 0x61b   : > { %v1369_v55 = vadd.f32 %v1368_v54, %v1367_v53 }
 0x61d   : > { %v1370_v56 = vrot.slane %v1369_v55, 1 }
 0x61f   : > { %v1371_v57 = vadd.f32 %v1370_v56, %v1369_v55 }
 0x621   : > { %8683 = vmatmul.mubr.msk.f32.vlgmr.msra.gmra.mxu0 %vm891_vm0, %v1371_v57 }
 0x622   : > { %9090 = vmatpush3.msra.mxu0 %v11314_v21  ;;  %9097 = vmatprep.mubr.msk.f32.mxu0 %vm10763_vm1, %v13308_v0 }
 0x623   : > { %9091 = vmatprep.subr.mxu0 %v13308_v0 }
 0x624   : > { %9092 = vmatpush3.msra.mxu0 %v11320_v22 }
 0x625   : > { %9093 = vmatprep.subr.mxu0 %v13308_v0 }
 0x626   : > { %9094 = vmatpush3.msra.mxu0 %v11326_v23 }
 0x627   : > { %9095 = vmatprep.subr.mxu0 %v13308_v0 }
 0x628   : > { %9096 = vmatpush3.msra.mxu0 %v11333_v24 }
 0x629   : > { %1889 = vmatprep.subr.mxu0 %v11170_v3 }
 0x6e1   : > { %v1447_v44 = vpop.f32.mrf.mxu0 }
 0x6e2   : > { %v1448_v59 = vadd.f32 %v1447_v44, %v11259_v36 }
 0x6e3   : > { %v1449_v43 = vpop.f32.mrf.mxu0 }
 0x6e4   : > { %v1452_v60 = vadd.f32 %v1448_v59, %v1233_v58  ;;  %1460 = vrot.lane.b32.xlu1 %v1448_v59, %s10766_s20  ;;  %v1450_v47 = vadd.f32 %v1449_v43, %v11430_v14 }
 0x6e6   : > { %v8684_v61 = vmul.f32 -1.442695, %v1452_v60  ;;  %v1481_v53 = vadd.f32 %v1450_v47, %v11307_v17 }
 0x6e8   : > { %9859 = vpow2.f32 %v8684_v61  ;;  %v8685_v54 = vmul.f32 -1.442695, %v1481_v53 }
 0x6f5   : > { %v9860_v62 = vpop.eup %9859 }
 0x6f6   : > { %v1456_v63 = vadd.f32 1.0, %v9860_v62 }
 0x6f8   : > { %9861 = vrcp.f32 %v1456_v63 }
 0x705   : > { %v9862_v1 = vpop.eup %9861 }
 0x706   : > { %v1492_v4 = vmul.f32 %v9862_v1, %v1490_v2  ;;  %v1470_v17 = vsub.f32 1.0, %v9862_v1 }
 0x708   : > { %1494 = vrot.lane.b32.xlu0 %v1492_v4, %s10766_s20 }
 0x756   : > { %v1461_v7 = vpop.permute.xlu1 %1460 }
 0x757   : > { %v1463_v26 = vmul.f32 %v9862_v1, %v1461_v7 }
 0x759   : > { %1465 = vrot.lane.b32.xlu1 %v1463_v26, %s10766_s20 }
 0x77a   : > { %v1495_v48 = vpop.permute.xlu0 %1494 }
 0x77b   : > { %v1497_v49 = vadd.f32 %v1495_v48, %v1450_v47  ;;  %v10772_v47 = vmov 2   ;;  %v1862_v48 = vrot.slane %v11230_v18, 3 }
 0x77c   : > { %9822 = vset.pattern.permute.xlu0 %v10772_v47  ;;  %9823 = vset.pattern.permute.xlu1 %v10772_v47 }
 0x77d   : > { %9863 = vtanh.f32 %v1497_v49  ;;  %v1587_v49 = vpop.f32.mrf.mxu1 }
 0x78a   : > { %v9864_v50 = vpop.eup %9863 }
 0x78b   : > { %1501 = vrot.lane.b32.xlu0 %v9864_v50, %s10764_s26  ;;  %v1589_v50 = vpop.f32.mrf.mxu1 }
 0x78f   : > { %1476 = vrot.lane.b32.xlu0 %v1371_v57, %s13302_s18 }
 0x7cb   : > { %v1466_v51 = vpop.permute.xlu1 %1465 }
 0x7cc   : > { %v1468_v52 = vadd.f32 %v1466_v51, %v1233_v58  ;;  %v11470_v51 = vadd.f32 %v1589_v50, %v11248_v28 }
 0x7ce   : > { %9865 = vtanh.f32 %v1468_v52  ;;  %v1669_v53 = vrot.slane %v11470_v51, %v11254_v34 }
 0x7cf   : > { %9867 = vpow2.f32 %v8685_v54 }
 0x7db   : > { %v9866_v20 = vpop.eup %9865 }
 0x7dc   : > { %1472 = vrot.lane.b32.xlu1 %v9866_v20, %s10764_s26  ;;  %v9868_v55 = vpop.eup %9867 }
 0x7dd   : > { %v1485_v56 = vadd.f32 1.0, %v9868_v55 }
 0x7df   : > { %9869 = vrcp.f32 %v1485_v56 }
 0x7ec   : > { %v9870_v44 = vpop.eup %9869 }
 0x7ed   : > { %v1499_v59 = vsub.f32 1.0, %v9870_v44  ;;  %v1506_v61 = vmul.f32 %v9870_v44, %v1163_v19 }
 0x7fd   : > { %v1502_v60 = vpop.permute.xlu0 %1501 }
 0x7fe   : > { %v1504_v57 = vmul.f32 %v1502_v60, %v1499_v59 }
 0x800   : > { %v1507_v62 = vadd.f32 %v1506_v61, %v1504_v57 }
 0x801   : > { %v1477_v63 = vpop.permute.xlu0 %1476 }
 0x802   : > { %1509 = vrot.lane.b32.xlu1 %v1507_v62, %s13302_s18  ;;  %v1479_v4 = vmul.f32 %v9862_v1, %v1477_v63 }
 0x806   : > { %1671 = vrot.lane.b32.xlu1 %v11291_v8, %s10771_s5  ;;  %s13372_s5 = smov 32  }
 0x80a   : > { %1695 = vperm.xlu1 %9823, %v11303_v15  }
 0x80e   : > { %9824 = vset.pattern.permute.xlu1 %v13305_v42 }
 0x84e   : > { %v1473_v58 = vpop.permute.xlu1 %1472 }
 0x84f   : > { %v1475_v2 = vmul.f32 %v1473_v58, %v1470_v17 }
 0x851   : > { %v1480_v7 = vadd.f32 %v1479_v4, %v1475_v2 }
 0x874   : > { %v1510_v26 = vpop.permute.xlu1 %1509 }
 0x875   : > { %v1512_v43 = vadd.f32 %v1510_v26, %v1480_v7 }
 0x877   : > { %1514 = vrot.lane.b32.xlu0 %v1512_v43, %s10764_s26 }
 0x878   : > { %v11477_v56 = vpop.permute.xlu1 %1671 }
 0x87b   : > { %1700 = vperm.xlu0 %9822, %v11343_v38  }
 0x8e9   : > { %v1515_v19 = vpop.permute.xlu0 %1514 }
 0x8ea   : > { %1517 = vst.msk [vmem:[#allocation2 + $0x1] sm:$0x1] %vm1161_vm2, %v1515_v19 }
 0x8f1   : > { %v1592_v1 = vld [vmem:[#allocation2] sm:$0xff] }
 0x8f2   : > { %9098 = vmatmul.mubr.msk.f32.vlgmr.msra.gmra.mxu0 %vm891_vm0, %v1592_v1 }
 0x8f3   : > { %1890 = vmatpush1.msra.mxu0 %v11177_v5  ;;  %1929 = vmatprep.mubr.f32.mxu0 %v13308_v0 }
 0x8f4   : > { %1891 = vmatprep.subr.mxu0 %v11182_v6 }
 0x8f5   : > { %1892 = vmatpush1.msra.mxu0 %v11197_v9 }
 0x8f6   : > { %1893 = vmatprep.subr.mxu0 %v11203_v10  ;;  %v11472_v52 = vpop.permute.xlu0 %1700 }
 0x8f7   : > { %1894 = vmatpush1.msra.mxu0 %v11210_v11 }
 0x8f8   : > { %1895 = vmatprep.subr.mxu0 %v11217_v12 }
 0x8f9   : > { %1896 = vmatpush1.msra.mxu0 %v11224_v13 }
 0x8fa   : > { %8691 = vmatmul.mubr.msk.f32.vlgmr.msra.gmra.mxu0 %vm891_vm0, %v1862_v48  ;;  %2093 = vmatprep.subr.mxu0 %v11373_v27 }
 0x8fb   : > { %2094 = vmatpush1.msra.mxu0 %v11376_v29  ;;  %2133 = vmatprep.mubr.f32.mxu0 %v13308_v0 }
 0x8fc   : > { %2095 = vmatprep.subr.mxu0 %v11380_v31 }
 0x8fd   : > { %2096 = vmatpush1.msra.mxu0 %v11384_v32 }
 0x8fe   : > { %2097 = vmatprep.subr.mxu0 %v11388_v33 }
 0x8ff   : > { %2098 = vmatpush1.msra.mxu0 %v11392_v35 }
 0x900   : > { %2099 = vmatprep.subr.mxu0 %v11396_v39 }
 0x901   : > { %2100 = vmatpush1.msra.mxu0 %v11398_v40 }
 0x902   : > { %9111 = vmatprep.subr.mxu0 %v13308_v0 }
 0x9b2   : > { %v1662_v54 = vpop.f32.mrf.mxu0 }
 0x9b3   : > { %v1670_v20 = vadd.f32 %v1669_v53, %v1662_v54  ;;  %v1703_v55 = vmul.f32 %v11472_v52, %v1662_v54 }
 0x9b4   : > { %v9099_v44 = vpop.f32.mrf.mxu0 }
 0x9b5   : > { %v1674_v59 = vadd.f32 %v11477_v56, %v1670_v20  ;;  %1705 = vrot.lane.b32.xlu0 %v1703_v55, %s10764_s26  ;;  %v11485_v44 = vpop.permute.xlu1 %1695 }
 0x9b7   : > { %v1675_v60 = vsel %vm1321_vm3, %v1674_v59, -inf }
 0x9b8   : > { %v1676_v61 = vrot.slane %v1675_v60, 4 }
 0x9ba   : > { %v1677_v57 = vmax.f32 %v1675_v60, %v1676_v61  ;;  %v1698_v60 = vmul.f32 %v11485_v44, %v1662_v54 }
 0x9bc   : > { %v1678_v62 = vrot.slane %v1677_v57, 2 }
 0x9be   : > { %v1679_v58 = vmax.f32 %v1677_v57, %v1678_v62 }
 0x9c0   : > { %v1680_v17 = vrot.slane %v1679_v58, 1 }
 0x9c2   : > { %v1681_v63 = vmax.f32 %v1679_v58, %v1680_v17 }
 0x9c4   : > { %v1682_v2 = vsub.f32 %v1674_v59, %v1681_v63 }
 0x9c6   : > { %v1683_v4 = vmul.f32 1.442695, %v1682_v2 }
 0x9c8   : > { %9871 = vpow2.f32 %v1683_v4 }
 0x9d5   : > { %v9872_v7 = vpop.eup %9871 }
 0x9d6   : > { %v1685_v26 = vsel %vm1321_vm3, %v9872_v7, 0.0 }
 0x9d7   : > { %v1686_v43 = vrot.slane %v1685_v26, 4 }
 0x9d9   : > { %v1687_v47 = vadd.f32 %v1686_v43, %v1685_v26  ;;  %v1588_v43 = vadd.f32 %v1587_v49, %v11265_v37 }
 0x9db   : > { %v1688_v19 = vrot.slane %v1687_v47, 2 }
 0x9dd   : > { %v1689_v1 = vadd.f32 %v1688_v19, %v1687_v47 }
 0x9df   : > { %v1690_v50 = vrot.slane %v1689_v1, 1 }
 0x9e1   : > { %v1691_v53 = vadd.f32 %v1690_v50, %v1689_v1 }
 0x9e3   : > { %9873 = vrcp.f32 %v1691_v53 }
 0x9f0   : > { %v9874_v20 = vpop.eup %9873 }
 0x9f1   : > { %v1693_v55 = vmul.f32 %v9874_v20, %v9872_v7 }
 0x9f3   : > { %1711 = vperm.xlu1 %9824, %v1693_v55  }
 0x9f7   : > { %1833 = vrot.lane.b32.xlu1 %v11470_v51, %s10766_s20 }
 0xa27   : > { %v1706_v59 = vpop.permute.xlu0 %1705 }
 0xa28   : > { %v1708_v61 = vadd.f32 %v1706_v59, %v1698_v60 }
 0xa6e   : > { %v1712_v57 = vpop.permute.xlu1 %1711 }
 0xa6f   : > { %v1714_v62 = vmul.f32 %v1712_v57, %v1708_v61 }
 0xa71   : > { %v1715_v58 = vsel %vm891_vm0, %v1714_v62, 0.0 }
 0xa72   : > { %v1716_v17 = vrot.slane %v1715_v58, 4  ;;  %v1834_v55 = vpop.permute.xlu1 %1833 }
 0xa74   : > { %v1717_v63 = vadd.f32 %v1716_v17, %v1715_v58  ;;  %v10773_v58 = vmov 3  }
 0xa75   : > { %9826 = vset.pattern.permute.xlu0 %v10773_v58  ;;  %9825 = vset.pattern.permute.xlu1 %v10773_v58 }
 0xa76   : > { %v1718_v2 = vrot.slane %v1717_v63, 2 }
 0xa78   : > { %v1719_v4 = vadd.f32 %v1718_v2, %v1717_v63 }
 0xa7a   : > { %v1720_v26 = vrot.slane %v1719_v4, 1 }
 0xa7c   : > { %v1721_v7 = vadd.f32 %v1720_v26, %v1719_v4 }
 0xa7e   : > { %8688 = vmatmul.mubr.msk.f32.vlgmr.msra.gmra.mxu1 %vm891_vm0, %v1721_v7 }
 0xa7f   : > { %9101 = vmatpush3.msra.mxu1 %v11314_v21  ;;  %9108 = vmatprep.mubr.msk.f32.mxu1 %vm10763_vm1, %v13308_v0 }
 0xa80   : > { %9102 = vmatprep.subr.mxu1 %v13308_v0 }
 0xa81   : > { %9103 = vmatpush3.msra.mxu1 %v11320_v22 }
 0xa82   : > { %9104 = vmatprep.subr.mxu1 %v13308_v0 }
 0xa83   : > { %9105 = vmatpush3.msra.mxu1 %v11326_v23 }
 0xa84   : > { %9106 = vmatprep.subr.mxu1 %v13308_v0 }
 0xa85   : > { %9107 = vmatpush3.msra.mxu1 %v11333_v24 }
 0xa86   : > { %2233 = vmatprep.subr.mxu1 %v11170_v3 }
 0xb3e   : > { %v1791_v54 = vpop.f32.mrf.mxu1 }
 0xb3f   : > { %v1792_v47 = vadd.f32 %v1791_v54, %v11259_v36 }
 0xb40   : > { %v1793_v49 = vpop.f32.mrf.mxu1 }
 0xb41   : > { %v1796_v19 = vadd.f32 %v1792_v47, %v1588_v43  ;;  %1804 = vrot.lane.b32.xlu0 %v1792_v47, %s10766_s20  ;;  %v1794_v61 = vadd.f32 %v1793_v49, %v11430_v14 }
 0xb43   : > { %v8689_v1 = vmul.f32 -1.442695, %v1796_v19  ;;  %v1825_v4 = vadd.f32 %v1794_v61, %v11470_v51 }
 0xb45   : > { %9875 = vpow2.f32 %v8689_v1  ;;  %v8690_v26 = vmul.f32 -1.442695, %v1825_v4 }
 0xb52   : > { %v9876_v50 = vpop.eup %9875 }
 0xb53   : > { %v1800_v53 = vadd.f32 1.0, %v9876_v50 }
 0xb55   : > { %9877 = vrcp.f32 %v1800_v53 }
 0xb62   : > { %v9878_v20 = vpop.eup %9877 }
 0xb63   : > { %v1836_v59 = vmul.f32 %v9878_v20, %v1834_v55 }
 0xb65   : > { %1838 = vrot.lane.b32.xlu1 %v1836_v59, %s10766_s20 }
 0xbb3   : > { %v1805_v60 = vpop.permute.xlu0 %1804 }
 0xbb4   : > { %v1807_v3 = vmul.f32 %v9878_v20, %v1805_v60 }
 0xbb6   : > { %1809 = vrot.lane.b32.xlu0 %v1807_v3, %s10766_s20 }
 0xbd7   : > { %v1839_v57 = vpop.permute.xlu1 %1838 }
 0xbd8   : > { %v1841_v62 = vadd.f32 %v1839_v57, %v1794_v61 }
 0xbda   : > { %9879 = vtanh.f32 %v1841_v62 }
 0xbe7   : > { %v9880_v17 = vpop.eup %9879 }
 0xbe8   : > { %1845 = vrot.lane.b32.xlu1 %v9880_v17, %s10764_s26 }
 0xbec   : > { %1820 = vrot.lane.b32.xlu1 %v1721_v7, %s13302_s18 }
 0xc28   : > { %v1810_v63 = vpop.permute.xlu0 %1809 }
 0xc29   : > { %v1812_v2 = vadd.f32 %v1810_v63, %v1588_v43  ;;  %v11513_v43 = vpop.f32.mrf.mxu0 }
 0xc2b   : > { %9881 = vtanh.f32 %v1812_v2  ;;  %v1933_v51 = vpop.f32.mrf.mxu0 }
 0xc2c   : > { %9883 = vpow2.f32 %v8690_v26  ;;  %v11518_v60 = vadd.f32 %v1933_v51, %v11248_v28 }
 0xc38   : > { %v9882_v54 = vpop.eup %9881 }
 0xc39   : > { %1816 = vrot.lane.b32.xlu0 %v9882_v54, %s10764_s26  ;;  %v9884_v47 = vpop.eup %9883 }
 0xc3a   : > { %v1829_v19 = vadd.f32 1.0, %v9884_v47 }
 0xc3c   : > { %9885 = vrcp.f32 %v1829_v19 }
 0xc49   : > { %v9886_v1 = vpop.eup %9885 }
 0xc4a   : > { %v1843_v50 = vsub.f32 1.0, %v9886_v1  ;;  %v1850_v55 = vmul.f32 %v9886_v1, %v1518_v41  ;;  %v1814_v41 = vsub.f32 1.0, %v9878_v20 }
 0xc5a   : > { %v1846_v53 = vpop.permute.xlu1 %1845 }
 0xc5b   : > { %v1848_v7 = vmul.f32 %v1846_v53, %v1843_v50 }
 0xc5d   : > { %v1851_v59 = vadd.f32 %v1850_v55, %v1848_v7 }
 0xc5e   : > { %v1821_v49 = vpop.permute.xlu1 %1820 }
 0xc5f   : > { %1853 = vrot.lane.b32.xlu0 %v1851_v59, %s13302_s18  ;;  %v1823_v57 = vmul.f32 %v9878_v20, %v1821_v49  ;;  %v2206_v20 = vrot.slane %v11230_v18, 4 }
 0xc63   : > { %2015 = vrot.lane.b32.xlu0 %v11291_v8, %s10774_s7  ;;  %s10778_s7 = smov 59  }
 0xc67   : > { %2039 = vperm.xlu0 %9826, %v11303_v15  }
 0xc6b   : > { %2177 = vrot.lane.b32.xlu0 %v11518_v60, %s10766_s20 }
 0xcab   : > { %v1817_v3 = vpop.permute.xlu0 %1816 }
 0xcac   : > { %v1819_v61 = vmul.f32 %v1817_v3, %v1814_v41 }
 0xcae   : > { %v1824_v62 = vadd.f32 %v1823_v57, %v1819_v61 }
 0xcd1   : > { %v1854_v58 = vpop.permute.xlu0 %1853 }
 0xcd2   : > { %v1856_v17 = vadd.f32 %v1854_v58, %v1824_v62 }
 0xcd4   : > { %1858 = vrot.lane.b32.xlu1 %v1856_v17, %s10764_s26 }
 0xcd8   : > { %2044 = vperm.xlu1 %9825, %v11343_v38  }
 0xcdc   : > { %9827 = vset.pattern.permute.xlu1 %v13305_v42 }
 0xd46   : > { %v1859_v63 = vpop.permute.xlu1 %1858 }
 0xd47   : > { %1861 = vst.msk [vmem:[#allocation2 + $0x2] sm:$0x1] %vm1161_vm2, %v1859_v63 }
 0xd4e   : > { %v1936_v2 = vld [vmem:[#allocation2] sm:$0xff] }
 0xd4f   : > { %9109 = vmatmul.mubr.msk.f32.vlgmr.msra.gmra.mxu1 %vm891_vm0, %v1936_v2 }
 0xd50   : > { %2234 = vmatpush1.msra.mxu1 %v11177_v5  ;;  %2273 = vmatprep.mubr.f32.mxu1 %v13308_v0  ;;  %v2013_v5 = vrot.slane %v11518_v60, %v11254_v34 }
 0xd51   : > { %2235 = vmatprep.subr.mxu1 %v11182_v6 }
 0xd52   : > { %2236 = vmatpush1.msra.mxu1 %v11197_v9 }
 0xd53   : > { %2237 = vmatprep.subr.mxu1 %v11203_v10  ;;  %v11551_v10 = vpop.permute.xlu0 %2015  ;;  %v11556_v58 = vpop.permute.xlu1 %2044 }
 0xd54   : > { %2238 = vmatpush1.msra.mxu1 %v11210_v11 }
 0xd55   : > { %2239 = vmatprep.subr.mxu1 %v11217_v12 }
 0xd56   : > { %2240 = vmatpush1.msra.mxu1 %v11224_v13 }
 0xd57   : > { %8696 = vmatmul.mubr.msk.f32.vlgmr.msra.gmra.mxu1 %vm891_vm0, %v2206_v20  ;;  %2437 = vmatprep.subr.mxu1 %v11373_v27  ;;  %v11560_v2 = vpop.permute.xlu0 %2039 }
 0xd58   : > { %2438 = vmatpush1.msra.mxu1 %v11376_v29  ;;  %2477 = vmatprep.mubr.f32.mxu1 %v13308_v0 }
 0xd59   : > { %2439 = vmatprep.subr.mxu1 %v11380_v31 }
 0xd5a   : > { %2440 = vmatpush1.msra.mxu1 %v11384_v32 }
 0xd5b   : > { %2441 = vmatprep.subr.mxu1 %v11388_v33 }
 0xd5c   : > { %2442 = vmatpush1.msra.mxu1 %v11392_v35 }
 0xd5d   : > { %2443 = vmatprep.subr.mxu1 %v11396_v39 }
 0xd5e   : > { %2444 = vmatpush1.msra.mxu1 %v11398_v40 }
 0xd5f   : > { %9122 = vmatprep.subr.mxu1 %v13308_v0 }
 0xe0f   : > { %v2006_v6 = vpop.f32.mrf.mxu1 }
 0xe10   : > { %v2014_v9 = vadd.f32 %v2013_v5, %v2006_v6  ;;  %v2047_v17 = vmul.f32 %v11556_v58, %v2006_v6  ;;  %v2042_v5 = vmul.f32 %v11560_v2, %v2006_v6  ;;  %v11577_v6 = vld [vmem:[%s13366_s9 + $0x38] sm:$0xff] }
 0xe11   : > { %v9110_v11 = vpop.f32.mrf.mxu1 }
 0xe12   : > { %v2018_v12 = vadd.f32 %v11551_v10, %v2014_v9 }
 0xe14   : > { %v2019_v13 = vsel %vm1321_vm3, %v2018_v12, -inf }
 0xe15   : > { %v2020_v4 = vrot.slane %v2019_v13, 4 }
 0xe17   : > { %v2021_v26 = vmax.f32 %v2019_v13, %v2020_v4 }
 0xe19   : > { %v2022_v54 = vrot.slane %v2021_v26, 2 }
 0xe1b   : > { %v2023_v47 = vmax.f32 %v2021_v26, %v2022_v54 }
 0xe1d   : > { %v2024_v19 = vrot.slane %v2023_v47, 1 }
 0xe1f   : > { %v2025_v1 = vmax.f32 %v2023_v47, %v2024_v19 }
 0xe21   : > { %v2026_v50 = vsub.f32 %v2018_v12, %v2025_v1 }
 0xe23   : > { %v2027_v53 = vmul.f32 1.442695, %v2026_v50  ;;  %v1932_v50 = vadd.f32 %v11513_v43, %v11265_v37 }
 0xe25   : > { %9887 = vpow2.f32 %v2027_v53 }
 0xe32   : > { %v9888_v55 = vpop.eup %9887 }
 0xe33   : > { %v2029_v7 = vsel %vm1321_vm3, %v9888_v55, 0.0 }
 0xe34   : > { %v2030_v59 = vrot.slane %v2029_v7, 4 }
 0xe36   : > { %v2031_v51 = vadd.f32 %v2030_v59, %v2029_v7  ;;  %v2178_v59 = vpop.permute.xlu0 %2177 }
 0xe38   : > { %v2032_v3 = vrot.slane %v2031_v51, 2 }
 0xe3a   : > { %v2033_v41 = vadd.f32 %v2032_v3, %v2031_v51 }
 0xe3c   : > { %v2034_v49 = vrot.slane %v2033_v41, 1 }
 0xe3e   : > { %v2035_v61 = vadd.f32 %v2034_v49, %v2033_v41 }
 0xe40   : > { %9889 = vrcp.f32 %v2035_v61 }
 0xe4d   : > { %v9890_v57 = vpop.eup %9889 }
 0xe4e   : > { %v2037_v62 = vmul.f32 %v9890_v57, %v9888_v55 }
 0xe50   : > { %2055 = vperm.xlu1 %9827, %v2037_v62  }
 0xe54   : > { %2049 = vrot.lane.b32.xlu1 %v2047_v17, %s10764_s26 }
 0xecb   : > { %v2056_v63 = vpop.permute.xlu1 %2055 }
 0xecf   : > { %v2050_v9 = vpop.permute.xlu1 %2049 }
 0xed0   : > { %v2052_v11 = vadd.f32 %v2050_v9, %v2042_v5 }
 0xed2   : > { %v2058_v12 = vmul.f32 %v2056_v63, %v2052_v11 }
 0xed4   : > { %v2059_v13 = vsel %vm891_vm0, %v2058_v12, 0.0 }
 0xed5   : > { %v2060_v4 = vrot.slane %v2059_v13, 4 }
 0xed7   : > { %v2061_v26 = vadd.f32 %v2060_v4, %v2059_v13 }
 0xed9   : > { %v2062_v54 = vrot.slane %v2061_v26, 2 }
 0xedb   : > { %v2063_v47 = vadd.f32 %v2062_v54, %v2061_v26 }
 0xedd   : > { %v2064_v19 = vrot.slane %v2063_v47, 1 }
 0xedf   : > { %v2065_v1 = vadd.f32 %v2064_v19, %v2063_v47 }
 0xee1   : > { %8693 = vmatmul.mubr.msk.f32.vlgmr.msra.gmra.mxu0 %vm891_vm0, %v2065_v1 }
 0xee2   : > { %9112 = vmatpush3.msra.mxu0 %v11314_v21  ;;  %9119 = vmatprep.mubr.msk.f32.mxu0 %vm10763_vm1, %v13308_v0 }
 0xee3   : > { %9113 = vmatprep.subr.mxu0 %v13308_v0 }
 0xee4   : > { %9114 = vmatpush3.msra.mxu0 %v11320_v22 }
 0xee5   : > { %9115 = vmatprep.subr.mxu0 %v13308_v0 }
 0xee6   : > { %9116 = vmatpush3.msra.mxu0 %v11326_v23 }
 0xee7   : > { %9117 = vmatprep.subr.mxu0 %v13308_v0 }
 0xee8   : > { %9118 = vmatpush3.msra.mxu0 %v11333_v24 }
 0xee9   : > { %2577 = vmatprep.subr.mxu0 %v11577_v6 }
 0xfa1   : > { %v2135_v21 = vpop.f32.mrf.mxu0 }
 0xfa2   : > { %v2136_v22 = vadd.f32 %v2135_v21, %v11259_v36 }
 0xfa3   : > { %v2137_v43 = vpop.f32.mrf.mxu0 }
 0xfa4   : > { %v2140_v53 = vadd.f32 %v2136_v22, %v1932_v50  ;;  %2148 = vrot.lane.b32.xlu1 %v2136_v22, %s10766_s20  ;;  %v2138_v49 = vadd.f32 %v2137_v43, %v11430_v14  ;;  %v11635_v43 = vld [vmem:[%s13366_s9 + $0x8] sm:$0xff] }
 0xfa6   : > { %v8694_v23 = vmul.f32 -1.442695, %v2140_v53  ;;  %v2169_v5 = vadd.f32 %v2138_v49, %v11518_v60 }
 0xfa8   : > { %9891 = vpow2.f32 %v8694_v23  ;;  %v8695_v9 = vmul.f32 -1.442695, %v2169_v5 }
 0xfb5   : > { %v9892_v55 = vpop.eup %9891 }
 0xfb6   : > { %v2144_v24 = vadd.f32 1.0, %v9892_v55 }
 0xfb8   : > { %9893 = vrcp.f32 %v2144_v24 }
 0xfc5   : > { %v9894_v7 = vpop.eup %9893 }
 0xfc6   : > { %v2180_v51 = vmul.f32 %v9894_v7, %v2178_v59  ;;  %v2158_v60 = vsub.f32 1.0, %v9894_v7  ;;  %v10776_v59 = vmov 4  }
 0xfc7   : > { %9828 = vset.pattern.permute.xlu0 %v10776_v59  ;;  %9829 = vset.pattern.permute.xlu1 %v10776_v59 }
 0xfc8   : > { %2182 = vrot.lane.b32.xlu0 %v2180_v51, %s10766_s20  ;;  %v11604_v51 = vld [vmem:[%s13366_s9 + $0x30] sm:$0xff] }
0x1016   : > { %v2149_v3 = vpop.permute.xlu1 %2148 }
0x1017   : > { %v2151_v41 = vmul.f32 %v9894_v7, %v2149_v3  ;;  %v11623_v3 = vld [vmem:[%s13366_s9 + $0x18] sm:$0xff] }
0x1019   : > { %2153 = vrot.lane.b32.xlu1 %v2151_v41, %s10766_s20  ;;  %v11629_v41 = vld [vmem:[%s13366_s9 + $0x10] sm:$0xff] }
0x103a   : > { %v2183_v61 = vpop.permute.xlu0 %2182 }
0x103b   : > { %v2185_v57 = vadd.f32 %v2183_v61, %v2138_v49  ;;  %v13307_v49 = vrot.slane %v11230_v18, 5  ;;  %v11642_v61 = vld [vmem:[%s13366_s9] sm:$0xff] }
0x103d   : > { %9895 = vtanh.f32 %v2185_v57  ;;  %v11658_v57 = vpop.f32.mrf.mxu1 }
0x104a   : > { %v9896_v62 = vpop.eup %9895 }
0x104b   : > { %2189 = vrot.lane.b32.xlu0 %v9896_v62, %s10764_s26 }
0x104f   : > { %2164 = vrot.lane.b32.xlu0 %v2065_v1, %s13302_s18 }
0x108b   : > { %v2154_v17 = vpop.permute.xlu1 %2153 }
0x108c   : > { %v2156_v63 = vadd.f32 %v2154_v17, %v1932_v50 }
0x108e   : > { %9897 = vtanh.f32 %v2156_v63 }
0x108f   : > { %9899 = vpow2.f32 %v8695_v9 }
0x109b   : > { %v9898_v11 = vpop.eup %9897 }
0x109c   : > { %2160 = vrot.lane.b32.xlu1 %v9898_v11, %s10764_s26  ;;  %v9900_v12 = vpop.eup %9899 }
0x109d   : > { %v2173_v13 = vadd.f32 1.0, %v9900_v12 }
0x109f   : > { %9901 = vrcp.f32 %v2173_v13 }
0x10ac   : > { %v9902_v4 = vpop.eup %9901 }
0x10ad   : > { %v2187_v26 = vsub.f32 1.0, %v9902_v4  ;;  %v2194_v47 = vmul.f32 %v9902_v4, %v1862_v48 }
0x10bd   : > { %v2190_v54 = vpop.permute.xlu0 %2189 }
0x10be   : > { %v2192_v19 = vmul.f32 %v2190_v54, %v2187_v26 }
0x10c0   : > { %v2195_v1 = vadd.f32 %v2194_v47, %v2192_v19 }
0x10c1   : > { %v2165_v50 = vpop.permute.xlu0 %2164 }
0x10c2   : > { %2197 = vrot.lane.b32.xlu1 %v2195_v1, %s13302_s18  ;;  %v2167_v53 = vmul.f32 %v9894_v7, %v2165_v50  ;;  %s8396_s18 = scalar_lea.sflag [#allocation6], %s11121_s11 }
0x10c6   : > { %2359 = vrot.lane.b32.xlu1 %v11291_v8, %s10775_s0  ;;  %v11611_v8 = vld [vmem:[%s13366_s9 + $0x28] sm:$0xff]  ;;  %s878_s0 = scalar_lea.vmem %s13383_s6, %s11279_s10  ;;  %s13384_s10 = sld [smem:[#allocation54_spill]] }
0x10ca   : > { %2383 = vperm.xlu1 %9829, %v11303_v15   ;;  %v11617_v15 = vld [vmem:[%s13366_s9 + $0x20] sm:$0xff] }
0x10ce   : > { %9830 = vset.pattern.permute.xlu1 %v13305_v42 }
0x110e   : > { %v2161_v21 = vpop.permute.xlu1 %2160 }
0x110f   : > { %v2163_v22 = vmul.f32 %v2161_v21, %v2158_v60 }
0x1111   : > { %v2168_v23 = vadd.f32 %v2167_v53, %v2163_v22 }
0x1134   : > { %v2198_v55 = vpop.permute.xlu1 %2197 }
0x1135   : > { %v2200_v24 = vadd.f32 %v2198_v55, %v2168_v23 }
0x1137   : > { %2202 = vrot.lane.b32.xlu0 %v2200_v24, %s10764_s26 }
0x113b   : > { %2388 = vperm.xlu0 %9828, %v11343_v38  }
0x11a9   : > { %v2203_v48 = vpop.permute.xlu0 %2202 }
0x11aa   : > { %2205 = vst.msk [vmem:[#allocation2 + $0x3] sm:$0x1] %vm1161_vm2, %v2203_v48 }
0x11b1   : > { %v2280_v7 = vld [vmem:[#allocation2] sm:$0xff] }
0x11b2   : > { %9120 = vmatmul.mubr.msk.f32.vlgmr.msra.gmra.mxu0 %vm891_vm0, %v2280_v7 }
0x11b3   : > { %2578 = vmatpush1.msra.mxu0 %v11604_v51  ;;  %2617 = vmatprep.mubr.f32.mxu0 %v13308_v0 }
0x11b4   : > { %2579 = vmatprep.subr.mxu0 %v11611_v8 }
0x11b5   : > { %2580 = vmatpush1.msra.mxu0 %v11617_v15 }
0x11b6   : > { %2581 = vmatprep.subr.mxu0 %v11623_v3  ;;  %v11663_v62 = vpop.permute.xlu0 %2388 }
0x11b7   : > { %2582 = vmatpush1.msra.mxu0 %v11629_v41 }
0x11b8   : > { %2583 = vmatprep.subr.mxu0 %v11635_v43 }
0x11b9   : > { %2584 = vmatpush1.msra.mxu0 %v11642_v61 }
0x11ba   : > { %8701 = vmatmul.mubr.msk.f32.vlgmr.msra.gmra.mxu0 %vm891_vm0, %v13307_v49  ;;  %2781 = vmatprep.subr.mxu0 %v11373_v27  ;;  %v2277_v27 = vpop.f32.mrf.mxu1 }
0x11bb   : > { %2782 = vmatpush1.msra.mxu0 %v11376_v29  ;;  %2821 = vmatprep.mubr.f32.mxu0 %v13308_v0  ;;  %v11661_v29 = vadd.f32 %v2277_v27, %v11248_v28 }
0x11bc   : > { %2783 = vmatprep.subr.mxu0 %v11380_v31 }
0x11bd   : > { %2784 = vmatpush1.msra.mxu0 %v11384_v32  ;;  %v2357_v31 = vrot.slane %v11661_v29, %v11254_v34 }
0x11be   : > { %2785 = vmatprep.subr.mxu0 %v11388_v33 }
0x11bf   : > { %2786 = vmatpush1.msra.mxu0 %v11392_v35 }
0x11c0   : > { %2787 = vmatprep.subr.mxu0 %v11396_v39  ;;  %v11668_v39 = vpop.permute.xlu1 %2359 }
0x11c1   : > { %2788 = vmatpush1.msra.mxu0 %v11398_v40  ;;  %13370 = vst [vmem:[#allocation37_spill] sm:$0xff] %v11668_v39 }
0x11c2   : > { %9133 = vmatprep.subr.mxu0 %v13308_v0 }
0x11c4   : > { %v11676_v24 = vpop.permute.xlu1 %2383 }
0x11c5   : > { %13371 = vst [vmem:[#allocation38_spill] sm:$0xff] %v11676_v24 }
0x1272   : > { %v2350_v32 = vpop.f32.mrf.mxu0 }
0x1273   : > { %v2358_v33 = vadd.f32 %v2357_v31, %v2350_v32  ;;  %v2391_v35 = vmul.f32 %v11663_v62, %v2350_v32  ;;  %v2386_v48 = vmul.f32 %v11676_v24, %v2350_v32  ;;  %v11693_v32 = vld [vmem:[%s13369_s28 + $0x10] sm:$0xff] }
0x1274   : > { %v9121_v40 = vpop.f32.mrf.mxu0 }
0x1275   : > { %v2362_v17 = vadd.f32 %v11668_v39, %v2358_v33  ;;  %2393 = vrot.lane.b32.xlu0 %v2391_v35, %s10764_s26 }
0x1277   : > { %v2363_v63 = vsel %vm1321_vm3, %v2362_v17, -inf }
0x1278   : > { %v2364_v5 = vrot.slane %v2363_v63, 4 }
0x127a   : > { %v2365_v9 = vmax.f32 %v2363_v63, %v2364_v5 }
0x127c   : > { %v2366_v11 = vrot.slane %v2365_v9, 2 }
0x127e   : > { %v2367_v12 = vmax.f32 %v2365_v9, %v2366_v11  ;;  %v11684_v11 = vld [vmem:[%s13369_s28 + $0x18] sm:$0xff] }
0x1280   : > { %v2368_v13 = vrot.slane %v2367_v12, 1 }
0x1282   : > { %v2369_v4 = vmax.f32 %v2367_v12, %v2368_v13  ;;  %v11700_v12 = vld [vmem:[%s13369_s28 + $0x8] sm:$0xff]  ;;  %v11707_v13 = vld [vmem:[%s13369_s28] sm:$0xff] }
0x1284   : > { %v2370_v26 = vsub.f32 %v2362_v17, %v2369_v4 }
0x1286   : > { %v2371_v54 = vmul.f32 1.442695, %v2370_v26  ;;  %v2276_v26 = vadd.f32 %v11658_v57, %v11265_v37 }
0x1288   : > { %9903 = vpow2.f32 %v2371_v54 }
0x1295   : > { %v9904_v47 = vpop.eup %9903 }
0x1296   : > { %v2373_v19 = vsel %vm1321_vm3, %v9904_v47, 0.0 }
0x1297   : > { %v2374_v1 = vrot.slane %v2373_v19, 4 }
0x1299   : > { %v2375_v21 = vadd.f32 %v2374_v1, %v2373_v19 }
0x129b   : > { %v2376_v60 = vrot.slane %v2375_v21, 2 }
0x129d   : > { %v2377_v50 = vadd.f32 %v2376_v60, %v2375_v21 }
0x129f   : > { %v2378_v22 = vrot.slane %v2377_v50, 1 }
0x12a1   : > { %v2379_v53 = vadd.f32 %v2378_v22, %v2377_v50 }
0x12a3   : > { %9905 = vrcp.f32 %v2379_v53 }
0x12b0   : > { %v9906_v23 = vpop.eup %9905 }
0x12b1   : > { %v2381_v55 = vmul.f32 %v9906_v23, %v9904_v47 }
0x12b3   : > { %2399 = vperm.xlu1 %9830, %v2381_v55  }
0x12b7   : > { %2521 = vrot.lane.b32.xlu1 %v11661_v29, %s10766_s20 }
0x12e7   : > { %v2394_v59 = vpop.permute.xlu0 %2393 }
0x12e8   : > { %v2396_v7 = vadd.f32 %v2394_v59, %v2386_v48 }
0x132e   : > { %v2400_v27 = vpop.permute.xlu1 %2399 }
0x132f   : > { %v2402_v31 = vmul.f32 %v2400_v27, %v2396_v7  ;;  %v10777_v7 = vmov 5  }
0x1330   : > { %9832 = vset.pattern.permute.xlu0 %v10777_v7  ;;  %9831 = vset.pattern.permute.xlu1 %v10777_v7 }
0x1331   : > { %v2403_v33 = vsel %vm891_vm0, %v2402_v31, 0.0 }
0x1332   : > { %v2404_v35 = vrot.slane %v2403_v33, 4  ;;  %v2522_v50 = vpop.permute.xlu1 %2521 }
0x1334   : > { %v2405_v40 = vadd.f32 %v2404_v35, %v2403_v33 }
0x1336   : > { %v2406_v17 = vrot.slane %v2405_v40, 2 }
0x1338   : > { %v2407_v63 = vadd.f32 %v2406_v17, %v2405_v40 }
0x133a   : > { %v2408_v5 = vrot.slane %v2407_v63, 1 }
0x133c   : > { %v2409_v9 = vadd.f32 %v2408_v5, %v2407_v63 }
0x133e   : > { %8698 = vmatmul.mubr.msk.f32.vlgmr.msra.gmra.mxu1 %vm891_vm0, %v2409_v9 }
0x133f   : > { %9123 = vmatpush3.msra.mxu1 %v11684_v11  ;;  %9130 = vmatprep.mubr.msk.f32.mxu1 %vm10763_vm1, %v13308_v0 }
0x1340   : > { %9124 = vmatprep.subr.mxu1 %v13308_v0 }
0x1341   : > { %9125 = vmatpush3.msra.mxu1 %v11693_v32 }
0x1342   : > { %9126 = vmatprep.subr.mxu1 %v13308_v0 }
0x1343   : > { %9127 = vmatpush3.msra.mxu1 %v11700_v12 }
0x1344   : > { %9128 = vmatprep.subr.mxu1 %v13308_v0 }
0x1345   : > { %9129 = vmatpush3.msra.mxu1 %v11707_v13 }
0x1346   : > { %2921 = vmatprep.subr.mxu1 %v11577_v6 }
0x13fe   : > { %v2479_v4 = vpop.f32.mrf.mxu1 }
0x13ff   : > { %v2480_v54 = vadd.f32 %v2479_v4, %v11259_v36 }
0x1400   : > { %v2481_v57 = vpop.f32.mrf.mxu1 }
0x1401   : > { %v2484_v47 = vadd.f32 %v2480_v54, %v2276_v26  ;;  %2492 = vrot.lane.b32.xlu0 %v2480_v54, %s10766_s20  ;;  %v2482_v55 = vadd.f32 %v2481_v57, %v11430_v14 }
0x1403   : > { %v8699_v19 = vmul.f32 -1.442695, %v2484_v47  ;;  %v2513_v35 = vadd.f32 %v2482_v55, %v11661_v29  ;;  %v11725_v29 = vpop.f32.mrf.mxu0 }
0x1405   : > { %9907 = vpow2.f32 %v8699_v19  ;;  %v8700_v40 = vmul.f32 -1.442695, %v2513_v35  ;;  %v11760_v35 = vld [vmem:[#allocation12 + $0x30] sm:$0xff] }
0x1412   : > { %v9908_v1 = vpop.eup %9907 }
0x1413   : > { %v2488_v21 = vadd.f32 1.0, %v9908_v1  ;;  %v11728_v1 = vld [vmem:[%s11287_s30] sm:$0xff]  ;;  %s10779_s30 = smov 58  }
0x1415   : > { %9909 = vrcp.f32 %v2488_v21  ;;  %v2621_v21 = vpop.f32.mrf.mxu0 }
0x1422   : > { %v9910_v60 = vpop.eup %9909 }
0x1423   : > { %v2524_v22 = vmul.f32 %v9910_v60, %v2522_v50  ;;  %v11732_v50 = vld [vmem:[%s11297_s13] sm:$0xff]  ;;  %s10782_s13 = smov 57  }
0x1425   : > { %2526 = vrot.lane.b32.xlu1 %v2524_v22, %s10766_s20  ;;  %v11736_v22 = vadd.f32 %v2621_v21, %v11248_v28 }
0x1473   : > { %v2493_v53 = vpop.permute.xlu0 %2492 }
0x1474   : > { %v2495_v23 = vmul.f32 %v9910_v60, %v2493_v53  ;;  %v2502_v53 = vsub.f32 1.0, %v9910_v60 }
0x1476   : > { %2497 = vrot.lane.b32.xlu0 %v2495_v23, %s10766_s20 }
0x1497   : > { %v2527_v59 = vpop.permute.xlu1 %2526 }
0x1498   : > { %v2529_v48 = vadd.f32 %v2527_v59, %v2482_v55 }
0x149a   : > { %9911 = vtanh.f32 %v2529_v48 }
0x14a7   : > { %v9912_v27 = vpop.eup %9911 }
0x14a8   : > { %2533 = vrot.lane.b32.xlu1 %v9912_v27, %s10764_s26 }
0x14ac   : > { %2508 = vrot.lane.b32.xlu1 %v2409_v9, %s13372_s5 }
0x14e8   : > { %v2498_v31 = vpop.permute.xlu0 %2497 }
0x14e9   : > { %v2500_v33 = vadd.f32 %v2498_v31, %v2276_v26 }
0x14eb   : > { %9913 = vtanh.f32 %v2500_v33  ;;  %v11757_v33 = vld [vmem:[#allocation12 + $0x38] sm:$0xff] }
0x14ec   : > { %9915 = vpow2.f32 %v8700_v40  ;;  %v11764_v40 = vld [vmem:[#allocation12 + $0x28] sm:$0xff] }
0x14f8   : > { %v9914_v17 = vpop.eup %9913 }
0x14f9   : > { %2504 = vrot.lane.b32.xlu0 %v9914_v17, %s10764_s26  ;;  %v9916_v63 = vpop.eup %9915  ;;  %v11767_v17 = vld [vmem:[#allocation12 + $0x20] sm:$0xff] }
0x14fa   : > { %v2517_v5 = vadd.f32 1.0, %v9916_v63  ;;  %v11770_v63 = vld [vmem:[#allocation12 + $0x18] sm:$0xff] }
0x14fc   : > { %9917 = vrcp.f32 %v2517_v5  ;;  %v11773_v5 = vld [vmem:[#allocation12 + $0x10] sm:$0xff] }
0x1509   : > { %v9918_v4 = vpop.eup %9917 }
0x150a   : > { %v2531_v54 = vsub.f32 1.0, %v9918_v4  ;;  %v2538_v9 = vmul.f32 %v9918_v4, %v2206_v20  ;;  %v11776_v4 = vld [vmem:[#allocation12 + $0x8] sm:$0xff] }
0x151a   : > { %v2534_v47 = vpop.permute.xlu1 %2533 }
0x151b   : > { %v2536_v26 = vmul.f32 %v2534_v47, %v2531_v54  ;;  %v11779_v54 = vld [vmem:[#allocation12] sm:$0xff]  ;;  %v2701_v47 = vrot.slane %v11736_v22, %v11254_v34 }
0x151d   : > { %v2539_v19 = vadd.f32 %v2538_v9, %v2536_v26 }
0x151e   : > { %v2509_v23 = vpop.permute.xlu1 %2508 }
0x151f   : > { %2541 = vrot.lane.b32.xlu0 %v2539_v19, %s13372_s5  ;;  %v2511_v55 = vmul.f32 %v9910_v60, %v2509_v23  ;;  %v13304_v60 = vrot.slane %v11230_v18, 6 }
0x1523   : > { %2703 = vrot.lane.b32.xlu0 %v11728_v1, %s10778_s7 }
0x1527   : > { %2727 = vperm.xlu0 %9832, %v11732_v50  }
0x152b   : > { %2865 = vrot.lane.b32.xlu0 %v11736_v22, %s10766_s20 }
0x156b   : > { %v2505_v20 = vpop.permute.xlu0 %2504 }
0x156c   : > { %v2507_v57 = vmul.f32 %v2505_v20, %v2502_v53 }
0x156e   : > { %v2512_v59 = vadd.f32 %v2511_v55, %v2507_v57 }
0x1591   : > { %v2542_v48 = vpop.permute.xlu0 %2541 }
0x1592   : > { %v2544_v7 = vadd.f32 %v2542_v48, %v2512_v59 }
0x1594   : > { %2546 = vrot.lane.b32.xlu1 %v2544_v7, %s10764_s26 }
0x1595   : > { %v11785_v19 = vpop.permute.xlu0 %2703 }
0x1596   : > { %13373 = vst [vmem:[#allocation39_spill] sm:$0xff] %v11785_v19 }
0x1598   : > { %2732 = vperm.xlu1 %9831, %v11343_v38  }
0x159c   : > { %9833 = vset.pattern.permute.xlu1 %v13305_v42 }
0x1606   : > { %v2547_v27 = vpop.permute.xlu1 %2546 }
0x1607   : > { %2549 = vst.msk [vmem:[#allocation2 + $0x4] sm:$0x1] %vm1161_vm2, %v2547_v27 }
0x160e   : > { %v2624_v31 = vld [vmem:[#allocation2] sm:$0xff] }
0x160f   : > { %9131 = vmatmul.mubr.msk.f32.vlgmr.msra.gmra.mxu1 %vm891_vm0, %v2624_v31 }
0x1610   : > { %2922 = vmatpush1.msra.mxu1 %v11604_v51  ;;  %2961 = vmatprep.mubr.f32.mxu1 %v13308_v0 }
0x1611   : > { %2923 = vmatprep.subr.mxu1 %v11611_v8 }
0x1612   : > { %2924 = vmatpush1.msra.mxu1 %v11617_v15 }
0x1613   : > { %2925 = vmatprep.subr.mxu1 %v11623_v3 }
0x1614   : > { %2926 = vmatpush1.msra.mxu1 %v11629_v41 }
0x1615   : > { %2927 = vmatprep.subr.mxu1 %v11635_v43 }
0x1616   : > { %2928 = vmatpush1.msra.mxu1 %v11642_v61 }
0x1617   : > { %8706 = vmatmul.mubr.msk.f32.vlgmr.msra.gmra.mxu1 %vm891_vm0, %v13304_v60  ;;  %3125 = vmatprep.subr.mxu1 %v11757_v33 }
0x1618   : > { %3126 = vmatpush1.msra.mxu1 %v11760_v35  ;;  %3165 = vmatprep.mubr.f32.mxu1 %v13308_v0 }
0x1619   : > { %3127 = vmatprep.subr.mxu1 %v11764_v40 }
0x161a   : > { %3128 = vmatpush1.msra.mxu1 %v11767_v17 }
0x161b   : > { %3129 = vmatprep.subr.mxu1 %v11770_v63 }
0x161c   : > { %3130 = vmatpush1.msra.mxu1 %v11773_v5 }
0x161d   : > { %3131 = vmatprep.subr.mxu1 %v11776_v4 }
0x161e   : > { %3132 = vmatpush1.msra.mxu1 %v11779_v54 }
0x161f   : > { %9144 = vmatprep.subr.mxu1 %v13308_v0 }
0x16cf   : > { %v2694_v9 = vpop.f32.mrf.mxu1 }
0x16d0   : > { %v2702_v26 = vadd.f32 %v2701_v47, %v2694_v9 }
0x16d1   : > { %v9132_v21 = vpop.f32.mrf.mxu1 }
0x16d2   : > { %v2706_v20 = vadd.f32 %v11785_v19, %v2702_v26 }
0x16d4   : > { %v2707_v53 = vsel %vm1321_vm3, %v2706_v20, -inf }
0x16d5   : > { %v2708_v23 = vrot.slane %v2707_v53, 4 }
0x16d7   : > { %v2709_v57 = vmax.f32 %v2707_v53, %v2708_v23  ;;  %v11790_v53 = vpop.permute.xlu1 %2732 }
0x16d8   : > { %v2735_v23 = vmul.f32 %v11790_v53, %v2694_v9 }
0x16d9   : > { %v2710_v55 = vrot.slane %v2709_v57, 2 }
0x16db   : > { %v2711_v59 = vmax.f32 %v2709_v57, %v2710_v55  ;;  %v11794_v57 = vpop.permute.xlu0 %2727 }
0x16dc   : > { %v2730_v55 = vmul.f32 %v11794_v57, %v2694_v9 }
0x16dd   : > { %v2712_v48 = vrot.slane %v2711_v59, 1 }
0x16df   : > { %v2713_v7 = vmax.f32 %v2711_v59, %v2712_v48 }
0x16e1   : > { %v2714_v27 = vsub.f32 %v2706_v20, %v2713_v7 }
0x16e3   : > { %v2715_v31 = vmul.f32 1.442695, %v2714_v27  ;;  %v13374_v27 = vmov 0.0  }
0x16e5   : > { %9919 = vpow2.f32 %v2715_v31  ;;  %v2620_v31 = vadd.f32 %v11725_v29, %v11265_v37 }
0x16f2   : > { %v9920_v60 = vpop.eup %9919 }
0x16f3   : > { %v2717_v42 = vsel %vm1321_vm3, %v9920_v60, 0.0 }
0x16f4   : > { %v2718_v47 = vrot.slane %v2717_v42, 4 }
0x16f6   : > { %v2719_v49 = vadd.f32 %v2718_v47, %v2717_v42 }
0x16f8   : > { %v2720_v0 = vrot.slane %v2719_v49, 2 }
0x16fa   : > { %v2721_v21 = vadd.f32 %v2720_v0, %v2719_v49 }
0x16fc   : > { %v2722_v24 = vrot.slane %v2721_v21, 1 }
0x16fe   : > { %v2723_v26 = vadd.f32 %v2722_v24, %v2721_v21 }
0x1700   : > { %9921 = vrcp.f32 %v2723_v26 }
0x170d   : > { %v9922_v19 = vpop.eup %9921 }
0x170e   : > { %v2725_v39 = vmul.f32 %v9922_v19, %v9920_v60 }
0x1710   : > { %2743 = vperm.xlu1 %9833, %v2725_v39  }
0x1714   : > { %2737 = vrot.lane.b32.xlu1 %v2735_v23, %s10764_s26 }
0x178b   : > { %v2744_v20 = vpop.permute.xlu1 %2743 }
0x178f   : > { %v2738_v42 = vpop.permute.xlu1 %2737 }
0x1790   : > { %v2740_v59 = vadd.f32 %v2738_v42, %v2730_v55  ;;  %v2866_v42 = vpop.permute.xlu0 %2865 }
0x1792   : > { %v2746_v0 = vmul.f32 %v2744_v20, %v2740_v59 }
0x1794   : > { %v2747_v49 = vsel %vm891_vm0, %v2746_v0, 0.0 }
0x1795   : > { %v2748_v24 = vrot.slane %v2747_v49, 4 }
0x1797   : > { %v2749_v48 = vadd.f32 %v2748_v24, %v2747_v49 }
0x1799   : > { %v2750_v60 = vrot.slane %v2749_v48, 2 }
0x179b   : > { %v2751_v19 = vadd.f32 %v2750_v60, %v2749_v48 }
0x179d   : > { %v2752_v7 = vrot.slane %v2751_v19, 1 }
0x179f   : > { %v2753_v39 = vadd.f32 %v2752_v7, %v2751_v19 }
0x17a1   : > { %8703 = vmatmul.mubr.msk.f32.vlgmr.msra.gmra.mxu0 %vm891_vm0, %v2753_v39 }
0x17a2   : > { %9134 = vmatpush3.msra.mxu0 %v11684_v11  ;;  %9141 = vmatprep.mubr.msk.f32.mxu0 %vm10763_vm1, %v13374_v27 }
0x17a3   : > { %9135 = vmatprep.subr.mxu0 %v13374_v27 }
0x17a4   : > { %9136 = vmatpush3.msra.mxu0 %v11693_v32 }
0x17a5   : > { %9137 = vmatprep.subr.mxu0 %v13374_v27 }
0x17a6   : > { %9138 = vmatpush3.msra.mxu0 %v11700_v12 }
0x17a7   : > { %9139 = vmatprep.subr.mxu0 %v13374_v27 }
0x17a8   : > { %9140 = vmatpush3.msra.mxu0 %v11707_v13 }
0x17a9   : > { %3265 = vmatprep.subr.mxu0 %v11577_v6 }
0x1861   : > { %v2823_v9 = vpop.f32.mrf.mxu0 }
0x1862   : > { %v2824_v47 = vadd.f32 %v2823_v9, %v11259_v36 }
0x1863   : > { %v2825_v29 = vpop.f32.mrf.mxu0 }
0x1864   : > { %v2828_v21 = vadd.f32 %v2824_v47, %v2620_v31  ;;  %2836 = vrot.lane.b32.xlu1 %v2824_v47, %s10766_s20  ;;  %v2826_v49 = vadd.f32 %v2825_v29, %v11430_v14 }
0x1866   : > { %v8704_v26 = vmul.f32 -1.442695, %v2828_v21  ;;  %v2857_v9 = vadd.f32 %v2826_v49, %v11736_v22 }
0x1868   : > { %9923 = vpow2.f32 %v8704_v26  ;;  %v8705_v47 = vmul.f32 -1.442695, %v2857_v9  ;;  %v10780_v9 = vmov 6  }
0x1869   : > { %9834 = vset.pattern.permute.xlu0 %v10780_v9  ;;  %9835 = vset.pattern.permute.xlu1 %v10780_v9 }
0x1875   : > { %v9924_v23 = vpop.eup %9923 }
0x1876   : > { %v2832_v20 = vadd.f32 1.0, %v9924_v23 }
0x1878   : > { %9925 = vrcp.f32 %v2832_v20 }
0x1885   : > { %v9926_v55 = vpop.eup %9925 }
0x1886   : > { %v2868_v59 = vmul.f32 %v9926_v55, %v2866_v42  ;;  %v2846_v22 = vsub.f32 1.0, %v9926_v55 }
0x1888   : > { %2870 = vrot.lane.b32.xlu0 %v2868_v59, %s10766_s20 }
0x18d6   : > { %v2837_v6 = vpop.permute.xlu1 %2836 }
0x18d7   : > { %v2839_v0 = vmul.f32 %v9926_v55, %v2837_v6  ;;  %v13375_v6 = vrot.slane %v11230_v18, 5 }
0x18d9   : > { %2841 = vrot.lane.b32.xlu1 %v2839_v0, %s10766_s20 }
0x18fa   : > { %v2871_v24 = vpop.permute.xlu0 %2870 }
0x18fb   : > { %v2873_v48 = vadd.f32 %v2871_v24, %v2826_v49 }
0x18fd   : > { %9927 = vtanh.f32 %v2873_v48 }
0x190a   : > { %v9928_v60 = vpop.eup %9927 }
0x190b   : > { %2877 = vrot.lane.b32.xlu0 %v9928_v60, %s10764_s26 }
0x190f   : > { %2852 = vrot.lane.b32.xlu0 %v2753_v39, %s13372_s5 }
0x194b   : > { %v2842_v19 = vpop.permute.xlu1 %2841 }
0x194c   : > { %v2844_v7 = vadd.f32 %v2842_v19, %v2620_v31 }
0x194e   : > { %9929 = vtanh.f32 %v2844_v7 }
0x194f   : > { %9931 = vpow2.f32 %v8705_v47  ;;  %v13376_v47 = vmov 64  }
0x195b   : > { %v9930_v21 = vpop.eup %9929 }
0x195c   : > { %2848 = vrot.lane.b32.xlu1 %v9930_v21, %s10764_s26  ;;  %v9932_v26 = vpop.eup %9931 }
0x195d   : > { %v2861_v23 = vadd.f32 1.0, %v9932_v26  ;;  %v3238_v26 = vrot.slane %v11230_v18, 7 }
0x195f   : > { %9933 = vrcp.f32 %v2861_v23 }
0x196c   : > { %v9934_v20 = vpop.eup %9933 }
0x196d   : > { %v2875_v42 = vsub.f32 1.0, %v9934_v20  ;;  %v2882_v0 = vmul.f32 %v9934_v20, %v13375_v6 }
0x197d   : > { %v2878_v59 = vpop.permute.xlu0 %2877 }
0x197e   : > { %v2880_v39 = vmul.f32 %v2878_v59, %v2875_v42 }
0x1980   : > { %v2883_v29 = vadd.f32 %v2882_v0, %v2880_v39 }
0x1981   : > { %v2853_v49 = vpop.permute.xlu0 %2852 }
0x1982   : > { %2885 = vrot.lane.b32.xlu1 %v2883_v29, %s13372_s5  ;;  %v2855_v48 = vmul.f32 %v9926_v55, %v2853_v49 }
0x1986   : > { %3047 = vrot.lane.b32.xlu1 %v11728_v1, %s10779_s30  ;;  %s10651_s30 = sshll.u32 %s10784_s3, 4  ;;  %s10652_s30 = int_to_ptr.vmem [resolvable:$false] %s10651_s30 }
0x198a   : > { %3071 = vperm.xlu1 %9835, %v11732_v50  }
0x198e   : > { %9836 = vset.pattern.permute.xlu1 %v13376_v47 }
0x19ce   : > { %v2849_v31 = vpop.permute.xlu1 %2848 }
0x19cf   : > { %v2851_v24 = vmul.f32 %v2849_v31, %v2846_v22 }
0x19d1   : > { %v2856_v60 = vadd.f32 %v2855_v48, %v2851_v24 }
0x19f4   : > { %v2886_v19 = vpop.permute.xlu1 %2885 }
0x19f5   : > { %v2888_v7 = vadd.f32 %v2886_v19, %v2856_v60 }
0x19f7   : > { %2890 = vrot.lane.b32.xlu0 %v2888_v7, %s10764_s26 }
0x19fb   : > { %3076 = vperm.xlu0 %9834, %v11343_v38  }
0x1a69   : > { %v2891_v21 = vpop.permute.xlu0 %2890 }
0x1a6a   : > { %2893 = vst.msk [vmem:[#allocation2 + $0x5] sm:$0x1] %vm1161_vm2, %v2891_v21 }
0x1a71   : > { %v2968_v55 = vld [vmem:[#allocation2] sm:$0xff] }
0x1a72   : > { %9142 = vmatmul.mubr.msk.f32.vlgmr.msra.gmra.mxu0 %vm891_vm0, %v2968_v55 }
0x1a73   : > { %3266 = vmatpush1.msra.mxu0 %v11604_v51  ;;  %3305 = vmatprep.mubr.f32.mxu0 %v13374_v27  ;;  %v2963_v51 = vpop.f32.mrf.mxu1 }
0x1a74   : > { %3267 = vmatprep.subr.mxu0 %v11611_v8 }
0x1a75   : > { %3268 = vmatpush1.msra.mxu0 %v11617_v15  ;;  %v2965_v8 = vpop.f32.mrf.mxu1 }
0x1a76   : > { %3269 = vmatprep.subr.mxu0 %v11623_v3  ;;  %v11852_v15 = vadd.f32 %v2965_v8, %v11248_v28  ;;  %v11854_v3 = vpop.permute.xlu0 %3076 }
0x1a77   : > { %3270 = vmatpush1.msra.mxu0 %v11629_v41 }
0x1a78   : > { %3271 = vmatprep.subr.mxu0 %v11635_v43  ;;  %v3045_v41 = vrot.slane %v11852_v15, %v11254_v34 }
0x1a79   : > { %3272 = vmatpush1.msra.mxu0 %v11642_v61 }
0x1a7a   : > { %8711 = vmatmul.mubr.msk.f32.vlgmr.msra.gmra.mxu0 %vm891_vm0, %v3238_v26  ;;  %3469 = vmatprep.subr.mxu0 %v11757_v33 }
0x1a7b   : > { %3470 = vmatpush1.msra.mxu0 %v11760_v35  ;;  %3509 = vmatprep.mubr.f32.mxu0 %v13374_v27  ;;  %v11859_v35 = vpop.permute.xlu1 %3047 }
0x1a7c   : > { %3471 = vmatprep.subr.mxu0 %v11764_v40 }
0x1a7d   : > { %3472 = vmatpush1.msra.mxu0 %v11767_v17 }
0x1a7e   : > { %3473 = vmatprep.subr.mxu0 %v11770_v63 }
0x1a7f   : > { %3474 = vmatpush1.msra.mxu0 %v11773_v5  ;;  %v11867_v7 = vpop.permute.xlu1 %3071 }
0x1a80   : > { %3475 = vmatprep.subr.mxu0 %v11776_v4 }
0x1a81   : > { %3476 = vmatpush1.msra.mxu0 %v11779_v54 }
0x1b32   : > { %v3038_v43 = vpop.f32.mrf.mxu0 }
0x1b33   : > { %v3046_v61 = vadd.f32 %v3045_v41, %v3038_v43  ;;  %v3079_v33 = vmul.f32 %v11854_v3, %v3038_v43  ;;  %v3074_v21 = vmul.f32 %v11867_v7, %v3038_v43 }
0x1b34   : > { %v9143_v40 = vpop.f32.mrf.mxu0 }
0x1b35   : > { %v3050_v17 = vadd.f32 %v11859_v35, %v3046_v61  ;;  %3081 = vrot.lane.b32.xlu0 %v3079_v33, %s10764_s26 }
0x1b37   : > { %v3051_v63 = vsel %vm1321_vm3, %v3050_v17, -inf }
0x1b38   : > { %v3052_v5 = vrot.slane %v3051_v63, 4 }
0x1b3a   : > { %v3053_v4 = vmax.f32 %v3051_v63, %v3052_v5 }
0x1b3c   : > { %v3054_v54 = vrot.slane %v3053_v4, 2 }
0x1b3e   : > { %v3055_v23 = vmax.f32 %v3053_v4, %v3054_v54  ;;  %v2964_v54 = vadd.f32 %v2963_v51, %v11265_v37 }
0x1b40   : > { %v3056_v20 = vrot.slane %v3055_v23, 1 }
0x1b42   : > { %v3057_v42 = vmax.f32 %v3055_v23, %v3056_v20 }
0x1b44   : > { %v3058_v59 = vsub.f32 %v3050_v17, %v3057_v42 }
0x1b46   : > { %v3059_v6 = vmul.f32 1.442695, %v3058_v59 }
0x1b48   : > { %9935 = vpow2.f32 %v3059_v6 }
0x1b55   : > { %v9936_v0 = vpop.eup %9935 }
0x1b56   : > { %v3061_v39 = vsel %vm1321_vm3, %v9936_v0, 0.0 }
0x1b57   : > { %v3062_v29 = vrot.slane %v3061_v39, 4 }
0x1b59   : > { %v3063_v31 = vadd.f32 %v3062_v29, %v3061_v39 }
0x1b5b   : > { %v3064_v22 = vrot.slane %v3063_v31, 2 }
0x1b5d   : > { %v3065_v49 = vadd.f32 %v3064_v22, %v3063_v31  ;;  %v10781_v22 = vmov 7  }
0x1b5e   : > { %9838 = vset.pattern.permute.xlu0 %v10781_v22 }
0x1b5f   : > { %v3066_v24 = vrot.slane %v3065_v49, 1 }
0x1b61   : > { %v3067_v48 = vadd.f32 %v3066_v24, %v3065_v49 }
0x1b63   : > { %9937 = vrcp.f32 %v3067_v48 }
0x1b70   : > { %v9938_v60 = vpop.eup %9937 }
0x1b71   : > { %v3069_v19 = vmul.f32 %v9938_v60, %v9936_v0 }
0x1b73   : > { %3087 = vperm.xlu1 %9836, %v3069_v19  }
0x1b77   : > { %3209 = vrot.lane.b32.xlu1 %v11852_v15, %s10766_s20 }
0x1b78   : > { %9837 = vset.pattern.permute.xlu1 %v10781_v22 }
0x1ba7   : > { %v3082_v9 = vpop.permute.xlu0 %3081 }
0x1ba8   : > { %v3084_v55 = vadd.f32 %v3082_v9, %v3074_v21 }
0x1bee   : > { %v3088_v8 = vpop.permute.xlu1 %3087 }
0x1bef   : > { %v3090_v41 = vmul.f32 %v3088_v8, %v3084_v55 }
0x1bf1   : > { %v3091_v61 = vsel %vm891_vm0, %v3090_v41, 0.0 }
0x1bf2   : > { %v3092_v33 = vrot.slane %v3091_v61, 4  ;;  %v3210_v6 = vpop.permute.xlu1 %3209 }
0x1bf4   : > { %v3093_v40 = vadd.f32 %v3092_v33, %v3091_v61  ;;  %v13377_v33 = vrot.slane %v11230_v18, 6 }
0x1bf6   : > { %v3094_v17 = vrot.slane %v3093_v40, 2 }
0x1bf8   : > { %v3095_v63 = vadd.f32 %v3094_v17, %v3093_v40 }
0x1bfa   : > { %v3096_v5 = vrot.slane %v3095_v63, 1 }
0x1bfc   : > { %v3097_v4 = vadd.f32 %v3096_v5, %v3095_v63  ;;  %v11894_v5 = vpop.f32.mrf.mxu0 }
0x1bfe   : > { %8708 = vmatmul.mubr.msk.f32.vlgmr.msra.gmra.mxu1 %vm891_vm0, %v3097_v4 }
0x1bff   : > { %9145 = vmatpush3.msra.mxu1 %v11684_v11  ;;  %9152 = vmatprep.mubr.msk.f32.mxu1 %vm10763_vm1, %v13374_v27 }
0x1c00   : > { %9146 = vmatprep.subr.mxu1 %v13374_v27 }
0x1c01   : > { %9147 = vmatpush3.msra.mxu1 %v11693_v32 }
0x1c02   : > { %9148 = vmatprep.subr.mxu1 %v13374_v27 }
0x1c03   : > { %9149 = vmatpush3.msra.mxu1 %v11700_v12 }
0x1c04   : > { %9150 = vmatprep.subr.mxu1 %v13374_v27 }
0x1c05   : > { %9151 = vmatpush3.msra.mxu1 %v11707_v13 }
0x1cbe   : > { %v3167_v43 = vpop.f32.mrf.mxu1 }
0x1cbf   : > { %v3168_v11 = vadd.f32 %v3167_v43, %v11259_v36 }
0x1cc0   : > { %v3169_v51 = vpop.f32.mrf.mxu1 }
0x1cc1   : > { %v3172_v23 = vadd.f32 %v3168_v11, %v2964_v54  ;;  %3180 = vrot.lane.b32.xlu0 %v3168_v11, %s10766_s20  ;;  %v3170_v39 = vadd.f32 %v3169_v51, %v11430_v14 }
0x1cc3   : > { %v8709_v20 = vmul.f32 -1.442695, %v3172_v23  ;;  %v3201_v60 = vadd.f32 %v3170_v39, %v11852_v15  ;;  %v3309_v15 = vpop.f32.mrf.mxu0 }
0x1cc5   : > { %9939 = vpow2.f32 %v8709_v20  ;;  %v8710_v19 = vmul.f32 -1.442695, %v3201_v60 }
0x1cd2   : > { %v9940_v42 = vpop.eup %9939 }
0x1cd3   : > { %v3176_v32 = vadd.f32 1.0, %v9940_v42 }
0x1cd5   : > { %9941 = vrcp.f32 %v3176_v32 }
0x1ce2   : > { %v9942_v59 = vpop.eup %9941 }
0x1ce3   : > { %v3212_v12 = vmul.f32 %v9942_v59, %v3210_v6 }
0x1ce5   : > { %3214 = vrot.lane.b32.xlu1 %v3212_v12, %s10766_s20 }
0x1d33   : > { %v3181_v0 = vpop.permute.xlu0 %3180 }
0x1d34   : > { %v3183_v13 = vmul.f32 %v9942_v59, %v3181_v0 }
0x1d36   : > { %3185 = vrot.lane.b32.xlu0 %v3183_v13, %s10766_s20 }
0x1d57   : > { %v3215_v29 = vpop.permute.xlu1 %3214 }
0x1d58   : > { %v3217_v31 = vadd.f32 %v3215_v29, %v3170_v39 }
0x1d5a   : > { %9943 = vtanh.f32 %v3217_v31 }
0x1d67   : > { %v9944_v49 = vpop.eup %9943 }
0x1d68   : > { %3221 = vrot.lane.b32.xlu1 %v9944_v49, %s10764_s26 }
0x1d6c   : > { %3196 = vrot.lane.b32.xlu1 %v3097_v4, %s13372_s5  ;;  %v11899_v4 = vadd.f32 %v3309_v15, %v11248_v28 }
0x1da8   : > { %v3186_v24 = vpop.permute.xlu0 %3185 }
0x1da9   : > { %v3188_v48 = vadd.f32 %v3186_v24, %v2964_v54  ;;  %v3190_v54 = vsub.f32 1.0, %v9942_v59 }
0x1dab   : > { %9945 = vtanh.f32 %v3188_v48 }
0x1dac   : > { %9947 = vpow2.f32 %v8710_v19 }
0x1db8   : > { %v9946_v9 = vpop.eup %9945 }
0x1db9   : > { %3192 = vrot.lane.b32.xlu0 %v9946_v9, %s10764_s26  ;;  %v9948_v21 = vpop.eup %9947 }
0x1dba   : > { %v3205_v55 = vadd.f32 1.0, %v9948_v21 }
0x1dbc   : > { %9949 = vrcp.f32 %v3205_v55 }
0x1dc9   : > { %v9950_v8 = vpop.eup %9949 }
0x1dca   : > { %v3219_v41 = vsub.f32 1.0, %v9950_v8  ;;  %v3226_v40 = vmul.f32 %v9950_v8, %v13377_v33 }
0x1dda   : > { %v3222_v61 = vpop.permute.xlu1 %3221 }
0x1ddb   : > { %v3224_v17 = vmul.f32 %v3222_v61, %v3219_v41 }
0x1ddd   : > { %v3227_v63 = vadd.f32 %v3226_v40, %v3224_v17 }
0x1dde   : > { %v3197_v11 = vpop.permute.xlu1 %3196 }
0x1ddf   : > { %3229 = vrot.lane.b32.xlu0 %v3227_v63, %s13372_s5  ;;  %v3199_v20 = vmul.f32 %v9942_v59, %v3197_v11 }
0x1de3   : > { %3391 = vrot.lane.b32.xlu0 %v11728_v1, %s10782_s13  ;;  %s10653_s13 = scalar_lea.vmem %s10652_s30, 64 }
0x1de7   : > { %3415 = vperm.xlu0 %9838, %v11732_v50   ;;  %v3389_v50 = vrot.slane %v11899_v4, %v11254_v34 }
0x1deb   : > { %3553 = vrot.lane.b32.xlu0 %v11899_v4, %s10766_s20 }
0x1dec   : > { %9840 = vset.pattern.permute.xlu0 %v13376_v47 }
0x1e2b   : > { %v3193_v43 = vpop.permute.xlu0 %3192 }
0x1e2c   : > { %v3195_v23 = vmul.f32 %v3193_v43, %v3190_v54 }
0x1e2e   : > { %v3200_v42 = vadd.f32 %v3199_v20, %v3195_v23 }
0x1e51   : > { %v3230_v32 = vpop.permute.xlu0 %3229 }
0x1e52   : > { %v3232_v6 = vadd.f32 %v3230_v32, %v3200_v42 }
0x1e54   : > { %3234 = vrot.lane.b32.xlu1 %v3232_v6, %s10764_s26 }
0x1e55   : > { %v11912_v0 = vpop.permute.xlu0 %3391 }
0x1e58   : > { %3420 = vperm.xlu1 %9837, %v11343_v38  }
0x1e5c   : > { %9839 = vset.pattern.permute.xlu1 %v13376_v47 }
0x1e62   : > { %v11921_v43 = vpop.permute.xlu0 %3415 }
0x1ec6   : > { %v3235_v28 = vpop.permute.xlu1 %3234 }
0x1ec7   : > { %3237 = vst.msk [vmem:[#allocation2 + $0x6] sm:$0x1] %vm1161_vm2, %v3235_v28 }
0x1ece   : > { %v3312_v1 = vld [vmem:[#allocation2] sm:$0xff] }
0x1ecf   : > { %9153 = vmatmul.mubr.msk.f32.vlgmr.msra.gmra.mxu1 %vm891_vm0, %v3312_v1 }
0x1ed0   : > { %3689 = vmatprep.mubr.f32.mxu1 %v13374_v27 }
0x1ed3   : > { %v11917_v17 = vpop.permute.xlu1 %3420 }
0x1f8f   : > { %v3382_v59 = vpop.f32.mrf.mxu1 }
0x1f90   : > { %v3390_v12 = vadd.f32 %v3389_v50, %v3382_v59  ;;  %v3423_v63 = vmul.f32 %v11917_v17, %v3382_v59  ;;  %v3418_v54 = vmul.f32 %v11921_v43, %v3382_v59 }
0x1f91   : > { %v9154_v13 = vpop.f32.mrf.mxu1 }
0x1f92   : > { %v3394_v38 = vadd.f32 %v11912_v0, %v3390_v12 }
0x1f94   : > { %v3395_v47 = vsel %vm1321_vm3, %v3394_v38, -inf }
0x1f95   : > { %v3396_v51 = vrot.slane %v3395_v47, 4 }
0x1f97   : > { %v3397_v39 = vmax.f32 %v3395_v47, %v3396_v51 }
0x1f99   : > { %v3398_v29 = vrot.slane %v3397_v39, 2 }
0x1f9b   : > { %v3399_v31 = vmax.f32 %v3397_v39, %v3398_v29 }
0x1f9d   : > { %v3400_v22 = vrot.slane %v3399_v31, 1 }
0x1f9f   : > { %v3401_v49 = vmax.f32 %v3399_v31, %v3400_v22  ;;  %v3554_v22 = vpop.permute.xlu0 %3553 }
0x1fa1   : > { %v3402_v24 = vsub.f32 %v3394_v38, %v3401_v49  ;;  %v3308_v38 = vadd.f32 %v11894_v5, %v11265_v37 }
0x1fa3   : > { %v3403_v48 = vmul.f32 1.442695, %v3402_v24 }
0x1fa5   : > { %9951 = vpow2.f32 %v3403_v48 }
0x1fb2   : > { %v9952_v60 = vpop.eup %9951 }
0x1fb3   : > { %v3405_v19 = vsel %vm1321_vm3, %v9952_v60, 0.0 }
0x1fb4   : > { %v3406_v9 = vrot.slane %v3405_v19, 4 }
0x1fb6   : > { %v3407_v21 = vadd.f32 %v3406_v9, %v3405_v19 }
0x1fb8   : > { %v3408_v55 = vrot.slane %v3407_v21, 2 }
0x1fba   : > { %v3409_v8 = vadd.f32 %v3408_v55, %v3407_v21 }
0x1fbc   : > { %v3410_v41 = vrot.slane %v3409_v8, 1 }
0x1fbe   : > { %v3411_v61 = vadd.f32 %v3410_v41, %v3409_v8 }
0x1fc0   : > { %9953 = vrcp.f32 %v3411_v61 }
0x1fcd   : > { %v9954_v33 = vpop.eup %9953 }
0x1fce   : > { %v3413_v40 = vmul.f32 %v9954_v33, %v9952_v60 }
0x1fd0   : > { %3431 = vperm.xlu1 %9839, %v3413_v40  }
0x1fd4   : > { %3425 = vrot.lane.b32.xlu1 %v3423_v63, %s10764_s26 }
0x204b   : > { %v3432_v15 = vpop.permute.xlu1 %3431 }
0x204f   : > { %v3426_v11 = vpop.permute.xlu1 %3425 }
0x2050   : > { %v3428_v23 = vadd.f32 %v3426_v11, %v3418_v54 }
0x2052   : > { %v3434_v20 = vmul.f32 %v3432_v15, %v3428_v23  ;;  %v11949_v23 = vld [vmem:[%s13366_s9 + $0x70] sm:$0xff] }
0x2054   : > { %v3435_v42 = vsel %vm891_vm0, %v3434_v20, 0.0  ;;  %v11954_v20 = vld [vmem:[%s13366_s9 + $0x68] sm:$0xff] }
0x2055   : > { %v3436_v32 = vrot.slane %v3435_v42, 4 }
0x2057   : > { %v3437_v6 = vadd.f32 %v3436_v32, %v3435_v42  ;;  %v11968_v32 = vld [vmem:[%s13366_s9 + $0x58] sm:$0xff] }
0x2059   : > { %v3438_v28 = vrot.slane %v3437_v6, 2 }
0x205b   : > { %v3439_v1 = vadd.f32 %v3438_v28, %v3437_v6  ;;  %v11975_v28 = vld [vmem:[%s13366_s9 + $0x50] sm:$0xff] }
0x205d   : > { %v3440_v50 = vrot.slane %v3439_v1, 1 }
0x205f   : > { %v3441_v12 = vadd.f32 %v3440_v50, %v3439_v1  ;;  %v11982_v50 = vld [vmem:[%s13366_s9 + $0x48] sm:$0xff] }
0x2061   : > { %8713 = vmatmul.mubr.msk.f32.vlgmr.msra.gmra.mxu0 %vm891_vm0, %v3441_v12 }
0x2062   : > { %3849 = vmatprep.mubr.f32.mxu0 %v13374_v27 }
0x2121   : > { %v3511_v13 = vpop.f32.mrf.mxu0 }
0x2122   : > { %v3512_v59 = vadd.f32 %v3511_v13, %v11259_v36  ;;  %v11989_v13 = vld [vmem:[%s13366_s9 + $0x40] sm:$0xff] }
0x2123   : > { %v3513_v37 = vpop.f32.mrf.mxu0 }
0x2124   : > { %v3516_v47 = vadd.f32 %v3512_v59, %v3308_v38  ;;  %3524 = vrot.lane.b32.xlu1 %v3512_v59, %s10766_s20  ;;  %v3514_v36 = vadd.f32 %v3513_v37, %v11430_v14 }
0x2126   : > { %v8714_v51 = vmul.f32 -1.442695, %v3516_v47  ;;  %v3545_v55 = vadd.f32 %v3514_v36, %v11899_v4  ;;  %v11944_v4 = vld [vmem:[%s13366_s9 + $0x78] sm:$0xff] }
0x2127   : > { %3649 = vmatprep.subr.mxu1 %v11944_v4  ;;  %3809 = vmatprep.subr.mxu0 %v11944_v4 }
0x2128   : > { %9955 = vpow2.f32 %v8714_v51  ;;  %v8715_v8 = vmul.f32 -1.442695, %v3545_v55  ;;  %3650 = vmatpush1.msra.mxu1 %v11949_v23  ;;  %3810 = vmatpush1.msra.mxu0 %v11949_v23  ;;  %v11998_v51 = vld [vmem:[#allocation13 + $0x2] sm:$0x3] }
0x2129   : > { %3651 = vmatprep.subr.mxu1 %v11954_v20  ;;  %3811 = vmatprep.subr.mxu0 %v11954_v20 }
0x2135   : > { %v9956_v39 = vpop.eup %9955 }
0x2136   : > { %v3520_v29 = vadd.f32 1.0, %v9956_v39 }
0x2138   : > { %9957 = vrcp.f32 %v3520_v29  ;;  %v12003_v29 = vrot.slane %v11998_v51, %v11254_v34 }
0x2145   : > { %v9958_v31 = vpop.eup %9957 }
0x2146   : > { %v3556_v49 = vmul.f32 %v9958_v31, %v3554_v22  ;;  %v3534_v6 = vsub.f32 1.0, %v9958_v31 }
0x2148   : > { %3558 = vrot.lane.b32.xlu0 %v3556_v49, %s10766_s20 }
0x2196   : > { %v3525_v24 = vpop.permute.xlu1 %3524 }
0x2197   : > { %v3527_v48 = vmul.f32 %v9958_v31, %v3525_v24  ;;  %v3593_v24 = vld [vmem:[#allocation10 + $0x2] sm:$0x3] }
0x2198   : > { %v12023_v37 = vrot.slane %v3593_v24, %v11245_v25 }
0x2199   : > { %3529 = vrot.lane.b32.xlu1 %v3527_v48, %s10766_s20  ;;  %v12020_v48 = vrot.slane %v3593_v24, %v11254_v34 }
0x21ba   : > { %v3559_v5 = vpop.permute.xlu0 %3558 }
0x21bb   : > { %v3561_v60 = vadd.f32 %v3559_v5, %v3514_v36 }
0x21bd   : > { %9959 = vtanh.f32 %v3561_v60 }
0x21ca   : > { %v9960_v19 = vpop.eup %9959 }
0x21cb   : > { %3565 = vrot.lane.b32.xlu0 %v9960_v19, %s10764_s26 }
0x21cf   : > { %3540 = vrot.lane.b32.xlu0 %v3441_v12, %s13372_s5 }
0x220b   : > { %v3530_v9 = vpop.permute.xlu1 %3529 }
0x220c   : > { %v3532_v21 = vadd.f32 %v3530_v9, %v3308_v38 }
0x220e   : > { %9961 = vtanh.f32 %v3532_v21 }
0x220f   : > { %9963 = vpow2.f32 %v8715_v8 }
0x221b   : > { %v9962_v41 = vpop.eup %9961 }
0x221c   : > { %3536 = vrot.lane.b32.xlu1 %v9962_v41, %s10764_s26  ;;  %v9964_v61 = vpop.eup %9963 }
0x221d   : > { %v3549_v14 = vadd.f32 1.0, %v9964_v61 }
0x221f   : > { %9965 = vrcp.f32 %v3549_v14 }
0x222c   : > { %v9966_v33 = vpop.eup %9965 }
0x222d   : > { %v3563_v40 = vsub.f32 1.0, %v9966_v33  ;;  %v3570_v15 = vmul.f32 %v9966_v33, %v3238_v26  ;;  %v11961_v26 = vld [vmem:[%s13366_s9 + $0x60] sm:$0xff] }
0x222e   : > { %3652 = vmatpush1.msra.mxu1 %v11961_v26  ;;  %3812 = vmatpush1.msra.mxu0 %v11961_v26 }
0x222f   : > { %3653 = vmatprep.subr.mxu1 %v11968_v32  ;;  %3813 = vmatprep.subr.mxu0 %v11968_v32 }
0x2230   : > { %3654 = vmatpush1.msra.mxu1 %v11975_v28  ;;  %3814 = vmatpush1.msra.mxu0 %v11975_v28 }
0x2231   : > { %3655 = vmatprep.subr.mxu1 %v11982_v50  ;;  %3815 = vmatprep.subr.mxu0 %v11982_v50 }
0x2232   : > { %3656 = vmatpush1.msra.mxu1 %v11989_v13  ;;  %3816 = vmatpush1.msra.mxu0 %v11989_v13 }
0x2233   : > { %9155 = vmatprep.subr.mxu1 %v13374_v27 }
0x223d   : > { %v3566_v63 = vpop.permute.xlu0 %3565 }
0x223e   : > { %v3568_v54 = vmul.f32 %v3566_v63, %v3563_v40 }
0x2240   : > { %v3571_v11 = vadd.f32 %v3570_v15, %v3568_v54 }
0x2241   : > { %v3541_v1 = vpop.permute.xlu0 %3540 }
0x2242   : > { %3573 = vrot.lane.b32.xlu1 %v3571_v11, %s13372_s5  ;;  %v3543_v38 = vmul.f32 %v9958_v31, %v3541_v1 }
0x228e   : > { %v3537_v42 = vpop.permute.xlu1 %3536 }
0x228f   : > { %v3539_v12 = vmul.f32 %v3537_v42, %v3534_v6  ;;  %v3726_v6 = vrot.slane %v11998_v51, 1 }
0x2291   : > { %v3544_v59 = vadd.f32 %v3543_v38, %v3539_v12 }
0x22b4   : > { %v3574_v47 = vpop.permute.xlu1 %3573 }
0x22b5   : > { %v3576_v39 = vadd.f32 %v3574_v47, %v3544_v59 }
0x22b7   : > { %3578 = vrot.lane.b32.xlu0 %v3576_v39, %s10764_s26 }
0x22bb   : > { %3708 = vrot.lane.b32.xlu0 %v12003_v29, %s10766_s20 }
0x2329   : > { %v3579_v31 = vpop.permute.xlu0 %3578 }
0x232a   : > { %3581 = vst.msk [vmem:[#allocation2 + $0x7] sm:$0x1] %vm1161_vm2, %v3579_v31 }
0x232d   : > { %v3709_v14 = vpop.permute.xlu0 %3708 }
0x2331   : > { %v12008_v22 = vld [vmem:[#allocation2] sm:$0xff] }
0x2332   : > { %8728 = vmatmul.mubr.msk.f32.vlgmr.msra.gmra.mxu1 %vm891_vm0, %v12008_v22  ;;  %v3782_v49 = vrot.slane %v12008_v22, 1 }
0x2333   : > { %9163 = vmatprep.mubr.msk.f32.mxu1 %vm10763_vm1, %v13374_v27 }
0x2334   : > { %8731 = vmatmul.mubr.msk.f32.vlgmr.msra.gmra.mxu0 %vm891_vm0, %v3782_v49 }
0x2335   : > { %4048 = vmatprep.mubr.f32.mxu0 %v13374_v27 }
0x23f2   : > { %v3691_v36 = vpop.f32.mrf.mxu1 }
0x23f3   : > { %v3692_v5 = vadd.f32 %v3691_v36, %v12020_v48 }
0x23f4   : > { %v3693_v60 = vpop.f32.mrf.mxu1 }
0x23f5   : > { %v3696_v19 = vadd.f32 %v3692_v5, %v11998_v51  ;;  %v3694_v9 = vadd.f32 %v3693_v60, %v12023_v37 }
0x23f7   : > { %v8729_v21 = vmul.f32 -1.442695, %v3696_v19  ;;  %v3742_v55 = vrot.slane %v3694_v9, %v11250_v30  ;;  %v3728_v1 = vadd.f32 %v3726_v6, %v3694_v9  ;;  %v12043_v9 = vld [vmem:[%s13369_s28 + $0x38] sm:$0xff] }
0x23f8   : > { %9156 = vmatpush3.msra.mxu1 %v12043_v9 }
0x23f9   : > { %9967 = vpow2.f32 %v8729_v21  ;;  %v3749_v8 = vrot.slane %v3742_v55, %v11250_v30  ;;  %v8730_v12 = vmul.f32 -1.442695, %v3728_v1  ;;  %9157 = vmatprep.subr.mxu1 %v13374_v27  ;;  %v12084_v1 = vpop.f32.mrf.mxu0 }
0x23fb   : > { %3750 = vrot.lane.b32.xlu1 %v3749_v8, %s10766_s20  ;;  %v12048_v8 = vld [vmem:[%s13369_s28 + $0x30] sm:$0xff] }
0x23fc   : > { %9158 = vmatpush3.msra.mxu1 %v12048_v8 }
0x23fd   : > { %9159 = vmatprep.subr.mxu1 %v13374_v27 }
0x23ff   : > { %3754 = vrot.lane.b32.xlu1 %v11998_v51, %s10764_s26 }
0x2406   : > { %v9968_v41 = vpop.eup %9967 }
0x2407   : > { %v3700_v61 = vadd.f32 1.0, %v9968_v41 }
0x2409   : > { %9969 = vrcp.f32 %v3700_v61  ;;  %v12055_v61 = vld [vmem:[%s13369_s28 + $0x28] sm:$0xff] }
0x240a   : > { %9160 = vmatpush3.msra.mxu1 %v12055_v61 }
0x240b   : > { %9161 = vmatprep.subr.mxu1 %v13374_v27 }
0x2416   : > { %v9970_v33 = vpop.eup %9969 }
0x2417   : > { %v3711_v40 = vmul.f32 %v9970_v33, %v3709_v14  ;;  %v3718_v14 = vsub.f32 1.0, %v9970_v33 }
0x2419   : > { %3713 = vrot.lane.b32.xlu1 %v3711_v40, %s10766_s20  ;;  %v12062_v40 = vld [vmem:[%s13369_s28 + $0x20] sm:$0xff] }
0x241a   : > { %9162 = vmatpush3.msra.mxu1 %v12062_v40 }
0x241b   : > { %4148 = vmatprep.subr.mxu1 %v11944_v4 }
0x246d   : > { %v3751_v63 = vpop.permute.xlu1 %3750 }
0x246e   : > { %v3753_v15 = vmul.f32 %v9970_v33, %v3751_v63 }
0x2470   : > { %3759 = vrot.lane.b32.xlu0 %v3753_v15, %s13372_s5  ;;  %v3724_v15 = vmul.f32 0.0, %v9970_v33  ;;  %v13314_v33 = vrot.slane %v12008_v22, 2 }
0x2471   : > { %v3755_v54 = vpop.permute.xlu1 %3754 }
0x2472   : > { %v3756_v47 = vrot.slane %v3755_v54, 1 }
0x248b   : > { %v3714_v11 = vpop.permute.xlu1 %3713 }
0x248c   : > { %v3716_v30 = vadd.f32 %v3714_v11, %v3692_v5 }
0x248e   : > { %9971 = vtanh.f32 %v3716_v30 }
0x248f   : > { %9973 = vpow2.f32 %v8730_v12  ;;  %v3853_v12 = vpop.f32.mrf.mxu0 }
0x249b   : > { %v9972_v42 = vpop.eup %9971 }
0x249c   : > { %3720 = vrot.lane.b32.xlu0 %v9972_v42, %s10764_s26  ;;  %v9974_v38 = vpop.eup %9973 }
0x249d   : > { %v3732_v59 = vadd.f32 1.0, %v9974_v38  ;;  %v12087_v38 = vadd.f32 %v3853_v12, %v12023_v37 }
0x249f   : > { %9975 = vrcp.f32 %v3732_v59  ;;  %v3933_v59 = vrot.slane %v12087_v38, %v11254_v34 }
0x24ac   : > { %v9976_v24 = vpop.eup %9975 }
0x24ad   : > { %v3764_v36 = vsub.f32 1.0, %v9976_v24  ;;  %v3766_v19 = vmul.f32 %v9976_v24, %v12008_v22 }
0x24e2   : > { %v3760_v39 = vpop.permute.xlu0 %3759 }
0x24e3   : > { %v3762_v31 = vadd.f32 %v3760_v39, %v3756_v47 }
0x24e5   : > { %9977 = vtanh.f32 %v3762_v31 }
0x24f2   : > { %v9978_v60 = vpop.eup %9977 }
0x24f3   : > { %v3765_v5 = vmul.f32 %v9978_v60, %v3764_v36 }
0x24f5   : > { %v3767_v21 = vadd.f32 %v3766_v19, %v3765_v5 }
0x24f7   : > { %v3772_v55 = vrot.slane %v3767_v21, %v11254_v34 }
0x24f9   : > { %3773 = vrot.lane.b32.xlu1 %v3772_v55, %s13372_s5 }
0x250e   : > { %v3721_v41 = vpop.permute.xlu0 %3720 }
0x250f   : > { %v3723_v63 = vmul.f32 %v3721_v41, %v3718_v14 }
0x2511   : > { %v3725_v54 = vadd.f32 %v3724_v15, %v3723_v63 }
0x256b   : > { %v3774_v11 = vpop.permute.xlu1 %3773 }
0x256c   : > { %v3776_v30 = vadd.f32 %v3774_v11, %v3725_v54 }
0x256e   : > { %3778 = vrot.lane.b32.xlu0 %v3776_v30, %s10764_s26 }
0x25e0   : > { %v3779_v42 = vpop.permute.xlu0 %3778 }
0x25e1   : > { %3781 = vst.msk [vmem:[#allocation3] sm:$0x1] %vm1161_vm2, %v3779_v42 }
0x25e8   : > { %v3856_v6 = vld [vmem:[#allocation3] sm:$0xff] }
0x25e9   : > { %9164 = vmatmul.mubr.msk.f32.vlgmr.msra.gmra.mxu1 %vm891_vm0, %v3856_v6 }
0x25ea   : > { %4149 = vmatpush1.msra.mxu1 %v11949_v23  ;;  %4188 = vmatprep.mubr.f32.mxu1 %v13374_v27 }
0x25eb   : > { %4150 = vmatprep.subr.mxu1 %v11954_v20 }
0x25ec   : > { %4151 = vmatpush1.msra.mxu1 %v11961_v26 }
0x25ed   : > { %4152 = vmatprep.subr.mxu1 %v11968_v32 }
0x25ee   : > { %4153 = vmatpush1.msra.mxu1 %v11975_v28 }
0x25ef   : > { %4154 = vmatprep.subr.mxu1 %v11982_v50 }
0x25f0   : > { %4155 = vmatpush1.msra.mxu1 %v11989_v13 }
0x25f1   : > { %8736 = vmatmul.mubr.msk.f32.vlgmr.msra.gmra.mxu1 %vm891_vm0, %v13314_v33 }
0x25f2   : > { %4381 = vmatprep.mubr.f32.mxu1 %v13374_v27 }
0x26a9   : > { %v3926_v47 = vpop.f32.mrf.mxu1 }
0x26aa   : > { %v3934_v39 = vadd.f32 %v3933_v59, %v3926_v47  ;;  %v3956_v31 = vmul.f32 %v3926_v47, %v11369_v16 }
0x26ab   : > { %v9165_v24 = vpop.f32.mrf.mxu1 }
0x26ac   : > { %v3935_v36 = vadd.f32 %v3934_v39, %v11364_v46  ;;  %3958 = vrot.lane.b32.xlu0 %v3956_v31, %s10764_s26  ;;  %v12096_v31 = vld [vmem:[#allocation12 + $0x78] sm:$0xff]  ;;  %v12101_v24 = vld [vmem:[#allocation12 + $0x70] sm:$0xff] }
0x26ad   : > { %4008 = vmatprep.subr.mxu0 %v12096_v31  ;;  %4341 = vmatprep.subr.mxu1 %v12096_v31 }
0x26ae   : > { %v3936_v60 = vsel %vm1321_vm3, %v3935_v36, -inf  ;;  %4009 = vmatpush1.msra.mxu0 %v12101_v24  ;;  %4342 = vmatpush1.msra.mxu1 %v12101_v24 }
0x26af   : > { %v3937_v5 = vrot.slane %v3936_v60, 4 }
0x26b1   : > { %v3938_v19 = vmax.f32 %v3936_v60, %v3937_v5  ;;  %v12108_v60 = vld [vmem:[#allocation12 + $0x60] sm:$0xff]  ;;  %v12112_v5 = vld [vmem:[#allocation12 + $0x58] sm:$0xff] }
0x26b3   : > { %v3939_v21 = vrot.slane %v3938_v19, 2 }
0x26b5   : > { %v3940_v55 = vmax.f32 %v3938_v19, %v3939_v21  ;;  %v12116_v19 = vld [vmem:[#allocation12 + $0x50] sm:$0xff]  ;;  %v12120_v21 = vld [vmem:[#allocation12 + $0x48] sm:$0xff] }
0x26b7   : > { %v3941_v41 = vrot.slane %v3940_v55, 1 }
0x26b9   : > { %v3942_v14 = vmax.f32 %v3940_v55, %v3941_v41  ;;  %v12122_v55 = vld [vmem:[#allocation12 + $0x40] sm:$0xff] }
0x26bb   : > { %v3943_v63 = vsub.f32 %v3935_v36, %v3942_v14  ;;  %v12104_v36 = vld [vmem:[#allocation12 + $0x68] sm:$0xff]  ;;  %v3955_v14 = vmul.f32 %v3926_v47, %v11407_v45  ;;  %v3852_v47 = vadd.f32 %v12084_v1, %v12020_v48  ;;  %v12153_v1 = vrot.slane %v11998_v51, %v11245_v25 }
0x26bc   : > { %4010 = vmatprep.subr.mxu0 %v12104_v36  ;;  %4343 = vmatprep.subr.mxu1 %v12104_v36 }
0x26bd   : > { %v3944_v15 = vmul.f32 1.442695, %v3943_v63  ;;  %4011 = vmatpush1.msra.mxu0 %v12108_v60  ;;  %4344 = vmatpush1.msra.mxu1 %v12108_v60 }
0x26be   : > { %4012 = vmatprep.subr.mxu0 %v12112_v5  ;;  %4345 = vmatprep.subr.mxu1 %v12112_v5 }
0x26bf   : > { %9979 = vpow2.f32 %v3944_v15  ;;  %4013 = vmatpush1.msra.mxu0 %v12116_v19  ;;  %4346 = vmatpush1.msra.mxu1 %v12116_v19 }
0x26c0   : > { %4014 = vmatprep.subr.mxu0 %v12120_v21  ;;  %4347 = vmatprep.subr.mxu1 %v12120_v21 }
0x26c1   : > { %4015 = vmatpush1.msra.mxu0 %v12122_v55  ;;  %4348 = vmatpush1.msra.mxu1 %v12122_v55 }
0x26c2   : > { %9166 = vmatprep.subr.mxu0 %v13374_v27  ;;  %9177 = vmatprep.subr.mxu1 %v13374_v27 }
0x26cc   : > { %v9980_v54 = vpop.eup %9979 }
0x26cd   : > { %v3946_v11 = vsel %vm1321_vm3, %v9980_v54, 0.0 }
0x26ce   : > { %v3947_v16 = vrot.slane %v3946_v11, 4 }
0x26d0   : > { %v3948_v30 = vadd.f32 %v3947_v16, %v3946_v11 }
0x26d2   : > { %v3949_v42 = vrot.slane %v3948_v30, 2 }
0x26d4   : > { %v3950_v46 = vadd.f32 %v3949_v42, %v3948_v30 }
0x26d6   : > { %v3951_v6 = vrot.slane %v3950_v46, 1 }
0x26d8   : > { %v3952_v12 = vadd.f32 %v3951_v6, %v3950_v46 }
0x26da   : > { %9981 = vrcp.f32 %v3952_v12 }
0x26e7   : > { %v9982_v59 = vpop.eup %9981 }
0x26e8   : > { %v3954_v39 = vmul.f32 %v9982_v59, %v9980_v54 }
0x26ea   : > { %3964 = vperm.xlu1 %9839, %v3954_v39  }
0x26ee   : > { %4092 = vrot.lane.b32.xlu1 %v12087_v38, %s10766_s20 }
0x271e   : > { %v3959_v41 = vpop.permute.xlu0 %3958 }
0x271f   : > { %v3961_v63 = vadd.f32 %v3959_v41, %v3955_v14 }
0x2765   : > { %v3965_v15 = vpop.permute.xlu1 %3964 }
0x2766   : > { %v3967_v54 = vmul.f32 %v3965_v15, %v3961_v63 }
0x2768   : > { %v3968_v11 = vsel %vm891_vm0, %v3967_v54, 0.0 }
0x2769   : > { %v3969_v16 = vrot.slane %v3968_v11, 4  ;;  %v4093_v54 = vpop.permute.xlu1 %4092 }
0x276b   : > { %v3970_v30 = vadd.f32 %v3969_v16, %v3968_v11 }
0x276d   : > { %v3971_v42 = vrot.slane %v3970_v30, 2 }
0x276f   : > { %v3972_v46 = vadd.f32 %v3971_v42, %v3970_v30 }
0x2771   : > { %v3973_v6 = vrot.slane %v3972_v46, 1 }
0x2773   : > { %v3974_v12 = vadd.f32 %v3973_v6, %v3972_v46 }
0x2775   : > { %8733 = vmatmul.mubr.msk.f32.vlgmr.msra.gmra.mxu0 %vm891_vm0, %v3974_v12 }
0x2776   : > { %9167 = vmatpush3.msra.mxu0 %v12043_v9  ;;  %9174 = vmatprep.mubr.msk.f32.mxu0 %vm10763_vm1, %v13374_v27 }
0x2777   : > { %9168 = vmatprep.subr.mxu0 %v13374_v27 }
0x2778   : > { %9169 = vmatpush3.msra.mxu0 %v12048_v8 }
0x2779   : > { %9170 = vmatprep.subr.mxu0 %v13374_v27 }
0x277a   : > { %9171 = vmatpush3.msra.mxu0 %v12055_v61 }
0x277b   : > { %9172 = vmatprep.subr.mxu0 %v13374_v27 }
0x277c   : > { %9173 = vmatpush3.msra.mxu0 %v12062_v40 }
0x277d   : > { %4481 = vmatprep.subr.mxu0 %v11944_v4 }
0x2835   : > { %v4050_v45 = vpop.f32.mrf.mxu0 }
0x2836   : > { %v4051_v59 = vadd.f32 %v4050_v45, %v12003_v29 }
0x2837   : > { %v4052_v42 = vpop.f32.mrf.mxu0 }
0x2838   : > { %v4055_v39 = vadd.f32 %v4051_v59, %v3852_v47  ;;  %4063 = vrot.lane.b32.xlu0 %v4051_v59, %s10766_s20  ;;  %v4053_v46 = vadd.f32 %v4052_v42, %v12153_v1 }
0x283a   : > { %v8734_v41 = vmul.f32 -1.442695, %v4055_v39 }
0x283c   : > { %9983 = vpow2.f32 %v8734_v41 }
0x2849   : > { %v9984_v14 = vpop.eup %9983 }
0x284a   : > { %v4059_v63 = vadd.f32 1.0, %v9984_v14  ;;  %v4084_v14 = vadd.f32 %v4053_v46, %v12087_v38 }
0x284c   : > { %9985 = vrcp.f32 %v4059_v63  ;;  %v8735_v63 = vmul.f32 -1.442695, %v4084_v14 }
0x2859   : > { %v9986_v15 = vpop.eup %9985 }
0x285a   : > { %v4095_v11 = vmul.f32 %v9986_v15, %v4093_v54  ;;  %v4073_v38 = vsub.f32 1.0, %v9986_v15 }
0x285c   : > { %4097 = vrot.lane.b32.xlu1 %v4095_v11, %s10766_s20 }
0x28aa   : > { %v4064_v16 = vpop.permute.xlu0 %4063 }
0x28ab   : > { %v4066_v30 = vmul.f32 %v9986_v15, %v4064_v16 }
0x28ad   : > { %4068 = vrot.lane.b32.xlu0 %v4066_v30, %s10766_s20 }
0x28ce   : > { %v4098_v6 = vpop.permute.xlu1 %4097 }
0x28cf   : > { %v4100_v45 = vadd.f32 %v4098_v6, %v4053_v46 }
0x28d1   : > { %9987 = vtanh.f32 %v4100_v45 }
0x28de   : > { %v9988_v59 = vpop.eup %9987 }
0x28df   : > { %4104 = vrot.lane.b32.xlu1 %v9988_v59, %s10764_s26 }
0x28e3   : > { %4079 = vrot.lane.b32.xlu1 %v3974_v12, %s13372_s5 }
0x291f   : > { %v4069_v39 = vpop.permute.xlu0 %4068 }
0x2920   : > { %v4071_v41 = vadd.f32 %v4069_v39, %v3852_v47 }
0x2922   : > { %9989 = vtanh.f32 %v4071_v41 }
0x2923   : > { %9991 = vpow2.f32 %v8735_v63 }
0x292f   : > { %v9990_v25 = vpop.eup %9989 }
0x2930   : > { %4075 = vrot.lane.b32.xlu0 %v9990_v25, %s10764_s26  ;;  %v9992_v51 = vpop.eup %9991 }
0x2931   : > { %v4088_v54 = vadd.f32 1.0, %v9992_v51 }
0x2933   : > { %9993 = vrcp.f32 %v4088_v54 }
0x2940   : > { %v9994_v11 = vpop.eup %9993 }
0x2941   : > { %v4102_v16 = vsub.f32 1.0, %v9994_v11  ;;  %v4109_v42 = vmul.f32 %v9994_v11, %v3782_v49  ;;  %v13313_v49 = vrot.slane %v12008_v22, 3 }
0x2951   : > { %v4105_v30 = vpop.permute.xlu1 %4104 }
0x2952   : > { %v4107_v12 = vmul.f32 %v4105_v30, %v4102_v16 }
0x2954   : > { %v4110_v6 = vadd.f32 %v4109_v42, %v4107_v12 }
0x2955   : > { %v4080_v46 = vpop.permute.xlu1 %4079 }
0x2956   : > { %4112 = vrot.lane.b32.xlu0 %v4110_v6, %s13372_s5  ;;  %v4082_v59 = vmul.f32 %v9986_v15, %v4080_v46  ;;  %v4190_v15 = vpop.f32.mrf.mxu1 }
0x2958   : > { %v4192_v51 = vpop.f32.mrf.mxu1 }
0x2959   : > { %v12189_v54 = vadd.f32 %v4192_v51, %v12023_v37 }
0x295b   : > { %v4272_v11 = vrot.slane %v12189_v54, %v11254_v34 }
0x29a2   : > { %v4076_v47 = vpop.permute.xlu0 %4075 }
0x29a3   : > { %v4078_v45 = vmul.f32 %v4076_v47, %v4073_v38 }
0x29a5   : > { %v4083_v39 = vadd.f32 %v4082_v59, %v4078_v45 }
0x29c8   : > { %v4113_v41 = vpop.permute.xlu0 %4112 }
0x29c9   : > { %v4115_v14 = vadd.f32 %v4113_v41, %v4083_v39 }
0x29cb   : > { %4117 = vrot.lane.b32.xlu1 %v4115_v14, %s10764_s26 }
0x2a3d   : > { %v4118_v63 = vpop.permute.xlu1 %4117 }
0x2a3e   : > { %4120 = vst.msk [vmem:[#allocation3 + $0x1] sm:$0x1] %vm1161_vm2, %v4118_v63 }
0x2a45   : > { %v4195_v25 = vld [vmem:[#allocation3] sm:$0xff] }
0x2a46   : > { %9175 = vmatmul.mubr.msk.f32.vlgmr.msra.gmra.mxu0 %vm891_vm0, %v4195_v25 }
0x2a47   : > { %4482 = vmatpush1.msra.mxu0 %v11949_v23  ;;  %4521 = vmatprep.mubr.f32.mxu0 %v13374_v27 }
0x2a48   : > { %4483 = vmatprep.subr.mxu0 %v11954_v20 }
0x2a49   : > { %4484 = vmatpush1.msra.mxu0 %v11961_v26 }
0x2a4a   : > { %4485 = vmatprep.subr.mxu0 %v11968_v32 }
0x2a4b   : > { %4486 = vmatpush1.msra.mxu0 %v11975_v28 }
0x2a4c   : > { %4487 = vmatprep.subr.mxu0 %v11982_v50 }
0x2a4d   : > { %4488 = vmatpush1.msra.mxu0 %v11989_v13 }
0x2a4e   : > { %8741 = vmatmul.mubr.msk.f32.vlgmr.msra.gmra.mxu0 %vm891_vm0, %v13313_v49  ;;  %4674 = vmatprep.subr.mxu0 %v12096_v31 }
0x2a4f   : > { %4675 = vmatpush1.msra.mxu0 %v12101_v24  ;;  %4714 = vmatprep.mubr.f32.mxu0 %v13374_v27 }
0x2a50   : > { %4676 = vmatprep.subr.mxu0 %v12104_v36 }
0x2a51   : > { %4677 = vmatpush1.msra.mxu0 %v12108_v60 }
0x2a52   : > { %4678 = vmatprep.subr.mxu0 %v12112_v5 }
0x2a53   : > { %4679 = vmatpush1.msra.mxu0 %v12116_v19 }
0x2a54   : > { %4680 = vmatprep.subr.mxu0 %v12120_v21 }
0x2a55   : > { %4681 = vmatpush1.msra.mxu0 %v12122_v55 }
0x2a56   : > { %9188 = vmatprep.subr.mxu0 %v13374_v27 }
0x2b06   : > { %v4265_v16 = vpop.f32.mrf.mxu0 }
0x2b07   : > { %v4273_v30 = vadd.f32 %v4272_v11, %v4265_v16  ;;  %v4295_v42 = vmul.f32 %v4265_v16, %v11472_v52 }
0x2b08   : > { %v9176_v12 = vpop.f32.mrf.mxu0 }
0x2b09   : > { %v4274_v6 = vadd.f32 %v4273_v30, %v11477_v56  ;;  %4297 = vrot.lane.b32.xlu1 %v4295_v42, %s10764_s26 }
0x2b0b   : > { %v4275_v47 = vsel %vm1321_vm3, %v4274_v6, -inf }
0x2b0c   : > { %v4276_v38 = vrot.slane %v4275_v47, 4 }
0x2b0d   : > { %4425 = vrot.lane.b32.xlu1 %v12189_v54, %s10766_s20 }
0x2b0e   : > { %v4277_v46 = vmax.f32 %v4275_v47, %v4276_v38  ;;  %v4294_v38 = vmul.f32 %v4265_v16, %v11485_v44 }
0x2b10   : > { %v4278_v45 = vrot.slane %v4277_v46, 2 }
0x2b12   : > { %v4279_v59 = vmax.f32 %v4277_v46, %v4278_v45 }
0x2b14   : > { %v4280_v39 = vrot.slane %v4279_v59, 1 }
0x2b16   : > { %v4281_v41 = vmax.f32 %v4279_v59, %v4280_v39 }
0x2b18   : > { %v4282_v14 = vsub.f32 %v4274_v6, %v4281_v41 }
0x2b1a   : > { %v4283_v63 = vmul.f32 1.442695, %v4282_v14 }
0x2b1c   : > { %9995 = vpow2.f32 %v4283_v63 }
0x2b29   : > { %v9996_v52 = vpop.eup %9995 }
0x2b2a   : > { %v4285_v25 = vsel %vm1321_vm3, %v9996_v52, 0.0 }
0x2b2b   : > { %v4286_v56 = vrot.slane %v4285_v25, 4 }
0x2b2d   : > { %v4287_v51 = vadd.f32 %v4286_v56, %v4285_v25 }
0x2b2f   : > { %v4288_v11 = vrot.slane %v4287_v51, 2 }
0x2b31   : > { %v4289_v30 = vadd.f32 %v4288_v11, %v4287_v51 }
0x2b33   : > { %v4290_v42 = vrot.slane %v4289_v30, 1 }
0x2b35   : > { %v4291_v12 = vadd.f32 %v4290_v42, %v4289_v30 }
0x2b37   : > { %9997 = vrcp.f32 %v4291_v12 }
0x2b44   : > { %v9998_v49 = vpop.eup %9997 }
0x2b45   : > { %v4293_v33 = vmul.f32 %v9998_v49, %v9996_v52 }
0x2b47   : > { %4303 = vperm.xlu0 %9840, %v4293_v33   ;;  %v4191_v33 = vadd.f32 %v4190_v15, %v12020_v48 }
0x2b7b   : > { %v4298_v47 = vpop.permute.xlu1 %4297 }
0x2b7c   : > { %v4300_v46 = vadd.f32 %v4298_v47, %v4294_v38 }
0x2b7f   : > { %v4426_v42 = vpop.permute.xlu1 %4425 }
0x2bc2   : > { %v4304_v6 = vpop.permute.xlu0 %4303 }
0x2bc3   : > { %v4306_v45 = vmul.f32 %v4304_v6, %v4300_v46 }
0x2bc5   : > { %v4307_v59 = vsel %vm891_vm0, %v4306_v45, 0.0 }
0x2bc6   : > { %v4308_v39 = vrot.slane %v4307_v59, 4 }
0x2bc8   : > { %v4309_v41 = vadd.f32 %v4308_v39, %v4307_v59 }
0x2bca   : > { %v4310_v14 = vrot.slane %v4309_v41, 2 }
0x2bcc   : > { %v4311_v63 = vadd.f32 %v4310_v14, %v4309_v41 }
0x2bce   : > { %v4312_v25 = vrot.slane %v4311_v63, 1 }
0x2bd0   : > { %v4313_v56 = vadd.f32 %v4312_v25, %v4311_v63 }
0x2bd2   : > { %8738 = vmatmul.mubr.msk.f32.vlgmr.msra.gmra.mxu1 %vm891_vm0, %v4313_v56 }
0x2bd3   : > { %9178 = vmatpush3.msra.mxu1 %v12043_v9  ;;  %9185 = vmatprep.mubr.msk.f32.mxu1 %vm10763_vm1, %v13374_v27 }
0x2bd4   : > { %9179 = vmatprep.subr.mxu1 %v13374_v27 }
0x2bd5   : > { %9180 = vmatpush3.msra.mxu1 %v12048_v8 }
0x2bd6   : > { %9181 = vmatprep.subr.mxu1 %v13374_v27 }
0x2bd7   : > { %9182 = vmatpush3.msra.mxu1 %v12055_v61 }
0x2bd8   : > { %9183 = vmatprep.subr.mxu1 %v13374_v27 }
0x2bd9   : > { %9184 = vmatpush3.msra.mxu1 %v12062_v40 }
0x2bda   : > { %4814 = vmatprep.subr.mxu1 %v11944_v4 }
0x2c92   : > { %v4383_v44 = vpop.f32.mrf.mxu1 }
0x2c93   : > { %v4384_v49 = vadd.f32 %v4383_v44, %v12003_v29 }
0x2c94   : > { %v4385_v15 = vpop.f32.mrf.mxu1 }
0x2c95   : > { %v4388_v16 = vadd.f32 %v4384_v49, %v4191_v33  ;;  %4396 = vrot.lane.b32.xlu0 %v4384_v49, %s10766_s20  ;;  %v4386_v46 = vadd.f32 %v4385_v15, %v12153_v1 }
0x2c97   : > { %v8739_v52 = vmul.f32 -1.442695, %v4388_v16  ;;  %v4417_v14 = vadd.f32 %v4386_v46, %v12189_v54 }
0x2c99   : > { %9999 = vpow2.f32 %v8739_v52  ;;  %v8740_v63 = vmul.f32 -1.442695, %v4417_v14 }
0x2ca6   : > { %v10000_v51 = vpop.eup %9999 }
0x2ca7   : > { %v4392_v11 = vadd.f32 1.0, %v10000_v51 }
0x2ca9   : > { %10001 = vrcp.f32 %v4392_v11  ;;  %v13378_v11 = vrot.slane %v12008_v22, 2 }
0x2cb6   : > { %v10002_v30 = vpop.eup %10001 }
0x2cb7   : > { %v4428_v12 = vmul.f32 %v10002_v30, %v4426_v42  ;;  %v4406_v54 = vsub.f32 1.0, %v10002_v30 }
0x2cb9   : > { %4430 = vrot.lane.b32.xlu1 %v4428_v12, %s10766_s20 }
0x2d07   : > { %v4397_v47 = vpop.permute.xlu0 %4396 }
0x2d08   : > { %v4399_v38 = vmul.f32 %v10002_v30, %v4397_v47 }
0x2d0a   : > { %4401 = vrot.lane.b32.xlu0 %v4399_v38, %s10766_s20 }
0x2d2b   : > { %v4431_v6 = vpop.permute.xlu1 %4430 }
0x2d2c   : > { %v4433_v45 = vadd.f32 %v4431_v6, %v4386_v46 }
0x2d2e   : > { %10003 = vtanh.f32 %v4433_v45 }
0x2d3b   : > { %v10004_v59 = vpop.eup %10003 }
0x2d3c   : > { %4437 = vrot.lane.b32.xlu1 %v10004_v59, %s10764_s26 }
0x2d40   : > { %4412 = vrot.lane.b32.xlu1 %v4313_v56, %s13372_s5 }
0x2d7c   : > { %v4402_v39 = vpop.permute.xlu0 %4401 }
0x2d7d   : > { %v4404_v41 = vadd.f32 %v4402_v39, %v4191_v33 }
0x2d7f   : > { %10005 = vtanh.f32 %v4404_v41 }
0x2d80   : > { %10007 = vpow2.f32 %v8740_v63 }
0x2d8c   : > { %v10006_v25 = vpop.eup %10005 }
0x2d8d   : > { %4408 = vrot.lane.b32.xlu0 %v10006_v25, %s10764_s26  ;;  %v10008_v44 = vpop.eup %10007 }
0x2d8e   : > { %v4421_v49 = vadd.f32 1.0, %v10008_v44 }
0x2d90   : > { %10009 = vrcp.f32 %v4421_v49 }
0x2d9d   : > { %v10010_v16 = vpop.eup %10009 }
0x2d9e   : > { %v4435_v52 = vsub.f32 1.0, %v10010_v16  ;;  %v4442_v42 = vmul.f32 %v10010_v16, %v13378_v11 }
0x2dae   : > { %v4438_v51 = vpop.permute.xlu1 %4437 }
0x2daf   : > { %v4440_v56 = vmul.f32 %v4438_v51, %v4435_v52 }
0x2db1   : > { %v4443_v12 = vadd.f32 %v4442_v42, %v4440_v56 }
0x2db2   : > { %v4413_v47 = vpop.permute.xlu1 %4412 }
0x2db3   : > { %4445 = vrot.lane.b32.xlu0 %v4443_v12, %s13372_s5  ;;  %v4415_v15 = vmul.f32 %v10002_v30, %v4413_v47  ;;  %v4787_v30 = vrot.slane %v12008_v22, 4 }
0x2dff   : > { %v4409_v33 = vpop.permute.xlu0 %4408 }
0x2e00   : > { %v4411_v38 = vmul.f32 %v4409_v33, %v4406_v54 }
0x2e02   : > { %v4416_v46 = vadd.f32 %v4415_v15, %v4411_v38 }
0x2e25   : > { %v4446_v6 = vpop.permute.xlu0 %4445 }
0x2e26   : > { %v4448_v45 = vadd.f32 %v4446_v6, %v4416_v46 }
0x2e28   : > { %4450 = vrot.lane.b32.xlu1 %v4448_v45, %s10764_s26 }
0x2e9a   : > { %v4451_v59 = vpop.permute.xlu1 %4450 }
0x2e9b   : > { %4453 = vst.msk [vmem:[#allocation3 + $0x2] sm:$0x1] %vm1161_vm2, %v4451_v59 }
0x2ea2   : > { %v4528_v39 = vld [vmem:[#allocation3] sm:$0xff] }
0x2ea3   : > { %9186 = vmatmul.mubr.msk.f32.vlgmr.msra.gmra.mxu1 %vm891_vm0, %v4528_v39 }
0x2ea4   : > { %4815 = vmatpush1.msra.mxu1 %v11949_v23  ;;  %4854 = vmatprep.mubr.f32.mxu1 %v13374_v27  ;;  %v4523_v23 = vpop.f32.mrf.mxu0 }
0x2ea5   : > { %4816 = vmatprep.subr.mxu1 %v11954_v20 }
0x2ea6   : > { %4817 = vmatpush1.msra.mxu1 %v11961_v26  ;;  %v4525_v20 = vpop.f32.mrf.mxu0 }
0x2ea7   : > { %4818 = vmatprep.subr.mxu1 %v11968_v32  ;;  %v12252_v26 = vadd.f32 %v4525_v20, %v12023_v37 }
0x2ea8   : > { %4819 = vmatpush1.msra.mxu1 %v11975_v28 }
0x2ea9   : > { %4820 = vmatprep.subr.mxu1 %v11982_v50  ;;  %v4605_v32 = vrot.slane %v12252_v26, %v11254_v34 }
0x2eaa   : > { %4821 = vmatpush1.msra.mxu1 %v11989_v13 }
0x2eab   : > { %8746 = vmatmul.mubr.msk.f32.vlgmr.msra.gmra.mxu1 %vm891_vm0, %v4787_v30  ;;  %5007 = vmatprep.subr.mxu1 %v12096_v31 }
0x2eac   : > { %5008 = vmatpush1.msra.mxu1 %v12101_v24  ;;  %5047 = vmatprep.mubr.f32.mxu1 %v13374_v27 }
0x2ead   : > { %5009 = vmatprep.subr.mxu1 %v12104_v36 }
0x2eae   : > { %5010 = vmatpush1.msra.mxu1 %v12108_v60 }
0x2eaf   : > { %5011 = vmatprep.subr.mxu1 %v12112_v5 }
0x2eb0   : > { %5012 = vmatpush1.msra.mxu1 %v12116_v19 }
0x2eb1   : > { %5013 = vmatprep.subr.mxu1 %v12120_v21 }
0x2eb2   : > { %5014 = vmatpush1.msra.mxu1 %v12122_v55 }
0x2eb3   : > { %9199 = vmatprep.subr.mxu1 %v13374_v27 }
0x2f63   : > { %v4598_v28 = vpop.f32.mrf.mxu1 }
0x2f64   : > { %v4606_v50 = vadd.f32 %v4605_v32, %v4598_v28  ;;  %v4628_v13 = vmul.f32 %v4598_v28, %v11556_v58  ;;  %v4627_v45 = vmul.f32 %v4598_v28, %v11560_v2  ;;  %v4524_v28 = vadd.f32 %v4523_v23, %v12020_v48 }
0x2f65   : > { %v9187_v41 = vpop.f32.mrf.mxu1 }
0x2f66   : > { %v4607_v14 = vadd.f32 %v4606_v50, %v11551_v10  ;;  %4630 = vrot.lane.b32.xlu1 %v4628_v13, %s10764_s26 }
0x2f68   : > { %v4608_v63 = vsel %vm1321_vm3, %v4607_v14, -inf }
0x2f69   : > { %v4609_v25 = vrot.slane %v4608_v63, 4 }
0x2f6b   : > { %v4610_v44 = vmax.f32 %v4608_v63, %v4609_v25 }
0x2f6d   : > { %v4611_v49 = vrot.slane %v4610_v44, 2 }
0x2f6f   : > { %v4612_v16 = vmax.f32 %v4610_v44, %v4611_v49 }
0x2f71   : > { %v4613_v52 = vrot.slane %v4612_v16, 1 }
0x2f73   : > { %v4614_v51 = vmax.f32 %v4612_v16, %v4613_v52 }
0x2f75   : > { %v4615_v11 = vsub.f32 %v4607_v14, %v4614_v51 }
0x2f77   : > { %v4616_v42 = vmul.f32 1.442695, %v4615_v11 }
0x2f79   : > { %10011 = vpow2.f32 %v4616_v42 }
0x2f86   : > { %v10012_v56 = vpop.eup %10011 }
0x2f87   : > { %v4618_v12 = vsel %vm1321_vm3, %v10012_v56, 0.0 }
0x2f88   : > { %v4619_v58 = vrot.slane %v4618_v12, 4 }
0x2f8a   : > { %v4620_v33 = vadd.f32 %v4619_v58, %v4618_v12 }
0x2f8c   : > { %v4621_v54 = vrot.slane %v4620_v33, 2 }
0x2f8e   : > { %v4622_v10 = vadd.f32 %v4621_v54, %v4620_v33 }
0x2f90   : > { %v4623_v47 = vrot.slane %v4622_v10, 1 }
0x2f92   : > { %v4624_v38 = vadd.f32 %v4623_v47, %v4622_v10 }
0x2f94   : > { %10013 = vrcp.f32 %v4624_v38 }
0x2fa1   : > { %v10014_v15 = vpop.eup %10013 }
0x2fa2   : > { %v4626_v46 = vmul.f32 %v10014_v15, %v10012_v56 }
0x2fa4   : > { %4636 = vperm.xlu0 %9840, %v4626_v46  }
0x2fa8   : > { %4758 = vrot.lane.b32.xlu0 %v12252_v26, %s10766_s20 }
0x2fd8   : > { %v4631_v6 = vpop.permute.xlu1 %4630 }
0x2fd9   : > { %v4633_v59 = vadd.f32 %v4631_v6, %v4627_v45 }
0x301f   : > { %v4637_v39 = vpop.permute.xlu0 %4636 }
0x3020   : > { %v4639_v20 = vmul.f32 %v4637_v39, %v4633_v59 }
0x3022   : > { %v4640_v32 = vsel %vm891_vm0, %v4639_v20, 0.0 }
0x3023   : > { %v4641_v50 = vrot.slane %v4640_v32, 4  ;;  %v4759_v42 = vpop.permute.xlu0 %4758 }
0x3025   : > { %v4642_v13 = vadd.f32 %v4641_v50, %v4640_v32  ;;  %v13379_v50 = vrot.slane %v12008_v22, 3 }
0x3027   : > { %v4643_v41 = vrot.slane %v4642_v13, 2 }
0x3029   : > { %v4644_v14 = vadd.f32 %v4643_v41, %v4642_v13 }
0x302b   : > { %v4645_v63 = vrot.slane %v4644_v14, 1 }
0x302d   : > { %v4646_v25 = vadd.f32 %v4645_v63, %v4644_v14 }
0x302f   : > { %8743 = vmatmul.mubr.msk.f32.vlgmr.msra.gmra.mxu0 %vm891_vm0, %v4646_v25 }
0x3030   : > { %9189 = vmatpush3.msra.mxu0 %v12043_v9  ;;  %9196 = vmatprep.mubr.msk.f32.mxu0 %vm10763_vm1, %v13374_v27 }
0x3031   : > { %9190 = vmatprep.subr.mxu0 %v13374_v27 }
0x3032   : > { %9191 = vmatpush3.msra.mxu0 %v12048_v8 }
0x3033   : > { %9192 = vmatprep.subr.mxu0 %v13374_v27 }
0x3034   : > { %9193 = vmatpush3.msra.mxu0 %v12055_v61 }
0x3035   : > { %9194 = vmatprep.subr.mxu0 %v13374_v27 }
0x3036   : > { %9195 = vmatpush3.msra.mxu0 %v12062_v40 }
0x3037   : > { %5147 = vmatprep.subr.mxu0 %v11944_v4 }
0x30ef   : > { %v4716_v2 = vpop.f32.mrf.mxu0 }
0x30f0   : > { %v4717_v44 = vadd.f32 %v4716_v2, %v12003_v29 }
0x30f1   : > { %v4718_v23 = vpop.f32.mrf.mxu0 }
0x30f2   : > { %v4721_v49 = vadd.f32 %v4717_v44, %v4524_v28  ;;  %4729 = vrot.lane.b32.xlu1 %v4717_v44, %s10766_s20  ;;  %v4719_v58 = vadd.f32 %v4718_v23, %v12153_v1  ;;  %v12326_v23 = vld [vmem:[%s13366_s9 + $0x48] sm:$0xff] }
0x30f4   : > { %v8744_v16 = vmul.f32 -1.442695, %v4721_v49  ;;  %v4750_v15 = vadd.f32 %v4719_v58, %v12252_v26 }
0x30f6   : > { %10015 = vpow2.f32 %v8744_v16  ;;  %v8745_v46 = vmul.f32 -1.442695, %v4750_v15 }
0x3103   : > { %v10016_v52 = vpop.eup %10015 }
0x3104   : > { %v4725_v51 = vadd.f32 1.0, %v10016_v52 }
0x3106   : > { %10017 = vrcp.f32 %v4725_v51 }
0x3113   : > { %v10018_v11 = vpop.eup %10017 }
0x3114   : > { %v4761_v56 = vmul.f32 %v10018_v11, %v4759_v42  ;;  %v4739_v26 = vsub.f32 1.0, %v10018_v11  ;;  %v12295_v42 = vld [vmem:[%s13366_s9 + $0x70] sm:$0xff] }
0x3116   : > { %4763 = vrot.lane.b32.xlu0 %v4761_v56, %s10766_s20  ;;  %v12308_v56 = vld [vmem:[%s13366_s9 + $0x60] sm:$0xff] }
0x3164   : > { %v4730_v12 = vpop.permute.xlu1 %4729 }
0x3165   : > { %v4732_v4 = vmul.f32 %v10018_v11, %v4730_v12  ;;  %v12314_v12 = vld [vmem:[%s13366_s9 + $0x58] sm:$0xff] }
0x3167   : > { %4734 = vrot.lane.b32.xlu1 %v4732_v4, %s10766_s20  ;;  %v12320_v4 = vld [vmem:[%s13366_s9 + $0x50] sm:$0xff] }
0x3188   : > { %v4764_v33 = vpop.permute.xlu0 %4763 }
0x3189   : > { %v4766_v54 = vadd.f32 %v4764_v33, %v4719_v58  ;;  %v5120_v58 = vrot.slane %v12008_v22, 5  ;;  %v12333_v33 = vld [vmem:[%s13366_s9 + $0x40] sm:$0xff] }
0x318b   : > { %10019 = vtanh.f32 %v4766_v54  ;;  %v4856_v54 = vpop.f32.mrf.mxu1 }
0x3198   : > { %v10020_v10 = vpop.eup %10019 }
0x3199   : > { %4770 = vrot.lane.b32.xlu0 %v10020_v10, %s10764_s26  ;;  %v4858_v10 = vpop.f32.mrf.mxu1 }
0x319d   : > { %4745 = vrot.lane.b32.xlu0 %v4646_v25, %s13372_s5 }
0x31d9   : > { %v4735_v47 = vpop.permute.xlu1 %4734 }
0x31da   : > { %v4737_v38 = vadd.f32 %v4735_v47, %v4524_v28  ;;  %v12350_v47 = vadd.f32 %v4858_v10, %v12023_v37 }
0x31dc   : > { %10021 = vtanh.f32 %v4737_v38  ;;  %v4938_v38 = vrot.slane %v12350_v47, %v11254_v34 }
0x31dd   : > { %10023 = vpow2.f32 %v8745_v46 }
0x31e9   : > { %v10022_v6 = vpop.eup %10021 }
0x31ea   : > { %4741 = vrot.lane.b32.xlu1 %v10022_v6, %s10764_s26  ;;  %v10024_v45 = vpop.eup %10023 }
0x31eb   : > { %v4754_v59 = vadd.f32 1.0, %v10024_v45 }
0x31ed   : > { %10025 = vrcp.f32 %v4754_v59  ;;  %v13380_v59 = vld [vmem:[#allocation37_spill] sm:$0xff] }
0x31fa   : > { %v10026_v39 = vpop.eup %10025 }
0x31fb   : > { %v4768_v20 = vsub.f32 1.0, %v10026_v39  ;;  %v4775_v13 = vmul.f32 %v10026_v39, %v13379_v50 }
0x320b   : > { %v4771_v32 = vpop.permute.xlu0 %4770 }
0x320c   : > { %v4773_v41 = vmul.f32 %v4771_v32, %v4768_v20 }
0x320e   : > { %v4776_v14 = vadd.f32 %v4775_v13, %v4773_v41 }
0x320f   : > { %v4746_v25 = vpop.permute.xlu0 %4745 }
0x3210   : > { %4778 = vrot.lane.b32.xlu1 %v4776_v14, %s13372_s5  ;;  %v4748_v28 = vmul.f32 %v10018_v11, %v4746_v25  ;;  %v12302_v11 = vld [vmem:[%s13366_s9 + $0x68] sm:$0xff] }
0x325c   : > { %v4742_v63 = vpop.permute.xlu1 %4741 }
0x325d   : > { %v4744_v2 = vmul.f32 %v4742_v63, %v4739_v26 }
0x325f   : > { %v4749_v44 = vadd.f32 %v4748_v28, %v4744_v2 }
0x3282   : > { %v4779_v49 = vpop.permute.xlu1 %4778 }
0x3283   : > { %v4781_v16 = vadd.f32 %v4779_v49, %v4749_v44 }
0x3285   : > { %4783 = vrot.lane.b32.xlu0 %v4781_v16, %s10764_s26 }
0x32f7   : > { %v4784_v52 = vpop.permute.xlu0 %4783 }
0x32f8   : > { %4786 = vst.msk [vmem:[#allocation3 + $0x3] sm:$0x1] %vm1161_vm2, %v4784_v52 }
0x32ff   : > { %v4861_v51 = vld [vmem:[#allocation3] sm:$0xff] }
0x3300   : > { %9197 = vmatmul.mubr.msk.f32.vlgmr.msra.gmra.mxu0 %vm891_vm0, %v4861_v51 }
0x3301   : > { %5148 = vmatpush1.msra.mxu0 %v12295_v42  ;;  %5187 = vmatprep.mubr.f32.mxu0 %v13374_v27 }
0x3302   : > { %5149 = vmatprep.subr.mxu0 %v12302_v11 }
0x3303   : > { %5150 = vmatpush1.msra.mxu0 %v12308_v56 }
0x3304   : > { %5151 = vmatprep.subr.mxu0 %v12314_v12 }
0x3305   : > { %5152 = vmatpush1.msra.mxu0 %v12320_v4 }
0x3306   : > { %5153 = vmatprep.subr.mxu0 %v12326_v23 }
0x3307   : > { %5154 = vmatpush1.msra.mxu0 %v12333_v33 }
0x3308   : > { %8751 = vmatmul.mubr.msk.f32.vlgmr.msra.gmra.mxu0 %vm891_vm0, %v5120_v58  ;;  %5340 = vmatprep.subr.mxu0 %v12096_v31 }
0x3309   : > { %5341 = vmatpush1.msra.mxu0 %v12101_v24  ;;  %5380 = vmatprep.mubr.f32.mxu0 %v13374_v27 }
0x330a   : > { %5342 = vmatprep.subr.mxu0 %v12104_v36 }
0x330b   : > { %5343 = vmatpush1.msra.mxu0 %v12108_v60 }
0x330c   : > { %5344 = vmatprep.subr.mxu0 %v12112_v5 }
0x330d   : > { %5345 = vmatpush1.msra.mxu0 %v12116_v19 }
0x330e   : > { %5346 = vmatprep.subr.mxu0 %v12120_v21 }
0x330f   : > { %5347 = vmatpush1.msra.mxu0 %v12122_v55 }
0x3310   : > { %9210 = vmatprep.subr.mxu0 %v13374_v27 }
0x33c0   : > { %v4931_v15 = vpop.f32.mrf.mxu0 }
0x33c1   : > { %v4939_v46 = vadd.f32 %v4938_v38, %v4931_v15  ;;  %v4961_v6 = vmul.f32 %v4931_v15, %v11663_v62 }
0x33c2   : > { %v9198_v45 = vpop.f32.mrf.mxu0 }
0x33c3   : > { %v4940_v39 = vadd.f32 %v4939_v46, %v13380_v59  ;;  %4963 = vrot.lane.b32.xlu0 %v4961_v6, %s10764_s26  ;;  %v13381_v6 = vld [vmem:[#allocation38_spill] sm:$0xff] }
0x33c4   : > { %v4960_v45 = vmul.f32 %v4931_v15, %v13381_v6  ;;  %v12376_v15 = vld [vmem:[%s13366_s9 + $0x78] sm:$0xff] }
0x33c5   : > { %v4941_v20 = vsel %vm1321_vm3, %v4940_v39, -inf }
0x33c6   : > { %v4942_v32 = vrot.slane %v4941_v20, 4 }
0x33c8   : > { %v4943_v50 = vmax.f32 %v4941_v20, %v4942_v32 }
0x33ca   : > { %v4944_v13 = vrot.slane %v4943_v50, 2 }
0x33cc   : > { %v4945_v41 = vmax.f32 %v4943_v50, %v4944_v13 }
0x33ce   : > { %v4946_v14 = vrot.slane %v4945_v41, 1 }
0x33d0   : > { %v4947_v63 = vmax.f32 %v4945_v41, %v4946_v14 }
0x33d2   : > { %v4948_v26 = vsub.f32 %v4940_v39, %v4947_v63 }
0x33d4   : > { %v4949_v25 = vmul.f32 1.442695, %v4948_v26 }
0x33d6   : > { %10027 = vpow2.f32 %v4949_v25  ;;  %v4857_v25 = vadd.f32 %v4856_v54, %v12020_v48 }
0x33e3   : > { %v10028_v2 = vpop.eup %10027 }
0x33e4   : > { %v4951_v28 = vsel %vm1321_vm3, %v10028_v2, 0.0 }
0x33e5   : > { %v4952_v62 = vrot.slane %v4951_v28, 4 }
0x33e7   : > { %v4953_v44 = vadd.f32 %v4952_v62, %v4951_v28 }
0x33e9   : > { %v4954_v49 = vrot.slane %v4953_v44, 2 }
0x33eb   : > { %v4955_v16 = vadd.f32 %v4954_v49, %v4953_v44 }
0x33ed   : > { %v4956_v52 = vrot.slane %v4955_v16, 1 }
0x33ef   : > { %v4957_v51 = vadd.f32 %v4956_v52, %v4955_v16 }
0x33f1   : > { %10029 = vrcp.f32 %v4957_v51 }
0x33fe   : > { %v10030_v10 = vpop.eup %10029 }
0x33ff   : > { %v4959_v38 = vmul.f32 %v10030_v10, %v10028_v2 }
0x3401   : > { %4969 = vperm.xlu1 %9839, %v4959_v38  }
0x3405   : > { %5091 = vrot.lane.b32.xlu1 %v12350_v47, %s10766_s20 }
0x3435   : > { %v4964_v46 = vpop.permute.xlu0 %4963 }
0x3436   : > { %v4966_v59 = vadd.f32 %v4964_v46, %v4960_v45 }
0x347c   : > { %v4970_v39 = vpop.permute.xlu1 %4969 }
0x347d   : > { %v4972_v20 = vmul.f32 %v4970_v39, %v4966_v59 }
0x347f   : > { %v4973_v32 = vsel %vm891_vm0, %v4972_v20, 0.0 }
0x3480   : > { %v4974_v50 = vrot.slane %v4973_v32, 4  ;;  %v5092_v44 = vpop.permute.xlu1 %5091 }
0x3482   : > { %v4975_v13 = vadd.f32 %v4974_v50, %v4973_v32 }
0x3484   : > { %v4976_v41 = vrot.slane %v4975_v13, 2 }
0x3486   : > { %v4977_v14 = vadd.f32 %v4976_v41, %v4975_v13 }
0x3488   : > { %v4978_v63 = vrot.slane %v4977_v14, 1 }
0x348a   : > { %v4979_v26 = vadd.f32 %v4978_v63, %v4977_v14 }
0x348c   : > { %8748 = vmatmul.mubr.msk.f32.vlgmr.msra.gmra.mxu1 %vm891_vm0, %v4979_v26 }
0x348d   : > { %9200 = vmatpush3.msra.mxu1 %v12043_v9  ;;  %9207 = vmatprep.mubr.msk.f32.mxu1 %vm10763_vm1, %v13374_v27 }
0x348e   : > { %9201 = vmatprep.subr.mxu1 %v13374_v27 }
0x348f   : > { %9202 = vmatpush3.msra.mxu1 %v12048_v8 }
0x3490   : > { %9203 = vmatprep.subr.mxu1 %v13374_v27 }
0x3491   : > { %9204 = vmatpush3.msra.mxu1 %v12055_v61 }
0x3492   : > { %9205 = vmatprep.subr.mxu1 %v13374_v27 }
0x3493   : > { %9206 = vmatpush3.msra.mxu1 %v12062_v40 }
0x3494   : > { %5480 = vmatprep.subr.mxu1 %v12376_v15 }
0x354c   : > { %v5049_v9 = vpop.f32.mrf.mxu1 }
0x354d   : > { %v5050_v8 = vadd.f32 %v5049_v9, %v12003_v29 }
0x354e   : > { %v5051_v54 = vpop.f32.mrf.mxu1 }
0x354f   : > { %v5054_v2 = vadd.f32 %v5050_v8, %v4857_v25  ;;  %5062 = vrot.lane.b32.xlu0 %v5050_v8, %s10766_s20  ;;  %v5052_v51 = vadd.f32 %v5051_v54, %v12153_v1 }
0x3551   : > { %v8749_v61 = vmul.f32 -1.442695, %v5054_v2  ;;  %v5083_v59 = vadd.f32 %v5052_v51, %v12350_v47 }
0x3553   : > { %10031 = vpow2.f32 %v8749_v61  ;;  %v8750_v39 = vmul.f32 -1.442695, %v5083_v59 }
0x3560   : > { %v10032_v28 = vpop.eup %10031 }
0x3561   : > { %v5058_v62 = vadd.f32 1.0, %v10032_v28 }
0x3563   : > { %10033 = vrcp.f32 %v5058_v62 }
0x3570   : > { %v10034_v40 = vpop.eup %10033 }
0x3571   : > { %v5094_v49 = vmul.f32 %v10034_v40, %v5092_v44  ;;  %v5072_v47 = vsub.f32 1.0, %v10034_v40 }
0x3573   : > { %5096 = vrot.lane.b32.xlu1 %v5094_v49, %s10766_s20 }
0x35c1   : > { %v5063_v16 = vpop.permute.xlu0 %5062 }
0x35c2   : > { %v5065_v52 = vmul.f32 %v10034_v40, %v5063_v16 }
0x35c4   : > { %5067 = vrot.lane.b32.xlu0 %v5065_v52, %s10766_s20  ;;  %v5189_v52 = vpop.f32.mrf.mxu0 }
0x35e5   : > { %v5097_v10 = vpop.permute.xlu1 %5096 }
0x35e6   : > { %v5099_v38 = vadd.f32 %v5097_v10, %v5052_v51 }
0x35e8   : > { %10035 = vtanh.f32 %v5099_v38 }
0x35f5   : > { %v10036_v46 = vpop.eup %10035 }
0x35f6   : > { %5103 = vrot.lane.b32.xlu1 %v10036_v46, %s10764_s26 }
0x35fa   : > { %5078 = vrot.lane.b32.xlu1 %v4979_v26, %s13372_s5 }
0x3636   : > { %v5068_v6 = vpop.permute.xlu0 %5067 }
0x3637   : > { %v5070_v45 = vadd.f32 %v5068_v6, %v4857_v25 }
0x3639   : > { %10037 = vtanh.f32 %v5070_v45 }
0x363a   : > { %10039 = vpow2.f32 %v8750_v39 }
0x3646   : > { %v10038_v20 = vpop.eup %10037 }
0x3647   : > { %5074 = vrot.lane.b32.xlu0 %v10038_v20, %s10764_s26  ;;  %v10040_v32 = vpop.eup %10039 }
0x3648   : > { %v5087_v50 = vadd.f32 1.0, %v10040_v32 }
0x364a   : > { %10041 = vrcp.f32 %v5087_v50 }
0x3657   : > { %v10042_v13 = vpop.eup %10041 }
0x3658   : > { %v5101_v41 = vsub.f32 1.0, %v10042_v13  ;;  %v5108_v63 = vmul.f32 %v10042_v13, %v4787_v30  ;;  %v12402_v30 = vld [vmem:[#allocation2] sm:$0xff] }
0x3659   : > { %v5786_v22 = vrot.slane %v12402_v30, 7 }
0x3668   : > { %v5104_v14 = vpop.permute.xlu1 %5103 }
0x3669   : > { %v5106_v26 = vmul.f32 %v5104_v14, %v5101_v41 }
0x366b   : > { %v5109_v9 = vadd.f32 %v5108_v63, %v5106_v26 }
0x366c   : > { %v5079_v8 = vpop.permute.xlu1 %5078 }
0x366d   : > { %5111 = vrot.lane.b32.xlu0 %v5109_v9, %s13372_s5  ;;  %v5081_v61 = vmul.f32 %v10034_v40, %v5079_v8  ;;  %v5453_v40 = vrot.slane %v12402_v30, 6 }
0x36b9   : > { %v5075_v25 = vpop.permute.xlu0 %5074 }
0x36ba   : > { %v5077_v2 = vmul.f32 %v5075_v25, %v5072_v47 }
0x36bc   : > { %v5082_v28 = vadd.f32 %v5081_v61, %v5077_v2 }
0x36df   : > { %v5112_v62 = vpop.permute.xlu0 %5111 }
0x36e0   : > { %v5114_v44 = vadd.f32 %v5112_v62, %v5082_v28 }
0x36e2   : > { %5116 = vrot.lane.b32.xlu1 %v5114_v44, %s10764_s26 }
0x3754   : > { %v5117_v49 = vpop.permute.xlu1 %5116 }
0x3755   : > { %5119 = vst.msk [vmem:[#allocation3 + $0x4] sm:$0x1] %vm1161_vm2, %v5117_v49 }
0x375c   : > { %v5194_v16 = vld [vmem:[#allocation3] sm:$0xff] }
0x375d   : > { %9208 = vmatmul.mubr.msk.f32.vlgmr.msra.gmra.mxu1 %vm891_vm0, %v5194_v16 }
0x375e   : > { %5481 = vmatpush1.msra.mxu1 %v12295_v42  ;;  %5520 = vmatprep.mubr.f32.mxu1 %v13374_v27 }
0x375f   : > { %5482 = vmatprep.subr.mxu1 %v12302_v11 }
0x3760   : > { %5483 = vmatpush1.msra.mxu1 %v12308_v56 }
0x3761   : > { %5484 = vmatprep.subr.mxu1 %v12314_v12 }
0x3762   : > { %5485 = vmatpush1.msra.mxu1 %v12320_v4 }
0x3763   : > { %5486 = vmatprep.subr.mxu1 %v12326_v23 }
0x3764   : > { %5487 = vmatpush1.msra.mxu1 %v12333_v33 }
0x3765   : > { %8756 = vmatmul.mubr.msk.f32.vlgmr.msra.gmra.mxu1 %vm891_vm0, %v5453_v40  ;;  %5673 = vmatprep.subr.mxu1 %v12096_v31  ;;  %v5191_v31 = vpop.f32.mrf.mxu0 }
0x3766   : > { %5674 = vmatpush1.msra.mxu1 %v12101_v24  ;;  %5713 = vmatprep.mubr.f32.mxu1 %v13374_v27  ;;  %v12420_v24 = vadd.f32 %v5191_v31, %v12023_v37 }
0x3767   : > { %5675 = vmatprep.subr.mxu1 %v12104_v36 }
0x3768   : > { %5676 = vmatpush1.msra.mxu1 %v12108_v60  ;;  %v5271_v36 = vrot.slane %v12420_v24, %v11254_v34 }
0x3769   : > { %5677 = vmatprep.subr.mxu1 %v12112_v5 }
0x376a   : > { %5678 = vmatpush1.msra.mxu1 %v12116_v19  ;;  %v13382_v19 = vld [vmem:[#allocation39_spill] sm:$0xff] }
0x376b   : > { %5679 = vmatprep.subr.mxu1 %v12120_v21 }
0x376c   : > { %5680 = vmatpush1.msra.mxu1 %v12122_v55 }
0x376d   : > { %9221 = vmatprep.subr.mxu1 %v13374_v27 }
0x381d   : > { %v5264_v54 = vpop.f32.mrf.mxu1 }
0x381e   : > { %v5272_v60 = vadd.f32 %v5271_v36, %v5264_v54  ;;  %v5294_v5 = vmul.f32 %v5264_v54, %v11790_v53  ;;  %v5293_v8 = vmul.f32 %v5264_v54, %v11794_v57  ;;  %v12446_v57 = vld [vmem:[%s13369_s28 + $0x30] sm:$0xff]  ;;  %v12453_v54 = vld [vmem:[%s13369_s28 + $0x28] sm:$0xff] }
0x381f   : > { %v9209_v51 = vpop.f32.mrf.mxu1 }
0x3820   : > { %v5273_v10 = vadd.f32 %v5272_v60, %v13382_v19  ;;  %5296 = vrot.lane.b32.xlu1 %v5294_v5, %s10764_s26  ;;  %v12437_v5 = vld [vmem:[%s13369_s28 + $0x38] sm:$0xff]  ;;  %v12460_v51 = vld [vmem:[%s13369_s28 + $0x20] sm:$0xff] }
0x3822   : > { %v5274_v21 = vsel %vm1321_vm3, %v5273_v10, -inf }
0x3823   : > { %v5275_v55 = vrot.slane %v5274_v21, 4 }
0x3825   : > { %v5276_v38 = vmax.f32 %v5274_v21, %v5275_v55 }
0x3827   : > { %v5277_v46 = vrot.slane %v5276_v38, 2 }
0x3829   : > { %v5278_v6 = vmax.f32 %v5276_v38, %v5277_v46 }
0x382b   : > { %v5279_v45 = vrot.slane %v5278_v6, 1 }
0x382d   : > { %v5280_v59 = vmax.f32 %v5278_v6, %v5279_v45 }
0x382f   : > { %v5281_v39 = vsub.f32 %v5273_v10, %v5280_v59  ;;  %v5190_v10 = vadd.f32 %v5189_v52, %v12020_v48 }
0x3831   : > { %v5282_v20 = vmul.f32 1.442695, %v5281_v39 }
0x3833   : > { %10043 = vpow2.f32 %v5282_v20 }
0x3840   : > { %v10044_v32 = vpop.eup %10043 }
0x3841   : > { %v5284_v50 = vsel %vm1321_vm3, %v10044_v32, 0.0 }
0x3842   : > { %v5285_v53 = vrot.slane %v5284_v50, 4 }
0x3844   : > { %v5286_v13 = vadd.f32 %v5285_v53, %v5284_v50 }
0x3846   : > { %v5287_v41 = vrot.slane %v5286_v13, 2 }
0x3848   : > { %v5288_v14 = vadd.f32 %v5287_v41, %v5286_v13 }
0x384a   : > { %v5289_v63 = vrot.slane %v5288_v14, 1 }
0x384c   : > { %v5290_v26 = vadd.f32 %v5289_v63, %v5288_v14 }
0x384e   : > { %10045 = vrcp.f32 %v5290_v26 }
0x385b   : > { %v10046_v9 = vpop.eup %10045 }
0x385c   : > { %v5292_v25 = vmul.f32 %v10046_v9, %v10044_v32 }
0x385e   : > { %5302 = vperm.xlu0 %9840, %v5292_v25  }
0x3862   : > { %5424 = vrot.lane.b32.xlu0 %v12420_v24, %s10766_s20 }
0x3892   : > { %v5297_v47 = vpop.permute.xlu1 %5296 }
0x3893   : > { %v5299_v2 = vadd.f32 %v5297_v47, %v5293_v8 }
0x38d9   : > { %v5303_v61 = vpop.permute.xlu0 %5302 }
0x38da   : > { %v5305_v28 = vmul.f32 %v5303_v61, %v5299_v2 }
0x38dc   : > { %v5306_v62 = vsel %vm891_vm0, %v5305_v28, 0.0 }
0x38dd   : > { %v5307_v44 = vrot.slane %v5306_v62, 4  ;;  %v5425_v59 = vpop.permute.xlu0 %5424 }
0x38df   : > { %v5308_v49 = vadd.f32 %v5307_v44, %v5306_v62 }
0x38e1   : > { %v5309_v16 = vrot.slane %v5308_v49, 2 }
0x38e3   : > { %v5310_v31 = vadd.f32 %v5309_v16, %v5308_v49 }
0x38e5   : > { %v5311_v36 = vrot.slane %v5310_v31, 1 }
0x38e7   : > { %v5312_v60 = vadd.f32 %v5311_v36, %v5310_v31 }
0x38e9   : > { %8753 = vmatmul.mubr.msk.f32.vlgmr.msra.gmra.mxu0 %vm891_vm0, %v5312_v60 }
0x38ea   : > { %9211 = vmatpush3.msra.mxu0 %v12437_v5  ;;  %9218 = vmatprep.mubr.msk.f32.mxu0 %vm10763_vm1, %v13374_v27 }
0x38eb   : > { %9212 = vmatprep.subr.mxu0 %v13374_v27 }
0x38ec   : > { %9213 = vmatpush3.msra.mxu0 %v12446_v57 }
0x38ed   : > { %9214 = vmatprep.subr.mxu0 %v13374_v27 }
0x38ee   : > { %9215 = vmatpush3.msra.mxu0 %v12453_v54 }
0x38ef   : > { %9216 = vmatprep.subr.mxu0 %v13374_v27 }
0x38f0   : > { %9217 = vmatpush3.msra.mxu0 %v12460_v51 }
0x38f1   : > { %5813 = vmatprep.subr.mxu0 %v12376_v15 }
0x39a9   : > { %v5382_v19 = vpop.f32.mrf.mxu0 }
0x39aa   : > { %v5383_v21 = vadd.f32 %v5382_v19, %v12003_v29 }
0x39ab   : > { %v5384_v52 = vpop.f32.mrf.mxu0 }
0x39ac   : > { %v5387_v55 = vadd.f32 %v5383_v21, %v5190_v10  ;;  %5395 = vrot.lane.b32.xlu1 %v5383_v21, %s10766_s20  ;;  %v5385_v32 = vadd.f32 %v5384_v52, %v12153_v1 }
0x39ae   : > { %v8754_v38 = vmul.f32 -1.442695, %v5387_v55  ;;  %v5416_v63 = vadd.f32 %v5385_v32, %v12420_v24 }
0x39b0   : > { %10047 = vpow2.f32 %v8754_v38  ;;  %v8755_v26 = vmul.f32 -1.442695, %v5416_v63  ;;  %v5522_v38 = vpop.f32.mrf.mxu1 }
0x39bd   : > { %v10048_v46 = vpop.eup %10047 }
0x39be   : > { %v5391_v6 = vadd.f32 1.0, %v10048_v46  ;;  %v5524_v46 = vpop.f32.mrf.mxu1 }
0x39c0   : > { %10049 = vrcp.f32 %v5391_v6  ;;  %v12495_v6 = vadd.f32 %v5524_v46, %v12023_v37 }
0x39cd   : > { %v10050_v45 = vpop.eup %10049 }
0x39ce   : > { %v5427_v39 = vmul.f32 %v10050_v45, %v5425_v59  ;;  %v5405_v24 = vsub.f32 1.0, %v10050_v45 }
0x39d0   : > { %5429 = vrot.lane.b32.xlu0 %v5427_v39, %s10766_s20 }
0x3a1e   : > { %v5396_v20 = vpop.permute.xlu1 %5395 }
0x3a1f   : > { %v5398_v15 = vmul.f32 %v10050_v45, %v5396_v20 }
0x3a21   : > { %5400 = vrot.lane.b32.xlu1 %v5398_v15, %s10766_s20 }
0x3a42   : > { %v5430_v50 = vpop.permute.xlu0 %5429 }
0x3a43   : > { %v5432_v53 = vadd.f32 %v5430_v50, %v5385_v32 }
0x3a45   : > { %10051 = vtanh.f32 %v5432_v53 }
0x3a52   : > { %v10052_v13 = vpop.eup %10051 }
0x3a53   : > { %5436 = vrot.lane.b32.xlu0 %v10052_v13, %s10764_s26 }
0x3a57   : > { %5411 = vrot.lane.b32.xlu0 %v5312_v60, %s13372_s5 }
0x3a93   : > { %v5401_v41 = vpop.permute.xlu1 %5400 }
0x3a94   : > { %v5403_v14 = vadd.f32 %v5401_v41, %v5190_v10 }
0x3a96   : > { %10053 = vtanh.f32 %v5403_v14 }
0x3a97   : > { %10055 = vpow2.f32 %v8755_v26 }
0x3aa3   : > { %v10054_v9 = vpop.eup %10053 }
0x3aa4   : > { %5407 = vrot.lane.b32.xlu1 %v10054_v9, %s10764_s26  ;;  %v10056_v25 = vpop.eup %10055 }
0x3aa5   : > { %v5420_v47 = vadd.f32 1.0, %v10056_v25 }
0x3aa7   : > { %10057 = vrcp.f32 %v5420_v47 }
0x3ab4   : > { %v10058_v8 = vpop.eup %10057 }
0x3ab5   : > { %v5434_v2 = vsub.f32 1.0, %v10058_v8  ;;  %v5441_v28 = vmul.f32 %v10058_v8, %v5120_v58  ;;  %v10255_v58 = vld [vmem:[#allocation12 + $0x70] sm:$0xff] }
0x3ac5   : > { %v5437_v61 = vpop.permute.xlu0 %5436 }
0x3ac6   : > { %v5439_v62 = vmul.f32 %v5437_v61, %v5434_v2 }
0x3ac8   : > { %v5442_v44 = vadd.f32 %v5441_v28, %v5439_v62 }
0x3ac9   : > { %v5412_v16 = vpop.permute.xlu0 %5411 }
0x3aca   : > { %5444 = vrot.lane.b32.xlu1 %v5442_v44, %s13372_s5  ;;  %v5414_v36 = vmul.f32 %v10050_v45, %v5412_v16  ;;  %v5604_v45 = vrot.slane %v12495_v6, %v11254_v34 }
0x3b16   : > { %v5408_v49 = vpop.permute.xlu1 %5407 }
0x3b17   : > { %v5410_v31 = vmul.f32 %v5408_v49, %v5405_v24 }
0x3b19   : > { %v5415_v60 = vadd.f32 %v5414_v36, %v5410_v31 }
0x3b3c   : > { %v5445_v19 = vpop.permute.xlu1 %5444 }
0x3b3d   : > { %v5447_v10 = vadd.f32 %v5445_v19, %v5415_v60 }
0x3b3f   : > { %5449 = vrot.lane.b32.xlu0 %v5447_v10, %s10764_s26 }
0x3bb1   : > { %v5450_v21 = vpop.permute.xlu0 %5449 }
0x3bb2   : > { %5452 = vst.msk [vmem:[#allocation3 + $0x5] sm:$0x1] %vm1161_vm2, %v5450_v21 }
0x3bb9   : > { %v5527_v55 = vld [vmem:[#allocation3] sm:$0xff] }
0x3bba   : > { %9219 = vmatmul.mubr.msk.f32.vlgmr.msra.gmra.mxu0 %vm891_vm0, %v5527_v55 }
0x3bbb   : > { %5814 = vmatpush1.msra.mxu0 %v12295_v42  ;;  %5853 = vmatprep.mubr.f32.mxu0 %v13374_v27  ;;  %v10254_v42 = vld [vmem:[#allocation12 + $0x78] sm:$0xff] }
0x3bbc   : > { %5815 = vmatprep.subr.mxu0 %v12302_v11  ;;  %v10256_v11 = vld [vmem:[#allocation12 + $0x68] sm:$0xff] }
0x3bbd   : > { %5816 = vmatpush1.msra.mxu0 %v12308_v56  ;;  %v10257_v56 = vld [vmem:[#allocation12 + $0x60] sm:$0xff] }
0x3bbe   : > { %5817 = vmatprep.subr.mxu0 %v12314_v12  ;;  %v10258_v12 = vld [vmem:[#allocation12 + $0x58] sm:$0xff] }
0x3bbf   : > { %5818 = vmatpush1.msra.mxu0 %v12320_v4  ;;  %v10259_v4 = vld [vmem:[#allocation12 + $0x50] sm:$0xff] }
0x3bc0   : > { %5819 = vmatprep.subr.mxu0 %v12326_v23  ;;  %v10260_v23 = vld [vmem:[#allocation12 + $0x48] sm:$0xff] }
0x3bc1   : > { %5820 = vmatpush1.msra.mxu0 %v12333_v33  ;;  %v10261_v33 = vld [vmem:[#allocation12 + $0x40] sm:$0xff] }
0x3bc2   : > { %8761 = vmatmul.mubr.msk.f32.vlgmr.msra.gmra.mxu0 %vm891_vm0, %v5786_v22  ;;  %6006 = vmatprep.subr.mxu0 %v10254_v42 }
0x3bc3   : > { %6007 = vmatpush1.msra.mxu0 %v10255_v58  ;;  %6046 = vmatprep.mubr.f32.mxu0 %v13374_v27 }
0x3bc4   : > { %6008 = vmatprep.subr.mxu0 %v10256_v11 }
0x3bc5   : > { %6009 = vmatpush1.msra.mxu0 %v10257_v56 }
0x3bc6   : > { %6010 = vmatprep.subr.mxu0 %v10258_v12 }
0x3bc7   : > { %6011 = vmatpush1.msra.mxu0 %v10259_v4 }
0x3bc8   : > { %6012 = vmatprep.subr.mxu0 %v10260_v23 }
0x3bc9   : > { %6013 = vmatpush1.msra.mxu0 %v10261_v33 }
0x3bca   : > { %9243 = vmatprep.subr.mxu0 %v13374_v27 }
0x3c7a   : > { %v5597_v59 = vpop.f32.mrf.mxu0 }
0x3c7b   : > { %v5605_v39 = vadd.f32 %v5604_v45, %v5597_v59  ;;  %v5627_v20 = vmul.f32 %v5597_v59, %v11854_v3  ;;  %v5626_v24 = vmul.f32 %v5597_v59, %v11867_v7 }
0x3c7c   : > { %v9220_v15 = vpop.f32.mrf.mxu0 }
0x3c7d   : > { %v5606_v52 = vadd.f32 %v5605_v39, %v11859_v35  ;;  %5629 = vrot.lane.b32.xlu0 %v5627_v20, %s10764_s26 }
0x3c7f   : > { %v5607_v32 = vsel %vm1321_vm3, %v5606_v52, -inf }
0x3c80   : > { %v5608_v50 = vrot.slane %v5607_v32, 4 }
0x3c82   : > { %v5609_v53 = vmax.f32 %v5607_v32, %v5608_v50 }
0x3c84   : > { %v5610_v13 = vrot.slane %v5609_v53, 2 }
0x3c86   : > { %v5611_v41 = vmax.f32 %v5609_v53, %v5610_v13 }
0x3c88   : > { %v5612_v14 = vrot.slane %v5611_v41, 1 }
0x3c8a   : > { %v5613_v63 = vmax.f32 %v5611_v41, %v5612_v14 }
0x3c8c   : > { %v5614_v26 = vsub.f32 %v5606_v52, %v5613_v63 }
0x3c8e   : > { %v5615_v9 = vmul.f32 1.442695, %v5614_v26 }
0x3c90   : > { %10059 = vpow2.f32 %v5615_v9 }
0x3c9d   : > { %v10060_v25 = vpop.eup %10059 }
0x3c9e   : > { %v5617_v47 = vsel %vm1321_vm3, %v10060_v25, 0.0 }
0x3c9f   : > { %v5618_v3 = vrot.slane %v5617_v47, 4 }
0x3ca1   : > { %v5619_v8 = vadd.f32 %v5618_v3, %v5617_v47 }
0x3ca3   : > { %v5620_v2 = vrot.slane %v5619_v8, 2 }
0x3ca5   : > { %v5621_v35 = vadd.f32 %v5620_v2, %v5619_v8 }
0x3ca7   : > { %v5622_v61 = vrot.slane %v5621_v35, 1 }
0x3ca9   : > { %v5623_v28 = vadd.f32 %v5622_v61, %v5621_v35 }
0x3cab   : > { %10061 = vrcp.f32 %v5623_v28 }
0x3cb8   : > { %v10062_v62 = vpop.eup %10061 }
0x3cb9   : > { %v5625_v44 = vmul.f32 %v10062_v62, %v10060_v25 }
0x3cbb   : > { %5635 = vperm.xlu1 %9839, %v5625_v44  }
0x3cbf   : > { %5757 = vrot.lane.b32.xlu1 %v12495_v6, %s10766_s20 }
0x3cef   : > { %v5630_v49 = vpop.permute.xlu0 %5629 }
0x3cf0   : > { %v5632_v16 = vadd.f32 %v5630_v49, %v5626_v24  ;;  %v6123_v49 = vld [vmem:[#allocation16 + $0x18] sm:$0xff]  ;;  %v6122_v24 = vld [vmem:[#allocation16 + $0x10] sm:$0xff] }
0x3d36   : > { %v5636_v31 = vpop.permute.xlu1 %5635 }
0x3d37   : > { %v5638_v36 = vmul.f32 %v5636_v31, %v5632_v16  ;;  %v6121_v16 = vld [vmem:[#allocation16 + $0x8] sm:$0xff]  ;;  %v6120_v31 = vld [vmem:[#allocation16] sm:$0xff] }
0x3d39   : > { %v5639_v60 = vsel %vm891_vm0, %v5638_v36, 0.0  ;;  %v6280_v36 = vld [vmem:[#allocation15 + $0x38] sm:$0xff] }
0x3d3a   : > { %v5640_v19 = vrot.slane %v5639_v60, 4  ;;  %v5758_v23 = vpop.permute.xlu1 %5757 }
0x3d3c   : > { %v5641_v10 = vadd.f32 %v5640_v19, %v5639_v60  ;;  %v10262_v60 = vld [vmem:[%s11125_s12] sm:$0xff]  ;;  %s8672_s12 = sshll.u32 %s11121_s11, 1 }
0x3d3d   : > { %v6279_v19 = vld [vmem:[#allocation15 + $0x30] sm:$0xff]  ;;  %s866_s6 = scalar_lea.vmem [#allocation27], %s8672_s12 }
0x3d3e   : > { %v5642_v21 = vrot.slane %v5641_v10, 2 }
0x3d40   : > { %v5643_v55 = vadd.f32 %v5642_v21, %v5641_v10  ;;  %v6278_v10 = vld [vmem:[#allocation15 + $0x28] sm:$0xff]  ;;  %v6277_v21 = vld [vmem:[#allocation15 + $0x20] sm:$0xff] }
0x3d42   : > { %v5644_v42 = vrot.slane %v5643_v55, 1 }
0x3d44   : > { %v5645_v58 = vadd.f32 %v5644_v42, %v5643_v55  ;;  %v12553_v55 = vpop.f32.mrf.mxu0 }
0x3d46   : > { %8758 = vmatmul.mubr.msk.f32.vlgmr.msra.gmra.mxu1 %vm891_vm0, %v5645_v58  ;;  %v5857_v42 = vpop.f32.mrf.mxu0 }
0x3d47   : > { %9222 = vmatpush3.msra.mxu1 %v12437_v5  ;;  %9229 = vmatprep.mubr.msk.f32.mxu1 %vm10763_vm1, %v13374_v27  ;;  %v5523_v5 = vadd.f32 %v5522_v38, %v12020_v48 }
0x3d48   : > { %9223 = vmatprep.subr.mxu1 %v13374_v27 }
0x3d49   : > { %9224 = vmatpush3.msra.mxu1 %v12446_v57 }
0x3d4a   : > { %9225 = vmatprep.subr.mxu1 %v13374_v27 }
0x3d4b   : > { %9226 = vmatpush3.msra.mxu1 %v12453_v54 }
0x3d4c   : > { %9227 = vmatprep.subr.mxu1 %v13374_v27 }
0x3d4d   : > { %9228 = vmatpush3.msra.mxu1 %v12460_v51 }
0x3d4e   : > { %9232 = vmatprep.subr.mxu1 %v13374_v27 }
0x3e06   : > { %v5715_v7 = vpop.f32.mrf.mxu1 }
0x3e07   : > { %v5716_v11 = vadd.f32 %v5715_v7, %v12003_v29 }
0x3e08   : > { %v5717_v38 = vpop.f32.mrf.mxu1 }
0x3e09   : > { %v5720_v56 = vadd.f32 %v5716_v11, %v5523_v5  ;;  %5728 = vrot.lane.b32.xlu0 %v5716_v11, %s10766_s20  ;;  %v5718_v45 = vadd.f32 %v5717_v38, %v12153_v1 }
0x3e0b   : > { %v8759_v12 = vmul.f32 -1.442695, %v5720_v56  ;;  %v5749_v32 = vadd.f32 %v5718_v45, %v12495_v6 }
0x3e0d   : > { %10063 = vpow2.f32 %v8759_v12  ;;  %v8760_v50 = vmul.f32 -1.442695, %v5749_v32 }
0x3e1a   : > { %v10064_v57 = vpop.eup %10063 }
0x3e1b   : > { %v5724_v4 = vadd.f32 1.0, %v10064_v57 }
0x3e1d   : > { %10065 = vrcp.f32 %v5724_v4 }
0x3e2a   : > { %v10066_v54 = vpop.eup %10065 }
0x3e2b   : > { %v5760_v33 = vmul.f32 %v10066_v54, %v5758_v23  ;;  %v5738_v6 = vsub.f32 1.0, %v10066_v54 }
0x3e2d   : > { %5762 = vrot.lane.b32.xlu1 %v5760_v33, %s10766_s20 }
0x3e7b   : > { %v5729_v51 = vpop.permute.xlu0 %5728 }
0x3e7c   : > { %v5731_v46 = vmul.f32 %v10066_v54, %v5729_v51 }
0x3e7e   : > { %5733 = vrot.lane.b32.xlu0 %v5731_v46, %s10766_s20 }
0x3e9f   : > { %v5763_v59 = vpop.permute.xlu1 %5762 }
0x3ea0   : > { %v5765_v39 = vadd.f32 %v5763_v59, %v5718_v45 }
0x3ea2   : > { %10067 = vtanh.f32 %v5765_v39 }
0x3eaf   : > { %v10068_v20 = vpop.eup %10067 }
0x3eb0   : > { %5769 = vrot.lane.b32.xlu1 %v10068_v20, %s10764_s26 }
0x3eb4   : > { %5744 = vrot.lane.b32.xlu1 %v5645_v58, %s13372_s5  ;;  %v12556_v58 = vadd.f32 %v5857_v42, %v12023_v37 }
0x3eb6   : > { %v5937_v7 = vrot.slane %v12556_v58, %v11254_v34 }
0x3ef0   : > { %v5734_v15 = vpop.permute.xlu0 %5733 }
0x3ef1   : > { %v5736_v52 = vadd.f32 %v5734_v15, %v5523_v5 }
0x3ef3   : > { %10069 = vtanh.f32 %v5736_v52 }
0x3ef4   : > { %10071 = vpow2.f32 %v8760_v50 }
0x3f00   : > { %v10070_v53 = vpop.eup %10069 }
0x3f01   : > { %5740 = vrot.lane.b32.xlu0 %v10070_v53, %s10764_s26  ;;  %v10072_v13 = vpop.eup %10071 }
0x3f02   : > { %v5753_v41 = vadd.f32 1.0, %v10072_v13 }
0x3f04   : > { %10073 = vrcp.f32 %v5753_v41 }
0x3f11   : > { %v10074_v14 = vpop.eup %10073 }
0x3f12   : > { %v5767_v63 = vsub.f32 1.0, %v10074_v14  ;;  %v5774_v9 = vmul.f32 %v10074_v14, %v5453_v40 }
0x3f22   : > { %v5770_v26 = vpop.permute.xlu1 %5769 }
0x3f23   : > { %v5772_v25 = vmul.f32 %v5770_v26, %v5767_v63 }
0x3f25   : > { %v5775_v47 = vadd.f32 %v5774_v9, %v5772_v25 }
0x3f26   : > { %v5745_v8 = vpop.permute.xlu1 %5744 }
0x3f27   : > { %5777 = vrot.lane.b32.xlu0 %v5775_v47, %s13372_s5  ;;  %v5747_v35 = vmul.f32 %v10066_v54, %v5745_v8 }
0x3f73   : > { %v5741_v3 = vpop.permute.xlu0 %5740 }
0x3f74   : > { %v5743_v2 = vmul.f32 %v5741_v3, %v5738_v6 }
0x3f76   : > { %v5748_v61 = vadd.f32 %v5747_v35, %v5743_v2 }
0x3f99   : > { %v5778_v28 = vpop.permute.xlu0 %5777 }
0x3f9a   : > { %v5780_v62 = vadd.f32 %v5778_v28, %v5748_v61 }
0x3f9c   : > { %5782 = vrot.lane.b32.xlu1 %v5780_v62, %s10764_s26  ;;  %v6204_v62 = vld [vmem:[#allocation15 + $0x18] sm:$0xff] }
0x400e   : > { %v5783_v44 = vpop.permute.xlu1 %5782 }
0x400f   : > { %5785 = vst.msk [vmem:[#allocation3 + $0x6] sm:$0x1] %vm1161_vm2, %v5783_v44  ;;  %v6203_v44 = vld [vmem:[#allocation15 + $0x10] sm:$0xff] }
0x4016   : > { %v5860_v40 = vld [vmem:[#allocation3] sm:$0xff] }
0x4017   : > { %9230 = vmatmul.mubr.msk.f32.vlgmr.msra.gmra.mxu1 %vm891_vm0, %v5860_v40 }
0x4018   : > { %9233 = vmatpush3.msra.mxu1 %v6123_v49  ;;  %9240 = vmatprep.mubr.msk.f32.mxu1 %vm10763_vm1, %v13374_v27  ;;  %v6201_v49 = vld [vmem:[#allocation15] sm:$0xff] }
0x4019   : > { %9234 = vmatprep.subr.mxu1 %v13374_v27 }
0x401a   : > { %9235 = vmatpush3.msra.mxu1 %v6122_v24  ;;  %v5856_v24 = vadd.f32 %v12553_v55, %v12020_v48 }
0x401b   : > { %9236 = vmatprep.subr.mxu1 %v13374_v27 }
0x401c   : > { %9237 = vmatpush3.msra.mxu1 %v6121_v16 }
0x401d   : > { %9238 = vmatprep.subr.mxu1 %v13374_v27 }
0x401e   : > { %9239 = vmatpush3.msra.mxu1 %v6120_v31  ;;  %v8766_v31 = vld [vmem:[#allocation18] ss:$0 sm:$0xff] }
0x401f   : > { %9254 = vmatprep.subr.mxu1 %v13374_v27  ;;  %9241 = vmatmul.mubr.msk.f32.vlgmr.msra.gmra.mxu1 %vm891_vm0, %v10262_v60 }
0x4020   : > { %9255 = vmatpush3.msra.mxu1 %v6280_v36  ;;  %9262 = vmatprep.mubr.msk.f32.mxu1 %vm10763_vm1, %v13374_v27 }
0x4021   : > { %9256 = vmatprep.subr.mxu1 %v13374_v27 }
0x4022   : > { %9257 = vmatpush3.msra.mxu1 %v6279_v19 }
0x4023   : > { %9258 = vmatprep.subr.mxu1 %v13374_v27 }
0x4024   : > { %9259 = vmatpush3.msra.mxu1 %v6278_v10 }
0x4025   : > { %9260 = vmatprep.subr.mxu1 %v13374_v27 }
0x4026   : > { %9261 = vmatpush3.msra.mxu1 %v6277_v21 }
0x4027   : > { %9263 = vmatmul.mubr.msk.f32.vlgmr.msra.gmra.mxu1 %vm891_vm0, %v12402_v30  ;;  %9276 = vmatprep.subr.mxu1 %v13374_v27 }
0x4028   : > { %9292 = vmatprep.mubr.msk.f32.mxu1 %vm10763_vm1, %v13374_v27 }
0x40d7   : > { %v5930_v5 = vpop.f32.mrf.mxu1 }
0x40d8   : > { %v5938_v11 = vadd.f32 %v5937_v7, %v5930_v5  ;;  %v5960_v56 = vmul.f32 %v5930_v5, %v11917_v17  ;;  %v5959_v26 = vmul.f32 %v5930_v5, %v11921_v43  ;;  %v6202_v43 = vld [vmem:[#allocation15 + $0x8] sm:$0xff] }
0x40d9   : > { %v9231_v12 = vpop.f32.mrf.mxu1 }
0x40da   : > { %v5939_v57 = vadd.f32 %v5938_v11, %v11912_v0  ;;  %5962 = vrot.lane.b32.xlu1 %v5960_v56, %s10764_s26 }
0x40dc   : > { %v5940_v4 = vsel %vm1321_vm3, %v5939_v57, -inf }
0x40dd   : > { %v5941_v54 = vrot.slane %v5940_v4, 4 }
0x40df   : > { %v5942_v23 = vmax.f32 %v5940_v4, %v5941_v54  ;;  %v6197_v33 = vpop.f32.mrf.mxu1 }
0x40e0   : > { %v6198_v60 = vadd.f32 %v8766_v31, %v6197_v33  ;;  %v12663_v31 = vld [vmem:[#allocation19 + $0x40] sm:$0xff] }
0x40e1   : > { %v5943_v51 = vrot.slane %v5942_v23, 2  ;;  %v9242_v37 = vpop.f32.mrf.mxu1 }
0x40e3   : > { %v5944_v46 = vmax.f32 %v5942_v23, %v5943_v51 }
0x40e5   : > { %v5945_v38 = vrot.slane %v5944_v46, 1 }
0x40e7   : > { %v5946_v45 = vmax.f32 %v5944_v46, %v5945_v38  ;;  %v12564_v34 = vpop.f32.mrf.mxu1 }
0x40e9   : > { %v5947_v59 = vsub.f32 %v5939_v57, %v5946_v45  ;;  %v9264_v39 = vpop.f32.mrf.mxu1 }
0x40eb   : > { %v5948_v17 = vmul.f32 1.442695, %v5947_v59 }
0x40ed   : > { %10075 = vpow2.f32 %v5948_v17 }
0x40fa   : > { %v10076_v20 = vpop.eup %10075 }
0x40fb   : > { %v5950_v0 = vsel %vm1321_vm3, %v10076_v20, 0.0 }
0x40fc   : > { %v5951_v15 = vrot.slane %v5950_v0, 4 }
0x40fe   : > { %v5952_v52 = vadd.f32 %v5951_v15, %v5950_v0  ;;  %v6356_v15 = vld [vmem:[#allocation15 + $0x58] sm:$0xff] }
0x4100   : > { %v5953_v32 = vrot.slane %v5952_v52, 2 }
0x4102   : > { %v5954_v50 = vadd.f32 %v5953_v32, %v5952_v52  ;;  %v6354_v32 = vld [vmem:[#allocation15 + $0x48] sm:$0xff] }
0x4104   : > { %v5955_v53 = vrot.slane %v5954_v50, 1 }
0x4106   : > { %v5956_v13 = vadd.f32 %v5955_v53, %v5954_v50 }
0x4108   : > { %10077 = vrcp.f32 %v5956_v13  ;;  %v6353_v13 = vld [vmem:[#allocation15 + $0x40] sm:$0xff] }
0x4115   : > { %v10078_v41 = vpop.eup %10077 }
0x4116   : > { %v5958_v14 = vmul.f32 %v10078_v41, %v10076_v20 }
0x4118   : > { %5968 = vperm.xlu0 %9840, %v5958_v14   ;;  %v10783_v14 = vmov 0  }
0x4119   : > { %9841 = vset.pattern.permute.xlu1 %v10783_v14 }
0x411c   : > { %6090 = vrot.lane.b32.xlu0 %v12556_v58, %s10766_s20 }
0x411d   : > { %9842 = vset.pattern.permute.xlu0 %v10783_v14 }
0x414c   : > { %v5963_v63 = vpop.permute.xlu1 %5962 }
0x414d   : > { %v5965_v9 = vadd.f32 %v5963_v63, %v5959_v26  ;;  %v6431_v63 = vld [vmem:[%s878_s0] sm:$0xff]  ;;  %s8409_s0 = sshll.u32 %s866_s6, 4  ;;  %s8410_s0 = int_to_ptr.vmem [resolvable:$true] %s8409_s0 }
0x414e   : > { %s10647_s7 = scalar_lea.vmem %s8410_s0, 32  ;;  %p10654_p0 = scmp.lt.s32.totalorder %s8410_s0, %s10652_s30 }
0x414f   : > { %p10648_p6 = scmp.ne.s32.totalorder %s8410_s0, %s10647_s7  ;;  %p10655_p5 = scmp.lt.s32.totalorder %s10653_s13, %s10647_s7 }
0x4151   : > { %p10649_p11 = pnand %p10648_p6, %p13386_p10  ;;  %p10656_p8 = por %p10655_p5, %p10654_p0 }
0x4153   : > { %p10650_p12 = pneg %p10649_p11 }
0x4155   : > { %p10657_p4 = pnand %p10656_p8, %p10650_p12 }
0x4193   : > { %v5969_v25 = vpop.permute.xlu0 %5968 }
0x4194   : > { %v5971_v47 = vmul.f32 %v5969_v25, %v5965_v9  ;;  %v12606_v9 = vld [vmem:[#allocation19 + $0x38] sm:$0xff] }
0x4195   : > { %9277 = vmatpush3.msra.mxu1 %v12606_v9 }
0x4196   : > { %v5972_v3 = vsel %vm891_vm0, %v5971_v47, 0.0  ;;  %9278 = vmatprep.subr.mxu1 %v13374_v27  ;;  %v12610_v47 = vld [vmem:[#allocation19 + $0x30] sm:$0xff] }
0x4197   : > { %v5973_v6 = vrot.slane %v5972_v3, 4  ;;  %v6091_v56 = vpop.permute.xlu0 %6090  ;;  %9279 = vmatpush3.msra.mxu1 %v12610_v47 }
0x4198   : > { %9280 = vmatprep.subr.mxu1 %v13374_v27 }
0x4199   : > { %v5974_v8 = vadd.f32 %v5973_v6, %v5972_v3  ;;  %v12615_v3 = vld [vmem:[#allocation19 + $0x28] sm:$0xff]  ;;  %v12619_v6 = vld [vmem:[#allocation19 + $0x20] sm:$0xff] }
0x419a   : > { %9281 = vmatpush3.msra.mxu1 %v12615_v3 }
0x419b   : > { %v5975_v2 = vrot.slane %v5974_v8, 2  ;;  %9282 = vmatprep.subr.mxu1 %v13374_v27 }
0x419c   : > { %9283 = vmatpush3.msra.mxu1 %v12619_v6 }
0x419d   : > { %v5976_v35 = vadd.f32 %v5975_v2, %v5974_v8  ;;  %9284 = vmatprep.subr.mxu1 %v13374_v27  ;;  %v12624_v2 = vld [vmem:[#allocation19 + $0x78] sm:$0xff] }
0x419f   : > { %v5977_v61 = vrot.slane %v5976_v35, 1 }
0x41a1   : > { %v5978_v28 = vadd.f32 %v5977_v61, %v5976_v35  ;;  %v12627_v61 = vld [vmem:[#allocation19 + $0x70] sm:$0xff] }
0x41a3   : > { %8763 = vmatmul.mubr.msk.f32.vlgmr.msra.gmra.mxu0 %vm891_vm0, %v5978_v28 }
0x41a4   : > { %9244 = vmatpush3.msra.mxu0 %v6204_v62  ;;  %9251 = vmatprep.mubr.msk.f32.mxu0 %vm10763_vm1, %v13374_v27  ;;  %v12637_v62 = vld [vmem:[#allocation19 + $0x60] sm:$0xff] }
0x41a5   : > { %9245 = vmatprep.subr.mxu0 %v13374_v27 }
0x41a6   : > { %9246 = vmatpush3.msra.mxu0 %v6203_v44  ;;  %v12641_v44 = vld [vmem:[#allocation19 + $0x58] sm:$0xff] }
0x41a7   : > { %9247 = vmatprep.subr.mxu0 %v13374_v27 }
0x41a8   : > { %9248 = vmatpush3.msra.mxu0 %v6202_v43  ;;  %v12647_v43 = vld [vmem:[#allocation19 + $0x18] sm:$0xff] }
0x41a9   : > { %9249 = vmatprep.subr.mxu0 %v13374_v27  ;;  %9285 = vmatpush3.msra.mxu1 %v12647_v43 }
0x41aa   : > { %9250 = vmatpush3.msra.mxu0 %v6201_v49  ;;  %v12649_v49 = vld [vmem:[#allocation19 + $0x50] sm:$0xff]  ;;  %9286 = vmatprep.subr.mxu1 %v13374_v27 }
0x41ab   : > { %9252 = vmatmul.mubr.msk.f32.vlgmr.msra.gmra.mxu0 %vm891_vm0, %v11230_v18  ;;  %9265 = vmatprep.subr.mxu0 %v13374_v27 }
0x41ac   : > { %9273 = vmatprep.mubr.msk.f32.mxu0 %vm10763_vm1, %v13374_v27  ;;  %9266 = vmatpush3.msra.mxu0 %v6356_v15 }
0x41ad   : > { %9267 = vmatprep.subr.mxu0 %v13374_v27 }
0x4263   : > { %v6048_v40 = vpop.f32.mrf.mxu0 }
0x4264   : > { %v6049_v16 = vadd.f32 %v6048_v40, %v12003_v29  ;;  %v12655_v40 = vld [vmem:[#allocation19 + $0x10] sm:$0xff] }
0x4265   : > { %v6050_v10 = vpop.f32.mrf.mxu0  ;;  %9287 = vmatpush3.msra.mxu1 %v12655_v40 }
0x4266   : > { %v6053_v36 = vadd.f32 %v6049_v16, %v5856_v24  ;;  %6061 = vrot.lane.b32.xlu1 %v6049_v16, %s10766_s20  ;;  %v6051_v12 = vadd.f32 %v6050_v10, %v12153_v1  ;;  %v12659_v16 = vld [vmem:[#allocation19 + $0x8] sm:$0xff]  ;;  %9288 = vmatprep.subr.mxu1 %v13374_v27 }
0x4267   : > { %9289 = vmatpush3.msra.mxu1 %v12659_v16 }
0x4268   : > { %v8764_v19 = vmul.f32 -1.442695, %v6053_v36  ;;  %v6082_v51 = vadd.f32 %v6051_v12, %v12556_v58  ;;  %v6355_v58 = vld [vmem:[#allocation15 + $0x50] sm:$0xff]  ;;  %v12669_v36 = vld [vmem:[#allocation19] sm:$0xff]  ;;  %9290 = vmatprep.subr.mxu1 %v13374_v27 }
0x4269   : > { %9268 = vmatpush3.msra.mxu0 %v6355_v58  ;;  %9291 = vmatpush3.msra.mxu1 %v12669_v36 }
0x426a   : > { %10079 = vpow2.f32 %v8764_v19  ;;  %v8765_v37 = vmul.f32 -1.442695, %v6082_v51  ;;  %9269 = vmatprep.subr.mxu0 %v13374_v27  ;;  %9314 = vmatprep.subr.mxu1 %v13374_v27 }
0x426b   : > { %v6271_v18 = vpop.f32.mrf.mxu0  ;;  %9270 = vmatpush3.msra.mxu0 %v6354_v32 }
0x426c   : > { %v12586_v21 = vadd.f32 %v6271_v18, %v6198_v60  ;;  %9271 = vmatprep.subr.mxu0 %v13374_v27 }
0x426d   : > { %v9253_v42 = vpop.f32.mrf.mxu0  ;;  %9272 = vmatpush3.msra.mxu0 %v6353_v13 }
0x426e   : > { %9295 = vmatprep.subr.mxu0 %v13374_v27  ;;  %v6351_v60 = vadd.f32 %v12564_v34, %v12586_v21  ;;  %v12724_v34 = vld [vmem:[#allocation21 + $0x1] sm:$0x1] }
0x4277   : > { %v10080_v7 = vpop.eup %10079 }
0x4278   : > { %v6057_v5 = vadd.f32 1.0, %v10080_v7 }
0x427a   : > { %10081 = vrcp.f32 %v6057_v5 }
0x4287   : > { %v10082_v11 = vpop.eup %10081 }
0x4288   : > { %v6093_v48 = vmul.f32 %v10082_v11, %v6091_v56  ;;  %v6071_v50 = vsub.f32 1.0, %v10082_v11 }
0x428a   : > { %6095 = vrot.lane.b32.xlu0 %v6093_v48, %s10766_s20  ;;  %v12726_v48 = vld [vmem:[#allocation21] sm:$0x1] }
0x42d8   : > { %v6062_v29 = vpop.permute.xlu1 %6061 }
0x42d9   : > { %v6064_v55 = vmul.f32 %v10082_v11, %v6062_v29 }
0x42db   : > { %6066 = vrot.lane.b32.xlu1 %v6064_v55, %s10766_s20 }
0x42fc   : > { %v6096_v57 = vpop.permute.xlu0 %6095 }
0x42fd   : > { %v6098_v4 = vadd.f32 %v6096_v57, %v6051_v12 }
0x42ff   : > { %10083 = vtanh.f32 %v6098_v4 }
0x430c   : > { %v10084_v54 = vpop.eup %10083 }
0x430d   : > { %6102 = vrot.lane.b32.xlu0 %v10084_v54, %s10764_s26 }
0x4311   : > { %6077 = vrot.lane.b32.xlu0 %v5978_v28, %s13372_s5  ;;  %v12633_v28 = vld [vmem:[#allocation19 + $0x68] sm:$0xff] }
0x434d   : > { %v6067_v23 = vpop.permute.xlu1 %6066 }
0x434e   : > { %v6069_v33 = vadd.f32 %v6067_v23, %v5856_v24  ;;  %v12657_v24 = vld [vmem:[#allocation19 + $0x48] sm:$0xff] }
0x4350   : > { %10085 = vtanh.f32 %v6069_v33 }
0x4351   : > { %10087 = vpow2.f32 %v8765_v37 }
0x435d   : > { %v10086_v46 = vpop.eup %10085 }
0x435e   : > { %6073 = vrot.lane.b32.xlu1 %v10086_v46, %s10764_s26  ;;  %v10088_v38 = vpop.eup %10087 }
0x435f   : > { %v6086_v1 = vadd.f32 1.0, %v10088_v38 }
0x4361   : > { %10089 = vrcp.f32 %v6086_v1 }
0x436e   : > { %v10090_v45 = vpop.eup %10089 }
0x436f   : > { %v6100_v59 = vsub.f32 1.0, %v10090_v45  ;;  %v6107_v17 = vmul.f32 %v10090_v45, %v5786_v22 }
0x437f   : > { %v6103_v39 = vpop.permute.xlu0 %6102 }
0x4380   : > { %v6105_v20 = vmul.f32 %v6103_v39, %v6100_v59 }
0x4382   : > { %v6108_v0 = vadd.f32 %v6107_v17, %v6105_v20 }
0x4383   : > { %v6078_v53 = vpop.permute.xlu0 %6077 }
0x4384   : > { %6110 = vrot.lane.b32.xlu1 %v6108_v0, %s13372_s5  ;;  %v6080_v22 = vmul.f32 %v10082_v11, %v6078_v53 }
0x4388   : > { %6454 = vperm.xlu1 %9841, %v6431_v63  }
0x43d0   : > { %v6074_v52 = vpop.permute.xlu1 %6073 }
0x43d1   : > { %v6076_v30 = vmul.f32 %v6074_v52, %v6071_v50 }
0x43d3   : > { %v6081_v41 = vadd.f32 %v6080_v22, %v6076_v30 }
0x43f6   : > { %v6111_v26 = vpop.permute.xlu1 %6110 }
0x43f7   : > { %v6113_v25 = vadd.f32 %v6111_v26, %v6081_v41 }
0x43f9   : > { %6115 = vrot.lane.b32.xlu0 %v6113_v25, %s10764_s26 }
0x4403   : > { %v6455_v10 = vpop.permute.xlu1 %6454 }
0x446b   : > { %v6116_v8 = vpop.permute.xlu0 %6115 }
0x446c   : > { %6118 = vst.msk [vmem:[#allocation3 + $0x7] sm:$0x1] %vm1161_vm2, %v6116_v8 }
0x4473   : > { %v6119_v35 = vld [vmem:[#allocation3] sm:$0xff] }
0x4474   : > { %9274 = vmatmul.mubr.msk.f32.vlgmr.msra.gmra.mxu0 %vm891_vm0, %v6119_v35 }
0x4475   : > { %9296 = vmatpush3.msra.mxu0 %v12624_v2  ;;  %9311 = vmatprep.mubr.msk.f32.mxu0 %vm10763_vm1, %v13374_v27 }
0x4476   : > { %9297 = vmatprep.subr.mxu0 %v13374_v27 }
0x4477   : > { %9298 = vmatpush3.msra.mxu0 %v12627_v61 }
0x4478   : > { %9299 = vmatprep.subr.mxu0 %v13374_v27 }
0x4479   : > { %9300 = vmatpush3.msra.mxu0 %v12633_v28 }
0x447a   : > { %9301 = vmatprep.subr.mxu0 %v13374_v27 }
0x447b   : > { %9302 = vmatpush3.msra.mxu0 %v12637_v62 }
0x447c   : > { %9303 = vmatprep.subr.mxu0 %v13374_v27 }
0x447d   : > { %9304 = vmatpush3.msra.mxu0 %v12641_v44 }
0x447e   : > { %9305 = vmatprep.subr.mxu0 %v13374_v27 }
0x447f   : > { %9306 = vmatpush3.msra.mxu0 %v12649_v49 }
0x4480   : > { %9307 = vmatprep.subr.mxu0 %v13374_v27 }
0x4481   : > { %9308 = vmatpush3.msra.mxu0 %v12657_v24 }
0x4482   : > { %9309 = vmatprep.subr.mxu0 %v13374_v27 }
0x4483   : > { %9310 = vmatpush3.msra.mxu0 %v12663_v31 }
0x4484   : > { %9333 = vmatprep.subr.mxu0 %v13374_v27 }
0x4534   : > { %v6426_v19 = vpop.f32.mrf.mxu0 }
0x4535   : > { %v6430_v18 = vadd.f32 %v6426_v19, %v6351_v60 }
0x4536   : > { %v9275_v42 = vpop.f32.mrf.mxu0 }
0x4537   : > { %v12677_v7 = vmul.f32 %v6455_v10, %v6430_v18 }
0x4539   : > { %v6559_v5 = vsel %vm891_vm0, %v12677_v7, 0.0  ;;  %v12682_v11 = vsub.f32 %v6430_v18, %v12677_v7 }
0x453a   : > { %9312 = vmatmul.mubr.msk.f32.vlgmr.msra.gmra.mxu0 %vm6460_vm4, %v6559_v5 }
0x453b   : > { %v6459_v56 = vsel %vm891_vm0, %v12682_v11, 0.0  ;;  %9334 = vmatpush3.msra.mxu0 %v12624_v2  ;;  %9349 = vmatprep.mubr.msk.f32.mxu0 %vm10763_vm1, %v13374_v27 }
0x453c   : > { %9293 = vmatmul.mubr.msk.f32.vlgmr.msra.gmra.mxu1 %vm6460_vm4, %v6459_v56  ;;  %9335 = vmatprep.subr.mxu0 %v13374_v27 }
0x453d   : > { %9315 = vmatpush3.msra.mxu1 %v12606_v9  ;;  %9336 = vmatpush3.msra.mxu0 %v12627_v61 }
0x453e   : > { %9316 = vmatprep.subr.mxu1 %v13374_v27  ;;  %9337 = vmatprep.subr.mxu0 %v13374_v27 }
0x453f   : > { %9317 = vmatpush3.msra.mxu1 %v12610_v47  ;;  %9338 = vmatpush3.msra.mxu0 %v12633_v28 }
0x4540   : > { %9318 = vmatprep.subr.mxu1 %v13374_v27  ;;  %9339 = vmatprep.subr.mxu0 %v13374_v27 }
0x4541   : > { %9319 = vmatpush3.msra.mxu1 %v12615_v3  ;;  %9340 = vmatpush3.msra.mxu0 %v12637_v62 }
0x4542   : > { %9320 = vmatprep.subr.mxu1 %v13374_v27  ;;  %9341 = vmatprep.subr.mxu0 %v13374_v27 }
0x4543   : > { %9321 = vmatpush3.msra.mxu1 %v12619_v6  ;;  %9342 = vmatpush3.msra.mxu0 %v12641_v44 }
0x4544   : > { %9322 = vmatprep.subr.mxu1 %v13374_v27  ;;  %9343 = vmatprep.subr.mxu0 %v13374_v27 }
0x4545   : > { %9323 = vmatpush3.msra.mxu1 %v12647_v43  ;;  %9344 = vmatpush3.msra.mxu0 %v12649_v49 }
0x4546   : > { %9345 = vmatprep.subr.mxu0 %v13374_v27  ;;  %9324 = vmatprep.subr.mxu1 %v13374_v27 }
0x4547   : > { %9325 = vmatpush3.msra.mxu1 %v12655_v40  ;;  %9346 = vmatpush3.msra.mxu0 %v12657_v24 }
0x4548   : > { %9326 = vmatprep.subr.mxu1 %v13374_v27  ;;  %9347 = vmatprep.subr.mxu0 %v13374_v27 }
0x4549   : > { %9327 = vmatpush3.msra.mxu1 %v12659_v16  ;;  %9348 = vmatpush3.msra.mxu0 %v12663_v31 }
0x454a   : > { %9328 = vmatprep.subr.mxu1 %v13374_v27  ;;  %9330 = vmatprep.mubr.msk.f32.mxu1 %vm10763_vm1, %v13374_v27 }
0x454b   : > { %9329 = vmatpush3.msra.mxu1 %v12669_v36  ;;  %9371 = vmatprep.subr.mxu0 %v13374_v27 }
0x454c   : > { %9352 = vmatprep.subr.mxu1 %v13374_v27 }
0x45fa   : > { %v6629_v21 = vpop.f32.mrf.mxu0 }
0x45fb   : > { %v6630_v29 = vadd.f32 %v6629_v21, %v12724_v34 }
0x45fc   : > { %v6530_v55 = vpop.f32.mrf.mxu1  ;;  %v9313_v12 = vpop.f32.mrf.mxu0 }
0x45fd   : > { %10091 = vtanh.f32 %v6630_v29  ;;  %v6531_v57 = vadd.f32 %v6530_v55, %v12726_v48  ;;  %v8774_v33 = vmul.f32 -1.442695, %v6630_v29 }
0x45fe   : > { %v9294_v4 = vpop.f32.mrf.mxu1 }
0x45ff   : > { %10093 = vtanh.f32 %v6531_v57  ;;  %v8772_v51 = vmul.f32 -1.442695, %v6531_v57 }
0x4600   : > { %10095 = vpow2.f32 %v8774_v33 }
0x4601   : > { %10097 = vpow2.f32 %v8772_v51 }
0x460a   : > { %v10092_v54 = vpop.eup %10091 }
0x460b   : > { %6642 = vrot.lane.b32.xlu0 %v10092_v54, %s10766_s20 }
0x460c   : > { %v10094_v23 = vpop.eup %10093 }
0x460d   : > { %6543 = vrot.lane.b32.xlu1 %v10094_v23, %s10766_s20  ;;  %v10096_v37 = vpop.eup %10095 }
0x460e   : > { %v10098_v46 = vpop.eup %10097  ;;  %v6636_v38 = vadd.f32 1.0, %v10096_v37 }
0x460f   : > { %v6537_v1 = vadd.f32 1.0, %v10098_v46 }
0x4610   : > { %10099 = vrcp.f32 %v6636_v38 }
0x4611   : > { %10101 = vrcp.f32 %v6537_v1 }
0x461d   : > { %v10100_v45 = vpop.eup %10099 }
0x461e   : > { %v10102_v17 = vpop.eup %10101  ;;  %v6640_v15 = vmul.f32 0.0, %v10100_v45 }
0x461f   : > { %v6541_v32 = vmul.f32 0.0, %v10102_v17 }
0x467d   : > { %v6643_v59 = vpop.permute.xlu0 %6642 }
0x467e   : > { %v6645_v39 = vmul.f32 %v10100_v45, %v6643_v59 }
0x467f   : > { %v6544_v20 = vpop.permute.xlu1 %6543 }
0x4680   : > { %6647 = vrot.lane.b32.xlu0 %v6645_v39, %s13372_s5  ;;  %v6546_v0 = vmul.f32 %v10102_v17, %v6544_v20 }
0x4682   : > { %6548 = vrot.lane.b32.xlu1 %v6546_v0, %s13372_s5 }
0x46f2   : > { %v6648_v58 = vpop.permute.xlu0 %6647 }
0x46f3   : > { %v12734_v52 = vadd.f32 %v6648_v58, %v6640_v15 }
0x46f4   : > { %v6549_v50 = vpop.permute.xlu1 %6548 }
0x46f5   : > { %10103 = vtanh.f32 %v12734_v52  ;;  %v12737_v53 = vadd.f32 %v6549_v50, %v6541_v32 }
0x46f7   : > { %10105 = vtanh.f32 %v12737_v53 }
0x4702   : > { %v10104_v13 = vpop.eup %10103 }
0x4703   : > { %6653 = vrot.lane.b32.xlu0 %v10104_v13, %s10766_s20 }
0x4704   : > { %v10106_v30 = vpop.eup %10105 }
0x4705   : > { %6554 = vrot.lane.b32.xlu1 %v10106_v30, %s10766_s20 }
0x4775   : > { %v6654_v22 = vpop.permute.xlu0 %6653 }
0x4776   : > { %v12742_v41 = vmul.f32 %v10100_v45, %v6654_v22 }
0x4777   : > { %v6555_v63 = vpop.permute.xlu1 %6554 }
0x4778   : > { %v6764_v14 = vrot.slane %v12742_v41, 7  ;;  %v12745_v26 = vmul.f32 %v10102_v17, %v6555_v63 }
0x477a   : > { %6765 = vrot.lane.b32.xlu0 %v6764_v14, %s10766_s20  ;;  %v6659_v25 = vrot.slane %v12745_v26, 7 }
0x477c   : > { %6660 = vrot.lane.b32.xlu1 %v6659_v25, %s10766_s20 }
0x47ec   : > { %v6766_v8 = vpop.permute.xlu0 %6765 }
0x47ed   : > { %v6768_v35 = vsel %vm891_vm0, %v12677_v7, %v6766_v8 }
0x47ee   : > { %v6770_v60 = vrot.slane %v6768_v35, 1  ;;  %v6661_v19 = vpop.permute.xlu1 %6660 }
0x47ef   : > { %v6663_v10 = vsel %vm891_vm0, %v12682_v11, %v6661_v19 }
0x47f0   : > { %9350 = vmatmul.mubr.msk.f32.vlgmr.msra.gmra.mxu0 %vm6460_vm4, %v6770_v60  ;;  %v6665_v18 = vrot.slane %v6663_v10, 1 }
0x47f1   : > { %9372 = vmatpush3.msra.mxu0 %v12624_v2  ;;  %9387 = vmatprep.mubr.msk.f32.mxu0 %vm10763_vm1, %v13374_v27 }
0x47f2   : > { %9373 = vmatprep.subr.mxu0 %v13374_v27  ;;  %9331 = vmatmul.mubr.msk.f32.vlgmr.msra.gmra.mxu1 %vm6460_vm4, %v6665_v18 }
0x47f3   : > { %9374 = vmatpush3.msra.mxu0 %v12627_v61  ;;  %9353 = vmatpush3.msra.mxu1 %v12606_v9 }
0x47f4   : > { %9375 = vmatprep.subr.mxu0 %v13374_v27  ;;  %9354 = vmatprep.subr.mxu1 %v13374_v27 }
0x47f5   : > { %9376 = vmatpush3.msra.mxu0 %v12633_v28  ;;  %9355 = vmatpush3.msra.mxu1 %v12610_v47 }
0x47f6   : > { %9377 = vmatprep.subr.mxu0 %v13374_v27  ;;  %9356 = vmatprep.subr.mxu1 %v13374_v27 }
0x47f7   : > { %9378 = vmatpush3.msra.mxu0 %v12637_v62  ;;  %9357 = vmatpush3.msra.mxu1 %v12615_v3 }
0x47f8   : > { %9379 = vmatprep.subr.mxu0 %v13374_v27  ;;  %9358 = vmatprep.subr.mxu1 %v13374_v27 }
0x47f9   : > { %9380 = vmatpush3.msra.mxu0 %v12641_v44  ;;  %9359 = vmatpush3.msra.mxu1 %v12619_v6 }
0x47fa   : > { %9381 = vmatprep.subr.mxu0 %v13374_v27  ;;  %9360 = vmatprep.subr.mxu1 %v13374_v27 }
0x47fb   : > { %9382 = vmatpush3.msra.mxu0 %v12649_v49  ;;  %9361 = vmatpush3.msra.mxu1 %v12647_v43 }
0x47fc   : > { %9383 = vmatprep.subr.mxu0 %v13374_v27  ;;  %9362 = vmatprep.subr.mxu1 %v13374_v27 }
0x47fd   : > { %9384 = vmatpush3.msra.mxu0 %v12657_v24  ;;  %9363 = vmatpush3.msra.mxu1 %v12655_v40 }
0x47fe   : > { %9385 = vmatprep.subr.mxu0 %v13374_v27  ;;  %9364 = vmatprep.subr.mxu1 %v13374_v27 }
0x47ff   : > { %9386 = vmatpush3.msra.mxu0 %v12663_v31  ;;  %9365 = vmatpush3.msra.mxu1 %v12659_v16 }
0x4800   : > { %9368 = vmatprep.mubr.msk.f32.mxu1 %vm10763_vm1, %v13374_v27  ;;  %9366 = vmatprep.subr.mxu1 %v13374_v27 }
0x4801   : > { %9409 = vmatprep.subr.mxu0 %v13374_v27  ;;  %9367 = vmatpush3.msra.mxu1 %v12669_v36 }
0x4802   : > { %9390 = vmatprep.subr.mxu1 %v13374_v27 }
0x48b0   : > { %v6839_v42 = vpop.f32.mrf.mxu0 }
0x48b1   : > { %v6840_v5 = vadd.f32 %v6839_v42, %v12724_v34 }
0x48b2   : > { %v9351_v56 = vpop.f32.mrf.mxu0  ;;  %v6734_v21 = vpop.f32.mrf.mxu1 }
0x48b3   : > { %10107 = vtanh.f32 %v6840_v5  ;;  %v6735_v29 = vadd.f32 %v6734_v21, %v12726_v48  ;;  %v8778_v4 = vmul.f32 -1.442695, %v6840_v5 }
0x48b4   : > { %v9332_v55 = vpop.f32.mrf.mxu1 }
0x48b5   : > { %10109 = vtanh.f32 %v6735_v29  ;;  %v8776_v54 = vmul.f32 -1.442695, %v6735_v29 }
0x48b6   : > { %10111 = vpow2.f32 %v8778_v4 }
0x48b7   : > { %10113 = vpow2.f32 %v8776_v54 }
0x48c0   : > { %v10108_v12 = vpop.eup %10107 }
0x48c1   : > { %6852 = vrot.lane.b32.xlu0 %v10108_v12, %s10766_s20 }
0x48c2   : > { %v10110_v57 = vpop.eup %10109 }
0x48c3   : > { %6747 = vrot.lane.b32.xlu1 %v10110_v57, %s10766_s20  ;;  %v10112_v23 = vpop.eup %10111 }
0x48c4   : > { %v10114_v33 = vpop.eup %10113  ;;  %v6846_v51 = vadd.f32 1.0, %v10112_v23 }
0x48c5   : > { %v6741_v37 = vadd.f32 1.0, %v10114_v33 }
0x48c6   : > { %10115 = vrcp.f32 %v6846_v51 }
0x48c7   : > { %10117 = vrcp.f32 %v6741_v37 }
0x48d3   : > { %v10116_v46 = vpop.eup %10115 }
0x48d4   : > { %v10118_v45 = vpop.eup %10117  ;;  %v6850_v17 = vmul.f32 %v10116_v46, %v12734_v52 }
0x48d5   : > { %v6745_v15 = vmul.f32 %v10118_v45, %v12737_v53 }
0x4933   : > { %v6853_v38 = vpop.permute.xlu0 %6852 }
0x4934   : > { %v6855_v1 = vmul.f32 %v10116_v46, %v6853_v38 }
0x4935   : > { %v6748_v59 = vpop.permute.xlu1 %6747 }
0x4936   : > { %6857 = vrot.lane.b32.xlu0 %v6855_v1, %s13372_s5  ;;  %v6750_v39 = vmul.f32 %v10118_v45, %v6748_v59 }
0x4938   : > { %6752 = vrot.lane.b32.xlu1 %v6750_v39, %s13372_s5 }
0x49a8   : > { %v6858_v20 = vpop.permute.xlu0 %6857 }
0x49a9   : > { %v12799_v0 = vadd.f32 %v6858_v20, %v6850_v17 }
0x49aa   : > { %v6753_v58 = vpop.permute.xlu1 %6752 }
0x49ab   : > { %10119 = vtanh.f32 %v12799_v0  ;;  %v12803_v32 = vadd.f32 %v6753_v58, %v6745_v15 }
0x49ad   : > { %10121 = vtanh.f32 %v12803_v32 }
0x49b8   : > { %v10120_v50 = vpop.eup %10119 }
0x49b9   : > { %6863 = vrot.lane.b32.xlu0 %v10120_v50, %s10766_s20 }
0x49ba   : > { %v10122_v13 = vpop.eup %10121 }
0x49bb   : > { %6758 = vrot.lane.b32.xlu1 %v10122_v13, %s10766_s20 }
0x4a2b   : > { %v6864_v30 = vpop.permute.xlu0 %6863 }
0x4a2c   : > { %v12808_v52 = vmul.f32 %v10116_v46, %v6864_v30 }
0x4a2d   : > { %v6759_v14 = vpop.permute.xlu1 %6758 }
0x4a2e   : > { %v6974_v22 = vrot.slane %v12808_v52, 6  ;;  %v12811_v53 = vmul.f32 %v10118_v45, %v6759_v14 }
0x4a30   : > { %6975 = vrot.lane.b32.xlu0 %v6974_v22, %s10766_s20  ;;  %v6869_v63 = vrot.slane %v12811_v53, 6 }
0x4a32   : > { %6870 = vrot.lane.b32.xlu1 %v6869_v63, %s10766_s20 }
0x4aa2   : > { %v6976_v25 = vpop.permute.xlu0 %6975 }
0x4aa3   : > { %v6978_v8 = vsel %vm891_vm0, %v12677_v7, %v6976_v25 }
0x4aa4   : > { %v6980_v35 = vrot.slane %v6978_v8, 2  ;;  %v6871_v60 = vpop.permute.xlu1 %6870  ;;  %v6762_v8 = vadd.f32 %v12811_v53, %v12745_v26 }
0x4aa5   : > { %v6873_v19 = vsel %vm891_vm0, %v12682_v11, %v6871_v60 }
0x4aa6   : > { %9388 = vmatmul.mubr.msk.f32.vlgmr.msra.gmra.mxu0 %vm6460_vm4, %v6980_v35  ;;  %v6875_v10 = vrot.slane %v6873_v19, 2 }
0x4aa7   : > { %9410 = vmatpush3.msra.mxu0 %v12624_v2  ;;  %9425 = vmatprep.mubr.msk.f32.mxu0 %vm10763_vm1, %v13374_v27 }
0x4aa8   : > { %9411 = vmatprep.subr.mxu0 %v13374_v27  ;;  %9369 = vmatmul.mubr.msk.f32.vlgmr.msra.gmra.mxu1 %vm6460_vm4, %v6875_v10 }
0x4aa9   : > { %9412 = vmatpush3.msra.mxu0 %v12627_v61  ;;  %9391 = vmatpush3.msra.mxu1 %v12606_v9 }
0x4aaa   : > { %9413 = vmatprep.subr.mxu0 %v13374_v27  ;;  %9392 = vmatprep.subr.mxu1 %v13374_v27 }
0x4aab   : > { %9414 = vmatpush3.msra.mxu0 %v12633_v28  ;;  %9393 = vmatpush3.msra.mxu1 %v12610_v47 }
0x4aac   : > { %9415 = vmatprep.subr.mxu0 %v13374_v27  ;;  %9394 = vmatprep.subr.mxu1 %v13374_v27 }
0x4aad   : > { %9416 = vmatpush3.msra.mxu0 %v12637_v62  ;;  %9395 = vmatpush3.msra.mxu1 %v12615_v3 }
0x4aae   : > { %9417 = vmatprep.subr.mxu0 %v13374_v27  ;;  %9396 = vmatprep.subr.mxu1 %v13374_v27 }
0x4aaf   : > { %9418 = vmatpush3.msra.mxu0 %v12641_v44  ;;  %9397 = vmatpush3.msra.mxu1 %v12619_v6 }
0x4ab0   : > { %9419 = vmatprep.subr.mxu0 %v13374_v27  ;;  %9398 = vmatprep.subr.mxu1 %v13374_v27 }
0x4ab1   : > { %9420 = vmatpush3.msra.mxu0 %v12649_v49  ;;  %9399 = vmatpush3.msra.mxu1 %v12647_v43 }
0x4ab2   : > { %9421 = vmatprep.subr.mxu0 %v13374_v27  ;;  %9400 = vmatprep.subr.mxu1 %v13374_v27 }
0x4ab3   : > { %9422 = vmatpush3.msra.mxu0 %v12657_v24  ;;  %9401 = vmatpush3.msra.mxu1 %v12655_v40 }
0x4ab4   : > { %9423 = vmatprep.subr.mxu0 %v13374_v27  ;;  %9402 = vmatprep.subr.mxu1 %v13374_v27 }
0x4ab5   : > { %9424 = vmatpush3.msra.mxu0 %v12663_v31  ;;  %9403 = vmatpush3.msra.mxu1 %v12659_v16 }
0x4ab6   : > { %9406 = vmatprep.mubr.msk.f32.mxu1 %vm10763_vm1, %v13374_v27  ;;  %9404 = vmatprep.subr.mxu1 %v13374_v27 }
0x4ab7   : > { %9447 = vmatprep.subr.mxu0 %v13374_v27  ;;  %9405 = vmatpush3.msra.mxu1 %v12669_v36 }
0x4ab8   : > { %9428 = vmatprep.subr.mxu1 %v13374_v27 }
0x4b66   : > { %v7049_v18 = vpop.f32.mrf.mxu0 }
0x4b67   : > { %v7050_v42 = vadd.f32 %v7049_v18, %v12724_v34 }
0x4b68   : > { %v9389_v5 = vpop.f32.mrf.mxu0  ;;  %v6944_v56 = vpop.f32.mrf.mxu1 }
0x4b69   : > { %10123 = vtanh.f32 %v7050_v42  ;;  %v6945_v21 = vadd.f32 %v6944_v56, %v12726_v48  ;;  %v8782_v57 = vmul.f32 -1.442695, %v7050_v42 }
0x4b6a   : > { %v9370_v29 = vpop.f32.mrf.mxu1 }
0x4b6b   : > { %10125 = vtanh.f32 %v6945_v21  ;;  %v8780_v4 = vmul.f32 -1.442695, %v6945_v21 }
0x4b6c   : > { %10127 = vpow2.f32 %v8782_v57 }
0x4b6d   : > { %10129 = vpow2.f32 %v8780_v4 }
0x4b76   : > { %v10124_v55 = vpop.eup %10123 }
0x4b77   : > { %7062 = vrot.lane.b32.xlu0 %v10124_v55, %s10766_s20 }
0x4b78   : > { %v10126_v12 = vpop.eup %10125 }
0x4b79   : > { %6957 = vrot.lane.b32.xlu1 %v10126_v12, %s10766_s20  ;;  %v10128_v54 = vpop.eup %10127 }
0x4b7a   : > { %v10130_v23 = vpop.eup %10129  ;;  %v7056_v33 = vadd.f32 1.0, %v10128_v54 }
0x4b7b   : > { %v6951_v51 = vadd.f32 1.0, %v10130_v23 }
0x4b7c   : > { %10131 = vrcp.f32 %v7056_v33 }
0x4b7d   : > { %10133 = vrcp.f32 %v6951_v51 }
0x4b89   : > { %v10132_v37 = vpop.eup %10131 }
0x4b8a   : > { %v10134_v1 = vpop.eup %10133  ;;  %v7060_v39 = vmul.f32 %v10132_v37, %v12799_v0  ;;  %v6867_v0 = vadd.f32 %v12808_v52, %v12742_v41 }
0x4b8b   : > { %v6955_v15 = vmul.f32 %v10134_v1, %v12803_v32 }
0x4be9   : > { %v7063_v46 = vpop.permute.xlu0 %7062 }
0x4bea   : > { %v7065_v38 = vmul.f32 %v10132_v37, %v7063_v46 }
0x4beb   : > { %v6958_v45 = vpop.permute.xlu1 %6957 }
0x4bec   : > { %7067 = vrot.lane.b32.xlu0 %v7065_v38, %s13372_s5  ;;  %v6960_v59 = vmul.f32 %v10134_v1, %v6958_v45 }
0x4bee   : > { %6962 = vrot.lane.b32.xlu1 %v6960_v59, %s13372_s5 }
0x4c5e   : > { %v7068_v17 = vpop.permute.xlu0 %7067 }
0x4c5f   : > { %v12865_v20 = vadd.f32 %v7068_v17, %v7060_v39 }
0x4c60   : > { %v6963_v58 = vpop.permute.xlu1 %6962 }
0x4c61   : > { %10135 = vtanh.f32 %v12865_v20  ;;  %v12869_v50 = vadd.f32 %v6963_v58, %v6955_v15 }
0x4c63   : > { %10137 = vtanh.f32 %v12869_v50 }
0x4c6e   : > { %v10136_v13 = vpop.eup %10135 }
0x4c6f   : > { %7073 = vrot.lane.b32.xlu0 %v10136_v13, %s10766_s20 }
0x4c70   : > { %v10138_v30 = vpop.eup %10137 }
0x4c71   : > { %6968 = vrot.lane.b32.xlu1 %v10138_v30, %s10766_s20 }
0x4ce1   : > { %v7074_v22 = vpop.permute.xlu0 %7073 }
0x4ce2   : > { %v7076_v14 = vmul.f32 %v10132_v37, %v7074_v22 }
0x4ce3   : > { %v6969_v25 = vpop.permute.xlu1 %6968 }
0x4ce4   : > { %v12876_v63 = vadd.f32 %v7076_v14, %v6867_v0  ;;  %v7184_v32 = vrot.slane %v7076_v14, 5  ;;  %v6971_v35 = vmul.f32 %v10134_v1, %v6969_v25 }
0x4ce6   : > { %7185 = vrot.lane.b32.xlu0 %v7184_v32, %s10766_s20  ;;  %v12881_v60 = vadd.f32 %v6971_v35, %v6762_v8  ;;  %v7079_v19 = vrot.slane %v6971_v35, 5 }
0x4ce8   : > { %7080 = vrot.lane.b32.xlu1 %v7079_v19, %s10766_s20 }
0x4d58   : > { %v7186_v10 = vpop.permute.xlu0 %7185 }
0x4d59   : > { %v7188_v41 = vsel %vm891_vm0, %v12677_v7, %v7186_v10 }
0x4d5a   : > { %v7190_v52 = vrot.slane %v7188_v41, 3  ;;  %v7081_v18 = vpop.permute.xlu1 %7080 }
0x4d5b   : > { %v7083_v42 = vsel %vm891_vm0, %v12682_v11, %v7081_v18 }
0x4d5c   : > { %9426 = vmatmul.mubr.msk.f32.vlgmr.msra.gmra.mxu0 %vm6460_vm4, %v7190_v52  ;;  %v7085_v26 = vrot.slane %v7083_v42, 3 }
0x4d5d   : > { %9448 = vmatpush3.msra.mxu0 %v12624_v2  ;;  %9463 = vmatprep.mubr.msk.f32.mxu0 %vm10763_vm1, %v13374_v27 }
0x4d5e   : > { %9449 = vmatprep.subr.mxu0 %v13374_v27  ;;  %9407 = vmatmul.mubr.msk.f32.vlgmr.msra.gmra.mxu1 %vm6460_vm4, %v7085_v26 }
0x4d5f   : > { %9450 = vmatpush3.msra.mxu0 %v12627_v61  ;;  %9429 = vmatpush3.msra.mxu1 %v12606_v9 }
0x4d60   : > { %9451 = vmatprep.subr.mxu0 %v13374_v27  ;;  %9430 = vmatprep.subr.mxu1 %v13374_v27 }
0x4d61   : > { %9452 = vmatpush3.msra.mxu0 %v12633_v28  ;;  %9431 = vmatpush3.msra.mxu1 %v12610_v47 }
0x4d62   : > { %9453 = vmatprep.subr.mxu0 %v13374_v27  ;;  %9432 = vmatprep.subr.mxu1 %v13374_v27 }
0x4d63   : > { %9454 = vmatpush3.msra.mxu0 %v12637_v62  ;;  %9433 = vmatpush3.msra.mxu1 %v12615_v3 }
0x4d64   : > { %9455 = vmatprep.subr.mxu0 %v13374_v27  ;;  %9434 = vmatprep.subr.mxu1 %v13374_v27 }
0x4d65   : > { %9456 = vmatpush3.msra.mxu0 %v12641_v44  ;;  %9435 = vmatpush3.msra.mxu1 %v12619_v6 }
0x4d66   : > { %9457 = vmatprep.subr.mxu0 %v13374_v27  ;;  %9436 = vmatprep.subr.mxu1 %v13374_v27 }
0x4d67   : > { %9458 = vmatpush3.msra.mxu0 %v12649_v49  ;;  %9437 = vmatpush3.msra.mxu1 %v12647_v43 }
0x4d68   : > { %9459 = vmatprep.subr.mxu0 %v13374_v27  ;;  %9438 = vmatprep.subr.mxu1 %v13374_v27 }
0x4d69   : > { %9460 = vmatpush3.msra.mxu0 %v12657_v24  ;;  %9439 = vmatpush3.msra.mxu1 %v12655_v40 }
0x4d6a   : > { %9461 = vmatprep.subr.mxu0 %v13374_v27  ;;  %9440 = vmatprep.subr.mxu1 %v13374_v27 }
0x4d6b   : > { %9462 = vmatpush3.msra.mxu0 %v12663_v31  ;;  %9441 = vmatpush3.msra.mxu1 %v12659_v16 }
0x4d6c   : > { %9444 = vmatprep.mubr.msk.f32.mxu1 %vm10763_vm1, %v13374_v27  ;;  %9442 = vmatprep.subr.mxu1 %v13374_v27 }
0x4d6d   : > { %9485 = vmatprep.subr.mxu0 %v13374_v27  ;;  %9443 = vmatpush3.msra.mxu1 %v12669_v36 }
0x4d6e   : > { %9466 = vmatprep.subr.mxu1 %v13374_v27 }
0x4e1c   : > { %v7259_v53 = vpop.f32.mrf.mxu0 }
0x4e1d   : > { %v7260_v5 = vadd.f32 %v7259_v53, %v12724_v34 }
0x4e1e   : > { %v9427_v56 = vpop.f32.mrf.mxu0  ;;  %v7154_v21 = vpop.f32.mrf.mxu1 }
0x4e1f   : > { %10139 = vtanh.f32 %v7260_v5  ;;  %v7155_v29 = vadd.f32 %v7154_v21, %v12726_v48  ;;  %v8786_v4 = vmul.f32 -1.442695, %v7260_v5 }
0x4e20   : > { %v9408_v55 = vpop.f32.mrf.mxu1 }
0x4e21   : > { %10141 = vtanh.f32 %v7155_v29  ;;  %v8784_v54 = vmul.f32 -1.442695, %v7155_v29 }
0x4e22   : > { %10143 = vpow2.f32 %v8786_v4 }
0x4e23   : > { %10145 = vpow2.f32 %v8784_v54 }
0x4e2c   : > { %v10140_v12 = vpop.eup %10139 }
0x4e2d   : > { %7272 = vrot.lane.b32.xlu0 %v10140_v12, %s10766_s20 }
0x4e2e   : > { %v10142_v57 = vpop.eup %10141 }
0x4e2f   : > { %7167 = vrot.lane.b32.xlu1 %v10142_v57, %s10766_s20  ;;  %v10144_v23 = vpop.eup %10143 }
0x4e30   : > { %v10146_v33 = vpop.eup %10145  ;;  %v7266_v51 = vadd.f32 1.0, %v10144_v23 }
0x4e31   : > { %v7161_v37 = vadd.f32 1.0, %v10146_v33 }
0x4e32   : > { %10147 = vrcp.f32 %v7266_v51 }
0x4e33   : > { %10149 = vrcp.f32 %v7161_v37 }
0x4e3f   : > { %v10148_v46 = vpop.eup %10147 }
0x4e40   : > { %v10150_v45 = vpop.eup %10149  ;;  %v7270_v17 = vmul.f32 %v10148_v46, %v12865_v20 }
0x4e41   : > { %v7165_v13 = vmul.f32 %v10150_v45, %v12869_v50 }
0x4e9f   : > { %v7273_v38 = vpop.permute.xlu0 %7272 }
0x4ea0   : > { %v7275_v1 = vmul.f32 %v10148_v46, %v7273_v38 }
0x4ea1   : > { %v7168_v59 = vpop.permute.xlu1 %7167 }
0x4ea2   : > { %7277 = vrot.lane.b32.xlu0 %v7275_v1, %s13372_s5  ;;  %v7170_v39 = vmul.f32 %v10150_v45, %v7168_v59 }
0x4ea4   : > { %7172 = vrot.lane.b32.xlu1 %v7170_v39, %s13372_s5 }
0x4f14   : > { %v7278_v15 = vpop.permute.xlu0 %7277 }
0x4f15   : > { %v12933_v58 = vadd.f32 %v7278_v15, %v7270_v17 }
0x4f16   : > { %v7173_v30 = vpop.permute.xlu1 %7172 }
0x4f17   : > { %10151 = vtanh.f32 %v12933_v58  ;;  %v12937_v22 = vadd.f32 %v7173_v30, %v7165_v13 }
0x4f19   : > { %10153 = vtanh.f32 %v12937_v22 }
0x4f24   : > { %v10152_v0 = vpop.eup %10151 }
0x4f25   : > { %7283 = vrot.lane.b32.xlu0 %v10152_v0, %s10766_s20  ;;  %v13028_v0 = vld [vmem:[#allocation19 + $0x70] sm:$0xff] }
0x4f26   : > { %v10154_v14 = vpop.eup %10153 }
0x4f27   : > { %7178 = vrot.lane.b32.xlu1 %v10154_v14, %s10766_s20  ;;  %v13031_v14 = vld [vmem:[#allocation19 + $0x38] sm:$0xff] }
0x4f97   : > { %v7284_v32 = vpop.permute.xlu0 %7283 }
0x4f98   : > { %v7286_v20 = vmul.f32 %v10148_v46, %v7284_v32  ;;  %v13036_v32 = vld [vmem:[#allocation19 + $0x68] sm:$0xff] }
0x4f99   : > { %v7179_v50 = vpop.permute.xlu1 %7178 }
0x4f9a   : > { %v12943_v25 = vadd.f32 %v7286_v20, %v12876_v63  ;;  %v7394_v8 = vrot.slane %v7286_v20, 4  ;;  %v7181_v35 = vmul.f32 %v10150_v45, %v7179_v50  ;;  %v13039_v20 = vld [vmem:[#allocation19 + $0x30] sm:$0xff]  ;;  %v13052_v50 = vld [vmem:[#allocation19 + $0x58] sm:$0xff] }
0x4f9c   : > { %7395 = vrot.lane.b32.xlu0 %v7394_v8, %s10766_s20  ;;  %v12947_v19 = vadd.f32 %v7181_v35, %v12881_v60  ;;  %v7289_v10 = vrot.slane %v7181_v35, 4  ;;  %v13047_v8 = vld [vmem:[#allocation19 + $0x28] sm:$0xff]  ;;  %v13055_v35 = vld [vmem:[#allocation19 + $0x20] sm:$0xff] }
0x4f9e   : > { %7290 = vrot.lane.b32.xlu1 %v7289_v10, %s10766_s20  ;;  %v13063_v10 = vld [vmem:[#allocation19 + $0x18] sm:$0xff] }
0x500e   : > { %v7396_v41 = vpop.permute.xlu0 %7395 }
0x500f   : > { %v7398_v52 = vsel %vm891_vm0, %v12677_v7, %v7396_v41  ;;  %v13068_v41 = vld [vmem:[#allocation19 + $0x48] sm:$0xff] }
0x5010   : > { %v7400_v18 = vrot.slane %v7398_v52, 4  ;;  %v7291_v42 = vpop.permute.xlu1 %7290  ;;  %v13071_v52 = vld [vmem:[#allocation19 + $0x10] sm:$0xff] }
0x5011   : > { %v7293_v63 = vsel %vm891_vm0, %v12682_v11, %v7291_v42  ;;  %v13079_v42 = vld [vmem:[#allocation19 + $0x8] sm:$0xff] }
0x5012   : > { %9464 = vmatmul.mubr.msk.f32.vlgmr.msra.gmra.mxu0 %vm6460_vm4, %v7400_v18  ;;  %v7295_v26 = vrot.slane %v7293_v63, 4  ;;  %v13076_v18 = vld [vmem:[#allocation19 + $0x40] sm:$0xff] }
0x5013   : > { %9486 = vmatpush3.msra.mxu0 %v12624_v2  ;;  %9501 = vmatprep.mubr.msk.f32.mxu0 %vm10763_vm1, %v13374_v27  ;;  %v13086_v63 = vld [vmem:[#allocation19] sm:$0xff] }
0x5014   : > { %9487 = vmatprep.subr.mxu0 %v13374_v27  ;;  %9445 = vmatmul.mubr.msk.f32.vlgmr.msra.gmra.mxu1 %vm6460_vm4, %v7295_v26 }
0x5015   : > { %9488 = vmatpush3.msra.mxu0 %v12627_v61  ;;  %9467 = vmatpush3.msra.mxu1 %v12606_v9 }
0x5016   : > { %9489 = vmatprep.subr.mxu0 %v13374_v27  ;;  %9468 = vmatprep.subr.mxu1 %v13374_v27 }
0x5017   : > { %9490 = vmatpush3.msra.mxu0 %v12633_v28  ;;  %9469 = vmatpush3.msra.mxu1 %v12610_v47 }
0x5018   : > { %9491 = vmatprep.subr.mxu0 %v13374_v27  ;;  %9470 = vmatprep.subr.mxu1 %v13374_v27 }
0x5019   : > { %9492 = vmatpush3.msra.mxu0 %v12637_v62  ;;  %9471 = vmatpush3.msra.mxu1 %v12615_v3 }
0x501a   : > { %9493 = vmatprep.subr.mxu0 %v13374_v27  ;;  %9472 = vmatprep.subr.mxu1 %v13374_v27 }
0x501b   : > { %9494 = vmatpush3.msra.mxu0 %v12641_v44  ;;  %9473 = vmatpush3.msra.mxu1 %v12619_v6 }
0x501c   : > { %9495 = vmatprep.subr.mxu0 %v13374_v27  ;;  %9474 = vmatprep.subr.mxu1 %v13374_v27 }
0x501d   : > { %9496 = vmatpush3.msra.mxu0 %v12649_v49  ;;  %9475 = vmatpush3.msra.mxu1 %v12647_v43 }
0x501e   : > { %9497 = vmatprep.subr.mxu0 %v13374_v27  ;;  %9476 = vmatprep.subr.mxu1 %v13374_v27 }
0x501f   : > { %9498 = vmatpush3.msra.mxu0 %v12657_v24  ;;  %9477 = vmatpush3.msra.mxu1 %v12655_v40 }
0x5020   : > { %9499 = vmatprep.subr.mxu0 %v13374_v27  ;;  %9478 = vmatprep.subr.mxu1 %v13374_v27 }
0x5021   : > { %9500 = vmatpush3.msra.mxu0 %v12663_v31  ;;  %9479 = vmatpush3.msra.mxu1 %v12659_v16 }
0x5022   : > { %9482 = vmatprep.mubr.msk.f32.mxu1 %vm10763_vm1, %v13374_v27  ;;  %9480 = vmatprep.subr.mxu1 %v13374_v27 }
0x5023   : > { %9523 = vmatprep.subr.mxu0 %v13374_v27  ;;  %9481 = vmatpush3.msra.mxu1 %v12669_v36 }
0x5024   : > { %9504 = vmatprep.subr.mxu1 %v13374_v27 }
0x50d2   : > { %v7469_v9 = vpop.f32.mrf.mxu0 }
0x50d3   : > { %v7470_v47 = vadd.f32 %v7469_v9, %v12724_v34 }
0x50d4   : > { %v9465_v3 = vpop.f32.mrf.mxu0  ;;  %v7364_v6 = vpop.f32.mrf.mxu1 }
0x50d5   : > { %10155 = vtanh.f32 %v7470_v47  ;;  %v7365_v2 = vadd.f32 %v7364_v6, %v12726_v48  ;;  %v8790_v44 = vmul.f32 -1.442695, %v7470_v47 }
0x50d6   : > { %v9446_v61 = vpop.f32.mrf.mxu1 }
0x50d7   : > { %10157 = vtanh.f32 %v7365_v2  ;;  %v8788_v43 = vmul.f32 -1.442695, %v7365_v2 }
0x50d8   : > { %10159 = vpow2.f32 %v8790_v44 }
0x50d9   : > { %10161 = vpow2.f32 %v8788_v43 }
0x50e2   : > { %v10156_v28 = vpop.eup %10155 }
0x50e3   : > { %7482 = vrot.lane.b32.xlu0 %v10156_v28, %s10766_s20 }
0x50e4   : > { %v10158_v62 = vpop.eup %10157 }
0x50e5   : > { %7377 = vrot.lane.b32.xlu1 %v10158_v62, %s10766_s20  ;;  %v10160_v49 = vpop.eup %10159 }
0x50e6   : > { %v10162_v40 = vpop.eup %10161  ;;  %v7476_v24 = vadd.f32 1.0, %v10160_v49 }
0x50e7   : > { %v7371_v16 = vadd.f32 1.0, %v10162_v40 }
0x50e8   : > { %10163 = vrcp.f32 %v7476_v24 }
0x50e9   : > { %10165 = vrcp.f32 %v7371_v16 }
0x50f5   : > { %v10164_v31 = vpop.eup %10163 }
0x50f6   : > { %v10166_v53 = vpop.eup %10165  ;;  %v7480_v21 = vmul.f32 %v10164_v31, %v12933_v58 }
0x50f7   : > { %v7375_v12 = vmul.f32 %v10166_v53, %v12937_v22  ;;  %v13021_v22 = vld [vmem:[#allocation19 + $0x78] sm:$0xff] }
0x5155   : > { %v7483_v36 = vpop.permute.xlu0 %7482 }
0x5156   : > { %v7485_v60 = vmul.f32 %v10164_v31, %v7483_v36 }
0x5157   : > { %v7378_v5 = vpop.permute.xlu1 %7377 }
0x5158   : > { %7487 = vrot.lane.b32.xlu0 %v7485_v60, %s13372_s5  ;;  %v7380_v56 = vmul.f32 %v10166_v53, %v7378_v5 }
0x515a   : > { %7382 = vrot.lane.b32.xlu1 %v7380_v56, %s13372_s5 }
0x51ca   : > { %v7488_v29 = vpop.permute.xlu0 %7487 }
0x51cb   : > { %v12999_v55 = vadd.f32 %v7488_v29, %v7480_v21 }
0x51cc   : > { %v7383_v57 = vpop.permute.xlu1 %7382 }
0x51cd   : > { %10167 = vtanh.f32 %v12999_v55  ;;  %v13003_v4 = vadd.f32 %v7383_v57, %v7375_v12 }
0x51cf   : > { %10169 = vtanh.f32 %v13003_v4 }
0x51da   : > { %v10168_v54 = vpop.eup %10167 }
0x51db   : > { %7493 = vrot.lane.b32.xlu0 %v10168_v54, %s10766_s20 }
0x51dc   : > { %v10170_v23 = vpop.eup %10169 }
0x51dd   : > { %7388 = vrot.lane.b32.xlu1 %v10170_v23, %s10766_s20 }
0x524d   : > { %v7494_v33 = vpop.permute.xlu0 %7493 }
0x524e   : > { %v7496_v51 = vmul.f32 %v10164_v31, %v7494_v33 }
0x524f   : > { %v7389_v38 = vpop.permute.xlu1 %7388 }
0x5250   : > { %v13009_v37 = vadd.f32 %v7496_v51, %v12943_v25  ;;  %v7604_v46 = vrot.slane %v7496_v51, 3  ;;  %v7391_v1 = vmul.f32 %v10166_v53, %v7389_v38  ;;  %v13044_v25 = vld [vmem:[#allocation19 + $0x60] sm:$0xff] }
0x5252   : > { %7605 = vrot.lane.b32.xlu0 %v7604_v46, %s10766_s20  ;;  %v13013_v45 = vadd.f32 %v7391_v1, %v12947_v19  ;;  %v7499_v59 = vrot.slane %v7391_v1, 3  ;;  %v13060_v19 = vld [vmem:[#allocation19 + $0x50] sm:$0xff] }
0x5254   : > { %7500 = vrot.lane.b32.xlu1 %v7499_v59, %s10766_s20 }
0x52c4   : > { %v7606_v39 = vpop.permute.xlu0 %7605 }
0x52c5   : > { %v7608_v17 = vsel %vm891_vm0, %v12677_v7, %v7606_v39 }
0x52c6   : > { %v7610_v15 = vrot.slane %v7608_v17, 5  ;;  %v7501_v58 = vpop.permute.xlu1 %7500 }
0x52c7   : > { %v7503_v13 = vsel %vm891_vm0, %v12682_v11, %v7501_v58 }
0x52c8   : > { %9502 = vmatmul.mubr.msk.f32.vlgmr.msra.gmra.mxu0 %vm6460_vm4, %v7610_v15  ;;  %v7505_v30 = vrot.slane %v7503_v13, 5  ;;  %v13156_v13 = vld [vmem:[#allocation21 + $0x1] sm:$0x1] }
0x52c9   : > { %9524 = vmatpush3.msra.mxu0 %v13021_v22  ;;  %9539 = vmatprep.mubr.msk.f32.mxu0 %vm10763_vm1, %v13374_v27 }
0x52ca   : > { %9525 = vmatprep.subr.mxu0 %v13374_v27  ;;  %9483 = vmatmul.mubr.msk.f32.vlgmr.msra.gmra.mxu1 %vm6460_vm4, %v7505_v30 }
0x52cb   : > { %9526 = vmatpush3.msra.mxu0 %v13028_v0  ;;  %9505 = vmatpush3.msra.mxu1 %v13031_v14 }
0x52cc   : > { %9527 = vmatprep.subr.mxu0 %v13374_v27  ;;  %9506 = vmatprep.subr.mxu1 %v13374_v27 }
0x52cd   : > { %9528 = vmatpush3.msra.mxu0 %v13036_v32  ;;  %9507 = vmatpush3.msra.mxu1 %v13039_v20 }
0x52ce   : > { %9529 = vmatprep.subr.mxu0 %v13374_v27  ;;  %9508 = vmatprep.subr.mxu1 %v13374_v27 }
0x52cf   : > { %9530 = vmatpush3.msra.mxu0 %v13044_v25  ;;  %9509 = vmatpush3.msra.mxu1 %v13047_v8 }
0x52d0   : > { %9531 = vmatprep.subr.mxu0 %v13374_v27  ;;  %9510 = vmatprep.subr.mxu1 %v13374_v27 }
0x52d1   : > { %9532 = vmatpush3.msra.mxu0 %v13052_v50  ;;  %9511 = vmatpush3.msra.mxu1 %v13055_v35 }
0x52d2   : > { %9533 = vmatprep.subr.mxu0 %v13374_v27  ;;  %9512 = vmatprep.subr.mxu1 %v13374_v27 }
0x52d3   : > { %9534 = vmatpush3.msra.mxu0 %v13060_v19  ;;  %9513 = vmatpush3.msra.mxu1 %v13063_v10 }
0x52d4   : > { %9535 = vmatprep.subr.mxu0 %v13374_v27  ;;  %9514 = vmatprep.subr.mxu1 %v13374_v27 }
0x52d5   : > { %9536 = vmatpush3.msra.mxu0 %v13068_v41  ;;  %9515 = vmatpush3.msra.mxu1 %v13071_v52 }
0x52d6   : > { %9537 = vmatprep.subr.mxu0 %v13374_v27  ;;  %9516 = vmatprep.subr.mxu1 %v13374_v27 }
0x52d7   : > { %9538 = vmatpush3.msra.mxu0 %v13076_v18  ;;  %9517 = vmatpush3.msra.mxu1 %v13079_v42 }
0x52d8   : > { %9520 = vmatprep.mubr.msk.f32.mxu1 %vm10763_vm1, %v13374_v27  ;;  %9518 = vmatprep.subr.mxu1 %v13374_v27 }
0x52d9   : > { %9561 = vmatprep.subr.mxu0 %v13374_v27  ;;  %9519 = vmatpush3.msra.mxu1 %v13086_v63 }
0x52da   : > { %9542 = vmatprep.subr.mxu1 %v13374_v27 }
0x5388   : > { %v7679_v26 = vpop.f32.mrf.mxu0 }
0x5389   : > { %v7680_v9 = vadd.f32 %v7679_v26, %v12724_v34 }
0x538a   : > { %v9503_v47 = vpop.f32.mrf.mxu0  ;;  %v7574_v3 = vpop.f32.mrf.mxu1 }
0x538b   : > { %10171 = vtanh.f32 %v7680_v9  ;;  %v7575_v6 = vadd.f32 %v7574_v3, %v12726_v48  ;;  %v8794_v62 = vmul.f32 -1.442695, %v7680_v9 }
0x538c   : > { %v9484_v2 = vpop.f32.mrf.mxu1 }
0x538d   : > { %10173 = vtanh.f32 %v7575_v6  ;;  %v8792_v44 = vmul.f32 -1.442695, %v7575_v6 }
0x538e   : > { %10175 = vpow2.f32 %v8794_v62 }
0x538f   : > { %10177 = vpow2.f32 %v8792_v44 }
0x5398   : > { %v10172_v61 = vpop.eup %10171 }
0x5399   : > { %7692 = vrot.lane.b32.xlu0 %v10172_v61, %s10766_s20 }
0x539a   : > { %v10174_v28 = vpop.eup %10173 }
0x539b   : > { %7587 = vrot.lane.b32.xlu1 %v10174_v28, %s10766_s20  ;;  %v10176_v43 = vpop.eup %10175 }
0x539c   : > { %v10178_v49 = vpop.eup %10177  ;;  %v7686_v34 = vadd.f32 1.0, %v10176_v43 }
0x539d   : > { %v7581_v40 = vadd.f32 1.0, %v10178_v49 }
0x539e   : > { %10179 = vrcp.f32 %v7686_v34 }
0x539f   : > { %10181 = vrcp.f32 %v7581_v40 }
0x53ab   : > { %v10180_v24 = vpop.eup %10179 }
0x53ac   : > { %v10182_v31 = vpop.eup %10181  ;;  %v7690_v53 = vmul.f32 %v10180_v24, %v12999_v55 }
0x53ad   : > { %v7585_v21 = vmul.f32 %v10182_v31, %v13003_v4 }
0x540b   : > { %v7693_v48 = vpop.permute.xlu0 %7692 }
0x540c   : > { %v7695_v16 = vmul.f32 %v10180_v24, %v7693_v48 }
0x540d   : > { %v7588_v36 = vpop.permute.xlu1 %7587 }
0x540e   : > { %7697 = vrot.lane.b32.xlu0 %v7695_v16, %s13372_s5  ;;  %v7590_v60 = vmul.f32 %v10182_v31, %v7588_v36 }
0x5410   : > { %7592 = vrot.lane.b32.xlu1 %v7590_v60, %s13372_s5 }
0x5480   : > { %v7698_v5 = vpop.permute.xlu0 %7697 }
0x5481   : > { %v13097_v56 = vadd.f32 %v7698_v5, %v7690_v53 }
0x5482   : > { %v7593_v29 = vpop.permute.xlu1 %7592 }
0x5483   : > { %10183 = vtanh.f32 %v13097_v56  ;;  %v13101_v12 = vadd.f32 %v7593_v29, %v7585_v21 }
0x5485   : > { %10185 = vtanh.f32 %v13101_v12 }
0x5490   : > { %v10184_v57 = vpop.eup %10183 }
0x5491   : > { %7703 = vrot.lane.b32.xlu0 %v10184_v57, %s10766_s20 }
0x5492   : > { %v10186_v54 = vpop.eup %10185 }
0x5493   : > { %7598 = vrot.lane.b32.xlu1 %v10186_v54, %s10766_s20 }
0x5503   : > { %v7704_v23 = vpop.permute.xlu0 %7703 }
0x5504   : > { %v7706_v55 = vmul.f32 %v10180_v24, %v7704_v23 }
0x5505   : > { %v7599_v4 = vpop.permute.xlu1 %7598 }
0x5506   : > { %v13107_v33 = vadd.f32 %v7706_v55, %v13009_v37  ;;  %v7814_v51 = vrot.slane %v7706_v55, 2  ;;  %v7601_v46 = vmul.f32 %v10182_v31, %v7599_v4 }
0x5508   : > { %7815 = vrot.lane.b32.xlu0 %v7814_v51, %s10766_s20  ;;  %v13111_v38 = vadd.f32 %v7601_v46, %v13013_v45  ;;  %v7709_v1 = vrot.slane %v7601_v46, 2 }
0x550a   : > { %7710 = vrot.lane.b32.xlu1 %v7709_v1, %s10766_s20 }
0x557a   : > { %v7816_v59 = vpop.permute.xlu0 %7815 }
0x557b   : > { %v7818_v39 = vsel %vm891_vm0, %v12677_v7, %v7816_v59 }
0x557c   : > { %v7820_v17 = vrot.slane %v7818_v39, 6  ;;  %v7711_v15 = vpop.permute.xlu1 %7710 }
0x557d   : > { %v7713_v37 = vsel %vm891_vm0, %v12682_v11, %v7711_v15 }
0x557e   : > { %9540 = vmatmul.mubr.msk.f32.vlgmr.msra.gmra.mxu0 %vm6460_vm4, %v7820_v17  ;;  %v7715_v58 = vrot.slane %v7713_v37, 6 }
0x557f   : > { %9562 = vmatpush3.msra.mxu0 %v13021_v22  ;;  %9577 = vmatprep.mubr.msk.f32.mxu0 %vm10763_vm1, %v13374_v27 }
0x5580   : > { %9563 = vmatprep.subr.mxu0 %v13374_v27  ;;  %9521 = vmatmul.mubr.msk.f32.vlgmr.msra.gmra.mxu1 %vm6460_vm4, %v7715_v58 }
0x5581   : > { %9564 = vmatpush3.msra.mxu0 %v13028_v0  ;;  %9543 = vmatpush3.msra.mxu1 %v13031_v14  ;;  %v13159_v14 = vld [vmem:[#allocation21] sm:$0x1] }
0x5582   : > { %9565 = vmatprep.subr.mxu0 %v13374_v27  ;;  %9544 = vmatprep.subr.mxu1 %v13374_v27 }
0x5583   : > { %9566 = vmatpush3.msra.mxu0 %v13036_v32  ;;  %9545 = vmatpush3.msra.mxu1 %v13039_v20 }
0x5584   : > { %9567 = vmatprep.subr.mxu0 %v13374_v27  ;;  %9546 = vmatprep.subr.mxu1 %v13374_v27 }
0x5585   : > { %9568 = vmatpush3.msra.mxu0 %v13044_v25  ;;  %9547 = vmatpush3.msra.mxu1 %v13047_v8 }
0x5586   : > { %9569 = vmatprep.subr.mxu0 %v13374_v27  ;;  %9548 = vmatprep.subr.mxu1 %v13374_v27 }
0x5587   : > { %9570 = vmatpush3.msra.mxu0 %v13052_v50  ;;  %9549 = vmatpush3.msra.mxu1 %v13055_v35 }
0x5588   : > { %9571 = vmatprep.subr.mxu0 %v13374_v27  ;;  %9550 = vmatprep.subr.mxu1 %v13374_v27 }
0x5589   : > { %9572 = vmatpush3.msra.mxu0 %v13060_v19  ;;  %9551 = vmatpush3.msra.mxu1 %v13063_v10 }
0x558a   : > { %9573 = vmatprep.subr.mxu0 %v13374_v27  ;;  %9552 = vmatprep.subr.mxu1 %v13374_v27 }
0x558b   : > { %9574 = vmatpush3.msra.mxu0 %v13068_v41  ;;  %9553 = vmatpush3.msra.mxu1 %v13071_v52 }
0x558c   : > { %9575 = vmatprep.subr.mxu0 %v13374_v27  ;;  %9554 = vmatprep.subr.mxu1 %v13374_v27 }
0x558d   : > { %9576 = vmatpush3.msra.mxu0 %v13076_v18  ;;  %9555 = vmatpush3.msra.mxu1 %v13079_v42 }
0x558e   : > { %9558 = vmatprep.mubr.msk.f32.mxu1 %vm10763_vm1, %v13374_v27  ;;  %9556 = vmatprep.subr.mxu1 %v13374_v27 }
0x558f   : > { %9591 = vmatprep.subr.mxu0 %v13374_v27  ;;  %9557 = vmatpush3.msra.mxu1 %v13086_v63 }
0x5590   : > { %9580 = vmatprep.subr.mxu1 %v13374_v27 }
0x563e   : > { %v7889_v45 = vpop.f32.mrf.mxu0 }
0x563f   : > { %v7890_v30 = vadd.f32 %v13156_v13, %v7889_v45 }
0x5640   : > { %v9541_v22 = vpop.f32.mrf.mxu0  ;;  %v7784_v0 = vpop.f32.mrf.mxu1 }
0x5641   : > { %10187 = vtanh.f32 %v7890_v30  ;;  %v7785_v32 = vadd.f32 %v13159_v14, %v7784_v0  ;;  %v8798_v50 = vmul.f32 -1.442695, %v7890_v30 }
0x5642   : > { %v9522_v20 = vpop.f32.mrf.mxu1 }
0x5643   : > { %10189 = vtanh.f32 %v7785_v32  ;;  %v8796_v35 = vmul.f32 -1.442695, %v7785_v32  ;;  %v8138_v20 = vld [vmem:[#allocation22 + $0x18] sm:$0xff] }
0x5644   : > { %10191 = vpow2.f32 %v8798_v50  ;;  %v8136_v50 = vld [vmem:[#allocation22 + $0x8] sm:$0xff] }
0x5645   : > { %10193 = vpow2.f32 %v8796_v35  ;;  %v8135_v35 = vld [vmem:[#allocation22] sm:$0xff] }
0x564e   : > { %v10188_v25 = vpop.eup %10187 }
0x564f   : > { %7902 = vrot.lane.b32.xlu0 %v10188_v25, %s10766_s20  ;;  %v8137_v25 = vld [vmem:[#allocation22 + $0x10] sm:$0xff] }
0x5650   : > { %v10190_v8 = vpop.eup %10189 }
0x5651   : > { %7797 = vrot.lane.b32.xlu1 %v10190_v8, %s10766_s20  ;;  %v10192_v19 = vpop.eup %10191 }
0x5652   : > { %v10194_v10 = vpop.eup %10193  ;;  %v7896_v41 = vadd.f32 1.0, %v10192_v19 }
0x5653   : > { %v7791_v52 = vadd.f32 1.0, %v10194_v10  ;;  %v8226_v10 = vld [vmem:[#allocation22 + $0x38] sm:$0xff] }
0x5654   : > { %10195 = vrcp.f32 %v7896_v41 }
0x5655   : > { %10197 = vrcp.f32 %v7791_v52 }
0x5661   : > { %v10196_v18 = vpop.eup %10195 }
0x5662   : > { %v10198_v26 = vpop.eup %10197  ;;  %v7900_v3 = vmul.f32 %v10196_v18, %v13097_v56 }
0x5663   : > { %v7795_v61 = vmul.f32 %v10198_v26, %v13101_v12 }
0x56c1   : > { %v7903_v42 = vpop.permute.xlu0 %7902 }
0x56c2   : > { %v7905_v63 = vmul.f32 %v10196_v18, %v7903_v42 }
0x56c3   : > { %v7798_v9 = vpop.permute.xlu1 %7797 }
0x56c4   : > { %7907 = vrot.lane.b32.xlu0 %v7905_v63, %s13372_s5  ;;  %v7800_v47 = vmul.f32 %v10198_v26, %v7798_v9 }
0x56c6   : > { %7802 = vrot.lane.b32.xlu1 %v7800_v47, %s13372_s5 }
0x5736   : > { %v7908_v6 = vpop.permute.xlu0 %7907 }
0x5737   : > { %v7910_v2 = vadd.f32 %v7908_v6, %v7900_v3 }
0x5738   : > { %v7803_v28 = vpop.permute.xlu1 %7802 }
0x5739   : > { %10199 = vtanh.f32 %v7910_v2  ;;  %v7805_v62 = vadd.f32 %v7803_v28, %v7795_v61  ;;  %v8225_v61 = vld [vmem:[#allocation22 + $0x30] sm:$0xff]  ;;  %v8224_v28 = vld [vmem:[#allocation22 + $0x28] sm:$0xff] }
0x573b   : > { %10201 = vtanh.f32 %v7805_v62 }
0x5746   : > { %v10200_v44 = vpop.eup %10199 }
0x5747   : > { %7913 = vrot.lane.b32.xlu0 %v10200_v44, %s10766_s20  ;;  %v8312_v44 = vld [vmem:[%s13384_s10 + $0x18] sm:$0xff] }
0x5748   : > { %v10202_v43 = vpop.eup %10201 }
0x5749   : > { %7808 = vrot.lane.b32.xlu1 %v10202_v43, %s10766_s20  ;;  %v8803_v43 = vld [vmem:[#allocation24] ss:$0 sm:$0xff] }
0x57b9   : > { %v7914_v49 = vpop.permute.xlu0 %7913 }
0x57ba   : > { %v7916_v34 = vmul.f32 %v10196_v18, %v7914_v49 }
0x57bb   : > { %v7809_v48 = vpop.permute.xlu1 %7808 }
0x57bc   : > { %v13171_v40 = vadd.f32 %v7916_v34, %v13107_v33  ;;  %v8024_v24 = vrot.slane %v7916_v34, 1  ;;  %v7811_v16 = vmul.f32 %v10198_v26, %v7809_v48  ;;  %v8311_v48 = vld [vmem:[%s13384_s10 + $0x10] sm:$0xff] }
0x57be   : > { %8025 = vrot.lane.b32.xlu0 %v8024_v24, %s10766_s20  ;;  %v13175_v31 = vadd.f32 %v7811_v16, %v13111_v38  ;;  %v7919_v36 = vrot.slane %v7811_v16, 1  ;;  %v8310_v16 = vld [vmem:[%s13384_s10 + $0x8] sm:$0xff] }
0x57c0   : > { %7920 = vrot.lane.b32.xlu1 %v7919_v36, %s10766_s20  ;;  %v8805_v36 = vld [vmem:[#allocation24 + $0x1] ss:$0 sm:$0xff] }
0x5830   : > { %v8026_v60 = vpop.permute.xlu0 %8025 }
0x5831   : > { %v8028_v53 = vsel %vm891_vm0, %v12677_v7, %v8026_v60 }
0x5832   : > { %v8030_v5 = vrot.slane %v8028_v53, 7  ;;  %v7921_v56 = vpop.permute.xlu1 %7920 }
0x5833   : > { %v7923_v21 = vsel %vm891_vm0, %v12682_v11, %v7921_v56 }
0x5834   : > { %9578 = vmatmul.mubr.msk.f32.vlgmr.msra.gmra.mxu0 %vm6460_vm4, %v8030_v5  ;;  %v7925_v29 = vrot.slane %v7923_v21, 7  ;;  %v8807_v21 = vld [vmem:[#allocation25] ss:$0 sm:$0xff] }
0x5835   : > { %9599 = vmatprep.mubr.msk.f32.mxu0 %vm10763_vm1, %v13374_v27  ;;  %9592 = vmatpush3.msra.mxu0 %v8226_v10 }
0x5836   : > { %9559 = vmatmul.mubr.msk.f32.vlgmr.msra.gmra.mxu1 %vm6460_vm4, %v7925_v29  ;;  %9593 = vmatprep.subr.mxu0 %v13374_v27 }
0x5837   : > { %9588 = vmatprep.mubr.msk.f32.mxu1 %vm10763_vm1, %v13374_v27  ;;  %9581 = vmatpush3.msra.mxu1 %v8138_v20 }
0x5838   : > { %9582 = vmatprep.subr.mxu1 %v13374_v27  ;;  %9594 = vmatpush3.msra.mxu0 %v8225_v61 }
0x5839   : > { %9583 = vmatpush3.msra.mxu1 %v8137_v25  ;;  %9595 = vmatprep.subr.mxu0 %v13374_v27 }
0x583a   : > { %9584 = vmatprep.subr.mxu1 %v13374_v27  ;;  %9596 = vmatpush3.msra.mxu0 %v8224_v28 }
0x583b   : > { %9585 = vmatpush3.msra.mxu1 %v8136_v50  ;;  %9597 = vmatprep.subr.mxu0 %v13374_v27 }
0x583c   : > { %9586 = vmatprep.subr.mxu1 %v13374_v27 }
0x583d   : > { %9587 = vmatpush3.msra.mxu1 %v8135_v35 }
0x583e   : > { %9602 = vmatprep.subr.mxu1 %v13374_v27 }
0x58f4   : > { %v8099_v12 = vpop.f32.mrf.mxu0 }
0x58f5   : > { %v8100_v57 = vadd.f32 %v13156_v13, %v8099_v12 }
0x58f6   : > { %v9579_v7 = vpop.f32.mrf.mxu0  ;;  %v7994_v54 = vpop.f32.mrf.mxu1 }
0x58f7   : > { %10203 = vtanh.f32 %v8100_v57  ;;  %v7995_v23 = vadd.f32 %v13159_v14, %v7994_v54  ;;  %v8802_v51 = vmul.f32 -1.442695, %v8100_v57 }
0x58f8   : > { %v9560_v11 = vpop.f32.mrf.mxu1 }
0x58f9   : > { %10205 = vtanh.f32 %v7995_v23  ;;  %v8800_v4 = vmul.f32 -1.442695, %v7995_v23 }
0x58fa   : > { %10207 = vpow2.f32 %v8802_v51 }
0x58fb   : > { %10209 = vpow2.f32 %v8800_v4 }
0x5904   : > { %v10204_v55 = vpop.eup %10203 }
0x5905   : > { %8112 = vrot.lane.b32.xlu0 %v10204_v55, %s10766_s20 }
0x5906   : > { %v10206_v33 = vpop.eup %10205 }
0x5907   : > { %8007 = vrot.lane.b32.xlu1 %v10206_v33, %s10766_s20  ;;  %v10208_v46 = vpop.eup %10207 }
0x5908   : > { %v10210_v38 = vpop.eup %10209  ;;  %v8106_v1 = vadd.f32 1.0, %v10208_v46 }
0x5909   : > { %v8001_v59 = vadd.f32 1.0, %v10210_v38 }
0x590a   : > { %10211 = vrcp.f32 %v8106_v1 }
0x590b   : > { %10213 = vrcp.f32 %v8001_v59 }
0x5917   : > { %v10212_v39 = vpop.eup %10211 }
0x5918   : > { %v10214_v37 = vpop.eup %10213  ;;  %v8110_v13 = vmul.f32 %v10212_v39, %v7910_v2 }
0x5919   : > { %v8005_v0 = vmul.f32 %v10214_v37, %v7805_v62  ;;  %v8223_v62 = vld [vmem:[#allocation22 + $0x20] sm:$0xff] }
0x591a   : > { %9598 = vmatpush3.msra.mxu0 %v8223_v62 }
0x5977   : > { %v8113_v17 = vpop.permute.xlu0 %8112 }
0x5978   : > { %v8115_v15 = vmul.f32 %v10212_v39, %v8113_v17 }
0x5979   : > { %v8008_v58 = vpop.permute.xlu1 %8007 }
0x597a   : > { %8117 = vrot.lane.b32.xlu0 %v8115_v15, %s13372_s5  ;;  %v8010_v45 = vmul.f32 %v10214_v37, %v8008_v58 }
0x597c   : > { %8012 = vrot.lane.b32.xlu1 %v8010_v45, %s13372_s5 }
0x59ec   : > { %v8118_v30 = vpop.permute.xlu0 %8117 }
0x59ed   : > { %v8120_v22 = vadd.f32 %v8118_v30, %v8110_v13 }
0x59ee   : > { %v8013_v14 = vpop.permute.xlu1 %8012 }
0x59ef   : > { %10215 = vtanh.f32 %v8120_v22  ;;  %v8015_v32 = vadd.f32 %v8013_v14, %v8005_v0 }
0x59f1   : > { %10217 = vtanh.f32 %v8015_v32 }
0x59fc   : > { %v10216_v8 = vpop.eup %10215 }
0x59fd   : > { %8123 = vrot.lane.b32.xlu0 %v10216_v8, %s10766_s20 }
0x59fe   : > { %v10218_v19 = vpop.eup %10217 }
0x59ff   : > { %8018 = vrot.lane.b32.xlu1 %v10218_v19, %s10766_s20 }
0x5a6f   : > { %v8124_v41 = vpop.permute.xlu0 %8123 }
0x5a70   : > { %v8126_v52 = vmul.f32 %v10212_v39, %v8124_v41 }
0x5a71   : > { %v8019_v42 = vpop.permute.xlu1 %8018 }
0x5a72   : > { %v8127_v18 = vadd.f32 %v8126_v52, %v13171_v40  ;;  %v8021_v63 = vmul.f32 %v10214_v37, %v8019_v42 }
0x5a74   : > { %v8129_v26 = vmul.f32 0.125, %v8127_v18  ;;  %v8022_v9 = vadd.f32 %v8021_v63, %v13175_v31  ;;  %v8309_v31 = vld [vmem:[%s13384_s10] sm:$0xff] }
0x5a76   : > { %v8131_v47 = vrot.slane %v8129_v26, 7  ;;  %v8128_v3 = vmul.f32 0.125, %v8022_v9 }
0x5a78   : > { %v8134_v6 = vsel %vm8133_vm5, %v8128_v3, %v8131_v47 }
0x5a79   : > { %8147 = vrot.lane.b32.xlu0 %v8134_v6, %s13372_s5  ;;  %s13385_s5 = sld [smem:[#allocation55_spill]] }
0x5a7f   : > { %s13231_s29 = scalar_lea.hbm %s13385_s5, %s8810_s8 }
0x5aeb   : > { %v8148_v2 = vpop.permute.xlu0 %8147 }
0x5aec   : > { %9589 = vmatmul.mubr.msk.f32.vlgmr.msra.gmra.mxu1 %vm891_vm0, %v8148_v2 }
0x5aed   : > { %9610 = vmatprep.mubr.msk.f32.mxu1 %vm10763_vm1, %v13374_v27  ;;  %9603 = vmatpush3.msra.mxu1 %v8312_v44 }
0x5aee   : > { %9604 = vmatprep.subr.mxu1 %v13374_v27 }
0x5aef   : > { %9605 = vmatpush3.msra.mxu1 %v8311_v48 }
0x5af0   : > { %9606 = vmatprep.subr.mxu1 %v13374_v27 }
0x5af1   : > { %9607 = vmatpush3.msra.mxu1 %v8310_v16 }
0x5af2   : > { %9608 = vmatprep.subr.mxu1 %v13374_v27 }
0x5af3   : > { %9609 = vmatpush3.msra.mxu1 %v8309_v31 }
0x5bac   : > { %v8217_v49 = vpop.f32.mrf.mxu1 }
0x5bad   : > { %v8218_v34 = vadd.f32 %v8803_v43, %v8217_v49 }
0x5bae   : > { %v9590_v40 = vpop.f32.mrf.mxu1 }
0x5baf   : > { %v8221_v24 = vmax.f32 %v8218_v34, 0.0 }
0x5bb1   : > { %9600 = vmatmul.mubr.msk.f32.vlgmr.msra.gmra.mxu0 %vm891_vm0, %v8221_v24 }
0x5c71   : > { %v8304_v60 = vpop.f32.mrf.mxu0 }
0x5c72   : > { %v8305_v53 = vadd.f32 %v8805_v36, %v8304_v60 }
0x5c73   : > { %v9601_v5 = vpop.f32.mrf.mxu0 }
0x5c74   : > { %v8308_v56 = vmax.f32 %v8305_v53, 0.0 }
0x5c76   : > { %9611 = vmatmul.mubr.msk.f32.vlgmr.msra.gmra.mxu1 %vm891_vm0, %v8308_v56 }
0x5d36   : > { %v8389_v27 = vpop.f32.mrf.mxu1 }
0x5d37   : > { %v8390_v29 = vadd.f32 %v8807_v21, %v8389_v27 }
0x5d38   : > { %v9612_v12 = vpop.f32.mrf.mxu1 }
0x5d39   : > { %8394 = vst.msk [vmem:[%s866_s6] sm:$0x3] %vm8393_vm6, %v8390_v29 }
0x5d3a   : > { %10660 = shalt.err (!%p10657_p4)
}
0x5d3b   : > { %s10661_s12 = scalar_lea.hbm %s13231_s29, 32  ;;  %s10665_s6 = scalar_lea.hbm %s13385_s5, 64 }
0x5d3c   : > { %p10662_p9 = scmp.ne.s32.totalorder %s13231_s29, %s10661_s12  ;;  %p10666_p2 = scmp.lt.s32.totalorder %s13231_s29, %s13385_s5 }
0x5d3d   : > { %p10667_p1 = scmp.lt.s32.totalorder %s10665_s6, %s10661_s12 }
0x5d3e   : > { %p10663_p7 = pnand %p10662_p9, %p13386_p10 }
0x5d3f   : > { %p10668_p3 = por %p10667_p1, %p10666_p2 }
0x5d40   : > { %p10664_p13 = pneg %p10663_p7 }
0x5d42   : > { %p10669_p6 = pnand %p10668_p3, %p10664_p13 }
0x5d44   : > { %10672 = shalt.err (!%p10669_p6)
}
0x5d45   : > { %9667 = dma.vmem_to_hbm [thread:$0]  (%p13386_p10), %s8410_s0, 32, %s13231_s29, %s8396_s18  }
0x5d46 PF: > { %s8421_s7 = sand.u32 1, %s10727_s1   ;;  %p13387_p11 = scmp.ne.s32.totalorder %s13347_s25, 0 }
0x5d47   : > { %p13388_p12 = scmp.ge.s32.totalorder %s10739_s24, 2  ;;  %s8422_s3 = scalar_lea.sflag [#allocation6], %s8421_s7 }
0x5d49   : > { %p9714_p0 = pnand %p13388_p12, %p13387_p11 }
0x5d4b   : > { %p9715_p5 = pneg %p9714_p0 }
0x5d4d   : > { %10722 = dma.done.wait (%p9715_p5), %s8422_s3, 32  }
0x5d4e   : > { %10724 = vsyncadd (%p9715_p5), %s8422_s3, 4294967264  ;;  %p40_p8 = scmp.ge.s32.totalorder %s11058_s4, 4   ;;  %s13389_s1 = smov %s10731_s22 }
0x5d4f   : > { %s13390_s22 = smov %s10735_s23  ;;  %s13391_s23 = smov %s11069_s21 }
0x5d50   : > { %s13392_s24 = smov %s11058_s4  ;;  %42 = sbr.rel (!%p40_p8) target bundleno = 29 (0x1d), region = 217 }
0x5d55   :  { %8427 = vsyncpa [#allocation5], 1 }
0x5d56   :  { %8429 = vsyncpa [#allocation5 + $0x1], 1 }
0x5d57   :  { %8430 = vsyncpa [#allocation8], 1 }
0x5d58   :  { %8431 = vsyncpa [#allocation11], 1 }
0x5d59   :  { %8432 = vsyncpa [#allocation14], 1 }
0x5d5a   :  { %8433 = vsyncpa [#allocation17], 1 }
0x5d5b   :  { %8434 = vsyncpa [#allocation20], 1 }
0x5d5c   :  { %8435 = vsyncpa [#allocation23], 1 }
0x5d5d   :  { %8436 = vsyncpa [#allocation26], 1 }
0x5d5e   :  { %8437 = vsyncpa [#allocation6], 1 }
0x5d5f   :  { %8439 = vsyncpa [#allocation6 + $0x1], 1 }

</bundles_post_ra>
